<compile_context>
chip_gen: v7x
topology: tpu7x:2x2x1
jax: 0.10.0
libtpu: 0.0.40
codegen_flags: <defaults>
</compile_context>

<pallas_src>
from functools import partial
import numpy as np
import jax
import jax.numpy as jnp
from jax.experimental import pallas as pl
from jax.experimental.pallas import tpu as pltpu


# ----------------------------- synthetic config -------------------------------------
class CFG:
    num_hidden = 32          # cfg.net.num_hidden
    num_blocks = 2           # cfg.net.num_blocks
    grid_resolution = 8      # cfg.gridifier.grid_resolution
    kernel_size = 3          # cfg.conv.kernel.size
    num_neighbors = 8        # cfg.gridifier.num_neighbors
    num_backward_neighbors = 0
    in_channels = 4          # point feature channels
    out_channels = 4         # segmentation classes
    batch_size = 2
    points_per_sample = 64
    nonlinearity = "ReLU"    # cfg.net.nonlinearity
    bn_eps = 1e-5


def _round_up(x, m):
    return ((x + m - 1) // m) * m


# ======================================================================================
# Pallas kernel 1: fused bipartite message passing (+ optional fused classifier head)
# ======================================================================================
def _bipartite_kernel(fnb_ref, rel_ref, w_ref, b_ref, o_ref, *, k, n_layers):
    rows = fnb_ref.shape[0]          # tm * k
    H = o_ref.shape[-1]              # packed width (= num_hidden)

    rel = rel_ref[...]               # (rows, 3)

    # ---- position embedding, layer 1: K=3 contraction done as VPU broadcast-FMAs ----
    w0 = w_ref[0]                    # (H, H), only first 3 rows are real
    pe = (jnp.broadcast_to(rel[:, 0:1], (rows, H)) * w0[0:1, :]
          + jnp.broadcast_to(rel[:, 1:2], (rows, H)) * w0[1:2, :]
          + jnp.broadcast_to(rel[:, 2:3], (rows, H)) * w0[2:3, :]
          + b_ref[0])
    pe = jnp.maximum(pe, 0.0)
    pe = jnp.dot(pe, w_ref[1], preferred_element_type=jnp.float32) + b_ref[1]

    # ---- conditioning + message MLP ----
    h = fnb_ref[...] * pe
    m = jnp.maximum(jnp.dot(h, w_ref[2], preferred_element_type=jnp.float32) + b_ref[2], 0.0)
    m = jnp.dot(m, w_ref[3], preferred_element_type=jnp.float32) + b_ref[3]

    # ---- mean over the k neighbors ----
    tm_rows = o_ref.shape[0]
    m = jnp.mean(m.reshape(tm_rows, k, H), axis=1)

    # ---- update MLP ----
    u = jnp.maximum(jnp.dot(m, w_ref[4], preferred_element_type=jnp.float32) + b_ref[4], 0.0)
    u = jnp.dot(u, w_ref[5], preferred_element_type=jnp.float32) + b_ref[5]

    # ---- optional fused classifier head (to_sparse path) ----
    if n_layers >= 7:
        u = jnp.dot(u, w_ref[6], preferred_element_type=jnp.float32) + b_ref[6]

    o_ref[...] = u.astype(o_ref.dtype)


def pallas_bipartite(fnb, rel, w_pack, b_pack, k):
    # fnb: (M, k, C) neighbor features (C = packed width), rel: (M, k, 3) -> (M, C)
    M, kk, C = fnb.shape
    assert kk == k
    assert w_pack.shape[-1] == C
    S = w_pack.shape[0]

    # keep >= 2 parallel grid steps so v7x's two TensorCores both get work
    tm = 128 if (M % 256 == 0) else M // 2
    assert M % tm == 0 and (M // tm) >= 2, \
        "TODO(synk): general point counts need row padding + masked mean"

    fnb_flat = fnb.reshape(M * k, C)
    rel_flat = rel.reshape(M * k, 3)

    return pl.pallas_call(
        partial(_bipartite_kernel, k=k, n_layers=S),
        out_shape=jax.ShapeDtypeStruct((M, C), jnp.float32),
        grid_spec=pltpu.PrefetchScalarGridSpec(
            num_scalar_prefetch=0,
            grid=(M // tm,),
            in_specs=[
                pl.BlockSpec((tm * k, C), lambda i: (i, 0)),
                pl.BlockSpec((tm * k, 3), lambda i: (i, 0)),
                pl.BlockSpec((S, C, C), lambda i: (0, 0, 0)),   # single packed weight slab
                pl.BlockSpec((S, 1, C), lambda i: (0, 0, 0)),   # single packed bias slab
            ],
            out_specs=pl.BlockSpec((tm, C), lambda i: (i, 0)),
        ),
        compiler_params=pltpu.CompilerParams(dimension_semantics=("parallel",)),
    )(fnb_flat, rel_flat, w_pack, b_pack)


# ======================================================================================
# Pallas kernel 2: fully fused ConvNet3D (conv + BN + ReLU + residual) x blocks + out_norm
# ======================================================================================
def _convnet3d_kernel(g_ref, wc_ref, bc_ref, gm_ref, bt_ref, og_ref, ob_ref,
                      o_ref, act_ref, *, num_blocks, R, halo, eps):
    M, H = o_ref.shape

    # resident activation in VMEM; zero the halo so shifted reads never see garbage
    act_ref[...] = jnp.zeros_like(act_ref)
    act_ref[halo:halo + M, :] = g_ref[...]

    # per-row spatial coordinates (rows flattened as b, z, y, x) for 'same'-padding masks
    row = jax.lax.broadcasted_iota(jnp.int32, (M, 1), 0)
    x_id = row % R
    y_id = (row // R) % R
    z_id = (row // (R * R)) % R

    def _bound(idx, off):
        if off == 1:
            return idx < (R - 1)
        if off == -1:
            return idx > 0
        return None

    taps = []  # (row shift, boundary mask) per 3x3x3 tap, Python-unrolled
    for oz in (-1, 0, 1):
        for oy in (-1, 0, 1):
            for ox in (-1, 0, 1):
                m = None
                for idx, off in ((z_id, oz), (y_id, oy), (x_id, ox)):
                    bm = _bound(idx, off)
                    if bm is not None:
                        m = bm if m is None else (m & bm)
                taps.append((oz * R * R + oy * R + ox, m))

    def _bn(v, gamma, beta, relu):
        mean = jnp.mean(v, axis=0, keepdims=True)
        var = jnp.mean((v - mean) ** 2, axis=0, keepdims=True)   # biased var (PyTorch BN fwd)
        v = (v - mean) * jax.lax.rsqrt(var + eps) * gamma + beta
        return jnp.maximum(v, 0.0) if relu else v

    for blk in range(num_blocks):
        # 3x3x3 'same' conv: accumulate 27 shifted (M,H)x(H,H) dots, no im2col
        acc = jnp.zeros((M, H), jnp.float32)
        for t, (shift, mask) in enumerate(taps):
            xin = act_ref[halo + shift: halo + shift + M, :]
            if mask is not None:
                xin = jnp.where(mask, xin, 0.0)
            acc = acc + jnp.dot(xin, wc_ref[blk * 27 + t],
                                preferred_element_type=jnp.float32)
        y = _bn(acc + bc_ref[blk], gm_ref[blk], bt_ref[blk], relu=True)
        act_ref[halo:halo + M, :] = act_ref[halo:halo + M, :] + y      # residual

    # out_norm (BN, no ReLU) straight into the output
    o_ref[...] = _bn(act_ref[halo:halo + M, :], og_ref[...], ob_ref[...],
                     relu=False).astype(o_ref.dtype)


def pallas_convnet3d(g2d, params, *, B, R, H, num_blocks, eps):
    # g2d: (B*R^3, H) channels-last flattened grid features
    M = B * R ** 3
    halo = _round_up(R * R + R + 1, 8)   # max |row shift| of a 3x3x3 tap, sublane-aligned

    args = (g2d, params["conv_w"], params["conv_b"], params["bn_gamma"],
            params["bn_beta"], params["out_gamma"], params["out_beta"])

    def _full(a):
        return pl.BlockSpec(a.shape, lambda i: (0,) * a.ndim)

    # Single-step grid: the whole ConvNet3D stage runs once with everything VMEM-resident
    # (BatchNorm needs global batch statistics, so it cannot be split across TensorCores
    # without cross-core reduction — acceptable at ~57 MFLOP).
    return pl.pallas_call(
        partial(_convnet3d_kernel, num_blocks=num_blocks, R=R, halo=halo, eps=eps),
        out_shape=jax.ShapeDtypeStruct((M, H), jnp.float32),
        grid_spec=pltpu.PrefetchScalarGridSpec(
            num_scalar_prefetch=0,
            grid=(1,),
            in_specs=[_full(a) for a in args],
            out_specs=pl.BlockSpec((M, H), lambda i: (0, 0)),
            scratch_shapes=[pltpu.VMEM((M + 2 * halo, H), jnp.float32)],
        ),
        compiler_params=pltpu.CompilerParams(dimension_semantics=("arbitrary",)),
    )(*args)


# ----------------------------- glue: kNN & grid --------------------------------------
def knn_indices(src_pos, src_batch, tgt_pos, tgt_batch, k):
    # TODO(synk): replace with a tiled Pallas top-K for production point counts.
    d2 = jnp.sum((tgt_pos[:, None, :] - src_pos[None, :, :]) ** 2, axis=-1)
    mask = tgt_batch[:, None] != src_batch[None, :]
    d2 = jnp.where(mask, jnp.inf, d2)
    _, idx = jax.lax.top_k(-d2, k)
    return idx  # (num_targets, k) indices into src


def create_coordinate_grid(size, domain):
    lin = jnp.linspace(domain[0], domain[1], size)
    gx, gy, gz = jnp.meshgrid(lin, lin, lin, indexing="ij")
    return jnp.stack([gx, gy, gz], axis=-1).reshape(-1, 3)      # (size^3, 3)


# ----------------------------- parameter init / packing ------------------------------
def init_linear(key, fan_in, fan_out, bias_scale=0.01):
    k1, k2 = jax.random.split(key)
    w = jax.random.normal(k1, (fan_in, fan_out), jnp.float32) / np.sqrt(fan_in)
    b = bias_scale * jax.random.normal(k2, (fan_out,), jnp.float32)
    return w, b


def init_bipartite_layers(key, cin, hidden):
    ks = jax.random.split(key, 6)
    return [
        init_linear(ks[0], 3, hidden),        # position-embed layer 1
        init_linear(ks[1], hidden, cin),      # position-embed layer 2 (feature gate)
        init_linear(ks[2], cin, hidden),      # message layer 1
        init_linear(ks[3], hidden, hidden),   # message layer 2
        init_linear(ks[4], hidden, hidden),   # update layer 1
        init_linear(ks[5], hidden, hidden),   # update layer 2
    ]


def pack_layers(layers, width):
    # Pack (w, b) pairs into one (S, width, width) weight slab and one (S, 1, width) bias
    # slab, zero-padded; the zero padding keeps the math exact (see kernel comments).
    S = len(layers)
    W = np.zeros((S, width, width), np.float32)
    Bv = np.zeros((S, 1, width), np.float32)
    for i, (w, b) in enumerate(layers):
        w = np.asarray(w)
        b = np.asarray(b)
        assert w.shape[0] <= width and w.shape[1] <= width
        W[i, :w.shape[0], :w.shape[1]] = w
        Bv[i, 0, :b.shape[-1]] = b
    return jnp.asarray(W), jnp.asarray(Bv)


def init_model_params(key, cfg):
    keys = jax.random.split(key, 4 + cfg.num_blocks)
    H = cfg.num_hidden
    params = {}

    # to_dense_rep bipartite conv (no classifier head)
    params["to_dense_w"], params["to_dense_b"] = pack_layers(
        init_bipartite_layers(keys[0], cfg.in_channels, H), H)

    # ConvNet3D blocks (width_factors all 1 -> channels stay at num_hidden)
    wcs, bcs, gms, bts = [], [], [], []
    for i in range(cfg.num_blocks):
        kw, kb = jax.random.split(keys[1 + i])
        wcs.append(jax.random.normal(kw, (27, H, H), jnp.float32) / np.sqrt(27 * H))
        bcs.append(0.01 * jax.random.normal(kb, (1, H), jnp.float32))
        gms.append(jnp.ones((1, H), jnp.float32))    # BatchNorm3d init: weight=1, bias=0
        bts.append(jnp.zeros((1, H), jnp.float32))
    params["conv_w"] = jnp.concatenate(wcs, axis=0)              # (num_blocks*27, H, H)
    params["conv_b"] = jnp.stack(bcs, axis=0)                    # (num_blocks, 1, H)
    params["bn_gamma"] = jnp.stack(gms, axis=0)
    params["bn_beta"] = jnp.stack(bts, axis=0)
    params["out_gamma"] = jnp.ones((1, H), jnp.float32)
    params["out_beta"] = jnp.zeros((1, H), jnp.float32)

    # to_sparse_rep bipartite conv + fused Linear classifier head
    layers2 = init_bipartite_layers(keys[1 + cfg.num_blocks], H, H)
    layers2.append(init_linear(keys[2 + cfg.num_blocks], H, cfg.out_channels))
    params["to_sparse_w"], params["to_sparse_b"] = pack_layers(layers2, H)
    return params


# ----------------------------- full forward ------------------------------------------
def point_cloud_segmentation_resnet_forward(params, pos, x, batch, cfg):
    B, R, H, K = cfg.batch_size, cfg.grid_resolution, cfg.num_hidden, cfg.num_neighbors

    # ---- Gridifier: grid target positions ----
    grid = create_coordinate_grid(R, (-1.0, 1.0))                       # (R^3, 3)
    target_pos = jnp.tile(grid, (B, 1))                                 # (B*R^3, 3)
    batch_y = jnp.repeat(jnp.arange(B, dtype=jnp.int32), R ** 3)        # (B*R^3,)

    # ---- to_dense_rep: points -> grid ----
    fwd_idx = knn_indices(pos, batch, target_pos, batch_y, K)           # (B*R^3, K)
    x_pad = jnp.pad(x, ((0, 0), (0, H - x.shape[-1])))                  # lane-pad Cin -> H
    fnb = x_pad[fwd_idx]                                                # (B*R^3, K, H)
    rel = pos[fwd_idx] - target_pos[:, None, :]                         # (B*R^3, K, 3)
    grid_feat = pallas_bipartite(fnb, rel, params["to_dense_w"],
                                 params["to_dense_b"], K)               # (B*R^3, H)

    # ---- ConvNet3D: single fused, VMEM-resident kernel (includes out_norm) ----
    grid_out = pallas_convnet3d(grid_feat, params, B=B, R=R, H=H,
                                num_blocks=cfg.num_blocks, eps=cfg.bn_eps)  # (B*R^3, H)
    # row-major (b, z, y, x) x channels == permute(0,2,3,4,1).reshape(...) of the reference

    # ---- to_sparse_rep: grid -> points, classifier fused into the epilogue ----
    bwd_idx = knn_indices(target_pos, batch_y, pos, batch, K)           # (Npts, K)
    fnb2 = grid_out[bwd_idx]                                            # (Npts, K, H)
    rel2 = target_pos[bwd_idx] - pos[:, None, :]                        # (Npts, K, 3)
    logits_pad = pallas_bipartite(fnb2, rel2, params["to_sparse_w"],
                                  params["to_sparse_b"], K)             # (Npts, H) padded
    return logits_pad[:, :cfg.out_channels]                             # (Npts, out_channels)


# ----------------------------- main ---------------------------------------------------
if __name__ == "__main__":
    cfg = CFG()
    key = jax.random.PRNGKey(0)
    k_pos, k_x, k_params = jax.random.split(key, 3)

    total_pts = cfg.batch_size * cfg.points_per_sample
    pos = jax.random.uniform(k_pos, (total_pts, 3), jnp.float32, minval=-1.0, maxval=1.0)
    x = jax.random.normal(k_x, (total_pts, cfg.in_channels), jnp.float32)
    batch = jnp.repeat(jnp.arange(cfg.batch_size, dtype=jnp.int32), cfg.points_per_sample)

    params = init_model_params(k_params, cfg)

    out = point_cloud_segmentation_resnet_forward(params, pos, x, batch, cfg)
    out = jax.block_until_ready(out)

    assert out.shape == (total_pts, cfg.out_channels), out.shape
    assert bool(jnp.all(jnp.isfinite(out)))
    print("KERNEL_OK")
</pallas_src>

<mosaic_0001>
module attributes {stable_mosaic.version = 11 : i64} {
  func.func @_bipartite_kernel(%arg0: i32, %arg1: memref<1024x32xf32, #tpu.memory_space<vmem>>, %arg2: memref<1024x3xf32, #tpu.memory_space<vmem>>, %arg3: memref<6x32x32xf32, #tpu.memory_space<vmem>>, %arg4: memref<6x1x32xf32, #tpu.memory_space<vmem>>, %arg5: memref<128x32xf32, #tpu.memory_space<vmem>>) attributes {dimension_semantics = [#tpu.dimension_semantics<parallel>], iteration_bounds = array<i64: 8>, scalar_prefetch = 0 : i64, scratch_operands = 0 : i64, tpu.core_type = #tpu.core_type<tc>, window_params = [{transform_indices = @transform_0, window_bounds = array<i64: 1024, 32>}, {transform_indices = @transform_1, window_bounds = array<i64: 1024, 3>}, {pipeline_mode = #tpu.pipeline_mode<synchronous>, transform_indices = @transform_2, window_bounds = array<i64: 6, 32, 32>}, {pipeline_mode = #tpu.pipeline_mode<synchronous>, transform_indices = @transform_3, window_bounds = array<i64: 6, 1, 32>}, {transform_indices = @transform_4, window_bounds = array<i64: 128, 32>}]} {
    %c0 = arith.constant 0 : index
    %c0_0 = arith.constant 0 : index
    %0 = vector.load %arg2[%c0, %c0_0] : memref<1024x3xf32, #tpu.memory_space<vmem>>, vector<1024x3xf32>
    %c0_1 = arith.constant 0 : index
    %c0_2 = arith.constant 0 : index
    %c0_3 = arith.constant 0 : index
    %1 = vector.load %arg3[%c0_1, %c0_2, %c0_3] : memref<6x32x32xf32, #tpu.memory_space<vmem>>, vector<1x32x32xf32>
    %2 = vector.shape_cast %1 : vector<1x32x32xf32> to vector<32x32xf32>
    %3 = vector.extract_strided_slice %0 {offsets = [0, 0], sizes = [1024, 1], strides = [1, 1]} : vector<1024x3xf32> to vector<1024x1xf32>
    %4 = vector.shape_cast %3 : vector<1024x1xf32> to vector<1024x1xf32>
    %5 = vector.broadcast %4 : vector<1024x1xf32> to vector<1024x32xf32>
    %6 = vector.extract_strided_slice %2 {offsets = [0, 0], sizes = [1, 32], strides = [1, 1]} : vector<32x32xf32> to vector<1x32xf32>
    %7 = vector.broadcast %6 : vector<1x32xf32> to vector<1024x32xf32>
    %8 = arith.mulf %5, %7 : vector<1024x32xf32>
    %9 = vector.extract_strided_slice %0 {offsets = [0, 1], sizes = [1024, 1], strides = [1, 1]} : vector<1024x3xf32> to vector<1024x1xf32>
    %10 = vector.shape_cast %9 : vector<1024x1xf32> to vector<1024x1xf32>
    %11 = vector.broadcast %10 : vector<1024x1xf32> to vector<1024x32xf32>
    %12 = vector.extract_strided_slice %2 {offsets = [1, 0], sizes = [1, 32], strides = [1, 1]} : vector<32x32xf32> to vector<1x32xf32>
    %13 = vector.broadcast %12 : vector<1x32xf32> to vector<1024x32xf32>
    %14 = arith.mulf %11, %13 : vector<1024x32xf32>
    %15 = arith.addf %8, %14 : vector<1024x32xf32>
    %16 = vector.extract_strided_slice %0 {offsets = [0, 2], sizes = [1024, 1], strides = [1, 1]} : vector<1024x3xf32> to vector<1024x1xf32>
    %17 = vector.shape_cast %16 : vector<1024x1xf32> to vector<1024x1xf32>
    %18 = vector.broadcast %17 : vector<1024x1xf32> to vector<1024x32xf32>
    %19 = vector.extract_strided_slice %2 {offsets = [2, 0], sizes = [1, 32], strides = [1, 1]} : vector<32x32xf32> to vector<1x32xf32>
    %20 = vector.broadcast %19 : vector<1x32xf32> to vector<1024x32xf32>
    %21 = arith.mulf %18, %20 : vector<1024x32xf32>
    %22 = arith.addf %15, %21 : vector<1024x32xf32>
    %c0_4 = arith.constant 0 : index
    %c0_5 = arith.constant 0 : index
    %c0_6 = arith.constant 0 : index
    %23 = vector.load %arg4[%c0_4, %c0_5, %c0_6] : memref<6x1x32xf32, #tpu.memory_space<vmem>>, vector<1x1x32xf32>
    %24 = vector.shape_cast %23 : vector<1x1x32xf32> to vector<1x32xf32>
    %25 = vector.broadcast %24 : vector<1x32xf32> to vector<1024x32xf32>
    %26 = arith.addf %22, %25 : vector<1024x32xf32>
    %cst = arith.constant 0.000000e+00 : f32
    %27 = vector.broadcast %cst : f32 to vector<1024x32xf32>
    %28 = arith.maximumf %26, %27 : vector<1024x32xf32>
    %c1 = arith.constant 1 : index
    %c0_7 = arith.constant 0 : index
    %c0_8 = arith.constant 0 : index
    %29 = vector.load %arg3[%c1, %c0_7, %c0_8] : memref<6x32x32xf32, #tpu.memory_space<vmem>>, vector<1x32x32xf32>
    %30 = vector.shape_cast %29 : vector<1x32x32xf32> to vector<32x32xf32>
    %cst_9 = arith.constant dense<0.000000e+00> : vector<1024x32xf32>
    %31 = tpu.matmul %28, %30, %cst_9 {dimension_numbers = #tpu.dot_dimension_numbers<[1], [0], [0], [1], [0, 0, 1, 1], [], []>} : vector<1024x32xf32>, vector<32x32xf32>, vector<1024x32xf32> -> vector<1024x32xf32>
    %c1_10 = arith.constant 1 : index
    %c0_11 = arith.constant 0 : index
    %c0_12 = arith.constant 0 : index
    %32 = vector.load %arg4[%c1_10, %c0_11, %c0_12] : memref<6x1x32xf32, #tpu.memory_space<vmem>>, vector<1x1x32xf32>
    %33 = vector.shape_cast %32 : vector<1x1x32xf32> to vector<1x32xf32>
    %34 = vector.broadcast %33 : vector<1x32xf32> to vector<1024x32xf32>
    %35 = arith.addf %31, %34 : vector<1024x32xf32>
    %c0_13 = arith.constant 0 : index
    %c0_14 = arith.constant 0 : index
    %36 = vector.load %arg1[%c0_13, %c0_14] : memref<1024x32xf32, #tpu.memory_space<vmem>>, vector<1024x32xf32>
    %37 = arith.mulf %36, %35 : vector<1024x32xf32>
    %c2 = arith.constant 2 : index
    %c0_15 = arith.constant 0 : index
    %c0_16 = arith.constant 0 : index
    %38 = vector.load %arg3[%c2, %c0_15, %c0_16] : memref<6x32x32xf32, #tpu.memory_space<vmem>>, vector<1x32x32xf32>
    %39 = vector.shape_cast %38 : vector<1x32x32xf32> to vector<32x32xf32>
    %cst_17 = arith.constant dense<0.000000e+00> : vector<1024x32xf32>
    %40 = tpu.matmul %37, %39, %cst_17 {dimension_numbers = #tpu.dot_dimension_numbers<[1], [0], [0], [1], [0, 0, 1, 1], [], []>} : vector<1024x32xf32>, vector<32x32xf32>, vector<1024x32xf32> -> vector<1024x32xf32>
    %c2_18 = arith.constant 2 : index
    %c0_19 = arith.constant 0 : index
    %c0_20 = arith.constant 0 : index
    %41 = vector.load %arg4[%c2_18, %c0_19, %c0_20] : memref<6x1x32xf32, #tpu.memory_space<vmem>>, vector<1x1x32xf32>
    %42 = vector.shape_cast %41 : vector<1x1x32xf32> to vector<1x32xf32>
    %43 = vector.broadcast %42 : vector<1x32xf32> to vector<1024x32xf32>
    %44 = arith.addf %40, %43 : vector<1024x32xf32>
    %cst_21 = arith.constant 0.000000e+00 : f32
    %45 = vector.broadcast %cst_21 : f32 to vector<1024x32xf32>
    %46 = arith.maximumf %44, %45 : vector<1024x32xf32>
    %c3 = arith.constant 3 : index
    %c0_22 = arith.constant 0 : index
    %c0_23 = arith.constant 0 : index
    %47 = vector.load %arg3[%c3, %c0_22, %c0_23] : memref<6x32x32xf32, #tpu.memory_space<vmem>>, vector<1x32x32xf32>
    %48 = vector.shape_cast %47 : vector<1x32x32xf32> to vector<32x32xf32>
    %cst_24 = arith.constant dense<0.000000e+00> : vector<1024x32xf32>
    %49 = tpu.matmul %46, %48, %cst_24 {dimension_numbers = #tpu.dot_dimension_numbers<[1], [0], [0], [1], [0, 0, 1, 1], [], []>} : vector<1024x32xf32>, vector<32x32xf32>, vector<1024x32xf32> -> vector<1024x32xf32>
    %c3_25 = arith.constant 3 : index
    %c0_26 = arith.constant 0 : index
    %c0_27 = arith.constant 0 : index
    %50 = vector.load %arg4[%c3_25, %c0_26, %c0_27] : memref<6x1x32xf32, #tpu.memory_space<vmem>>, vector<1x1x32xf32>
    %51 = vector.shape_cast %50 : vector<1x1x32xf32> to vector<1x32xf32>
    %52 = vector.broadcast %51 : vector<1x32xf32> to vector<1024x32xf32>
    %53 = arith.addf %49, %52 : vector<1024x32xf32>
    %54 = vector.shape_cast %53 : vector<1024x32xf32> to vector<128x8x32xf32>
    %cst_28 = arith.constant dense<0.000000e+00> : vector<128x32xf32>
    %55 = vector.multi_reduction <add>, %54, %cst_28 [1] : vector<128x8x32xf32> to vector<128x32xf32>
    %cst_29 = arith.constant 8.000000e+00 : f32
    %56 = vector.broadcast %cst_29 : f32 to vector<128x32xf32>
    %57 = arith.divf %55, %56 : vector<128x32xf32>
    %c4 = arith.constant 4 : index
    %c0_30 = arith.constant 0 : index
    %c0_31 = arith.constant 0 : index
    %58 = vector.load %arg3[%c4, %c0_30, %c0_31] : memref<6x32x32xf32, #tpu.memory_space<vmem>>, vector<1x32x32xf32>
    %59 = vector.shape_cast %58 : vector<1x32x32xf32> to vector<32x32xf32>
    %cst_32 = arith.constant dense<0.000000e+00> : vector<128x32xf32>
    %60 = tpu.matmul %57, %59, %cst_32 {dimension_numbers = #tpu.dot_dimension_numbers<[1], [0], [0], [1], [0, 0, 1, 1], [], []>} : vector<128x32xf32>, vector<32x32xf32>, vector<128x32xf32> -> vector<128x32xf32>
    %c4_33 = arith.constant 4 : index
    %c0_34 = arith.constant 0 : index
    %c0_35 = arith.constant 0 : index
    %61 = vector.load %arg4[%c4_33, %c0_34, %c0_35] : memref<6x1x32xf32, #tpu.memory_space<vmem>>, vector<1x1x32xf32>
    %62 = vector.shape_cast %61 : vector<1x1x32xf32> to vector<1x32xf32>
    %63 = vector.broadcast %62 : vector<1x32xf32> to vector<128x32xf32>
    %64 = arith.addf %60, %63 : vector<128x32xf32>
    %cst_36 = arith.constant 0.000000e+00 : f32
    %65 = vector.broadcast %cst_36 : f32 to vector<128x32xf32>
    %66 = arith.maximumf %64, %65 : vector<128x32xf32>
    %c5 = arith.constant 5 : index
    %c0_37 = arith.constant 0 : index
    %c0_38 = arith.constant 0 : index
    %67 = vector.load %arg3[%c5, %c0_37, %c0_38] : memref<6x32x32xf32, #tpu.memory_space<vmem>>, vector<1x32x32xf32>
    %68 = vector.shape_cast %67 : vector<1x32x32xf32> to vector<32x32xf32>
    %cst_39 = arith.constant dense<0.000000e+00> : vector<128x32xf32>
    %69 = tpu.matmul %66, %68, %cst_39 {dimension_numbers = #tpu.dot_dimension_numbers<[1], [0], [0], [1], [0, 0, 1, 1], [], []>} : vector<128x32xf32>, vector<32x32xf32>, vector<128x32xf32> -> vector<128x32xf32>
    %c5_40 = arith.constant 5 : index
    %c0_41 = arith.constant 0 : index
    %c0_42 = arith.constant 0 : index
    %70 = vector.load %arg4[%c5_40, %c0_41, %c0_42] : memref<6x1x32xf32, #tpu.memory_space<vmem>>, vector<1x1x32xf32>
    %71 = vector.shape_cast %70 : vector<1x1x32xf32> to vector<1x32xf32>
    %72 = vector.broadcast %71 : vector<1x32xf32> to vector<128x32xf32>
    %73 = arith.addf %69, %72 : vector<128x32xf32>
    %c0_43 = arith.constant 0 : index
    %c0_44 = arith.constant 0 : index
    %74 = vector.load %arg5[%c0_43, %c0_44] : memref<128x32xf32, #tpu.memory_space<vmem>>, vector<128x32xf32>
    tpu.vector_store %arg5[%c0_43, %c0_44], %73 {strides = array<i32>} : memref<128x32xf32, #tpu.memory_space<vmem>>, vector<128x32xf32>,
    return
  }
  func.func @transform_0(%arg0: i32) -> (i32, i32) {
    %c0_i32 = arith.constant 0 : i32
    %c0_i32_0 = arith.constant 0 : i32
    return %arg0, %c0_i32 : i32, i32
  }
  func.func @transform_1(%arg0: i32) -> (i32, i32) {
    %c0_i32 = arith.constant 0 : i32
    %c0_i32_0 = arith.constant 0 : i32
    return %arg0, %c0_i32 : i32, i32
  }
  func.func @transform_2(%arg0: i32) -> (i32, i32, i32) {
    %c0_i32 = arith.constant 0 : i32
    %c0_i32_0 = arith.constant 0 : i32
    %c0_i32_1 = arith.constant 0 : i32
    %c0_i32_2 = arith.constant 0 : i32
    return %c0_i32, %c0_i32_0, %c0_i32_1 : i32, i32, i32
  }
  func.func @transform_3(%arg0: i32) -> (i32, i32, i32) {
    %c0_i32 = arith.constant 0 : i32
    %c0_i32_0 = arith.constant 0 : i32
    %c0_i32_1 = arith.constant 0 : i32
    %c0_i32_2 = arith.constant 0 : i32
    return %c0_i32, %c0_i32_0, %c0_i32_1 : i32, i32, i32
  }
  func.func @transform_4(%arg0: i32) -> (i32, i32) {
    %c0_i32 = arith.constant 0 : i32
    %c0_i32_0 = arith.constant 0 : i32
    return %arg0, %c0_i32 : i32, i32
  }
}

</mosaic_0001>

<bundles_post_ra>
// kernel: tpu_custom_call.1
= control target key start
LH: loop header
LB: loop body
LE: loop exit
PB: predicated region body
PF: predicated region fallthrough
CT: control target
= control target key end

     0   :  { %s10315_s15 = smov 0   ;;  %s14422_s0 = inlined_call_operand.vmem [shape: f32[8192,32], index: 0, kind: input, shape index: {}]   ;;  %s14423_s1 = inlined_call_operand.vmem [shape: f32[8192,3], index: 1, kind: input, shape index: {}]   ;;  %s14424_s2 = inlined_call_operand.vmem [shape: f32[6,32,32], index: 2, kind: input, shape index: {}]   ;;  %s14425_s3 = inlined_call_operand.vmem [shape: f32[6,1,32], index: 3, kind: input, shape index: {}]   ;;  %s14426_s4 = inlined_call_operand.vmem [shape: f32[1024,32], index: 4, kind: output, shape index: {}]  }
   0x1 LB: > { %s8390_s16 = sadd.s32 4294967295, %s10285_s15   ;;  %p8394_p0 = scmp.ge.s32.totalorder %s10285_s15, 1  ;;  %s10285_s15 = sphi %s10315_s15, %s14_s15  }
   0x2   : > { %p174_p1 = scmp.lt.s32.totalorder %s10285_s15, 9 }
   0x4   : > { %p175_p2 = pnand %p8394_p0, %p174_p1 }
   0x6   : > { %178 = sbr.rel (%p175_p2) target bundleno = 2507 (0x9cb), region = 36 }
   0xd   : > { %s8395_s17 = sshll.u32 %s8390_s16, 7  ;;  %v14431_v0 = vmov 2   ;;  %v14427_v1 = vmov 0   ;;  %v14429_v27 = vmov 1   ;;  %vm2944_vm0 = vcmask 261120   ;;  %s8399_s22 = sshll.u32 %s8390_s16, 4 }
   0xe   : > { %10009 = vset.pattern.permute.xlu0 %v14431_v0  ;;  %10005 = vset.pattern.permute.xlu1 %v14427_v1  ;;  %p206_p3 = scmp.lt.s32.totalorder %s8395_s17, 1023  ;;  %vm7788_vm1 = vcmask 1041409   ;;  %vm7790_vm2 = vcmask 1042434   ;;  %vm7792_vm3 = vcmask 1043459   ;;  %vm7794_vm4 = vcmask 1044484   ;;  %p218_p4 = scmp.lt.s32.totalorder %s8399_s22, 127 }
   0xf   : > { %vm7796_vm5 = vcmask 1045509   ;;  %vm7798_vm6 = vcmask 1046534   ;;  %vm7800_vm7 = vcmask 1047559  }
  0x10   : > { %s14814_s17 = smov (!%p206_p3, %s8395_s17), 1023  ;;  %s14816_s22 = smov (!%p218_p4, %s8399_s22), 127 }
  0x11   : > { %s8396_s18 = sshll.u32 %s14814_s17, 3  ;;  %s8400_s23 = sshll.u32 %s14816_s22, 3 }
  0x12   : > { %s10335_s21 = scalar_lea.vmem %s14423_s1, %s8396_s18  ;;  %s12485_s8 = scalar_lea.vmem %s14422_s0, %s8396_s18 }
  0x13   : > { %v10338_v2 = vld [vmem:[%s10335_s21 + $0x10] sm:$0xff]  ;;  %v10346_v4 = vld [vmem:[%s10335_s21 + $0x18] sm:$0xff]  ;;  %v10351_v5 = vld [vmem:[%s10335_s21 + $0x28] sm:$0xff]  ;;  %s14383_s27 = scalar_lea.vmem %s14426_s4, %s8400_s23 }
  0x14   : > { %1905 = vperm.xlu0 %10009, %v10338_v2   ;;  %364 = vperm.xlu1 %10005, %v10338_v2   ;;  %v10343_v3 = vld [vmem:[%s10335_s21 + $0x30] sm:$0xff]  ;;  %v223_v6 = vld [vmem:[%s10335_s21] sm:$0xff]  ;;  %v10357_v7 = vld [vmem:[%s10335_s21 + $0x38] sm:$0xff] }
  0x15   : > { %v10360_v8 = vld [vmem:[%s10335_s21 + $0x8] sm:$0xff]  ;;  %v227_v10 = vld [vmem:[%s10335_s21 + $0x20] sm:$0xff]  ;;  %v10370_v11 = vld [vmem:[%s10335_s21 + $0x58] sm:$0xff] }
  0x16   : > { %v10365_v9 = vld [vmem:[%s10335_s21 + $0x48] sm:$0xff]  ;;  %v10378_v13 = vld [vmem:[%s10335_s21 + $0x40] sm:$0xff]  ;;  %v10383_v14 = vld [vmem:[%s10335_s21 + $0x78] sm:$0xff] }
  0x17   : > { %v10375_v12 = vld [vmem:[%s10335_s21 + $0x68] sm:$0xff]  ;;  %v10386_v15 = vld [vmem:[%s10335_s21 + $0x50] sm:$0xff]  ;;  %v10394_v17 = vld [vmem:[%s10335_s21 + $0x60] sm:$0xff] }
  0x18   : > { %1921 = vperm.xlu0 %10009, %v10343_v3   ;;  %369 = vperm.xlu1 %10005, %v10346_v4   ;;  %v10391_v16 = vld [vmem:[%s10335_s21 + $0x88] sm:$0xff]  ;;  %v10399_v18 = vld [vmem:[%s10335_s21 + $0x98] sm:$0xff]  ;;  %v10402_v19 = vld [vmem:[%s10335_s21 + $0x70] sm:$0xff] }
  0x19   : > { %v10407_v20 = vld [vmem:[%s10335_s21 + $0xa8] sm:$0xff]  ;;  %v10410_v21 = vld [vmem:[%s10335_s21 + $0x80] sm:$0xff]  ;;  %v10415_v22 = vld [vmem:[%s10335_s21 + $0xb8] sm:$0xff] }
  0x1a   : > { %v10418_v23 = vld [vmem:[%s10335_s21 + $0x90] sm:$0xff]  ;;  %v10423_v24 = vld [vmem:[%s10335_s21 + $0xc8] sm:$0xff]  ;;  %v10426_v25 = vld [vmem:[%s10335_s21 + $0xa0] sm:$0xff] }
  0x1b   : > { %v10431_v26 = vld [vmem:[%s10335_s21 + $0xb0] sm:$0xff]  ;;  %v10436_v28 = vld [vmem:[%s10335_s21 + $0xc0] sm:$0xff]  ;;  %v10446_v30 = vld [vmem:[%s10335_s21 + $0xe8] sm:$0xff] }
  0x1c   : > { %10014 = vset.pattern.permute.xlu0 %v14427_v1  ;;  %379 = vperm.xlu1 %10005, %v10351_v5   ;;  %v10441_v29 = vld [vmem:[%s10335_s21 + $0xd0] sm:$0xff]  ;;  %v10451_v31 = vld [vmem:[%s10335_s21 + $0xf8] sm:$0xff]  ;;  %v10456_v32 = vld [vmem:[%s10335_s21 + $0x108] sm:$0xff] }
  0x1d   : > { %354 = vperm.xlu0 %10014, %v223_v6   ;;  %v10462_v33 = vld [vmem:[%s10335_s21 + $0x118] sm:$0xff]  ;;  %v10467_v34 = vld [vmem:[%s10335_s21 + $0x128] sm:$0xff]  ;;  %v285_v49 = vld [vmem:[%s10335_s21 + $0x1f0] sm:$0xff] }
  0x1e   : > { %v10472_v35 = vld [vmem:[%s10335_s21 + $0x138] sm:$0xff]  ;;  %v10477_v36 = vld [vmem:[%s10335_s21 + $0x148] sm:$0xff]  ;;  %v307_v58 = vld [vmem:[%s10335_s21 + $0x2a0] sm:$0xff] }
  0x1f   : > { %v10482_v37 = vld [vmem:[%s10335_s21 + $0x158] sm:$0xff]  ;;  %v10487_v38 = vld [vmem:[%s10335_s21 + $0x168] sm:$0xff]  ;;  %v309_v61 = vld [vmem:[%s10335_s21 + $0x2b0] sm:$0xff] }
  0x20   : > { %389 = vperm.xlu1 %10005, %v10357_v7   ;;  %v10493_v39 = vld [vmem:[%s10335_s21 + $0x178] sm:$0xff]  ;;  %v10499_v40 = vld [vmem:[%s10335_s21 + $0x188] sm:$0xff]  ;;  %v319_v1 = vld [vmem:[%s10335_s21 + $0x300] sm:$0xff] }
  0x21   : > { %359 = vperm.xlu0 %10014, %v10360_v8   ;;  %v274_v41 = vld [vmem:[%s10335_s21 + $0x198] sm:$0xff]  ;;  %v276_v42 = vld [vmem:[%s10335_s21 + $0x1a8] sm:$0xff] }
  0x22   : > { %v278_v43 = vld [vmem:[%s10335_s21 + $0x1b8] sm:$0xff]  ;;  %v280_v44 = vld [vmem:[%s10335_s21 + $0x1c8] sm:$0xff] }
  0x23   : > { %v282_v45 = vld [vmem:[%s10335_s21 + $0x1d8] sm:$0xff]  ;;  %v284_v46 = vld [vmem:[%s10335_s21 + $0x1e8] sm:$0xff] }
  0x24   : > { %399 = vperm.xlu1 %10005, %v10365_v9   ;;  %v286_v52 = vld [vmem:[%s10335_s21 + $0x1f8] sm:$0xff]  ;;  %v288_v55 = vld [vmem:[%s10335_s21 + $0x208] sm:$0xff] }
  0x25   : > { %374 = vperm.xlu0 %10014, %v227_v10  }
  0x28   : > { %409 = vperm.xlu1 %10005, %v10370_v11  }
  0x29   : > { %384 = vperm.xlu0 %10014, %v10343_v3  }
  0x2c   : > { %419 = vperm.xlu1 %10005, %v10375_v12  }
  0x2d   : > { %394 = vperm.xlu0 %10014, %v10378_v13  }
  0x30   : > { %429 = vperm.xlu1 %10005, %v10383_v14  }
  0x31   : > { %404 = vperm.xlu0 %10014, %v10386_v15  }
  0x34   : > { %439 = vperm.xlu1 %10005, %v10391_v16  }
  0x35   : > { %414 = vperm.xlu0 %10014, %v10394_v17  }
  0x38   : > { %449 = vperm.xlu1 %10005, %v10399_v18  }
  0x39   : > { %424 = vperm.xlu0 %10014, %v10402_v19  }
  0x3c   : > { %459 = vperm.xlu1 %10005, %v10407_v20  }
  0x3d   : > { %434 = vperm.xlu0 %10014, %v10410_v21  }
  0x40   : > { %469 = vperm.xlu1 %10005, %v10415_v22  }
  0x41   : > { %444 = vperm.xlu0 %10014, %v10418_v23  }
  0x44   : > { %479 = vperm.xlu1 %10005, %v10423_v24  }
  0x45   : > { %454 = vperm.xlu0 %10014, %v10426_v25  }
  0x48   : > { %10006 = vset.pattern.permute.xlu1 %v14429_v27 }
  0x49   : > { %464 = vperm.xlu0 %10014, %v10431_v26   ;;  %1125 = vperm.xlu1 %10006, %v223_v6  }
  0x4d   : > { %474 = vperm.xlu0 %10014, %v10436_v28   ;;  %10007 = vset.pattern.permute.xlu1 %v14431_v0 }
  0x4e   : > { %1897 = vperm.xlu1 %10007, %v223_v6  }
  0x51   : > { %484 = vperm.xlu0 %10014, %v10441_v29  }
  0x52   : > { %1901 = vperm.xlu1 %10007, %v10360_v8  }
  0x55   : > { %499 = vperm.xlu0 %10014, %v10446_v30  }
  0x56   : > { %10008 = vset.pattern.permute.xlu1 %v14429_v27 }
  0x57   : > { %1137 = vperm.xlu1 %10008, %v10346_v4  }
  0x59   : > { %509 = vperm.xlu0 %10014, %v10451_v31  }
  0x5b   : > { %10010 = vset.pattern.permute.xlu1 %v14431_v0 }
  0x5c   : > { %1909 = vperm.xlu1 %10010, %v10346_v4   ;;  %v310_v4 = vld [vmem:[%s10335_s21 + $0x2b8] sm:$0xff] }
  0x5d   : > { %519 = vperm.xlu0 %10014, %v10456_v32  }
  0x60   : > { %10011 = vset.pattern.permute.xlu1 %v14429_v27 }
  0x61   : > { %529 = vperm.xlu0 %10014, %v10462_v33   ;;  %1141 = vperm.xlu1 %10011, %v227_v10  }
  0x65   : > { %539 = vperm.xlu0 %10014, %v10467_v34   ;;  %10012 = vset.pattern.permute.xlu1 %v14431_v0 }
  0x66   : > { %1913 = vperm.xlu1 %10012, %v227_v10   ;;  %v312_v10 = vld [vmem:[%s10335_s21 + $0x2c8] sm:$0xff] }
  0x69   : > { %549 = vperm.xlu0 %10014, %v10472_v35  }
  0x6a   : > { %1917 = vperm.xlu1 %10012, %v10351_v5  }
  0x6d   : > { %559 = vperm.xlu0 %10014, %v10477_v36  }
  0x6e   : > { %10013 = vset.pattern.permute.xlu1 %v14429_v27 }
  0x6f   : > { %1153 = vperm.xlu1 %10013, %v10357_v7  }
  0x71   : > { %569 = vperm.xlu0 %10014, %v10482_v37  }
  0x73   : > { %10015 = vset.pattern.permute.xlu1 %v14431_v0 }
  0x74   : > { %1925 = vperm.xlu1 %10015, %v10357_v7  }
  0x75   : > { %579 = vperm.xlu0 %10014, %v10487_v38  }
  0x78   : > { %10016 = vset.pattern.permute.xlu1 %v14429_v27 }
  0x79   : > { %589 = vperm.xlu0 %10014, %v10493_v39   ;;  %1157 = vperm.xlu1 %10016, %v10378_v13  }
  0x7d   : > { %599 = vperm.xlu0 %10014, %v10499_v40   ;;  %10017 = vset.pattern.permute.xlu1 %v14431_v0 }
  0x7e   : > { %1929 = vperm.xlu1 %10017, %v10378_v13  }
  0x81   : > { %609 = vperm.xlu0 %10014, %v274_v41  }
  0x82   : > { %1933 = vperm.xlu1 %10017, %v10365_v9  }
  0x85   : > { %619 = vperm.xlu0 %10014, %v276_v42   ;;  %v295_v42 = vld [vmem:[%s10335_s21 + $0x240] sm:$0xff] }
  0x86   : > { %10018 = vset.pattern.permute.xlu1 %v14429_v27 }
  0x87   : > { %1169 = vperm.xlu1 %10018, %v10370_v11  }
  0x89   : > { %629 = vperm.xlu0 %10014, %v278_v43  }
  0x8b   : > { %10019 = vset.pattern.permute.xlu1 %v14431_v0 }
  0x8c   : > { %1941 = vperm.xlu1 %10019, %v10370_v11  }
  0x8d   : > { %639 = vperm.xlu0 %10014, %v280_v44   ;;  %v296_v44 = vld [vmem:[%s10335_s21 + $0x248] sm:$0xff] }
  0x90   : > { %10020 = vset.pattern.permute.xlu1 %v14429_v27 }
  0x91   : > { %649 = vperm.xlu0 %10014, %v282_v45   ;;  %1173 = vperm.xlu1 %10020, %v10394_v17  }
  0x93   : > { %v10517_v47 = vpop.permute.xlu1 %364  ;;  %v10519_v48 = vpop.permute.xlu0 %1905 }
  0x95   : > { %659 = vperm.xlu0 %10014, %v284_v46   ;;  %10021 = vset.pattern.permute.xlu1 %v14431_v0  ;;  %v992_v46 = vlaneseq }
  0x96   : > { %1945 = vperm.xlu1 %10021, %v10394_v17  }
  0x97   : > { %v10524_v50 = vpop.permute.xlu1 %369  ;;  %v10526_v51 = vpop.permute.xlu0 %1921 }
  0x99   : > { %664 = vperm.xlu0 %10014, %v285_v49  }
  0x9a   : > { %1949 = vperm.xlu1 %10021, %v10375_v12  }
  0x9b   : > { %v10530_v53 = vpop.permute.xlu1 %379 }
  0x9c   : > { %v10532_v54 = vpop.permute.xlu0 %354 }
  0x9d   : > { %669 = vperm.xlu0 %10014, %v286_v52   ;;  %v298_v52 = vld [vmem:[%s10335_s21 + $0x258] sm:$0xff] }
  0x9e   : > { %10022 = vset.pattern.permute.xlu1 %v14429_v27 }
  0x9f   : > { %v10536_v56 = vpop.permute.xlu1 %389  ;;  %1185 = vperm.xlu1 %10022, %v10383_v14  }
  0xa0   : > { %v10539_v57 = vpop.permute.xlu0 %359 }
  0xa1   : > { %679 = vperm.xlu0 %10014, %v288_v55  }
  0xa3   : > { %v10542_v59 = vpop.permute.xlu1 %399  ;;  %10023 = vset.pattern.permute.xlu1 %v14431_v0 }
  0xa4   : > { %1957 = vperm.xlu1 %10023, %v10383_v14   ;;  %v10546_v60 = vpop.permute.xlu0 %374  ;;  %v293_v14 = vld [vmem:[%s10335_s21 + $0x230] sm:$0xff] }
  0xa5   : > { %774 = vperm.xlu0 %10014, %v307_v58   ;;  %v993_v58 = vshrl.u32 %v992_v46, 7 }
  0xa7   : > { %v10549_v62 = vpop.permute.xlu1 %409  ;;  %v2410_v46 = vsub.s32 2, %v993_v58 }
  0xa8   : > { %10024 = vset.pattern.permute.xlu1 %v14429_v27  ;;  %v10552_v63 = vpop.permute.xlu0 %384 }
  0xa9   : > { %784 = vperm.xlu0 %10014, %v309_v61   ;;  %1189 = vperm.xlu1 %10024, %v10410_v21  }
  0xab   : > { %v10556_v6 = vpop.permute.xlu1 %419 }
  0xac   : > { %v10558_v7 = vpop.permute.xlu0 %394 }
  0xad   : > { %789 = vperm.xlu0 %10014, %v310_v4   ;;  %10025 = vset.pattern.permute.xlu1 %v14431_v0  ;;  %v317_v4 = vld [vmem:[%s10335_s21 + $0x2f0] sm:$0xff] }
  0xae   : > { %1961 = vperm.xlu1 %10025, %v10410_v21  }
  0xaf   : > { %v10563_v11 = vpop.permute.xlu1 %429 }
  0xb0   : > { %14446 = vst [vmem:[#allocation2_spill] sm:$0xff] %v10563_v11  ;;  %v10565_v13 = vpop.permute.xlu0 %404 }
  0xb1   : > { %799 = vperm.xlu0 %10014, %v312_v10   ;;  %v1638_v10 = vsub.s32 1, %v993_v58 }
  0xb2   : > { %1965 = vperm.xlu1 %10025, %v10391_v16  }
  0xb3   : > { %v10569_v17 = vpop.permute.xlu1 %439 }
  0xb4   : > { %14447 = vst [vmem:[#allocation3_spill] sm:$0xff] %v10569_v17  ;;  %v10571_v41 = vpop.permute.xlu0 %414  ;;  %v261_v17 = vld [vmem:[%s10335_s21 + $0x130] sm:$0xff] }
  0xb5   : > { %704 = vperm.xlu0 %10014, %v293_v14  }
  0xb6   : > { %10026 = vset.pattern.permute.xlu1 %v14429_v27 }
  0xb7   : > { %v10575_v21 = vpop.permute.xlu1 %449  ;;  %1201 = vperm.xlu1 %10026, %v10399_v18  }
  0xb8   : > { %14448 = vst [vmem:[#allocation4_spill] sm:$0xff] %v10575_v21  ;;  %v10578_v43 = vpop.permute.xlu0 %424  ;;  %v14458_v21 = vmov 1  }
  0xb9   : > { %14449 = vst [vmem:[#allocation5_spill] sm:$0xff] %v10578_v43  ;;  %714 = vperm.xlu0 %10014, %v295_v42  }
  0xbb   : > { %v10581_v45 = vpop.permute.xlu1 %459  ;;  %10027 = vset.pattern.permute.xlu1 %v14431_v0 }
  0xbc   : > { %14450 = vst [vmem:[#allocation6_spill] sm:$0xff] %v10581_v45  ;;  %1973 = vperm.xlu1 %10027, %v10399_v18   ;;  %v10585_v49 = vpop.permute.xlu0 %434  ;;  %v994_v18 = vsub.s32 0, %v993_v58 }
  0xbd   : > { %14451 = vst [vmem:[#allocation7_spill] sm:$0xff] %v10585_v49  ;;  %719 = vperm.xlu0 %10014, %v296_v44   ;;  %v351_v44 = vld [vmem:[%s14424_s2] sm:$0xff] }
  0xbe   : > { %v10611_v45 = vrot.slane %v351_v44, %v2410_v46 }
  0xbf   : > { %v10588_v55 = vpop.permute.xlu1 %469 }
  0xc0   : > { %14452 = vst [vmem:[#allocation8_spill] sm:$0xff] %v10588_v55  ;;  %10028 = vset.pattern.permute.xlu1 %v14429_v27  ;;  %v10591_v61 = vpop.permute.xlu0 %444  ;;  %v10607_v27 = vrot.slane %v351_v44, %v994_v18 }
  0xc1   : > { %14453 = vst [vmem:[#allocation9_spill] sm:$0xff] %v10591_v61  ;;  %729 = vperm.xlu0 %10014, %v298_v52   ;;  %1205 = vperm.xlu1 %10028, %v10426_v25   ;;  %v10604_v52 = vrot.slane %v351_v44, %v1638_v10 }
  0xc3   : > { %v10595_v14 = vpop.permute.xlu1 %479 }
  0xc4   : > { %14454 = vst [vmem:[#allocation10_spill] sm:$0xff] %v10595_v14  ;;  %v10597_v42 = vpop.permute.xlu0 %454 }
  0xc5   : > { %14455 = vst [vmem:[#allocation11_spill] sm:$0xff] %v10597_v42  ;;  %824 = vperm.xlu0 %10014, %v317_v4   ;;  %10029 = vset.pattern.permute.xlu1 %v14431_v0  ;;  %v996_v4 = vmul.f32 %v10607_v27, %v10532_v54  ;;  %v10627_v54 = vld [vmem:[%s14425_s3] ss:$0 sm:$0xff] }
  0xc6   : > { %1977 = vperm.xlu1 %10029, %v10426_v25   ;;  %v320_v25 = vld [vmem:[%s10335_s21 + $0x308] sm:$0xff] }
  0xc8   : > { %v1126_v14 = vpop.permute.xlu1 %1125  ;;  %v10609_v55 = vpop.permute.xlu0 %464 }
  0xc9   : > { %14456 = vst [vmem:[#allocation12_spill] sm:$0xff] %v10609_v55  ;;  %834 = vperm.xlu0 %10014, %v319_v1   ;;  %v1640_v0 = vmul.f32 %v10604_v52, %v1126_v14  ;;  %v322_v1 = vld [vmem:[%s10335_s21 + $0x318] sm:$0xff] }
  0xca   : > { %1981 = vperm.xlu1 %10029, %v10407_v20  }
  0xcb   : > { %v1768_v18 = vadd.f32 %v1640_v0, %v996_v4  ;;  %v14460_v4 = vmov 2  }
  0xcc   : > { %v10618_v58 = vpop.permute.xlu0 %474 }
  0xcd   : > { %14457 = vst [vmem:[#allocation13_spill] sm:$0xff] %v10618_v58  ;;  %839 = vperm.xlu0 %10014, %v320_v25   ;;  %v1898_v10 = vpop.permute.xlu1 %1897  ;;  %v10777_v58 = vld [vmem:[%s10335_s21 + $0x218] sm:$0xff] }
  0xce   : > { %v2412_v42 = vmul.f32 %v10611_v45, %v1898_v10  ;;  %10030 = vset.pattern.permute.xlu1 %v14458_v21 }
  0xcf   : > { %1217 = vperm.xlu1 %10030, %v10415_v22  }
  0xd0   : > { %v2540_v14 = vadd.f32 %v2412_v42, %v1768_v18  ;;  %v10629_v44 = vpop.permute.xlu0 %484  ;;  %v8402_v42 = vld [vmem:[%s14424_s2 + $0x20] sm:$0xff]  ;;  %v8403_v18 = vld [vmem:[%s14424_s2 + $0x28] sm:$0xff] }
  0xd1   : > { %14459 = vst [vmem:[#allocation14_spill] sm:$0xff] %v10629_v44  ;;  %849 = vperm.xlu0 %10014, %v322_v1   ;;  %v10631_v46 = vpop.permute.xlu1 %1901  ;;  %v289_v44 = vld [vmem:[%s10335_s21 + $0x210] sm:$0xff] }
  0xd2   : > { %v2675_v0 = vadd.f32 %v10627_v54, %v2540_v14 }
  0xd3   : > { %10031 = vset.pattern.permute.xlu1 %v14460_v4 }
  0xd4   : > { %1989 = vperm.xlu1 %10031, %v10415_v22   ;;  %v10636_v25 = vpop.permute.xlu0 %499  ;;  %v2803_v10 = vmax.f32 %v2675_v0, 0.0  ;;  %v9950_v22 = vpack.c.bf16 %v8403_v18, %v8402_v42  ;;  %v8404_v0 = vld [vmem:[%s14424_s2 + $0x30] sm:$0xff] }
  0xd5   : > { %14461 = vst [vmem:[#allocation15_spill] sm:$0xff] %v10636_v25  ;;  %10153 = vset.pattern.permute.xlu0 %v14458_v21 }
  0xd6   : > { %1129 = vperm.xlu0 %10153, %v10360_v8   ;;  %9294 = vmatprep.mubr.msk.f32.mxu0 %vm2944_vm0, %v2803_v10  ;;  %v10647_v1 = vpop.permute.xlu1 %1137  ;;  %v8405_v8 = vld [vmem:[%s14424_s2 + $0x38] sm:$0xff] }
  0xd7   : > { %9951 = vmatprep.subr.bf16.mxu0 %v9950_v22  ;;  %v9954_v10 = vpack.c.bf16 %v8405_v8, %v8404_v0  ;;  %9990 = vmatprep.subr.bf16.mxu1 %v9950_v22  ;;  %v10676_v0 = vld [vmem:[%s10335_s21 + $0xd8] sm:$0xff] }
  0xd8   : > { %10032 = vset.pattern.permute.xlu1 %v14458_v21  ;;  %v10650_v14 = vpop.permute.xlu0 %509  ;;  %9953 = vmatpush3.bf16.msra.mxu0 %v9950_v22 }
  0xd9   : > { %14462 = vst [vmem:[#allocation16_spill] sm:$0xff] %v10650_v14  ;;  %1221 = vperm.xlu1 %10032, %v10436_v28   ;;  %9992 = vmatpush3.bf16.msra.mxu1 %v9950_v22 }
  0xda   : > { %1133 = vperm.xlu0 %10153, %v10338_v2   ;;  %9955 = vmatprep.subr.bf16.mxu0 %v9954_v10 }
  0xdb   : > { %v10660_v42 = vpop.permute.xlu1 %1909  ;;  %9991 = vmatprep.subr.bf16.mxu1 %v9954_v10 }
  0xdc   : > { %v10662_v18 = vpop.permute.xlu0 %519  ;;  %9957 = vmatpush3.bf16.msra.mxu0 %v9954_v10 }
  0xdd   : > { %14463 = vst [vmem:[#allocation17_spill] sm:$0xff] %v10662_v18  ;;  %10033 = vset.pattern.permute.xlu1 %v14460_v4  ;;  %9993 = vmatpush3.bf16.msra.mxu1 %v9954_v10  ;;  %v253_v18 = vld [vmem:[%s10335_s21 + $0xf0] sm:$0xff] }
  0xde   : > { %1145 = vperm.xlu0 %10153, %v10351_v5   ;;  %1993 = vperm.xlu1 %10033, %v10436_v28   ;;  %v14466_v5 = vmov 0  }
  0xe0   : > { %v10667_v14 = vpop.permute.xlu1 %1141  ;;  %v10669_v2 = vpop.permute.xlu0 %529 }
  0xe1   : > { %14464 = vst [vmem:[#allocation18_spill] sm:$0xff] %v10669_v2 }
  0xe2   : > { %1149 = vperm.xlu0 %10153, %v10343_v3   ;;  %1997 = vperm.xlu1 %10033, %v10423_v24  }
  0xe4   : > { %v10673_v22 = vpop.permute.xlu0 %539 }
  0xe5   : > { %14465 = vst [vmem:[#allocation19_spill] sm:$0xff] %v10673_v22  ;;  %v10678_v8 = vpop.permute.xlu1 %1913 }
  0xe6   : > { %1161 = vperm.xlu0 %10153, %v10365_v9   ;;  %10034 = vset.pattern.permute.xlu1 %v14466_v5  ;;  %v251_v9 = vld [vmem:[%s10335_s21 + $0xe0] sm:$0xff] }
  0xe7   : > { %489 = vperm.xlu1 %10034, %v10676_v0  }
  0xe8   : > { %v10683_v28 = vpop.permute.xlu0 %549 }
  0xe9   : > { %14467 = vst [vmem:[#allocation20_spill] sm:$0xff] %v10683_v28  ;;  %v10685_v10 = vpop.permute.xlu1 %1917 }
  0xea   : > { %1165 = vperm.xlu0 %10153, %v10386_v15  }
  0xeb   : > { %10035 = vset.pattern.permute.xlu1 %v14460_v4 }
  0xec   : > { %2001 = vperm.xlu1 %10035, %v10441_v29   ;;  %v10690_v3 = vpop.permute.xlu0 %559 }
  0xed   : > { %14468 = vst [vmem:[#allocation21_spill] sm:$0xff] %v10690_v3 }
  0xee   : > { %1177 = vperm.xlu0 %10153, %v10375_v12   ;;  %v10693_v22 = vpop.permute.xlu1 %1153 }
  0xf0   : > { %10036 = vset.pattern.permute.xlu1 %v14466_v5  ;;  %v10697_v2 = vpop.permute.xlu0 %569 }
  0xf1   : > { %14469 = vst [vmem:[#allocation22_spill] sm:$0xff] %v10697_v2  ;;  %494 = vperm.xlu1 %10036, %v251_v9  }
  0xf2   : > { %1181 = vperm.xlu0 %10153, %v10402_v19  }
  0xf3   : > { %v10700_v28 = vpop.permute.xlu1 %1925 }
  0xf4   : > { %v10702_v15 = vpop.permute.xlu0 %579 }
  0xf5   : > { %14470 = vst [vmem:[#allocation23_spill] sm:$0xff] %v10702_v15  ;;  %10037 = vset.pattern.permute.xlu1 %v14458_v21 }
  0xf6   : > { %1193 = vperm.xlu0 %10153, %v10391_v16   ;;  %1237 = vperm.xlu1 %10037, %v251_v9  }
  0xf8   : > { %v10706_v12 = vpop.permute.xlu1 %1157  ;;  %v10708_v3 = vpop.permute.xlu0 %589 }
  0xf9   : > { %14471 = vst [vmem:[#allocation24_spill] sm:$0xff] %v10708_v3 }
  0xfa   : > { %1197 = vperm.xlu0 %10153, %v10418_v23   ;;  %1241 = vperm.xlu1 %10037, %v10446_v30  }
  0xfc   : > { %v10712_v2 = vpop.permute.xlu0 %599 }
  0xfd   : > { %14472 = vst [vmem:[#allocation25_spill] sm:$0xff] %v10712_v2  ;;  %v10714_v19 = vpop.permute.xlu1 %1929 }
  0xfe   : > { %1209 = vperm.xlu0 %10153, %v10407_v20   ;;  %10038 = vset.pattern.permute.xlu1 %v14460_v4 }
  0xff   : > { %2009 = vperm.xlu1 %10038, %v251_v9  }
 0x100   : > { %v10718_v15 = vpop.permute.xlu0 %609 }
 0x101   : > { %14473 = vst [vmem:[#allocation26_spill] sm:$0xff] %v10718_v15  ;;  %v10720_v16 = vpop.permute.xlu1 %1933 }
 0x102   : > { %1213 = vperm.xlu0 %10153, %v10431_v26  }
 0x103   : > { %10039 = vset.pattern.permute.xlu1 %v14466_v5 }
 0x104   : > { %504 = vperm.xlu1 %10039, %v253_v18   ;;  %v10725_v23 = vpop.permute.xlu0 %619 }
 0x105   : > { %14474 = vst [vmem:[#allocation27_spill] sm:$0xff] %v10725_v23 }
 0x106   : > { %1225 = vperm.xlu0 %10153, %v10423_v24   ;;  %v10728_v20 = vpop.permute.xlu1 %1169  ;;  %v303_v24 = vld [vmem:[%s10335_s21 + $0x280] sm:$0xff] }
 0x108   : > { %10040 = vset.pattern.permute.xlu1 %v14458_v21  ;;  %v10731_v9 = vpop.permute.xlu0 %629 }
 0x109   : > { %14475 = vst [vmem:[#allocation28_spill] sm:$0xff] %v10731_v9  ;;  %1245 = vperm.xlu1 %10040, %v253_v18  }
 0x10a   : > { %1229 = vperm.xlu0 %10153, %v10441_v29   ;;  %v10747_v29 = vld [vmem:[%s10335_s21 + $0x288] sm:$0xff] }
 0x10b   : > { %v10734_v15 = vpop.permute.xlu1 %1941 }
 0x10c   : > { %v10736_v26 = vpop.permute.xlu0 %639 }
 0x10d   : > { %14476 = vst [vmem:[#allocation29_spill] sm:$0xff] %v10736_v26  ;;  %1249 = vperm.xlu1 %10040, %v10451_v31   ;;  %v255_v26 = vld [vmem:[%s10335_s21 + $0x100] sm:$0xff]  ;;  %v306_v31 = vld [vmem:[%s10335_s21 + $0x298] sm:$0xff] }
 0x10e   : > { %1233 = vperm.xlu0 %10153, %v10676_v0  }
 0x110   : > { %v10741_v23 = vpop.permute.xlu1 %1173  ;;  %v10743_v2 = vpop.permute.xlu0 %649 }
 0x111   : > { %14477 = vst [vmem:[#allocation30_spill] sm:$0xff] %v10743_v2  ;;  %10041 = vset.pattern.permute.xlu1 %v14460_v4 }
 0x112   : > { %1445 = vperm.xlu0 %10153, %v303_v24   ;;  %2017 = vperm.xlu1 %10041, %v253_v18   ;;  %v10763_v18 = vld [vmem:[%s10335_s21 + $0x200] sm:$0xff] }
 0x114   : > { %v10749_v9 = vpop.permute.xlu0 %659 }
 0x115   : > { %14478 = vst [vmem:[#allocation31_spill] sm:$0xff] %v10749_v9  ;;  %v10752_v3 = vpop.permute.xlu1 %1945 }
 0x116   : > { %1449 = vperm.xlu0 %10153, %v10747_v29   ;;  %10042 = vset.pattern.permute.xlu1 %v14466_v5 }
 0x117   : > { %514 = vperm.xlu1 %10042, %v255_v26  }
 0x118   : > { %v10757_v2 = vpop.permute.xlu0 %664 }
 0x119   : > { %14479 = vst [vmem:[#allocation32_spill] sm:$0xff] %v10757_v2  ;;  %v10759_v25 = vpop.permute.xlu1 %1949 }
 0x11a   : > { %14480 = vst [vmem:[#allocation33_spill] sm:$0xff] %v10759_v25  ;;  %1457 = vperm.xlu0 %10153, %v306_v31   ;;  %v257_v25 = vld [vmem:[%s10335_s21 + $0x110] sm:$0xff] }
 0x11b   : > { %10043 = vset.pattern.permute.xlu1 %v14458_v21 }
 0x11c   : > { %1253 = vperm.xlu1 %10043, %v255_v26   ;;  %v10765_v24 = vpop.permute.xlu0 %669 }
 0x11d   : > { %14481 = vst [vmem:[#allocation34_spill] sm:$0xff] %v10765_v24  ;;  %v292_v24 = vld [vmem:[%s10335_s21 + $0x228] sm:$0xff] }
 0x11e   : > { %1381 = vperm.xlu0 %10153, %v10763_v18   ;;  %v10768_v9 = vpop.permute.xlu1 %1185 }
 0x11f   : > { %14482 = vst [vmem:[#allocation35_spill] sm:$0xff] %v10768_v9 }
 0x120   : > { %1257 = vperm.xlu1 %10043, %v10456_v32   ;;  %v10772_v2 = vpop.permute.xlu0 %679 }
 0x121   : > { %14483 = vst [vmem:[#allocation36_spill] sm:$0xff] %v10772_v2 }
 0x122   : > { %1389 = vperm.xlu0 %10153, %v289_v44   ;;  %v10791_v44 = vld [vmem:[%s10335_s21 + $0x2c0] sm:$0xff] }
 0x123   : > { %v10774_v31 = vpop.permute.xlu1 %1957 }
 0x124   : > { %14484 = vst [vmem:[#allocation37_spill] sm:$0xff] %v10774_v31  ;;  %10044 = vset.pattern.permute.xlu1 %v14460_v4  ;;  %v10780_v55 = vpop.permute.xlu0 %774  ;;  %v316_v31 = vld [vmem:[%s10335_s21 + $0x2e8] sm:$0xff] }
 0x125   : > { %14485 = vst [vmem:[#allocation38_spill] sm:$0xff] %v10780_v55  ;;  %2025 = vperm.xlu1 %10044, %v255_v26   ;;  %v313_v26 = vld [vmem:[%s10335_s21 + $0x2d0] sm:$0xff] }
 0x126   : > { %1393 = vperm.xlu0 %10153, %v10777_v58  }
 0x128   : > { %v10785_v61 = vpop.permute.xlu1 %1189  ;;  %v10787_v32 = vpop.permute.xlu0 %784 }
 0x129   : > { %14486 = vst [vmem:[#allocation39_spill] sm:$0xff] %v10785_v61  ;;  %14487 = vst [vmem:[#allocation40_spill] sm:$0xff] %v10787_v32  ;;  %10045 = vset.pattern.permute.xlu1 %v14466_v5 }
 0x12a   : > { %1401 = vperm.xlu0 %10153, %v292_v24   ;;  %524 = vperm.xlu1 %10045, %v257_v25   ;;  %v10806_v24 = vld [vmem:[%s10335_s21 + $0x2d8] sm:$0xff] }
 0x12c   : > { %v10793_v2 = vpop.permute.xlu0 %789 }
 0x12d   : > { %14488 = vst [vmem:[#allocation41_spill] sm:$0xff] %v10793_v2  ;;  %v10795_v55 = vpop.permute.xlu1 %1961 }
 0x12e   : > { %14489 = vst [vmem:[#allocation42_spill] sm:$0xff] %v10795_v55  ;;  %1477 = vperm.xlu0 %10153, %v10791_v44   ;;  %10046 = vset.pattern.permute.xlu1 %v14458_v21 }
 0x12f   : > { %1261 = vperm.xlu1 %10046, %v257_v25  }
 0x130   : > { %v10800_v32 = vpop.permute.xlu0 %799 }
 0x131   : > { %14490 = vst [vmem:[#allocation43_spill] sm:$0xff] %v10800_v32  ;;  %v10802_v61 = vpop.permute.xlu1 %1965 }
 0x132   : > { %14491 = vst [vmem:[#allocation44_spill] sm:$0xff] %v10802_v61  ;;  %1485 = vperm.xlu0 %10153, %v313_v26   ;;  %v259_v26 = vld [vmem:[%s10335_s21 + $0x120] sm:$0xff] }
 0x133   : > { %1265 = vperm.xlu1 %10046, %v10462_v33   ;;  %v10821_v33 = vld [vmem:[%s10335_s21 + $0x250] sm:$0xff] }
 0x134   : > { %v10808_v2 = vpop.permute.xlu0 %704 }
 0x135   : > { %14492 = vst [vmem:[#allocation45_spill] sm:$0xff] %v10808_v2 }
 0x136   : > { %1489 = vperm.xlu0 %10153, %v10806_v24   ;;  %v10811_v55 = vpop.permute.xlu1 %1201 }
 0x137   : > { %14493 = vst [vmem:[#allocation46_spill] sm:$0xff] %v10811_v55  ;;  %10047 = vset.pattern.permute.xlu1 %v14460_v4  ;;  %v299_v55 = vld [vmem:[%s10335_s21 + $0x260] sm:$0xff] }
 0x138   : > { %2033 = vperm.xlu1 %10047, %v257_v25   ;;  %v10815_v32 = vpop.permute.xlu0 %714 }
 0x139   : > { %14494 = vst [vmem:[#allocation47_spill] sm:$0xff] %v10815_v32 }
 0x13a   : > { %1497 = vperm.xlu0 %10153, %v316_v31   ;;  %v10834_v31 = vld [vmem:[%s10335_s21 + $0x268] sm:$0xff] }
 0x13b   : > { %v10818_v61 = vpop.permute.xlu1 %1973  ;;  %14499 = vst [vmem:[#allocation52_spill] sm:$0xff] %v10834_v31 }
 0x13c   : > { %14495 = vst [vmem:[#allocation48_spill] sm:$0xff] %v10818_v61  ;;  %10048 = vset.pattern.permute.xlu1 %v14466_v5  ;;  %v10824_v2 = vpop.permute.xlu0 %719 }
 0x13d   : > { %14496 = vst [vmem:[#allocation49_spill] sm:$0xff] %v10824_v2  ;;  %534 = vperm.xlu1 %10048, %v259_v26  }
 0x13e   : > { %1421 = vperm.xlu0 %10153, %v10821_v33  }
 0x140   : > { %v10828_v49 = vpop.permute.xlu1 %1205  ;;  %v10830_v25 = vpop.permute.xlu0 %729 }
 0x141   : > { %14497 = vst [vmem:[#allocation50_spill] sm:$0xff] %v10828_v49  ;;  %14498 = vst [vmem:[#allocation51_spill] sm:$0xff] %v10830_v25  ;;  %10049 = vset.pattern.permute.xlu1 %v14458_v21  ;;  %v302_v49 = vld [vmem:[%s10335_s21 + $0x278] sm:$0xff] }
 0x142   : > { %1429 = vperm.xlu0 %10153, %v299_v55   ;;  %1269 = vperm.xlu1 %10049, %v259_v26   ;;  %v10849_v55 = vld [vmem:[%s10335_s21 + $0x310] sm:$0xff] }
 0x143   : > { %14504 = vst [vmem:[#allocation57_spill] sm:$0xff] %v10849_v55 }
 0x144   : > { %v10836_v32 = vpop.permute.xlu0 %824 }
 0x145   : > { %14500 = vst [vmem:[#allocation53_spill] sm:$0xff] %v10836_v32  ;;  %v10838_v2 = vpop.permute.xlu1 %1977 }
 0x146   : > { %14501 = vst [vmem:[#allocation54_spill] sm:$0xff] %v10838_v2  ;;  %1433 = vperm.xlu0 %10153, %v10834_v31   ;;  %1273 = vperm.xlu1 %10049, %v10467_v34   ;;  %v10859_v34 = vld [vmem:[%s10335_s21 + $0x320] sm:$0xff] }
 0x147   : > { %14507 = vst [vmem:[#allocation60_spill] sm:$0xff] %v10859_v34 }
 0x148   : > { %v10843_v61 = vpop.permute.xlu0 %834 }
 0x149   : > { %14502 = vst [vmem:[#allocation55_spill] sm:$0xff] %v10843_v61  ;;  %v10845_v25 = vpop.permute.xlu1 %1981 }
 0x14a   : > { %14503 = vst [vmem:[#allocation56_spill] sm:$0xff] %v10845_v25  ;;  %1441 = vperm.xlu0 %10153, %v302_v49   ;;  %10050 = vset.pattern.permute.xlu1 %v14460_v4  ;;  %v1643_v25 = vmul.f32 %v10604_v52, %v10647_v1  ;;  %v10885_v1 = vld [vmem:[%s10335_s21 + $0x340] sm:$0xff] }
 0x14b   : > { %2041 = vperm.xlu1 %10050, %v259_v26   ;;  %v10867_v26 = vld [vmem:[%s10335_s21 + $0x330] sm:$0xff] }
 0x14c   : > { %v10851_v32 = vpop.permute.xlu0 %839  ;;  %14510 = vst [vmem:[#allocation63_spill] sm:$0xff] %v10867_v26 }
 0x14d   : > { %14505 = vst [vmem:[#allocation58_spill] sm:$0xff] %v10851_v32  ;;  %v997_v32 = vmul.f32 %v10607_v27, %v10539_v57  ;;  %v2415_v57 = vmul.f32 %v10611_v45, %v10660_v42  ;;  %v998_v42 = vmul.f32 %v10607_v27, %v10517_v47  ;;  %v1003_v47 = vmul.f32 %v10607_v27, %v10536_v56 }
 0x14e   : > { %1517 = vperm.xlu0 %10153, %v10849_v55   ;;  %v10855_v2 = vpop.permute.xlu1 %1217  ;;  %v1002_v56 = vmul.f32 %v10607_v27, %v10552_v63 }
 0x14f   : > { %14506 = vst [vmem:[#allocation59_spill] sm:$0xff] %v10855_v2  ;;  %10051 = vset.pattern.permute.xlu1 %v14466_v5 }
 0x150   : > { %544 = vperm.xlu1 %10051, %v261_v17   ;;  %v10861_v61 = vpop.permute.xlu0 %849 }
 0x151   : > { %14508 = vst [vmem:[#allocation61_spill] sm:$0xff] %v10861_v61  ;;  %v999_v61 = vmul.f32 %v10607_v27, %v10524_v50  ;;  %v2416_v50 = vmul.f32 %v10611_v45, %v10678_v8 }
 0x152   : > { %1525 = vperm.xlu0 %10153, %v10859_v34   ;;  %v1000_v34 = vmul.f32 %v10607_v27, %v10546_v60 }
 0x153   : > { %v10864_v49 = vpop.permute.xlu1 %1989  ;;  %v1771_v11 = vadd.f32 %v1643_v25, %v999_v61  ;;  %v10901_v61 = vld [vmem:[%s10335_s21 + $0x350] sm:$0xff] }
 0x154   : > { %14509 = vst [vmem:[#allocation62_spill] sm:$0xff] %v10864_v49  ;;  %10052 = vset.pattern.permute.xlu1 %v14458_v21  ;;  %v1644_v49 = vmul.f32 %v10604_v52, %v10667_v14  ;;  %v2414_v14 = vmul.f32 %v10611_v45, %v10519_v48 }
 0x155   : > { %v1130_v2 = vpop.permute.xlu0 %1129  ;;  %1277 = vperm.xlu1 %10052, %v261_v17  }
 0x156   : > { %v1641_v55 = vmul.f32 %v10604_v52, %v1130_v2  ;;  %1533 = vperm.xlu0 %10153, %v10867_v26   ;;  %v2413_v2 = vmul.f32 %v10611_v45, %v10631_v46  ;;  %v2543_v46 = vadd.f32 %v2415_v57, %v1771_v11  ;;  %v1647_v11 = vmul.f32 %v10604_v52, %v10693_v22  ;;  %v10923_v22 = vld [vmem:[%s10335_s21 + $0x360] sm:$0xff] }
 0x157   : > { %v1648_v57 = vmul.f32 %v10604_v52, %v10706_v12  ;;  %14511 = vst [vmem:[#allocation64_spill] sm:$0xff] %v10923_v22 }
 0x158   : > { %v1769_v31 = vadd.f32 %v1641_v55, %v997_v32  ;;  %v10889_v26 = vpop.permute.xlu1 %1221  ;;  %v1772_v32 = vadd.f32 %v1644_v49, %v1000_v34  ;;  %v2678_v49 = vadd.f32 %v10627_v54, %v2543_v46  ;;  %v1775_v46 = vadd.f32 %v1647_v11, %v1003_v47 }
 0x159   : > { %v1134_v60 = vpop.permute.xlu0 %1133  ;;  %1281 = vperm.xlu1 %10052, %v10472_v35   ;;  %v1001_v35 = vmul.f32 %v10607_v27, %v10530_v53 }
 0x15a   : > { %v2541_v9 = vadd.f32 %v2413_v2, %v1769_v31  ;;  %v1642_v43 = vmul.f32 %v10604_v52, %v1134_v60  ;;  %1541 = vperm.xlu0 %10153, %v10885_v1   ;;  %v2544_v48 = vadd.f32 %v2416_v50, %v1772_v32  ;;  %v2417_v2 = vmul.f32 %v10611_v45, %v10685_v10 }
 0x15b   : > { %v2420_v60 = vmul.f32 %v10611_v45, %v10714_v19  ;;  %v2418_v10 = vmul.f32 %v10611_v45, %v10526_v51  ;;  %v2806_v19 = vmax.f32 %v2678_v49, 0.0 }
 0x15c   : > { %v2676_v8 = vadd.f32 %v10627_v54, %v2541_v9  ;;  %v1770_v25 = vadd.f32 %v1642_v43, %v998_v42  ;;  %v1004_v43 = vmul.f32 %v10607_v27, %v10558_v7  ;;  %v2679_v7 = vadd.f32 %v10627_v54, %v2544_v48 }
 0x15d   : > { %v1146_v31 = vpop.permute.xlu0 %1145  ;;  %10053 = vset.pattern.permute.xlu1 %v14460_v4  ;;  %v10909_v55 = vpop.permute.xlu1 %1993 }
 0x15e   : > { %v2542_v34 = vadd.f32 %v2414_v14, %v1770_v25  ;;  %v1645_v9 = vmul.f32 %v10604_v52, %v1146_v31  ;;  %1549 = vperm.xlu0 %10153, %v10901_v61   ;;  %2049 = vperm.xlu1 %10053, %v261_v17   ;;  %v2804_v53 = vmax.f32 %v2676_v8, 0.0  ;;  %v2419_v17 = vmul.f32 %v10611_v45, %v10700_v28  ;;  %v263_v14 = vld [vmem:[%s10335_s21 + $0x140] sm:$0xff] }
 0x15f   : > { %v1776_v8 = vadd.f32 %v1648_v57, %v1004_v43  ;;  %v2807_v51 = vmax.f32 %v2679_v7, 0.0 }
 0x160   : > { %v2677_v50 = vadd.f32 %v10627_v54, %v2542_v34  ;;  %v1773_v63 = vadd.f32 %v1645_v9, %v1001_v35  ;;  %9295 = vmatmul.mubr.msk.f32.vlgmr.msra.gmra.mrb[0].mxu0 %vm2944_vm0, %v2804_v53  ;;  %v10943_v35 = vld [vmem:[%s10335_s21 + $0x370] sm:$0xff]  ;;  %v2547_v48 = vadd.f32 %v2419_v17, %v1775_v46  ;;  %v1005_v9 = vmul.f32 %v10607_v27, %v10542_v59 }
 0x161   : > { %v1150_v12 = vpop.permute.xlu0 %1149  ;;  %v10934_v42 = vpop.permute.xlu1 %1997  ;;  %14512 = vst [vmem:[#allocation65_spill] sm:$0xff] %v10943_v35  ;;  %v2548_v47 = vadd.f32 %v2420_v60, %v1776_v8  ;;  %v2421_v59 = vmul.f32 %v10611_v45, %v10720_v16  ;;  %v10971_v16 = vld [vmem:[%s10335_s21 + $0x390] sm:$0xff] }
 0x162   : > { %v2545_v28 = vadd.f32 %v2417_v2, %v1773_v63  ;;  %v1646_v32 = vmul.f32 %v10604_v52, %v1150_v12  ;;  %1557 = vperm.xlu0 %10153, %v10923_v22   ;;  %10054 = vset.pattern.permute.xlu1 %v14466_v5  ;;  %v2805_v25 = vmax.f32 %v2677_v50, 0.0  ;;  %v2682_v2 = vadd.f32 %v10627_v54, %v2547_v48 }
 0x163   : > { %554 = vperm.xlu1 %10054, %v263_v14   ;;  %v2683_v63 = vadd.f32 %v10627_v54, %v2548_v47  ;;  %14514 = vst [vmem:[#allocation67_spill] sm:$0xff] %v10971_v16  ;;  %v11002_v47 = vld [vmem:[%s10335_s21 + $0x3c0] sm:$0xff] }
 0x164   : > { %v2680_v31 = vadd.f32 %v10627_v54, %v2545_v28  ;;  %v1774_v34 = vadd.f32 %v1646_v32, %v1002_v56  ;;  %9297 = vmatprep.mubr.msk.f32.mxu0 %vm2944_vm0, %v2805_v25  ;;  %v10956_v56 = vld [vmem:[%s10335_s21 + $0x380] sm:$0xff]  ;;  %v2810_v46 = vmax.f32 %v2682_v2, 0.0  ;;  %14517 = vst [vmem:[#allocation70_spill] sm:$0xff] %v11002_v47 }
 0x165   : > { %v1162_v11 = vpop.permute.xlu0 %1161  ;;  %9298 = vmatmul.mubr.msk.f32.gmra.mrb[2].mxu0 %vm2944_vm0, %v2806_v19  ;;  %14513 = vst [vmem:[#allocation66_spill] sm:$0xff] %v10956_v56  ;;  %v2811_v32 = vmax.f32 %v2683_v63, 0.0  ;;  %v267_v63 = vld [vmem:[%s10335_s21 + $0x160] sm:$0xff] }
 0x166   : > { %v2546_v53 = vadd.f32 %v2418_v10, %v1774_v34  ;;  %v1649_v43 = vmul.f32 %v10604_v52, %v1162_v11  ;;  %1565 = vperm.xlu0 %10153, %v10943_v35   ;;  %v10952_v49 = vpop.permute.xlu1 %489  ;;  %v2808_v57 = vmax.f32 %v2680_v31, 0.0  ;;  %9300 = vmatprep.mubr.msk.f32.mxu0 %vm2944_vm0, %v2807_v51  ;;  %v265_v31 = vld [vmem:[%s10335_s21 + $0x150] sm:$0xff] }
 0x167   : > { %10055 = vset.pattern.permute.xlu1 %v14458_v21 }
 0x168   : > { %v2681_v17 = vadd.f32 %v10627_v54, %v2546_v53  ;;  %v1777_v50 = vadd.f32 %v1649_v43, %v1005_v9  ;;  %1285 = vperm.xlu1 %10055, %v263_v14   ;;  %v345_v9 = vld [vmem:[%s10335_s21 + $0x3d0] sm:$0xff] }
 0x169   : > { %v10964_v7 = vpop.permute.xlu0 %1165  ;;  %9301 = vmatmul.mubr.msk.f32.gmra.mrb[4].mxu0 %vm2944_vm0, %v2808_v57  ;;  %v347_v57 = vld [vmem:[%s10335_s21 + $0x3e0] sm:$0xff] }
 0x16a   : > { %v2549_v60 = vadd.f32 %v2421_v59, %v1777_v50  ;;  %1573 = vperm.xlu0 %10153, %v10956_v56   ;;  %v2809_v12 = vmax.f32 %v2681_v17, 0.0  ;;  %v349_v17 = vld [vmem:[%s10335_s21 + $0x3f0] sm:$0xff] }
 0x16b   : > { %v10968_v10 = vpop.permute.xlu1 %2001  ;;  %v273_v56 = vld [vmem:[%s10335_s21 + $0x190] sm:$0xff] }
 0x16c   : > { %v2684_v28 = vadd.f32 %v10627_v54, %v2549_v60  ;;  %9303 = vmatprep.mubr.msk.f32.mxu0 %vm2944_vm0, %v2809_v12  ;;  %1289 = vperm.xlu1 %10055, %v10477_v36   ;;  %v10984_v54 = vld [vmem:[%s10335_s21 + $0x3a0] sm:$0xff]  ;;  %v10992_v36 = vld [vmem:[%s10335_s21 + $0x3b0] sm:$0xff] }
 0x16d   : > { %v10976_v8 = vpop.permute.xlu0 %1177  ;;  %9304 = vmatmul.mubr.msk.f32.gmra.mrb[6].mxu0 %vm2944_vm0, %v2810_v46  ;;  %14515 = vst [vmem:[#allocation68_spill] sm:$0xff] %v10984_v54  ;;  %14516 = vst [vmem:[#allocation69_spill] sm:$0xff] %v10992_v36  ;;  %v10199_v12 = vld [vmem:[%s10335_s21 + $0x50] sm:$0xff] }
 0x16e   : > { %1581 = vperm.xlu0 %10153, %v10971_v16   ;;  %v2812_v25 = vmax.f32 %v2684_v28, 0.0  ;;  %9306 = vmatprep.mubr.msk.f32.mxu0 %vm2944_vm0, %v2811_v32  ;;  %v10200_v32 = vld [vmem:[%s10335_s21 + $0x70] sm:$0xff] }
 0x170   : > { %v10981_v19 = vpop.permute.xlu1 %494  ;;  %10056 = vset.pattern.permute.xlu1 %v14460_v4 }
 0x171   : > { %v10987_v48 = vpop.permute.xlu0 %1181  ;;  %9307 = vmatmul.mubr.msk.f32.gmra.mrb[8].mxu0 %vm2944_vm0, %v2812_v25  ;;  %2057 = vperm.xlu1 %10056, %v263_v14  }
 0x172   : > { %1589 = vperm.xlu0 %10153, %v10984_v54  }
 0x175   : > { %v10995_v34 = vpop.permute.xlu0 %1193  ;;  %v10997_v51 = vpop.permute.xlu1 %1237  ;;  %10057 = vset.pattern.permute.xlu1 %v14466_v5 }
 0x176   : > { %1597 = vperm.xlu0 %10153, %v10992_v36   ;;  %564 = vperm.xlu1 %10057, %v265_v31  }
 0x179   : > { %v11004_v11 = vpop.permute.xlu0 %1197  ;;  %v11006_v14 = vpop.permute.xlu1 %1241 }
 0x17a   : > { %1605 = vperm.xlu0 %10153, %v11002_v47   ;;  %10058 = vset.pattern.permute.xlu1 %v14458_v21 }
 0x17b   : > { %1293 = vperm.xlu1 %10058, %v265_v31  }
 0x17d   : > { %v11011_v53 = vpop.permute.xlu0 %1209 }
 0x17e   : > { %v11013_v43 = vpop.permute.xlu1 %2009  ;;  %1613 = vperm.xlu0 %10153, %v345_v9   ;;  %v10201_v9 = vld [vmem:[%s10335_s21 + $0x90] sm:$0xff] }
 0x17f   : > { %1297 = vperm.xlu1 %10058, %v10482_v37  }
 0x181   : > { %v11017_v2 = vpop.permute.xlu0 %1213 }
 0x182   : > { %1621 = vperm.xlu0 %10153, %v347_v57  }
 0x183   : > { %v11019_v59 = vpop.permute.xlu1 %504  ;;  %10059 = vset.pattern.permute.xlu1 %v14460_v4 }
 0x184   : > { %2065 = vperm.xlu1 %10059, %v265_v31  }
 0x185   : > { %v11023_v50 = vpop.permute.xlu0 %1225 }
 0x186   : > { %1629 = vperm.xlu0 %10153, %v349_v17  }
 0x188   : > { %v11026_v60 = vpop.permute.xlu1 %1245  ;;  %10060 = vset.pattern.permute.xlu1 %v14466_v5 }
 0x189   : > { %v11029_v37 = vpop.permute.xlu0 %1229  ;;  %574 = vperm.xlu1 %10060, %v267_v63  }
 0x18a   : > { %10196 = vset.pattern.permute.xlu0 %v14460_v4 }
 0x18b   : > { %1937 = vperm.xlu0 %10196, %v10199_v12   ;;  %v10202_v12 = vld [vmem:[%s10335_s21 + $0xb0] sm:$0xff] }
 0x18c   : > { %v11033_v46 = vpop.permute.xlu1 %1249 }
 0x18d   : > { %v11035_v28 = vpop.permute.xlu0 %1233  ;;  %10061 = vset.pattern.permute.xlu1 %v14458_v21 }
 0x18e   : > { %1301 = vperm.xlu1 %10061, %v267_v63  }
 0x18f   : > { %1953 = vperm.xlu0 %10196, %v10200_v32   ;;  %v269_v32 = vld [vmem:[%s10335_s21 + $0x170] sm:$0xff] }
 0x191   : > { %v11039_v25 = vpop.permute.xlu1 %2017  ;;  %v11041_v31 = vpop.permute.xlu0 %1445 }
 0x192   : > { %14518 = vst [vmem:[#allocation71_spill] sm:$0xff] %v11041_v31  ;;  %1305 = vperm.xlu1 %10061, %v10487_v38  }
 0x193   : > { %1969 = vperm.xlu0 %10196, %v10201_v9  }
 0x195   : > { %v11045_v57 = vpop.permute.xlu0 %1449 }
 0x196   : > { %14519 = vst [vmem:[#allocation72_spill] sm:$0xff] %v11045_v57  ;;  %v11047_v17 = vpop.permute.xlu1 %514  ;;  %10062 = vset.pattern.permute.xlu1 %v14460_v4  ;;  %v271_v57 = vld [vmem:[%s10335_s21 + $0x180] sm:$0xff] }
 0x197   : > { %1985 = vperm.xlu0 %10196, %v10202_v12   ;;  %2073 = vperm.xlu1 %10062, %v267_v63   ;;  %v10203_v12 = vld [vmem:[%s10335_s21 + $0xf8] sm:$0xff] }
 0x199   : > { %v11051_v47 = vpop.permute.xlu0 %1457 }
 0x19a   : > { %14520 = vst [vmem:[#allocation73_spill] sm:$0xff] %v11051_v47 }
 0x19b   : > { %v11054_v36 = vpop.permute.xlu1 %1253  ;;  %2005 = vperm.xlu0 %10196, %v10676_v0   ;;  %10063 = vset.pattern.permute.xlu1 %v14466_v5 }
 0x19c   : > { %584 = vperm.xlu1 %10063, %v269_v32  }
 0x19d   : > { %v11058_v38 = vpop.permute.xlu0 %1381 }
 0x19e   : > { %14521 = vst [vmem:[#allocation74_spill] sm:$0xff] %v11058_v38  ;;  %v10204_v38 = vld [vmem:[%s10335_s21 + $0x108] sm:$0xff] }
 0x19f   : > { %v11060_v9 = vpop.permute.xlu1 %1257  ;;  %2013 = vperm.xlu0 %10196, %v10446_v30  }
 0x1a0   : > { %14522 = vst [vmem:[#allocation75_spill] sm:$0xff] %v11060_v9  ;;  %10064 = vset.pattern.permute.xlu1 %v14458_v21 }
 0x1a1   : > { %v11064_v63 = vpop.permute.xlu0 %1389  ;;  %1309 = vperm.xlu1 %10064, %v269_v32  }
 0x1a2   : > { %14523 = vst [vmem:[#allocation76_spill] sm:$0xff] %v11064_v63  ;;  %v10205_v63 = vld [vmem:[%s10335_s21 + $0x118] sm:$0xff] }
 0x1a3   : > { %2021 = vperm.xlu0 %10196, %v10203_v12  }
 0x1a4   : > { %v11067_v0 = vpop.permute.xlu1 %2025 }
 0x1a5   : > { %v11069_v47 = vpop.permute.xlu0 %1393  ;;  %1313 = vperm.xlu1 %10064, %v10493_v39   ;;  %v10206_v39 = vld [vmem:[%s10335_s21 + $0x128] sm:$0xff] }
 0x1a6   : > { %14524 = vst [vmem:[#allocation77_spill] sm:$0xff] %v11069_v47  ;;  %v10207_v47 = vld [vmem:[%s10335_s21 + $0x138] sm:$0xff] }
 0x1a7   : > { %2029 = vperm.xlu0 %10196, %v10204_v38  }
 0x1a9   : > { %v11073_v31 = vpop.permute.xlu1 %524  ;;  %v11075_v30 = vpop.permute.xlu0 %1401  ;;  %10065 = vset.pattern.permute.xlu1 %v14460_v4 }
 0x1aa   : > { %14525 = vst [vmem:[#allocation78_spill] sm:$0xff] %v11073_v31  ;;  %14526 = vst [vmem:[#allocation79_spill] sm:$0xff] %v11075_v30  ;;  %2081 = vperm.xlu1 %10065, %v269_v32  }
 0x1ab   : > { %2037 = vperm.xlu0 %10196, %v10205_v63  }
 0x1ad   : > { %v11079_v12 = vpop.permute.xlu0 %1477 }
 0x1ae   : > { %14527 = vst [vmem:[#allocation80_spill] sm:$0xff] %v11079_v12  ;;  %v11082_v54 = vpop.permute.xlu1 %1261  ;;  %10066 = vset.pattern.permute.xlu1 %v14466_v5  ;;  %v10208_v12 = vld [vmem:[%s10335_s21 + $0x148] sm:$0xff] }
 0x1af   : > { %14528 = vst [vmem:[#allocation81_spill] sm:$0xff] %v11082_v54  ;;  %2045 = vperm.xlu0 %10196, %v10206_v39   ;;  %594 = vperm.xlu1 %10066, %v271_v57  }
 0x1b1   : > { %v11086_v38 = vpop.permute.xlu0 %1485 }
 0x1b2   : > { %14529 = vst [vmem:[#allocation82_spill] sm:$0xff] %v11086_v38  ;;  %v11088_v30 = vpop.permute.xlu1 %1265  ;;  %v10209_v38 = vld [vmem:[%s10335_s21 + $0x158] sm:$0xff] }
 0x1b3   : > { %14530 = vst [vmem:[#allocation83_spill] sm:$0xff] %v11088_v30  ;;  %2053 = vperm.xlu0 %10196, %v10207_v47   ;;  %10067 = vset.pattern.permute.xlu1 %v14458_v21 }
 0x1b4   : > { %1317 = vperm.xlu1 %10067, %v271_v57  }
 0x1b5   : > { %v11092_v32 = vpop.permute.xlu0 %1489 }
 0x1b6   : > { %14531 = vst [vmem:[#allocation84_spill] sm:$0xff] %v11092_v32  ;;  %v10210_v32 = vld [vmem:[%s10335_s21 + $0x168] sm:$0xff] }
 0x1b7   : > { %v11094_v63 = vpop.permute.xlu1 %2033  ;;  %2061 = vperm.xlu0 %10196, %v10208_v12  }
 0x1b8   : > { %14532 = vst [vmem:[#allocation85_spill] sm:$0xff] %v11094_v63  ;;  %1321 = vperm.xlu1 %10067, %v10499_v40   ;;  %v10211_v40 = vld [vmem:[%s10335_s21 + $0x178] sm:$0xff] }
 0x1b9   : > { %v11098_v39 = vpop.permute.xlu0 %1497 }
 0x1ba   : > { %14533 = vst [vmem:[#allocation86_spill] sm:$0xff] %v11098_v39 }
 0x1bb   : > { %2069 = vperm.xlu0 %10196, %v10209_v38  }
 0x1bc   : > { %v11101_v16 = vpop.permute.xlu1 %534  ;;  %10068 = vset.pattern.permute.xlu1 %v14460_v4 }
 0x1bd   : > { %14534 = vst [vmem:[#allocation87_spill] sm:$0xff] %v11101_v16  ;;  %v11104_v47 = vpop.permute.xlu0 %1421  ;;  %2089 = vperm.xlu1 %10068, %v271_v57   ;;  %v10212_v57 = vld [vmem:[%s10335_s21 + $0x188] sm:$0xff]  ;;  %v275_v16 = vld [vmem:[%s10335_s21 + $0x1a0] sm:$0xff] }
 0x1be   : > { %14535 = vst [vmem:[#allocation88_spill] sm:$0xff] %v11104_v47  ;;  %v10213_v47 = vld [vmem:[%s10335_s21 + $0x198] sm:$0xff] }
 0x1bf   : > { %2077 = vperm.xlu0 %10196, %v10210_v32  }
 0x1c1   : > { %v11108_v12 = vpop.permute.xlu1 %1269  ;;  %v11110_v30 = vpop.permute.xlu0 %1429  ;;  %10069 = vset.pattern.permute.xlu1 %v14466_v5 }
 0x1c2   : > { %14536 = vst [vmem:[#allocation89_spill] sm:$0xff] %v11108_v12  ;;  %14537 = vst [vmem:[#allocation90_spill] sm:$0xff] %v11110_v30  ;;  %604 = vperm.xlu1 %10069, %v273_v56  }
 0x1c3   : > { %2085 = vperm.xlu0 %10196, %v10211_v40  }
 0x1c5   : > { %v11114_v38 = vpop.permute.xlu1 %1273  ;;  %v11116_v39 = vpop.permute.xlu0 %1433 }
 0x1c6   : > { %14538 = vst [vmem:[#allocation91_spill] sm:$0xff] %v11114_v38  ;;  %14539 = vst [vmem:[#allocation92_spill] sm:$0xff] %v11116_v39  ;;  %10070 = vset.pattern.permute.xlu1 %v14458_v21  ;;  %v10214_v39 = vld [vmem:[%s10335_s21 + $0x1a8] sm:$0xff] }
 0x1c7   : > { %2093 = vperm.xlu0 %10196, %v10212_v57   ;;  %1325 = vperm.xlu1 %10070, %v273_v56  }
 0x1c9   : > { %v11120_v32 = vpop.permute.xlu0 %1441 }
 0x1ca   : > { %14540 = vst [vmem:[#allocation93_spill] sm:$0xff] %v11120_v32  ;;  %v11122_v30 = vpop.permute.xlu1 %2041 }
 0x1cb   : > { %14541 = vst [vmem:[#allocation94_spill] sm:$0xff] %v11122_v30  ;;  %1329 = vperm.xlu1 %10070, %v10213_v47   ;;  %2101 = vperm.xlu0 %10196, %v10213_v47   ;;  %v10215_v30 = vld [vmem:[%s10335_s21 + $0x1b8] sm:$0xff] }
 0x1cd   : > { %v11125_v40 = vpop.permute.xlu0 %1517 }
 0x1ce   : > { %14542 = vst [vmem:[#allocation95_spill] sm:$0xff] %v11125_v40 }
 0x1cf   : > { %v11127_v38 = vpop.permute.xlu1 %544  ;;  %10071 = vset.pattern.permute.xlu1 %v14460_v4  ;;  %2109 = vperm.xlu0 %10196, %v10214_v39  }
 0x1d0   : > { %14543 = vst [vmem:[#allocation96_spill] sm:$0xff] %v11127_v38  ;;  %2097 = vperm.xlu1 %10071, %v273_v56   ;;  %v10216_v38 = vld [vmem:[%s10335_s21 + $0x1c8] sm:$0xff]  ;;  %v11147_v56 = vld [vmem:[%s10335_s21 + $0x1d8] sm:$0xff] }
 0x1d1   : > { %v11131_v57 = vpop.permute.xlu0 %1525 }
 0x1d2   : > { %14544 = vst [vmem:[#allocation97_spill] sm:$0xff] %v11131_v57 }
 0x1d3   : > { %2117 = vperm.xlu0 %10196, %v10215_v30  }
 0x1d4   : > { %v11134_v32 = vpop.permute.xlu1 %1277  ;;  %10072 = vset.pattern.permute.xlu1 %v14466_v5 }
 0x1d5   : > { %14545 = vst [vmem:[#allocation98_spill] sm:$0xff] %v11134_v32  ;;  %v11138_v47 = vpop.permute.xlu0 %1533  ;;  %614 = vperm.xlu1 %10072, %v275_v16  }
 0x1d6   : > { %14546 = vst [vmem:[#allocation99_spill] sm:$0xff] %v11138_v47 }
 0x1d7   : > { %2125 = vperm.xlu0 %10196, %v10216_v38  }
 0x1d8   : > { %v11140_v40 = vpop.permute.xlu1 %1281 }
 0x1d9   : > { %14547 = vst [vmem:[#allocation100_spill] sm:$0xff] %v11140_v40  ;;  %v11143_v63 = vpop.permute.xlu0 %1541  ;;  %10073 = vset.pattern.permute.xlu1 %v14458_v21  ;;  %v11161_v40 = vld [vmem:[%s10335_s21 + $0x1f0] sm:$0xff] }
 0x1da   : > { %14548 = vst [vmem:[#allocation101_spill] sm:$0xff] %v11143_v63  ;;  %1333 = vperm.xlu1 %10073, %v275_v16   ;;  %14553 = vst [vmem:[#allocation106_spill] sm:$0xff] %v11161_v40 }
 0x1db   : > { %2133 = vperm.xlu0 %10196, %v11147_v56  }
 0x1dd   : > { %v11150_v57 = vpop.permute.xlu1 %2049  ;;  %v11152_v32 = vpop.permute.xlu0 %1549 }
 0x1de   : > { %14549 = vst [vmem:[#allocation102_spill] sm:$0xff] %v11150_v57  ;;  %14550 = vst [vmem:[#allocation103_spill] sm:$0xff] %v11152_v32  ;;  %1337 = vperm.xlu1 %10073, %v10214_v39   ;;  %v277_v57 = vld [vmem:[%s10335_s21 + $0x1b0] sm:$0xff] }
 0x1df   : > { %2221 = vperm.xlu0 %10196, %v10747_v29  }
 0x1e1   : > { %v11155_v47 = vpop.permute.xlu0 %1557 }
 0x1e2   : > { %14551 = vst [vmem:[#allocation104_spill] sm:$0xff] %v11155_v47  ;;  %10074 = vset.pattern.permute.xlu1 %v14460_v4  ;;  %v11158_v63 = vpop.permute.xlu1 %554 }
 0x1e3   : > { %14552 = vst [vmem:[#allocation105_spill] sm:$0xff] %v11158_v63  ;;  %2105 = vperm.xlu1 %10074, %v275_v16   ;;  %2145 = vperm.xlu0 %10196, %v11161_v40   ;;  %v11176_v16 = vld [vmem:[%s10335_s21 + $0x208] sm:$0xff] }
 0x1e4   : > { %14558 = vst [vmem:[#allocation111_spill] sm:$0xff] %v11176_v16 }
 0x1e5   : > { %v11164_v31 = vpop.permute.xlu0 %1565 }
 0x1e6   : > { %14554 = vst [vmem:[#allocation107_spill] sm:$0xff] %v11164_v31 }
 0x1e7   : > { %10075 = vset.pattern.permute.xlu1 %v14466_v5  ;;  %v11168_v39 = vpop.permute.xlu1 %1285  ;;  %2153 = vperm.xlu0 %10196, %v10763_v18  }
 0x1e8   : > { %14555 = vst [vmem:[#allocation108_spill] sm:$0xff] %v11168_v39  ;;  %624 = vperm.xlu1 %10075, %v277_v57  }
 0x1e9   : > { %v11171_v29 = vpop.permute.xlu0 %1573 }
 0x1ea   : > { %14556 = vst [vmem:[#allocation109_spill] sm:$0xff] %v11171_v29  ;;  %v10220_v29 = vld [vmem:[%s10335_s21 + $0x2b0] sm:$0xff] }
 0x1eb   : > { %v11173_v47 = vpop.permute.xlu1 %1289  ;;  %2157 = vperm.xlu0 %10196, %v11176_v16  }
 0x1ec   : > { %14557 = vst [vmem:[#allocation110_spill] sm:$0xff] %v11173_v47  ;;  %10076 = vset.pattern.permute.xlu1 %v14458_v21 }
 0x1ed   : > { %v11180_v31 = vpop.permute.xlu0 %1581  ;;  %1341 = vperm.xlu1 %10076, %v277_v57  }
 0x1ee   : > { %14559 = vst [vmem:[#allocation112_spill] sm:$0xff] %v11180_v31  ;;  %v279_v31 = vld [vmem:[%s10335_s21 + $0x1c0] sm:$0xff] }
 0x1ef   : > { %2165 = vperm.xlu0 %10196, %v10777_v58  }
 0x1f0   : > { %v11183_v32 = vpop.permute.xlu1 %2057 }
 0x1f1   : > { %14560 = vst [vmem:[#allocation113_spill] sm:$0xff] %v11183_v32  ;;  %1345 = vperm.xlu1 %10076, %v10215_v30   ;;  %v11185_v18 = vpop.permute.xlu0 %1589  ;;  %v14575_v32 = vld [vmem:[#allocation3_spill] sm:$0xff] }
 0x1f2   : > { %14561 = vst [vmem:[#allocation114_spill] sm:$0xff] %v11185_v18  ;;  %v10221_v18 = vld [vmem:[%s10335_s21 + $0x2c8] sm:$0xff] }
 0x1f3   : > { %2241 = vperm.xlu0 %10196, %v10220_v29  }
 0x1f5   : > { %10077 = vset.pattern.permute.xlu1 %v14460_v4  ;;  %v11189_v40 = vpop.permute.xlu1 %564  ;;  %v11191_v16 = vpop.permute.xlu0 %1597 }
 0x1f6   : > { %14562 = vst [vmem:[#allocation115_spill] sm:$0xff] %v11189_v40  ;;  %14563 = vst [vmem:[#allocation116_spill] sm:$0xff] %v11191_v16  ;;  %2113 = vperm.xlu1 %10077, %v277_v57   ;;  %v1651_v16 = vmul.f32 %v10604_v52, %v10728_v20  ;;  %v2423_v20 = vmul.f32 %v10611_v45, %v10734_v15  ;;  %v14574_v40 = vld [vmem:[#allocation2_spill] sm:$0xff] }
 0x1f7   : > { %2249 = vperm.xlu0 %10196, %v10791_v44  }
 0x1f9   : > { %v11195_v58 = vpop.permute.xlu0 %1605 }
 0x1fa   : > { %14564 = vst [vmem:[#allocation117_spill] sm:$0xff] %v11195_v58  ;;  %10078 = vset.pattern.permute.xlu1 %v14466_v5  ;;  %v11198_v30 = vpop.permute.xlu1 %1293  ;;  %v10222_v58 = vld [vmem:[%s10335_s21 + $0x240] sm:$0xff] }
 0x1fb   : > { %14565 = vst [vmem:[#allocation118_spill] sm:$0xff] %v11198_v30  ;;  %634 = vperm.xlu1 %10078, %v279_v31   ;;  %2253 = vperm.xlu0 %10196, %v10221_v18   ;;  %v1006_v18 = vmul.f32 %v10607_v27, %v10565_v13  ;;  %v1653_v13 = vmul.f32 %v10604_v52, %v10976_v8 }
 0x1fc   : > { %v1011_v30 = vmul.f32 %v10607_v27, %v14574_v40  ;;  %v14579_v40 = vld [vmem:[#allocation37_spill] sm:$0xff] }
 0x1fd   : > { %v11201_v29 = vpop.permute.xlu0 %1613 }
 0x1fe   : > { %14566 = vst [vmem:[#allocation119_spill] sm:$0xff] %v11201_v29  ;;  %v11203_v47 = vpop.permute.xlu1 %1297  ;;  %v1008_v29 = vmul.f32 %v10607_v27, %v10571_v41  ;;  %v2424_v41 = vmul.f32 %v10611_v45, %v10752_v3  ;;  %v1654_v3 = vmul.f32 %v10604_v52, %v10987_v48  ;;  %v14576_v48 = vld [vmem:[#allocation7_spill] sm:$0xff] }
 0x1ff   : > { %14567 = vst [vmem:[#allocation120_spill] sm:$0xff] %v11203_v47  ;;  %10079 = vset.pattern.permute.xlu1 %v14458_v21  ;;  %2261 = vperm.xlu0 %10196, %v10806_v24   ;;  %v1652_v24 = vmul.f32 %v10604_v52, %v10741_v23  ;;  %v1009_v23 = vmul.f32 %v10607_v27, %v10556_v6 }
 0x200   : > { %1349 = vperm.xlu1 %10079, %v279_v31  }
 0x201   : > { %v11207_v44 = vpop.permute.xlu0 %1621 }
 0x202   : > { %14568 = vst [vmem:[#allocation121_spill] sm:$0xff] %v11207_v44  ;;  %v1650_v44 = vmul.f32 %v10604_v52, %v10964_v7 }
 0x203   : > { %v11209_v57 = vpop.permute.xlu1 %2065  ;;  %2185 = vperm.xlu0 %10196, %v10222_v58   ;;  %v1007_v58 = vmul.f32 %v10607_v27, %v10549_v62 }
 0x204   : > { %14569 = vst [vmem:[#allocation122_spill] sm:$0xff] %v11209_v57  ;;  %1353 = vperm.xlu1 %10079, %v10216_v38   ;;  %v14572_v38 = vld [vmem:[#allocation5_spill] sm:$0xff]  ;;  %v1778_v8 = vadd.f32 %v1650_v44, %v1006_v18  ;;  %v14573_v57 = vld [vmem:[#allocation35_spill] sm:$0xff]  ;;  %v11250_v44 = vld [vmem:[%s10335_s21 + $0x1d0] sm:$0xff] }
 0x205   : > { %v11222_v47 = vpop.permute.xlu0 %1629  ;;  %v1779_v7 = vadd.f32 %v1651_v16, %v1007_v58  ;;  %v1010_v15 = vmul.f32 %v10607_v27, %v14572_v38  ;;  %v1655_v6 = vmul.f32 %v10604_v52, %v14573_v57  ;;  %v1781_v16 = vadd.f32 %v1653_v13, %v1009_v23  ;;  %v10223_v18 = vld [vmem:[%s10335_s21 + $0x258] sm:$0xff] }
 0x206   : > { %14570 = vst [vmem:[#allocation123_spill] sm:$0xff] %v11222_v47  ;;  %v1780_v47 = vadd.f32 %v1652_v24, %v1008_v29  ;;  %v14577_v24 = vld [vmem:[#allocation9_spill] sm:$0xff]  ;;  %v2427_v23 = vmul.f32 %v10611_v45, %v14579_v40 }
 0x207   : > { %2193 = vperm.xlu0 %10196, %v10821_v33   ;;  %v2551_v33 = vadd.f32 %v2423_v20, %v1779_v7  ;;  %v1014_v57 = vmul.f32 %v10607_v27, %v14577_v24  ;;  %v14578_v20 = vld [vmem:[#allocation33_spill] sm:$0xff]  ;;  %v1658_v7 = vmul.f32 %v10604_v52, %v11004_v11  ;;  %v1783_v24 = vadd.f32 %v1655_v6, %v1011_v30  ;;  %v14585_v6 = vld [vmem:[#allocation11_spill] sm:$0xff] }
 0x208   : > { %10080 = vset.pattern.permute.xlu1 %v14460_v4  ;;  %v11236_v62 = vpop.permute.xlu1 %574  ;;  %v2552_v63 = vadd.f32 %v2424_v41, %v1780_v47  ;;  %v2425_v13 = vmul.f32 %v10611_v45, %v14578_v20  ;;  %v1782_v41 = vadd.f32 %v1654_v3, %v1010_v15  ;;  %v1657_v15 = vmul.f32 %v10604_v52, %v10995_v34 }
 0x209   : > { %14571 = vst [vmem:[#allocation124_spill] sm:$0xff] %v11236_v62  ;;  %2121 = vperm.xlu1 %10080, %v279_v31   ;;  %v1013_v62 = vmul.f32 %v10607_v27, %v14575_v32  ;;  %v1012_v31 = vmul.f32 %v10607_v27, %v14576_v48  ;;  %v14580_v32 = vld [vmem:[#allocation39_spill] sm:$0xff]  ;;  %v1016_v34 = vmul.f32 %v10607_v27, %v14585_v6 }
 0x20a   : > { %v1938_v58 = vpop.permute.xlu0 %1937  ;;  %v1656_v47 = vmul.f32 %v10604_v52, %v14580_v32  ;;  %v2553_v20 = vadd.f32 %v2425_v13, %v1781_v16  ;;  %v14586_v16 = vld [vmem:[#allocation12_spill] sm:$0xff]  ;;  %v2555_v39 = vadd.f32 %v2427_v23, %v1783_v24  ;;  %v1786_v35 = vadd.f32 %v1658_v7, %v1014_v57  ;;  %v10225_v24 = vld [vmem:[%s10335_s21 + $0x300] sm:$0xff] }
 0x20b   : > { %v2422_v29 = vmul.f32 %v10611_v45, %v1938_v58  ;;  %2197 = vperm.xlu0 %10196, %v10223_v18   ;;  %v11271_v18 = vld [vmem:[%s14425_s3] ss:$0 sm:$0xff]  ;;  %v1018_v13 = vmul.f32 %v10607_v27, %v14586_v16  ;;  %v1785_v9 = vadd.f32 %v1657_v15, %v1013_v62  ;;  %v14588_v23 = vld [vmem:[#allocation44_spill] sm:$0xff] }
 0x20c   : > { %v2686_v48 = vadd.f32 %v11271_v18, %v2551_v33  ;;  %v2687_v11 = vadd.f32 %v11271_v18, %v2552_v63  ;;  %v14584_v33 = vld [vmem:[#allocation4_spill] sm:$0xff]  ;;  %v1784_v63 = vadd.f32 %v1656_v47, %v1012_v31  ;;  %v2429_v47 = vmul.f32 %v10611_v45, %v14588_v23  ;;  %v14590_v62 = vld [vmem:[#allocation50_spill] sm:$0xff] }
 0x20d   : > { %v2550_v38 = vadd.f32 %v2422_v29, %v1778_v8  ;;  %10081 = vset.pattern.permute.xlu1 %v14466_v5  ;;  %v11266_v58 = vpop.permute.xlu1 %1301  ;;  %v14582_v8 = vld [vmem:[#allocation42_spill] sm:$0xff]  ;;  %v1015_v30 = vmul.f32 %v10607_v27, %v14584_v33  ;;  %v2688_v33 = vadd.f32 %v11271_v18, %v2553_v20  ;;  %v2690_v20 = vadd.f32 %v11271_v18, %v2555_v39 }
 0x20e   : > { %14581 = vst [vmem:[#allocation5_spill] sm:$0xff] %v11266_v58  ;;  %v1954_v3 = vpop.permute.xlu0 %1953  ;;  %644 = vperm.xlu1 %10081, %v11250_v44   ;;  %v2428_v29 = vmul.f32 %v10611_v45, %v14582_v8  ;;  %v14583_v58 = vld [vmem:[#allocation52_spill] sm:$0xff]  ;;  %v2815_v6 = vmax.f32 %v2687_v11, 0.0  ;;  %v14592_v23 = vld [vmem:[#allocation54_spill] sm:$0xff] }
 0x20f   : > { %v2685_v40 = vadd.f32 %v11271_v18, %v2550_v38  ;;  %v2426_v32 = vmul.f32 %v10611_v45, %v1954_v3  ;;  %2205 = vperm.xlu0 %10196, %v14583_v58   ;;  %v2814_v38 = vmax.f32 %v2686_v48, 0.0  ;;  %v14587_v3 = vld [vmem:[#allocation46_spill] sm:$0xff]  ;;  %v1660_v48 = vmul.f32 %v10604_v52, %v14590_v62  ;;  %v14596_v62 = vld [vmem:[#allocation8_spill] sm:$0xff] }
 0x210   : > { %v1659_v58 = vmul.f32 %v10604_v52, %v14587_v3  ;;  %v2556_v16 = vadd.f32 %v2428_v29, %v1784_v63  ;;  %v2557_v29 = vadd.f32 %v2429_v47, %v1785_v9  ;;  %v1664_v47 = vmul.f32 %v10604_v52, %v10889_v26 }
 0x211   : > { %v2813_v12 = vmax.f32 %v2685_v40, 0.0  ;;  %v2554_v8 = vadd.f32 %v2426_v32, %v1782_v41  ;;  %v11289_v54 = vpop.permute.xlu1 %1305  ;;  %v14589_v41 = vld [vmem:[#allocation48_spill] sm:$0xff]  ;;  %v1661_v40 = vmul.f32 %v10604_v52, %v11011_v53  ;;  %v14594_v53 = vld [vmem:[#allocation57_spill] sm:$0xff] }
 0x212   : > { %v1970_v22 = vpop.permute.xlu0 %1969  ;;  %10082 = vset.pattern.permute.xlu1 %v14458_v21  ;;  %v2431_v7 = vmul.f32 %v10611_v45, %v14589_v41  ;;  %v1787_v11 = vadd.f32 %v1659_v58, %v1015_v30  ;;  %v2691_v39 = vadd.f32 %v11271_v18, %v2556_v16  ;;  %v1788_v58 = vadd.f32 %v1660_v48, %v1016_v34 }
 0x213   : > { %v2689_v31 = vadd.f32 %v11271_v18, %v2554_v8  ;;  %v2430_v57 = vmul.f32 %v10611_v45, %v1970_v22  ;;  %9309 = vmatprep.mubr.msk.f32.mxu0 %vm2944_vm0, %v2813_v12  ;;  %1357 = vperm.xlu1 %10082, %v11250_v44   ;;  %v1662_v22 = vmul.f32 %v10604_v52, %v11017_v2  ;;  %v2816_v8 = vmax.f32 %v2688_v33, 0.0  ;;  %v14595_v33 = vld [vmem:[#allocation59_spill] sm:$0xff] }
 0x214   : > { %9310 = vmatmul.mubr.msk.f32.gmra.mrb[10].mxu0 %vm2944_vm0, %v2814_v38  ;;  %2281 = vperm.xlu0 %10196, %v10225_v24   ;;  %v14591_v38 = vld [vmem:[#allocation6_spill] sm:$0xff]  ;;  %v2432_v2 = vmul.f32 %v10611_v45, %v14592_v23  ;;  %v2559_v30 = vadd.f32 %v2431_v7, %v1787_v11  ;;  %v2692_v34 = vadd.f32 %v11271_v18, %v2557_v29  ;;  %v2819_v24 = vmax.f32 %v2691_v39, 0.0 }
 0x215   : > { %v2817_v12 = vmax.f32 %v2689_v31, 0.0  ;;  %v2558_v15 = vadd.f32 %v2430_v57, %v1786_v35  ;;  %9312 = vmatprep.mubr.msk.f32.mxu0 %vm2944_vm0, %v2815_v6  ;;  %v1017_v3 = vmul.f32 %v10607_v27, %v14591_v38  ;;  %v14593_v35 = vld [vmem:[#allocation13_spill] sm:$0xff]  ;;  %v1663_v6 = vmul.f32 %v10604_v52, %v14595_v33  ;;  %v14599_v38 = vld [vmem:[#allocation60_spill] sm:$0xff]  ;;  %v14601_v33 = vld [vmem:[#allocation10_spill] sm:$0xff] }
 0x216   : > { %v1986_v32 = vpop.permute.xlu0 %1985  ;;  %v11313_v63 = vpop.permute.xlu1 %2073  ;;  %v1020_v9 = vmul.f32 %v10607_v27, %v14593_v35  ;;  %v1790_v31 = vadd.f32 %v1662_v22, %v1018_v13  ;;  %v1019_v48 = vmul.f32 %v10607_v27, %v14596_v62  ;;  %v2560_v11 = vadd.f32 %v2432_v2, %v1788_v58  ;;  %v14597_v22 = vld [vmem:[#allocation56_spill] sm:$0xff]  ;;  %v11352_v35 = vld [vmem:[%s10335_s21 + $0x1e0] sm:$0xff] }
 0x217   : > { %1361 = vperm.xlu1 %10082, %v11147_v56   ;;  %v2693_v16 = vadd.f32 %v11271_v18, %v2558_v15  ;;  %v2434_v57 = vmul.f32 %v10611_v45, %v1986_v32  ;;  %v2818_v56 = vmax.f32 %v2690_v20, 0.0  ;;  %v1789_v41 = vadd.f32 %v1661_v40, %v1017_v3  ;;  %v14598_v20 = vld [vmem:[#allocation62_spill] sm:$0xff] }
 0x218   : > { %9313 = vmatmul.mubr.msk.f32.gmra.mrb[12].mxu0 %vm2944_vm0, %v2816_v8  ;;  %2289 = vperm.xlu0 %10196, %v14594_v53   ;;  %v2435_v26 = vmul.f32 %v10611_v45, %v14598_v20  ;;  %v2436_v15 = vmul.f32 %v10611_v45, %v10909_v55  ;;  %v2694_v29 = vadd.f32 %v11271_v18, %v2559_v30  ;;  %v2820_v55 = vmax.f32 %v2692_v34, 0.0  ;;  %v14600_v58 = vld [vmem:[#allocation14_spill] sm:$0xff]  ;;  %v14602_v34 = vld [vmem:[#allocation63_spill] sm:$0xff] }
 0x219   : > { %9315 = vmatprep.mubr.msk.f32.mxu0 %vm2944_vm0, %v2817_v12  ;;  %v2433_v12 = vmul.f32 %v10611_v45, %v14597_v22  ;;  %v1791_v40 = vadd.f32 %v1663_v6, %v1019_v48  ;;  %v2821_v32 = vmax.f32 %v2693_v16, 0.0  ;;  %v2562_v8 = vadd.f32 %v2434_v57, %v1790_v31 }
 0x21a   : > { %v2006_v7 = vpop.permute.xlu0 %2005  ;;  %v1792_v3 = vadd.f32 %v1664_v47, %v1020_v9  ;;  %v1665_v23 = vmul.f32 %v10604_v52, %v11023_v50  ;;  %v2695_v30 = vadd.f32 %v11271_v18, %v2560_v11  ;;  %v1666_v53 = vmul.f32 %v10604_v52, %v11029_v37 }
 0x21b   : > { %10083 = vset.pattern.permute.xlu1 %v14460_v4  ;;  %v11336_v13 = vpop.permute.xlu1 %584  ;;  %v2561_v39 = vadd.f32 %v2433_v12, %v1789_v41  ;;  %v1021_v6 = vmul.f32 %v10607_v27, %v14601_v33  ;;  %v2563_v9 = vadd.f32 %v2435_v26, %v1791_v40  ;;  %v2697_v16 = vadd.f32 %v11271_v18, %v2562_v8  ;;  %v14603_v8 = vld [vmem:[#allocation15_spill] sm:$0xff] }
 0x21c   : > { %9316 = vmatmul.mubr.msk.f32.gmra.mrb[14].mxu0 %vm2944_vm0, %v2818_v56  ;;  %2129 = vperm.xlu1 %10083, %v11250_v44   ;;  %v1022_v44 = vmul.f32 %v10607_v27, %v14600_v58  ;;  %v2564_v31 = vadd.f32 %v2436_v15, %v1792_v3  ;;  %v2822_v57 = vmax.f32 %v2694_v29, 0.0  ;;  %v2823_v41 = vmax.f32 %v2695_v30, 0.0 }
 0x21d   : > { %9318 = vmatprep.mubr.msk.f32.mxu0 %vm2944_vm0, %v2819_v24  ;;  %2297 = vperm.xlu0 %10196, %v14599_v38   ;;  %v2696_v37 = vadd.f32 %v11271_v18, %v2561_v39  ;;  %v1793_v56 = vadd.f32 %v1665_v23, %v1021_v6  ;;  %v1668_v62 = vmul.f32 %v10604_v52, %v10997_v51  ;;  %v2825_v29 = vmax.f32 %v2697_v16, 0.0 }
 0x21e   : > { %v2014_v2 = vpop.permute.xlu0 %2013  ;;  %v1794_v48 = vadd.f32 %v1666_v53, %v1022_v44  ;;  %v2698_v24 = vadd.f32 %v11271_v18, %v2563_v9  ;;  %v2699_v11 = vadd.f32 %v11271_v18, %v2564_v31  ;;  %v2437_v22 = vmul.f32 %v10611_v45, %v10934_v42 }
 0x21f   : > { %v1667_v12 = vmul.f32 %v10604_v52, %v11035_v28  ;;  %v2438_v26 = vmul.f32 %v10611_v45, %v10968_v10  ;;  %v1024_v51 = vmul.f32 %v10607_v27, %v10981_v19  ;;  %v2440_v15 = vmul.f32 %v10611_v45, %v11013_v43 }
 0x220   : > { %9319 = vmatmul.mubr.msk.f32.gmra.mrb[16].mxu0 %vm2944_vm0, %v2820_v55  ;;  %10084 = vset.pattern.permute.xlu1 %v14466_v5  ;;  %v11363_v50 = vpop.permute.xlu1 %1309  ;;  %v1023_v42 = vmul.f32 %v10607_v27, %v10952_v49  ;;  %v2565_v28 = vadd.f32 %v2437_v22, %v1793_v56  ;;  %v2439_v40 = vmul.f32 %v10611_v45, %v2006_v7  ;;  %v2824_v10 = vmax.f32 %v2696_v37, 0.0  ;;  %v14606_v22 = vld [vmem:[#allocation17_spill] sm:$0xff] }
 0x221   : > { %654 = vperm.xlu1 %10084, %v11352_v35   ;;  %9321 = vmatprep.mubr.msk.f32.mxu0 %vm2944_vm0, %v2821_v32  ;;  %v1796_v19 = vadd.f32 %v1668_v62, %v1024_v51  ;;  %v2566_v43 = vadd.f32 %v2438_v26, %v1794_v48  ;;  %v1025_v38 = vmul.f32 %v10607_v27, %v14603_v8  ;;  %v2826_v49 = vmax.f32 %v2698_v24, 0.0  ;;  %v14605_v48 = vld [vmem:[#allocation64_spill] sm:$0xff] }
 0x222   : > { %v2022_v47 = vpop.permute.xlu0 %2021  ;;  %2305 = vperm.xlu0 %10196, %v14602_v34   ;;  %v1669_v3 = vmul.f32 %v10604_v52, %v11006_v14  ;;  %v1795_v39 = vadd.f32 %v1667_v12, %v1023_v42  ;;  %v1670_v23 = vmul.f32 %v10604_v52, %v11026_v60  ;;  %v2700_v58 = vadd.f32 %v11271_v18, %v2565_v28  ;;  %v11409_v14 = vld [vmem:[%s10335_s21 + $0x1e8] sm:$0xff] }
 0x223   : > { %v2568_v7 = vadd.f32 %v2440_v15, %v1796_v19  ;;  %v2441_v30 = vmul.f32 %v10611_v45, %v2014_v2  ;;  %v1026_v60 = vmul.f32 %v10607_v27, %v11019_v59  ;;  %v2701_v33 = vadd.f32 %v11271_v18, %v2566_v43  ;;  %v14604_v2 = vld [vmem:[#allocation16_spill] sm:$0xff]  ;;  %v14608_v15 = vld [vmem:[#allocation75_spill] sm:$0xff]  ;;  %v14610_v19 = vld [vmem:[#allocation89_spill] sm:$0xff] }
 0x224   : > { %9322 = vmatmul.mubr.msk.f32.gmra.mrb[18].mxu0 %vm2944_vm0, %v2822_v57  ;;  %v11379_v20 = vpop.permute.xlu1 %1313  ;;  %v2567_v44 = vadd.f32 %v2439_v40, %v1795_v39  ;;  %v2442_v6 = vmul.f32 %v10611_v45, %v11039_v25  ;;  %v1672_v9 = vmul.f32 %v10604_v52, %v11054_v36  ;;  %v1027_v31 = vmul.f32 %v10607_v27, %v14604_v2  ;;  %v14609_v40 = vld [vmem:[#allocation81_spill] sm:$0xff] }
 0x225   : > { %9324 = vmatprep.mubr.msk.f32.mxu0 %vm2944_vm0, %v2823_v41  ;;  %10085 = vset.pattern.permute.xlu1 %v14458_v21  ;;  %v1797_v16 = vadd.f32 %v1669_v3, %v1025_v38  ;;  %v1671_v57 = vmul.f32 %v10604_v52, %v11033_v46  ;;  %v1798_v59 = vadd.f32 %v1670_v23, %v1026_v60  ;;  %v2828_v62 = vmax.f32 %v2700_v58, 0.0  ;;  %v14611_v23 = vld [vmem:[#allocation65_spill] sm:$0xff]  ;;  %v14612_v58 = vld [vmem:[#allocation78_spill] sm:$0xff] }
 0x226   : > { %v2030_v32 = vpop.permute.xlu0 %2029  ;;  %1365 = vperm.xlu1 %10085, %v11352_v35   ;;  %2313 = vperm.xlu0 %10196, %v10885_v1   ;;  %v2827_v1 = vmax.f32 %v2699_v11, 0.0  ;;  %v1028_v37 = vmul.f32 %v10607_v27, %v11047_v17  ;;  %v2444_v25 = vmul.f32 %v10611_v45, %v11067_v0  ;;  %v2702_v36 = vadd.f32 %v11271_v18, %v2567_v44  ;;  %v11440_v11 = vld [vmem:[%s10335_s21 + $0x280] sm:$0xff] }
 0x227   : > { %v2569_v56 = vadd.f32 %v2441_v30, %v1797_v16  ;;  %v2443_v34 = vmul.f32 %v10611_v45, %v2022_v47  ;;  %v2570_v17 = vadd.f32 %v2442_v6, %v1798_v59  ;;  %v2829_v0 = vmax.f32 %v2701_v33, 0.0  ;;  %v14607_v47 = vld [vmem:[#allocation18_spill] sm:$0xff]  ;;  %v14613_v30 = vld [vmem:[#allocation85_spill] sm:$0xff]  ;;  %v14614_v33 = vld [vmem:[#allocation87_spill] sm:$0xff] }
 0x228   : > { %9325 = vmatmul.mubr.msk.f32.gmra.mrb[20].mxu0 %vm2944_vm0, %v2824_v10  ;;  %v1800_v24 = vadd.f32 %v1672_v9, %v1028_v37  ;;  %v1029_v12 = vmul.f32 %v10607_v27, %v14606_v22  ;;  %v1031_v26 = vmul.f32 %v10607_v27, %v14607_v47  ;;  %v1799_v51 = vadd.f32 %v1671_v57, %v1027_v31  ;;  %v14615_v31 = vld [vmem:[#allocation83_spill] sm:$0xff]  ;;  %v14616_v57 = vld [vmem:[#allocation94_spill] sm:$0xff] }
 0x229   : > { %v11401_v55 = vpop.permute.xlu1 %2081  ;;  %9327 = vmatprep.mubr.msk.f32.mxu0 %vm2944_vm0, %v2825_v29  ;;  %v1673_v29 = vmul.f32 %v10604_v52, %v14608_v15  ;;  %v1674_v10 = vmul.f32 %v10604_v52, %v14609_v40  ;;  %v1676_v43 = vmul.f32 %v10604_v52, %v14610_v19  ;;  %v2830_v8 = vmax.f32 %v2702_v36, 0.0  ;;  %v10228_v19 = vld [vmem:[%s10335_s21 + $0x288] sm:$0xff] }
 0x22a   : > { %v11406_v53 = vpop.permute.xlu0 %2037  ;;  %1369 = vperm.xlu1 %10085, %v11409_v14   ;;  %2321 = vperm.xlu0 %10196, %v10901_v61   ;;  %v2703_v61 = vadd.f32 %v11271_v18, %v2568_v7  ;;  %v2572_v28 = vadd.f32 %v2444_v25, %v1800_v24  ;;  %v2704_v38 = vadd.f32 %v11271_v18, %v2569_v56 }
 0x22b   : > { %v2571_v3 = vadd.f32 %v2443_v34, %v1799_v51  ;;  %v2445_v39 = vmul.f32 %v10611_v45, %v2030_v32  ;;  %v1030_v44 = vmul.f32 %v10607_v27, %v14612_v58  ;;  %v2446_v60 = vmul.f32 %v10611_v45, %v14613_v30  ;;  %v14619_v51 = vld [vmem:[#allocation91_spill] sm:$0xff]  ;;  %v14623_v58 = vld [vmem:[#allocation102_spill] sm:$0xff]  ;;  %v14624_v30 = vld [vmem:[#allocation108_spill] sm:$0xff] }
 0x22c   : > { %9328 = vmatmul.mubr.msk.f32.gmra.mrb[22].mxu0 %vm2944_vm0, %v2826_v49  ;;  %v2831_v42 = vmax.f32 %v2703_v61, 0.0  ;;  %v1032_v6 = vmul.f32 %v10607_v27, %v14614_v33  ;;  %v1801_v2 = vadd.f32 %v1673_v29, %v1029_v12  ;;  %v1675_v16 = vmul.f32 %v10604_v52, %v14615_v31  ;;  %v14625_v33 = vld [vmem:[#allocation20_spill] sm:$0xff] }
 0x22d   : > { %9330 = vmatprep.mubr.msk.f32.mxu0 %vm2944_vm0, %v2827_v1  ;;  %v2705_v1 = vadd.f32 %v11271_v18, %v2570_v17  ;;  %v2448_v61 = vmul.f32 %v10611_v45, %v14616_v57  ;;  %v2707_v59 = vadd.f32 %v11271_v18, %v2572_v28  ;;  %v1802_v37 = vadd.f32 %v1674_v10, %v1030_v44  ;;  %v14618_v17 = vld [vmem:[#allocation19_spill] sm:$0xff]  ;;  %v14620_v28 = vld [vmem:[#allocation98_spill] sm:$0xff] }
 0x22e   : > { %v11433_v46 = vpop.permute.xlu0 %2045  ;;  %10086 = vset.pattern.permute.xlu1 %v14466_v5  ;;  %v11436_v41 = vpop.permute.xlu1 %594  ;;  %2329 = vperm.xlu0 %10196, %v14605_v48   ;;  %v1804_v25 = vadd.f32 %v1676_v43, %v1032_v6  ;;  %v2832_v36 = vmax.f32 %v2704_v38, 0.0  ;;  %v2706_v56 = vadd.f32 %v11271_v18, %v2571_v3  ;;  %v2573_v34 = vadd.f32 %v2445_v39, %v1801_v2  ;;  %v14617_v48 = vld [vmem:[#allocation66_spill] sm:$0xff]  ;;  %v14621_v3 = vld [vmem:[#allocation67_spill] sm:$0xff] }
 0x22f   : > { %754 = vperm.xlu1 %10086, %v11440_v11   ;;  %v1033_v24 = vmul.f32 %v10607_v27, %v14618_v17  ;;  %v1803_v47 = vadd.f32 %v1675_v16, %v1031_v26  ;;  %v1677_v15 = vmul.f32 %v10604_v52, %v14619_v51  ;;  %v1678_v40 = vmul.f32 %v10604_v52, %v14620_v28 }
 0x230   : > { %9331 = vmatmul.mubr.msk.f32.gmra.mrb[24].mxu0 %vm2944_vm0, %v2828_v62  ;;  %v2447_v62 = vmul.f32 %v10611_v45, %v11406_v53  ;;  %v2576_v29 = vadd.f32 %v2448_v61, %v1804_v25  ;;  %v2835_v53 = vmax.f32 %v2707_v59, 0.0  ;;  %v2834_v26 = vmax.f32 %v2706_v56, 0.0 }
 0x231   : > { %9333 = vmatprep.mubr.msk.f32.mxu0 %vm2944_vm0, %v2829_v0  ;;  %v2574_v0 = vadd.f32 %v2446_v60, %v1802_v37  ;;  %v2708_v43 = vadd.f32 %v11271_v18, %v2573_v34  ;;  %v2449_v38 = vmul.f32 %v10611_v45, %v11433_v46  ;;  %v2450_v44 = vmul.f32 %v10611_v45, %v14623_v58  ;;  %v14626_v46 = vld [vmem:[#allocation100_spill] sm:$0xff]  ;;  %v14627_v37 = vld [vmem:[#allocation105_spill] sm:$0xff] }
 0x232   : > { %v11457_v49 = vpop.permute.xlu0 %2053  ;;  %2337 = vperm.xlu0 %10196, %v14611_v23   ;;  %v14622_v23 = vld [vmem:[#allocation96_spill] sm:$0xff]  ;;  %v1680_v60 = vmul.f32 %v10604_v52, %v14624_v30  ;;  %v1035_v6 = vmul.f32 %v10607_v27, %v14625_v33  ;;  %v1805_v2 = vadd.f32 %v1677_v15, %v1033_v24  ;;  %v2711_v31 = vadd.f32 %v11271_v18, %v2576_v29  ;;  %v14630_v29 = vld [vmem:[#allocation21_spill] sm:$0xff] }
 0x233   : > { %v11459_v7 = vpop.f32.mrb[0].mxu0  ;;  %10087 = vset.pattern.permute.xlu1 %v14460_v4  ;;  %v11470_v32 = vpop.permute.xlu1 %1317  ;;  %v2709_v39 = vadd.f32 %v11271_v18, %v2574_v0  ;;  %v1679_v16 = vmul.f32 %v10604_v52, %v14626_v46  ;;  %v1036_v25 = vmul.f32 %v10607_v27, %v14627_v37  ;;  %v14629_v0 = vld [vmem:[#allocation68_spill] sm:$0xff]  ;;  %v1037_v28 = vmul.f32 %v10607_v27, %v14630_v29 }
 0x234   : > { %v11472_v9 = vpop.f32.mrb[1].mxu0  ;;  %9334 = vmatmul.mubr.msk.f32.gmra.mrb[26].mxu0 %vm2944_vm0, %v2830_v8  ;;  %2137 = vperm.xlu1 %10087, %v11352_v35   ;;  %v2833_v35 = vmax.f32 %v2705_v1, 0.0  ;;  %v2575_v8 = vadd.f32 %v2447_v62, %v1803_v47  ;;  %v1034_v1 = vmul.f32 %v10607_v27, %v14622_v23  ;;  %v2577_v24 = vadd.f32 %v2449_v38, %v1805_v2  ;;  %v14633_v38 = vld [vmem:[#allocation5_spill] sm:$0xff] }
 0x235   : > { %9336 = vmatprep.mubr.msk.f32.mxu0 %vm2944_vm0, %v2831_v42  ;;  %v2837_v47 = vmax.f32 %v2709_v39, 0.0  ;;  %v1808_v15 = vadd.f32 %v1680_v60, %v1036_v25  ;;  %v14634_v60 = vld [vmem:[#allocation69_spill] sm:$0xff]  ;;  %v14638_v25 = vld [vmem:[#allocation106_spill] sm:$0xff] }
 0x236   : > { %2345 = vperm.xlu0 %10196, %v14617_v48   ;;  %v2062_v22 = vpop.permute.xlu0 %2061  ;;  %v1806_v59 = vadd.f32 %v1678_v40, %v1034_v1  ;;  %v2836_v48 = vmax.f32 %v2708_v43, 0.0  ;;  %v2710_v17 = vadd.f32 %v11271_v18, %v2575_v8  ;;  %v14631_v40 = vld [vmem:[#allocation110_spill] sm:$0xff]  ;;  %v2839_v43 = vmax.f32 %v2711_v31, 0.0 }
 0x237   : > { %v11488_v12 = vpop.permute.xlu1 %1321  ;;  %v14632_v8 = vld [vmem:[#allocation118_spill] sm:$0xff]  ;;  %v2712_v58 = vadd.f32 %v11271_v18, %v2577_v24  ;;  %v2453_v30 = vmul.f32 %v10611_v45, %v2062_v22  ;;  %v2456_v24 = vmul.f32 %v10611_v45, %v11313_v63 }
 0x238   : > { %v11492_v42 = vpop.f32.mrb[2].mxu0  ;;  %9337 = vmatmul.mubr.msk.f32.gmra.mrb[28].mxu0 %vm2944_vm0, %v2832_v36  ;;  %10088 = vset.pattern.permute.xlu1 %v14466_v5  ;;  %v14628_v36 = vld [vmem:[#allocation113_spill] sm:$0xff]  ;;  %v2578_v51 = vadd.f32 %v2450_v44, %v1806_v59  ;;  %v2838_v1 = vmax.f32 %v2710_v17, 0.0  ;;  %v14636_v31 = vld [vmem:[#allocation122_spill] sm:$0xff] }
 0x239   : > { %v11498_v10 = vpop.f32.mrb[3].mxu0  ;;  %9339 = vmatprep.mubr.msk.f32.mxu0 %vm2944_vm0, %v2833_v35  ;;  %759 = vperm.xlu1 %10088, %v10228_v19   ;;  %v2452_v56 = vmul.f32 %v10611_v45, %v14628_v36  ;;  %v2451_v35 = vmul.f32 %v10611_v45, %v11457_v49  ;;  %v1681_v19 = vmul.f32 %v10604_v52, %v14631_v40  ;;  %v14639_v36 = vld [vmem:[#allocation22_spill] sm:$0xff]  ;;  %v2840_v29 = vmax.f32 %v2712_v58, 0.0 }
 0x23a   : > { %2353 = vperm.xlu0 %10196, %v14621_v3   ;;  %v2070_v34 = vpop.permute.xlu0 %2069  ;;  %v1684_v3 = vmul.f32 %v10604_v52, %v14633_v38  ;;  %v2713_v33 = vadd.f32 %v11271_v18, %v2578_v51  ;;  %v2454_v46 = vmul.f32 %v10611_v45, %v14636_v31  ;;  %v1039_v22 = vmul.f32 %v10607_v27, %v14639_v36  ;;  %v14641_v63 = vld [vmem:[#allocation70_spill] sm:$0xff] }
 0x23b   : > { %v2580_v49 = vadd.f32 %v2452_v56, %v1808_v15  ;;  %v1809_v56 = vadd.f32 %v1681_v19, %v1037_v28  ;;  %v2455_v40 = vmul.f32 %v10611_v45, %v2070_v34  ;;  %v1686_v34 = vmul.f32 %v10604_v52, %v11363_v50 }
 0x23c   : > { %v11518_v57 = vpop.f32.mrb[4].mxu0  ;;  %9340 = vmatmul.mubr.msk.f32.gmra.mrb[30].mxu0 %vm2944_vm0, %v2834_v26  ;;  %v11521_v61 = vpop.permute.xlu1 %2089  ;;  %v1042_v50 = vmul.f32 %v10607_v27, %v11336_v13  ;;  %v1688_v13 = vmul.f32 %v10604_v52, %v11470_v32  ;;  %v1044_v32 = vmul.f32 %v10607_v27, %v11436_v41 }
 0x23d   : > { %v11527_v62 = vpop.f32.mrb[5].mxu0  ;;  %9342 = vmatprep.mubr.msk.f32.mxu0 %vm2944_vm0, %v2835_v53  ;;  %10089 = vset.pattern.permute.xlu1 %v14460_v4  ;;  %v1807_v53 = vadd.f32 %v1679_v16, %v1035_v6  ;;  %v14635_v6 = vld [vmem:[#allocation115_spill] sm:$0xff]  ;;  %v14637_v16 = vld [vmem:[#allocation124_spill] sm:$0xff] }
 0x23e   : > { %2141 = vperm.xlu1 %10089, %v11409_v14   ;;  %2361 = vperm.xlu0 %10196, %v14629_v0   ;;  %v1682_v14 = vmul.f32 %v10604_v52, %v14632_v8  ;;  %v1038_v2 = vmul.f32 %v10607_v27, %v14635_v6  ;;  %v1040_v59 = vmul.f32 %v10607_v27, %v14637_v16  ;;  %v2078_v37 = vpop.permute.xlu0 %2077  ;;  %v14642_v8 = vld [vmem:[#allocation23_spill] sm:$0xff]  ;;  %v14643_v16 = vld [vmem:[#allocation24_spill] sm:$0xff] }
 0x23f   : > { %v2579_v44 = vadd.f32 %v2451_v35, %v1807_v53  ;;  %v2715_v0 = vadd.f32 %v11271_v18, %v2580_v49  ;;  %v2581_v53 = vadd.f32 %v2453_v30, %v1809_v56  ;;  %v1041_v38 = vmul.f32 %v10607_v27, %v14642_v8  ;;  %v11608_v56 = vld [vmem:[%s10335_s21 + $0x1f8] sm:$0xff] }
 0x240   : > { %v11540_v26 = vpop.f32.mrb[6].mxu0  ;;  %9343 = vmatmul.mubr.msk.f32.gmra.mrb[32].mxu0 %vm2944_vm0, %v2836_v48  ;;  %v14640_v48 = vld [vmem:[#allocation120_spill] sm:$0xff]  ;;  %v1812_v51 = vadd.f32 %v1684_v3, %v1040_v59  ;;  %v2457_v58 = vmul.f32 %v10611_v45, %v2078_v37  ;;  %v1043_v59 = vmul.f32 %v10607_v27, %v14643_v16  ;;  %v1814_v36 = vadd.f32 %v1686_v34, %v1042_v50 }
 0x241   : > { %v11547_v39 = vpop.f32.mrb[7].mxu0  ;;  %9345 = vmatprep.mubr.msk.f32.mxu0 %vm2944_vm0, %v2837_v47  ;;  %v11550_v23 = vpop.permute.xlu1 %604  ;;  %v1683_v17 = vmul.f32 %v10604_v52, %v14640_v48  ;;  %v1810_v47 = vadd.f32 %v1682_v14, %v1038_v2  ;;  %v2714_v28 = vadd.f32 %v11271_v18, %v2579_v44  ;;  %v1685_v14 = vmul.f32 %v10604_v52, %v11289_v54  ;;  %v10229_v2 = vld [vmem:[%s10335_s21 + $0x3d0] sm:$0xff] }
 0x242   : > { %10090 = vset.pattern.permute.xlu1 %v14458_v21  ;;  %2369 = vperm.xlu0 %10196, %v14634_v60   ;;  %v2584_v3 = vadd.f32 %v2456_v24, %v1812_v51  ;;  %v2086_v44 = vpop.permute.xlu0 %2085  ;;  %v2843_v30 = vmax.f32 %v2715_v0, 0.0  ;;  %v2716_v54 = vadd.f32 %v11271_v18, %v2581_v53  ;;  %v14644_v53 = vld [vmem:[#allocation25_spill] sm:$0xff] }
 0x243   : > { %1373 = vperm.xlu1 %10090, %v14638_v25   ;;  %v2582_v49 = vadd.f32 %v2454_v46, %v1810_v47  ;;  %v2842_v60 = vmax.f32 %v2714_v28, 0.0  ;;  %v2458_v46 = vmul.f32 %v10611_v45, %v11401_v55  ;;  %v1687_v25 = vmul.f32 %v10604_v52, %v11379_v20  ;;  %v11620_v28 = vld [vmem:[%s10335_s21 + $0x290] sm:$0xff] }
 0x244   : > { %v11570_v35 = vpop.f32.mrb[8].mxu0  ;;  %9346 = vmatmul.mubr.msk.f32.gmra.mrb[34].mxu0 %vm2944_vm0, %v2838_v1  ;;  %v2841_v1 = vmax.f32 %v2713_v33, 0.0  ;;  %v2719_v37 = vadd.f32 %v11271_v18, %v2584_v3  ;;  %v2844_v55 = vmax.f32 %v2716_v54, 0.0  ;;  %v2459_v20 = vmul.f32 %v10611_v45, %v2086_v44 }
 0x245   : > { %v11574_v15 = vpop.f32.mrb[9].mxu0  ;;  %9348 = vmatprep.mubr.msk.f32.mxu0 %vm2944_vm0, %v2839_v43  ;;  %v1811_v43 = vadd.f32 %v1683_v17, %v1039_v22  ;;  %v2717_v31 = vadd.f32 %v11271_v18, %v2582_v49  ;;  %v10231_v17 = vld [vmem:[%s10335_s21 + $0x3e0] sm:$0xff]  ;;  %v2586_v0 = vadd.f32 %v2458_v46, %v1814_v36  ;;  %v2460_v47 = vmul.f32 %v10611_v45, %v11521_v61 }
 0x246   : > { %v1326_v19 = vpop.permute.xlu1 %1325  ;;  %2377 = vperm.xlu0 %10196, %v14641_v63   ;;  %v2094_v51 = vpop.permute.xlu0 %2093  ;;  %v14645_v63 = vld [vmem:[#allocation26_spill] sm:$0xff]  ;;  %v2847_v41 = vmax.f32 %v2719_v37, 0.0  ;;  %v1816_v49 = vadd.f32 %v1688_v13, %v1044_v32 }
 0x247   : > { %10091 = vset.pattern.permute.xlu1 %v14460_v4  ;;  %v2583_v33 = vadd.f32 %v2455_v40, %v1811_v43  ;;  %v2845_v24 = vmax.f32 %v2717_v31, 0.0  ;;  %v1045_v40 = vmul.f32 %v10607_v27, %v14644_v53  ;;  %v1047_v8 = vmul.f32 %v10607_v27, %v14645_v63 }
 0x248   : > { %9349 = vmatmul.mubr.msk.f32.gmra.mrb[36].mxu0 %vm2944_vm0, %v2840_v29  ;;  %2217 = vperm.xlu1 %10091, %v11440_v11   ;;  %v1813_v11 = vadd.f32 %v1685_v14, %v1041_v38  ;;  %v1815_v38 = vadd.f32 %v1687_v25, %v1043_v59  ;;  %v1690_v14 = vmul.f32 %v10604_v52, %v1326_v19 }
 0x249   : > { %9351 = vmatprep.mubr.msk.f32.mxu0 %vm2944_vm0, %v2841_v1  ;;  %v2718_v48 = vadd.f32 %v11271_v18, %v2583_v33  ;;  %v1689_v1 = vmul.f32 %v10604_v52, %v11488_v12  ;;  %v2461_v34 = vmul.f32 %v10611_v45, %v2094_v51  ;;  %v10232_v12 = vld [vmem:[%s10335_s21 + $0x3f0] sm:$0xff]  ;;  %v2721_v44 = vadd.f32 %v11271_v18, %v2586_v0  ;;  %v10233_v0 = vld [vmem:[%s10335_s21 + $0x298] sm:$0xff] }
 0x24a   : > { %v1330_v6 = vpop.permute.xlu1 %1329  ;;  %2385 = vperm.xlu0 %10196, %v10229_v2   ;;  %v2585_v22 = vadd.f32 %v2457_v58, %v1813_v11  ;;  %v2587_v3 = vadd.f32 %v2459_v20, %v1815_v38  ;;  %v1046_v19 = vmul.f32 %v10607_v27, %v11550_v23 }
 0x24b   : > { %v2846_v43 = vmax.f32 %v2718_v48, 0.0  ;;  %v1691_v58 = vmul.f32 %v10604_v52, %v1330_v6  ;;  %v1817_v33 = vadd.f32 %v1689_v1, %v1045_v40  ;;  %v2849_v23 = vmax.f32 %v2721_v44, 0.0 }
 0x24c   : > { %9352 = vmatmul.mubr.msk.f32.gmra.mrb[38].mxu0 %vm2944_vm0, %v2842_v60  ;;  %10092 = vset.pattern.permute.xlu1 %v14458_v21  ;;  %v2720_v61 = vadd.f32 %v11271_v18, %v2585_v22  ;;  %v2102_v60 = vpop.permute.xlu0 %2101  ;;  %v1818_v11 = vadd.f32 %v1690_v14, %v1046_v19  ;;  %v2722_v6 = vadd.f32 %v11271_v18, %v2587_v3 }
 0x24d   : > { %1377 = vperm.xlu1 %10092, %v11608_v56   ;;  %9354 = vmatprep.mubr.msk.f32.mxu0 %vm2944_vm0, %v2843_v30  ;;  %v2588_v30 = vadd.f32 %v2460_v47, %v1816_v49  ;;  %v2589_v50 = vadd.f32 %v2461_v34, %v1817_v33  ;;  %v1819_v46 = vadd.f32 %v1691_v58, %v1047_v8  ;;  %v10234_v34 = vld [vmem:[%s10335_s21 + $0x200] sm:$0xff]  ;;  %v14648_v33 = vld [vmem:[#allocation111_spill] sm:$0xff] }
 0x24e   : > { %2393 = vperm.xlu0 %10196, %v10231_v17   ;;  %v2848_v31 = vmax.f32 %v2720_v61, 0.0  ;;  %v2463_v16 = vmul.f32 %v10611_v45, %v2102_v60  ;;  %v2850_v36 = vmax.f32 %v2722_v6, 0.0  ;;  %v14646_v17 = vld [vmem:[#allocation27_spill] sm:$0xff]  ;;  %v14647_v60 = vld [vmem:[#allocation28_spill] sm:$0xff] }
 0x24f   : > { %v2098_v29 = vpop.permute.xlu1 %2097  ;;  %v2723_v59 = vadd.f32 %v11271_v18, %v2588_v30  ;;  %v2724_v13 = vadd.f32 %v11271_v18, %v2589_v50 }
 0x250   : > { %9355 = vmatmul.mubr.msk.f32.gmra.mrb[40].mxu0 %vm2944_vm0, %v2844_v55  ;;  %v2462_v54 = vmul.f32 %v10611_v45, %v2098_v29  ;;  %v2591_v22 = vadd.f32 %v2463_v16, %v1819_v46  ;;  %v2110_v20 = vpop.permute.xlu0 %2109 }
 0x251   : > { %10093 = vset.pattern.permute.xlu1 %v14466_v5  ;;  %9357 = vmatprep.mubr.msk.f32.mxu0 %vm2944_vm0, %v2845_v24  ;;  %v2851_v55 = vmax.f32 %v2723_v59, 0.0  ;;  %v1049_v24 = vmul.f32 %v10607_v27, %v14646_v17  ;;  %v2852_v47 = vmax.f32 %v2724_v13, 0.0  ;;  %v2465_v53 = vmul.f32 %v10611_v45, %v2110_v20  ;;  %v10235_v13 = vld [vmem:[%s10335_s21 + $0x2a0] sm:$0xff] }
 0x252   : > { %764 = vperm.xlu1 %10093, %v11620_v28   ;;  %2401 = vperm.xlu0 %10196, %v10232_v12   ;;  %v2590_v37 = vadd.f32 %v2462_v54, %v1818_v11  ;;  %v2726_v51 = vadd.f32 %v11271_v18, %v2591_v22  ;;  %v1051_v54 = vmul.f32 %v10607_v27, %v14647_v60 }
 0x254   : > { %9358 = vmatmul.mubr.msk.f32.gmra.mrb[42].mxu0 %vm2944_vm0, %v2846_v43  ;;  %v615_v2 = vpop.permute.xlu1 %614  ;;  %v2725_v48 = vadd.f32 %v11271_v18, %v2590_v37  ;;  %v2854_v1 = vmax.f32 %v2726_v51, 0.0  ;;  %v2118_v19 = vpop.permute.xlu0 %2117 }
 0x255   : > { %9360 = vmatprep.mubr.msk.f32.mxu0 %vm2944_vm0, %v2847_v41  ;;  %v1048_v38 = vmul.f32 %v10607_v27, %v615_v2  ;;  %v2467_v11 = vmul.f32 %v10611_v45, %v2118_v19 }
 0x256   : > { %10094 = vset.pattern.permute.xlu1 %v14458_v21  ;;  %v2853_v40 = vmax.f32 %v2725_v48, 0.0  ;;  %v308_v48 = vld [vmem:[%s10335_s21 + $0x2a8] sm:$0xff] }
 0x257   : > { %1453 = vperm.xlu1 %10094, %v11620_v28  }
 0x258   : > { %9361 = vmatmul.mubr.msk.f32.gmra.mrb[44].mxu0 %vm2944_vm0, %v2848_v31 }
 0x259   : > { %9363 = vmatprep.mubr.msk.f32.mxu0 %vm2944_vm0, %v2849_v23  ;;  %v1334_v25 = vpop.permute.xlu1 %1333 }
 0x25a   : > { %v1692_v63 = vmul.f32 %v10604_v52, %v1334_v25 }
 0x25b   : > { %10095 = vset.pattern.permute.xlu1 %v14466_v5 }
 0x25c   : > { %769 = vperm.xlu1 %10095, %v10233_v0   ;;  %9364 = vmatmul.mubr.msk.f32.gmra.mrb[46].mxu0 %vm2944_vm0, %v2850_v36  ;;  %v1820_v61 = vadd.f32 %v1692_v63, %v1048_v38 }
 0x25d   : > { %9366 = vmatprep.mubr.msk.f32.mxu0 %vm2944_vm0, %v2851_v55  ;;  %v1338_v32 = vpop.permute.xlu1 %1337 }
 0x25e   : > { %v1693_v29 = vmul.f32 %v10604_v52, %v1338_v32 }
 0x260   : > { %v1821_v8 = vadd.f32 %v1693_v29, %v1049_v24  ;;  %10096 = vset.pattern.permute.xlu1 %v14460_v4  ;;  %9367 = vmatmul.mubr.msk.f32.gmra.mrb[48].mxu0 %vm2944_vm0, %v2852_v47  ;;  %v2126_v24 = vpop.permute.xlu0 %2125 }
 0x261   : > { %2149 = vperm.xlu1 %10096, %v11608_v56   ;;  %9369 = vmatprep.mubr.msk.f32.mxu0 %vm2944_vm0, %v2853_v40  ;;  %v2469_v29 = vmul.f32 %v10611_v45, %v2126_v24 }
 0x262   : > { %v2593_v41 = vadd.f32 %v2465_v53, %v1821_v8  ;;  %v2106_v49 = vpop.permute.xlu1 %2105 }
 0x263   : > { %v2464_v14 = vmul.f32 %v10611_v45, %v2106_v49  ;;  %v10236_v49 = vld [vmem:[%s10335_s21 + $0x210] sm:$0xff] }
 0x264   : > { %9370 = vmatmul.mubr.msk.f32.gmra.mrb[50].mxu0 %vm2944_vm0, %v2854_v1  ;;  %v2728_v3 = vadd.f32 %v11271_v18, %v2593_v41 }
 0x265   : > { %v2592_v43 = vadd.f32 %v2464_v14, %v1820_v61  ;;  %10097 = vset.pattern.permute.xlu1 %v14466_v5 }
 0x266   : > { %674 = vperm.xlu1 %10097, %v10234_v34   ;;  %v2856_v44 = vmax.f32 %v2728_v3, 0.0 }
 0x267   : > { %v2727_v58 = vadd.f32 %v11271_v18, %v2592_v43  ;;  %v625_v56 = vpop.permute.xlu1 %624 }
 0x268   : > { %v1050_v50 = vmul.f32 %v10607_v27, %v625_v56 }
 0x269   : > { %v2855_v12 = vmax.f32 %v2727_v58, 0.0 }
 0x26a   : > { %10098 = vset.pattern.permute.xlu1 %v14460_v4 }
 0x26b   : > { %2225 = vperm.xlu1 %10098, %v11620_v28   ;;  %9372 = vmatprep.mubr.msk.f32.mxu0 %vm2944_vm0, %v2855_v12  ;;  %v10237_v12 = vld [vmem:[%s10335_s21 + $0x218] sm:$0xff] }
 0x26c   : > { %9373 = vmatmul.mubr.msk.f32.gmra.mrb[52].mxu0 %vm2944_vm0, %v2856_v44  ;;  %v1342_v30 = vpop.permute.xlu1 %1341  ;;  %v2134_v44 = vpop.permute.xlu0 %2133 }
 0x26d   : > { %v1694_v28 = vmul.f32 %v10604_v52, %v1342_v30  ;;  %v14650_v30 = vld [vmem:[#allocation30_spill] sm:$0xff] }
 0x26e   : > { %v1055_v19 = vmul.f32 %v10607_v27, %v14650_v30  ;;  %v14653_v30 = vld [vmem:[#allocation32_spill] sm:$0xff] }
 0x26f   : > { %10099 = vset.pattern.permute.xlu1 %v14458_v21  ;;  %v1822_v23 = vadd.f32 %v1694_v28, %v1050_v50 }
 0x270   : > { %1385 = vperm.xlu1 %10099, %v14648_v33   ;;  %v1346_v2 = vpop.permute.xlu1 %1345  ;;  %v2471_v33 = vmul.f32 %v10611_v45, %v2134_v44 }
 0x271   : > { %v1695_v31 = vmul.f32 %v10604_v52, %v1346_v2 }
 0x273   : > { %v1823_v6 = vadd.f32 %v1695_v31, %v1051_v54 }
 0x274   : > { %10100 = vset.pattern.permute.xlu1 %v14460_v4 }
 0x275   : > { %v2595_v46 = vadd.f32 %v2467_v11, %v1823_v6  ;;  %2229 = vperm.xlu1 %10100, %v10233_v0   ;;  %v2114_v16 = vpop.permute.xlu1 %2113  ;;  %v14649_v0 = vld [vmem:[#allocation29_spill] sm:$0xff] }
 0x276   : > { %v2466_v59 = vmul.f32 %v10611_v45, %v2114_v16  ;;  %v1053_v32 = vmul.f32 %v10607_v27, %v14649_v0  ;;  %v10238_v16 = vld [vmem:[%s10335_s21 + $0x2b0] sm:$0xff] }
 0x277   : > { %v2730_v25 = vadd.f32 %v11271_v18, %v2595_v46 }
 0x278   : > { %v2594_v37 = vadd.f32 %v2466_v59, %v1822_v23 }
 0x279   : > { %10101 = vset.pattern.permute.xlu1 %v14458_v21  ;;  %v2858_v20 = vmax.f32 %v2730_v25, 0.0 }
 0x27a   : > { %v2729_v36 = vadd.f32 %v11271_v18, %v2594_v37  ;;  %1461 = vperm.xlu1 %10101, %v10235_v13   ;;  %v635_v22 = vpop.permute.xlu1 %634 }
 0x27b   : > { %v1052_v63 = vmul.f32 %v10607_v27, %v635_v22 }
 0x27c   : > { %v2857_v55 = vmax.f32 %v2729_v36, 0.0 }
 0x27e   : > { %10102 = vset.pattern.permute.xlu1 %v14466_v5  ;;  %9375 = vmatprep.mubr.msk.f32.mxu0 %vm2944_vm0, %v2857_v55  ;;  %v10239_v55 = vld [vmem:[%s10335_s21 + $0x2b8] sm:$0xff] }
 0x27f   : > { %779 = vperm.xlu1 %10102, %v308_v48   ;;  %9376 = vmatmul.mubr.msk.f32.gmra.mrb[54].mxu0 %vm2944_vm0, %v2858_v20  ;;  %v1350_v17 = vpop.permute.xlu1 %1349  ;;  %v291_v20 = vld [vmem:[%s10335_s21 + $0x220] sm:$0xff] }
 0x280   : > { %v1696_v53 = vmul.f32 %v10604_v52, %v1350_v17 }
 0x282   : > { %v1824_v1 = vadd.f32 %v1696_v53, %v1052_v63  ;;  %v11740_v53 = vld [vmem:[%s14425_s3] ss:$0 sm:$0xff] }
 0x283   : > { %10103 = vset.pattern.permute.xlu1 %v14458_v21  ;;  %v1354_v47 = vpop.permute.xlu1 %1353 }
 0x284   : > { %v1697_v51 = vmul.f32 %v10604_v52, %v1354_v47  ;;  %1465 = vperm.xlu1 %10103, %v308_v48  }
 0x286   : > { %v1825_v40 = vadd.f32 %v1697_v51, %v1053_v32 }
 0x288   : > { %v2597_v8 = vadd.f32 %v2469_v29, %v1825_v40  ;;  %10104 = vset.pattern.permute.xlu1 %v14466_v5  ;;  %v2122_v38 = vpop.permute.xlu1 %2121  ;;  %v10240_v29 = vld [vmem:[%s10335_s21 + $0x228] sm:$0xff] }
 0x289   : > { %v2468_v41 = vmul.f32 %v10611_v45, %v2122_v38  ;;  %684 = vperm.xlu1 %10104, %v10236_v49  }
 0x28a   : > { %v2732_v14 = vadd.f32 %v11271_v18, %v2597_v8  ;;  %v14651_v8 = vld [vmem:[#allocation31_spill] sm:$0xff] }
 0x28b   : > { %v2596_v61 = vadd.f32 %v2468_v41, %v1824_v1  ;;  %v1057_v38 = vmul.f32 %v10607_v27, %v14651_v8  ;;  %v14655_v8 = vld [vmem:[#allocation34_spill] sm:$0xff] }
 0x28c   : > { %v2860_v58 = vmax.f32 %v2732_v14, 0.0 }
 0x28d   : > { %v2731_v43 = vadd.f32 %v11271_v18, %v2596_v61  ;;  %10105 = vset.pattern.permute.xlu1 %v14460_v4  ;;  %v645_v3 = vpop.permute.xlu1 %644 }
 0x28e   : > { %2233 = vperm.xlu1 %10105, %v10235_v13   ;;  %v1054_v11 = vmul.f32 %v10607_v27, %v645_v3  ;;  %v14652_v3 = vld [vmem:[#allocation72_spill] sm:$0xff] }
 0x28f   : > { %v2859_v34 = vmax.f32 %v2731_v43, 0.0 }
 0x291   : > { %9378 = vmatprep.mubr.msk.f32.mxu0 %vm2944_vm0, %v2859_v34  ;;  %v1721_v34 = vmul.f32 %v10604_v52, %v14652_v3  ;;  %v14656_v3 = vld [vmem:[#allocation74_spill] sm:$0xff] }
 0x292   : > { %10106 = vset.pattern.permute.xlu1 %v14466_v5  ;;  %9379 = vmatmul.mubr.msk.f32.gmra.mrb[56].mxu0 %vm2944_vm0, %v2860_v58  ;;  %v1358_v56 = vpop.permute.xlu1 %1357 }
 0x293   : > { %689 = vperm.xlu1 %10106, %v10237_v12   ;;  %v1698_v2 = vmul.f32 %v10604_v52, %v1358_v56  ;;  %v10242_v12 = vld [vmem:[%s10335_s21 + $0x2c0] sm:$0xff] }
 0x295   : > { %v1826_v50 = vadd.f32 %v1698_v2, %v1054_v11 }
 0x296   : > { %v1362_v60 = vpop.permute.xlu1 %1361 }
 0x297   : > { %v1699_v54 = vmul.f32 %v10604_v52, %v1362_v60  ;;  %10107 = vset.pattern.permute.xlu1 %v14460_v4 }
 0x298   : > { %2237 = vperm.xlu1 %10107, %v308_v48  }
 0x299   : > { %v1827_v31 = vadd.f32 %v1699_v54, %v1055_v19  ;;  %v1058_v19 = vmul.f32 %v10607_v27, %v14653_v30 }
 0x29b   : > { %v2599_v28 = vadd.f32 %v2471_v33, %v1827_v31  ;;  %v2130_v6 = vpop.permute.xlu1 %2129 }
 0x29c   : > { %v2470_v46 = vmul.f32 %v10611_v45, %v2130_v6  ;;  %10108 = vset.pattern.permute.xlu1 %v14458_v21 }
 0x29d   : > { %1469 = vperm.xlu1 %10108, %v10238_v16   ;;  %v2734_v59 = vadd.f32 %v11271_v18, %v2599_v28  ;;  %v14654_v28 = vld [vmem:[#allocation71_spill] sm:$0xff] }
 0x29e   : > { %v2598_v23 = vadd.f32 %v2470_v46, %v1826_v50  ;;  %v1720_v6 = vmul.f32 %v10604_v52, %v14654_v28 }
 0x29f   : > { %v2862_v13 = vmax.f32 %v2734_v59, 0.0 }
 0x2a0   : > { %v2733_v37 = vadd.f32 %v11271_v18, %v2598_v23  ;;  %v655_v25 = vpop.permute.xlu1 %654 }
 0x2a1   : > { %10109 = vset.pattern.permute.xlu1 %v14460_v4  ;;  %v1056_v24 = vmul.f32 %v10607_v27, %v655_v25 }
 0x2a2   : > { %v2861_v36 = vmax.f32 %v2733_v37, 0.0  ;;  %2161 = vperm.xlu1 %10109, %v10236_v49   ;;  %v2222_v49 = vpop.permute.xlu0 %2221 }
 0x2a3   : > { %v2493_v2 = vmul.f32 %v10611_v45, %v2222_v49 }
 0x2a4   : > { %9381 = vmatprep.mubr.msk.f32.mxu0 %vm2944_vm0, %v2861_v36 }
 0x2a5   : > { %9382 = vmatmul.mubr.msk.f32.gmra.mrb[58].mxu0 %vm2944_vm0, %v2862_v13  ;;  %v1366_v22 = vpop.permute.xlu1 %1365 }
 0x2a6   : > { %10110 = vset.pattern.permute.xlu1 %v14458_v21  ;;  %v1700_v17 = vmul.f32 %v10604_v52, %v1366_v22  ;;  %v2146_v44 = vpop.permute.xlu0 %2145 }
 0x2a7   : > { %1473 = vperm.xlu1 %10110, %v10239_v55   ;;  %v2474_v11 = vmul.f32 %v10611_v45, %v2146_v44 }
 0x2a8   : > { %v1828_v32 = vadd.f32 %v1700_v17, %v1056_v24 }
 0x2a9   : > { %v1370_v48 = vpop.permute.xlu1 %1369 }
 0x2aa   : > { %v1701_v1 = vmul.f32 %v10604_v52, %v1370_v48 }
 0x2ab   : > { %10111 = vset.pattern.permute.xlu1 %v14466_v5 }
 0x2ac   : > { %694 = vperm.xlu1 %10111, %v291_v20   ;;  %v1829_v14 = vadd.f32 %v1701_v1, %v1057_v38  ;;  %v1059_v38 = vmul.f32 %v10607_v27, %v14655_v8 }
 0x2ae   : > { %v755_v18 = vpop.permute.xlu1 %754 }
 0x2af   : > { %v1076_v50 = vmul.f32 %v10607_v27, %v755_v18 }
 0x2b0   : > { %10112 = vset.pattern.permute.xlu1 %v14458_v21 }
 0x2b1   : > { %1397 = vperm.xlu1 %10112, %v291_v20   ;;  %v1848_v25 = vadd.f32 %v1720_v6, %v1076_v50 }
 0x2b3   : > { %v2138_v0 = vpop.permute.xlu1 %2137 }
 0x2b4   : > { %v2472_v47 = vmul.f32 %v10611_v45, %v2138_v0 }
 0x2b5   : > { %10113 = vset.pattern.permute.xlu1 %v14466_v5 }
 0x2b6   : > { %v2600_v51 = vadd.f32 %v2472_v47, %v1828_v32  ;;  %699 = vperm.xlu1 %10113, %v10240_v29   ;;  %v10244_v47 = vld [vmem:[%s10335_s21 + $0x230] sm:$0xff] }
 0x2b8   : > { %v2735_v40 = vadd.f32 %v11740_v53, %v2600_v51  ;;  %v760_v63 = vpop.permute.xlu1 %759 }
 0x2b9   : > { %v1077_v58 = vmul.f32 %v10607_v27, %v760_v63 }
 0x2ba   : > { %v2863_v41 = vmax.f32 %v2735_v40, 0.0  ;;  %10114 = vset.pattern.permute.xlu1 %v14460_v4  ;;  %v294_v40 = vld [vmem:[%s10335_s21 + $0x238] sm:$0xff] }
 0x2bb   : > { %2245 = vperm.xlu1 %10114, %v10239_v55   ;;  %v1849_v33 = vadd.f32 %v1721_v34, %v1077_v58  ;;  %v10243_v55 = vld [vmem:[%s10335_s21 + $0x2c8] sm:$0xff]  ;;  %v1704_v34 = vmul.f32 %v10604_v52, %v14656_v3  ;;  %v10247_v3 = vld [vmem:[%s10335_s21 + $0x240] sm:$0xff] }
 0x2bc   : > { %9384 = vmatprep.mubr.msk.f32.mxu0 %vm2944_vm0, %v2863_v41 }
 0x2bd   : > { %v2142_v61 = vpop.permute.xlu1 %2141  ;;  %v2621_v23 = vadd.f32 %v2493_v2, %v1849_v33 }
 0x2be   : > { %v2473_v43 = vmul.f32 %v10611_v45, %v2142_v61 }
 0x2bf   : > { %10115 = vset.pattern.permute.xlu1 %v14466_v5  ;;  %v2756_v48 = vadd.f32 %v11740_v53, %v2621_v23 }
 0x2c0   : > { %v2601_v56 = vadd.f32 %v2473_v43, %v1829_v14  ;;  %794 = vperm.xlu1 %10115, %v10242_v12   ;;  %v11786_v14 = vld [vmem:[%s10335_s21 + $0x2d0] sm:$0xff]  ;;  %v2154_v43 = vpop.permute.xlu0 %2153 }
 0x2c1   : > { %v2884_v0 = vmax.f32 %v2756_v48, 0.0  ;;  %v2476_v44 = vmul.f32 %v10611_v45, %v2154_v43 }
 0x2c2   : > { %v2736_v60 = vadd.f32 %v11740_v53, %v2601_v56  ;;  %v1374_v54 = vpop.permute.xlu1 %1373 }
 0x2c3   : > { %v1702_v31 = vmul.f32 %v10604_v52, %v1374_v54 }
 0x2c4   : > { %v2864_v46 = vmax.f32 %v2736_v60, 0.0  ;;  %10116 = vset.pattern.permute.xlu1 %v14460_v4 }
 0x2c5   : > { %v1830_v16 = vadd.f32 %v1702_v31, %v1058_v19  ;;  %2169 = vperm.xlu1 %10116, %v291_v20  }
 0x2c6   : > { %9385 = vmatmul.mubr.msk.f32.gmra.mrb[60].mxu0 %vm2944_vm0, %v2864_v46 }
 0x2c7   : > { %v2602_v59 = vadd.f32 %v2474_v11, %v1830_v16  ;;  %v2218_v37 = vpop.permute.xlu1 %2217 }
 0x2c8   : > { %v2492_v36 = vmul.f32 %v10611_v45, %v2218_v37  ;;  %v2158_v37 = vpop.permute.xlu0 %2157 }
 0x2c9   : > { %v2737_v13 = vadd.f32 %v11740_v53, %v2602_v59  ;;  %10117 = vset.pattern.permute.xlu1 %v14458_v21  ;;  %v10246_v59 = vld [vmem:[%s10335_s21 + $0x2d8] sm:$0xff] }
 0x2ca   : > { %v2620_v22 = vadd.f32 %v2492_v36, %v1848_v25  ;;  %1481 = vperm.xlu1 %10117, %v10243_v55   ;;  %v14657_v55 = vld [vmem:[#allocation36_spill] sm:$0xff] }
 0x2cb   : > { %v2865_v20 = vmax.f32 %v2737_v13, 0.0  ;;  %v1061_v48 = vmul.f32 %v10607_v27, %v14657_v55 }
 0x2cc   : > { %v1378_v18 = vpop.permute.xlu1 %1377  ;;  %v2755_v17 = vadd.f32 %v11740_v53, %v2620_v22 }
 0x2cd   : > { %9387 = vmatprep.mubr.msk.f32.mxu0 %vm2944_vm0, %v2865_v20 }
 0x2ce   : > { %10118 = vset.pattern.permute.xlu1 %v14460_v4  ;;  %v2883_v24 = vmax.f32 %v2755_v17, 0.0  ;;  %v2477_v17 = vmul.f32 %v10611_v45, %v2158_v37 }
 0x2cf   : > { %2173 = vperm.xlu1 %10118, %v10240_v29   ;;  %v1703_v29 = vmul.f32 %v10604_v52, %v1378_v18 }
 0x2d0   : > { %9414 = vmatprep.mubr.msk.f32.mxu1 %vm2944_vm0, %v2883_v24  ;;  %v14658_v24 = vld [vmem:[#allocation73_spill] sm:$0xff] }
 0x2d1   : > { %9415 = vmatmul.mubr.msk.f32.vlgmr.msra.gmra.mrb[0].mxu1 %vm2944_vm0, %v2884_v0  ;;  %v765_v32 = vpop.permute.xlu1 %764  ;;  %v1831_v41 = vadd.f32 %v1703_v29, %v1059_v38  ;;  %v1723_v0 = vmul.f32 %v10604_v52, %v14658_v24 }
 0x2d2   : > { %v1078_v2 = vmul.f32 %v10607_v27, %v765_v32 }
 0x2d3   : > { %10119 = vset.pattern.permute.xlu1 %v14458_v21 }
 0x2d4   : > { %1405 = vperm.xlu1 %10119, %v10244_v47  }
 0x2d6   : > { %v1454_v51 = vpop.permute.xlu1 %1453 }
 0x2d7   : > { %v1722_v30 = vmul.f32 %v10604_v52, %v1454_v51 }
 0x2d8   : > { %10120 = vset.pattern.permute.xlu1 %v14466_v5 }
 0x2d9   : > { %709 = vperm.xlu1 %10120, %v294_v40   ;;  %v1850_v28 = vadd.f32 %v1722_v30, %v1078_v2 }
 0x2db   : > { %v770_v63 = vpop.permute.xlu1 %769 }
 0x2dc   : > { %v1079_v32 = vmul.f32 %v10607_v27, %v770_v63 }
 0x2dd   : > { %10121 = vset.pattern.permute.xlu1 %v14458_v21 }
 0x2de   : > { %1409 = vperm.xlu1 %10121, %v294_v40  }
 0x2e0   : > { %v2150_v1 = vpop.permute.xlu1 %2149 }
 0x2e1   : > { %v2475_v49 = vmul.f32 %v10611_v45, %v2150_v1 }
 0x2e2   : > { %10122 = vset.pattern.permute.xlu1 %v14466_v5 }
 0x2e3   : > { %v2603_v61 = vadd.f32 %v2475_v49, %v1831_v41  ;;  %804 = vperm.xlu1 %10122, %v11786_v14   ;;  %v1851_v41 = vadd.f32 %v1723_v0, %v1079_v32 }
 0x2e5   : > { %v2738_v58 = vadd.f32 %v11740_v53, %v2603_v61  ;;  %v675_v56 = vpop.permute.xlu1 %674 }
 0x2e6   : > { %v1060_v12 = vmul.f32 %v10607_v27, %v675_v56 }
 0x2e7   : > { %v2866_v19 = vmax.f32 %v2738_v58, 0.0  ;;  %v11795_v60 = vpop.f32.mrb[10].mxu0  ;;  %10123 = vset.pattern.permute.xlu1 %v14460_v4 }
 0x2e8   : > { %v1832_v54 = vadd.f32 %v1704_v34, %v1060_v12  ;;  %v11798_v33 = vpop.f32.mrb[11].mxu0  ;;  %2177 = vperm.xlu1 %10123, %v10244_v47  }
 0x2e9   : > { %9388 = vmatmul.mubr.msk.f32.gmra.mrb[62].mxu0 %vm2944_vm0, %v2866_v19 }
 0x2ea   : > { %v2604_v31 = vadd.f32 %v2476_v44, %v1832_v54  ;;  %v2226_v11 = vpop.permute.xlu1 %2225 }
 0x2eb   : > { %v2494_v6 = vmul.f32 %v10611_v45, %v2226_v11  ;;  %v11803_v50 = vpop.f32.mrb[12].mxu0 }
 0x2ec   : > { %v2739_v46 = vadd.f32 %v11740_v53, %v2604_v31  ;;  %v11806_v16 = vpop.f32.mrb[13].mxu0  ;;  %10124 = vset.pattern.permute.xlu1 %v14466_v5  ;;  %v10248_v31 = vld [vmem:[%s10335_s21 + $0x248] sm:$0xff] }
 0x2ed   : > { %v2622_v23 = vadd.f32 %v2494_v6, %v1850_v28  ;;  %809 = vperm.xlu1 %10124, %v10246_v59   ;;  %v315_v6 = vld [vmem:[%s10335_s21 + $0x2e0] sm:$0xff] }
 0x2ee   : > { %v2867_v25 = vmax.f32 %v2739_v46, 0.0 }
 0x2ef   : > { %v2757_v36 = vadd.f32 %v11740_v53, %v2622_v23  ;;  %v11811_v13 = vpop.f32.mrb[14].mxu0  ;;  %v1386_v22 = vpop.permute.xlu1 %1385 }
 0x2f0   : > { %v1705_v20 = vmul.f32 %v10604_v52, %v1386_v22  ;;  %v11816_v18 = vpop.f32.mrb[15].mxu0  ;;  %9390 = vmatprep.mubr.msk.f32.mxu0 %vm2944_vm0, %v2867_v25 }
 0x2f1   : > { %v2885_v47 = vmax.f32 %v2757_v36, 0.0  ;;  %10125 = vset.pattern.permute.xlu1 %v14460_v4  ;;  %v14659_v36 = vld [vmem:[#allocation38_spill] sm:$0xff] }
 0x2f2   : > { %v1833_v51 = vadd.f32 %v1705_v20, %v1061_v48  ;;  %2181 = vperm.xlu1 %10125, %v294_v40   ;;  %v1080_v22 = vmul.f32 %v10607_v27, %v14659_v36 }
 0x2f3   : > { %v11824_v8 = vpop.f32.mrb[16].mxu0  ;;  %9417 = vmatprep.mubr.msk.f32.mxu1 %vm2944_vm0, %v2885_v47  ;;  %v11877_v47 = vld [vmem:[%s10335_s21 + $0x2e8] sm:$0xff] }
 0x2f4   : > { %v2605_v38 = vadd.f32 %v2477_v17, %v1833_v51  ;;  %v11827_v29 = vpop.f32.mrb[17].mxu0  ;;  %v2230_v1 = vpop.permute.xlu1 %2229 }
 0x2f5   : > { %v2495_v49 = vmul.f32 %v10611_v45, %v2230_v1 }
 0x2f6   : > { %v2740_v61 = vadd.f32 %v11740_v53, %v2605_v38  ;;  %10126 = vset.pattern.permute.xlu1 %v14458_v21 }
 0x2f7   : > { %v2623_v63 = vadd.f32 %v2495_v49, %v1851_v41  ;;  %v11832_v43 = vpop.f32.mrb[18].mxu0  ;;  %1413 = vperm.xlu1 %10126, %v10247_v3   ;;  %v2166_v3 = vpop.permute.xlu0 %2165 }
 0x2f8   : > { %v2868_v40 = vmax.f32 %v2740_v61, 0.0  ;;  %v11835_v34 = vpop.f32.mrb[19].mxu0 }
 0x2f9   : > { %v2758_v58 = vadd.f32 %v11740_v53, %v2623_v63  ;;  %v1462_v56 = vpop.permute.xlu1 %1461 }
 0x2fa   : > { %9391 = vmatmul.mubr.msk.f32.gmra.mrb[64].mxu0 %vm2944_vm0, %v2868_v40  ;;  %v1724_v37 = vmul.f32 %v10604_v52, %v1462_v56 }
 0x2fb   : > { %v2886_v12 = vmax.f32 %v2758_v58, 0.0  ;;  %v11839_v44 = vpop.f32.mrb[20].mxu0  ;;  %10127 = vset.pattern.permute.xlu1 %v14460_v4 }
 0x2fc   : > { %v11842_v30 = vpop.f32.mrb[21].mxu0  ;;  %2257 = vperm.xlu1 %10127, %v11786_v14   ;;  %v1852_v20 = vadd.f32 %v1724_v37, %v1080_v22 }
 0x2fd   : > { %9418 = vmatmul.mubr.msk.f32.gmra.mrb[2].mxu1 %vm2944_vm0, %v2886_v12 }
 0x2fe   : > { %v780_v19 = vpop.permute.xlu1 %779 }
 0x2ff   : > { %v11846_v54 = vpop.f32.mrb[22].mxu0  ;;  %v1081_v63 = vmul.f32 %v10607_v27, %v780_v19  ;;  %v10250_v19 = vld [vmem:[%s10335_s21 + $0x250] sm:$0xff] }
 0x300   : > { %v11848_v2 = vpop.f32.mrb[23].mxu0  ;;  %10128 = vset.pattern.permute.xlu1 %v14458_v21 }
 0x301   : > { %1417 = vperm.xlu1 %10128, %v10248_v31  }
 0x303   : > { %v11852_v11 = vpop.f32.mrb[24].mxu0  ;;  %v1466_v28 = vpop.permute.xlu1 %1465 }
 0x304   : > { %v11855_v46 = vpop.f32.mrb[25].mxu0  ;;  %v1725_v41 = vmul.f32 %v10604_v52, %v1466_v28  ;;  %v14660_v28 = vld [vmem:[#allocation77_spill] sm:$0xff] }
 0x305   : > { %10129 = vset.pattern.permute.xlu1 %v14466_v5  ;;  %v1707_v36 = vmul.f32 %v10604_v52, %v14660_v28 }
 0x306   : > { %814 = vperm.xlu1 %10129, %v315_v6   ;;  %v1853_v56 = vadd.f32 %v1725_v41, %v1081_v63 }
 0x307   : > { %v11858_v14 = vpop.f32.mrb[26].mxu0 }
 0x308   : > { %v11860_v23 = vpop.f32.mrb[27].mxu0  ;;  %v685_v59 = vpop.permute.xlu1 %684 }
 0x30a   : > { %10130 = vset.pattern.permute.xlu1 %v14458_v21 }
 0x30b   : > { %v11864_v25 = vpop.f32.mrb[28].mxu0  ;;  %1493 = vperm.xlu1 %10130, %v315_v6  }
 0x30c   : > { %v11868_v55 = vpop.f32.mrb[29].mxu0 }
 0x30d   : > { %v2234_v48 = vpop.permute.xlu1 %2233 }
 0x30e   : > { %v2496_v17 = vmul.f32 %v10611_v45, %v2234_v48  ;;  %v2242_v48 = vpop.permute.xlu0 %2241 }
 0x30f   : > { %v11871_v24 = vpop.f32.mrb[30].mxu0  ;;  %10131 = vset.pattern.permute.xlu1 %v14466_v5 }
 0x310   : > { %v2624_v0 = vadd.f32 %v2496_v17, %v1852_v20  ;;  %v11874_v32 = vpop.f32.mrb[31].mxu0  ;;  %819 = vperm.xlu1 %10131, %v11877_v47   ;;  %v14662_v17 = vld [vmem:[#allocation40_spill] sm:$0xff] }
 0x312   : > { %v2759_v51 = vadd.f32 %v11740_v53, %v2624_v0  ;;  %v690_v38 = vpop.permute.xlu1 %689  ;;  %v1082_v0 = vmul.f32 %v10607_v27, %v14662_v17 }
 0x313   : > { %v11881_v1 = vpop.f32.mrb[32].mxu0  ;;  %v1063_v22 = vmul.f32 %v10607_v27, %v690_v38 }
 0x314   : > { %v2887_v49 = vmax.f32 %v2759_v51, 0.0  ;;  %v11884_v61 = vpop.f32.mrb[33].mxu0  ;;  %10132 = vset.pattern.permute.xlu1 %v14460_v4 }
 0x315   : > { %2189 = vperm.xlu1 %10132, %v10248_v31   ;;  %v1835_v63 = vadd.f32 %v1707_v36, %v1063_v22 }
 0x316   : > { %9420 = vmatprep.mubr.msk.f32.mxu1 %vm2944_vm0, %v2887_v49 }
 0x317   : > { %v11889_v40 = vpop.f32.mrb[34].mxu0  ;;  %v2238_v58 = vpop.permute.xlu1 %2237 }
 0x318   : > { %v2497_v12 = vmul.f32 %v10611_v45, %v2238_v58  ;;  %v11892_v37 = vpop.f32.mrb[35].mxu0  ;;  %v2479_v58 = vmul.f32 %v10611_v45, %v2166_v3 }
 0x319   : > { %10133 = vset.pattern.permute.xlu1 %v14466_v5 }
 0x31a   : > { %v2625_v31 = vadd.f32 %v2497_v12, %v1853_v56  ;;  %724 = vperm.xlu1 %10133, %v10250_v19   ;;  %v2498_v56 = vmul.f32 %v10611_v45, %v2242_v48  ;;  %v14664_v12 = vld [vmem:[#allocation76_spill] sm:$0xff]  ;;  %v1062_v19 = vmul.f32 %v10607_v27, %v685_v59  ;;  %v2607_v3 = vadd.f32 %v2479_v58, %v1835_v63 }
 0x31b   : > { %v11899_v20 = vpop.f32.mrb[36].mxu0  ;;  %v1706_v28 = vmul.f32 %v10604_v52, %v14664_v12 }
 0x31c   : > { %14661 = vst [vmem:[#allocation35_spill] sm:$0xff] %v11899_v20  ;;  %v2760_v51 = vadd.f32 %v11740_v53, %v2625_v31  ;;  %v11904_v41 = vpop.f32.mrb[37].mxu0  ;;  %v1470_v49 = vpop.permute.xlu1 %1469 }
 0x31d   : > { %14663 = vst [vmem:[#allocation2_spill] sm:$0xff] %v11904_v41  ;;  %v1726_v38 = vmul.f32 %v10604_v52, %v1470_v49  ;;  %v1834_v49 = vadd.f32 %v1706_v28, %v1062_v19 }
 0x31e   : > { %v2888_v20 = vmax.f32 %v2760_v51, 0.0  ;;  %10134 = vset.pattern.permute.xlu1 %v14460_v4 }
 0x31f   : > { %v1854_v31 = vadd.f32 %v1726_v38, %v1082_v0  ;;  %v11913_v17 = vpop.f32.mrb[38].mxu0  ;;  %2265 = vperm.xlu1 %10134, %v315_v6   ;;  %v10251_v6 = vld [vmem:[%s10335_s21 + $0x258] sm:$0xff] }
 0x320   : > { %14665 = vst [vmem:[#allocation3_spill] sm:$0xff] %v11913_v17  ;;  %v11915_v36 = vpop.f32.mrb[39].mxu0  ;;  %9421 = vmatmul.mubr.msk.f32.gmra.mrb[4].mxu1 %vm2944_vm0, %v2888_v20  ;;  %v2742_v17 = vadd.f32 %v11740_v53, %v2607_v3 }
 0x321   : > { %14666 = vst [vmem:[#allocation7_spill] sm:$0xff] %v11915_v36  ;;  %v2626_v22 = vadd.f32 %v2498_v56, %v1854_v31  ;;  %v2162_v48 = vpop.permute.xlu1 %2161 }
 0x322   : > { %v2478_v12 = vmul.f32 %v10611_v45, %v2162_v48  ;;  %v2870_v31 = vmax.f32 %v2742_v17, 0.0 }
 0x323   : > { %v2761_v59 = vadd.f32 %v11740_v53, %v2626_v22  ;;  %v11920_v51 = vpop.f32.mrb[40].mxu0  ;;  %10135 = vset.pattern.permute.xlu1 %v14458_v21 }
 0x324   : > { %14667 = vst [vmem:[#allocation9_spill] sm:$0xff] %v11920_v51  ;;  %v2606_v0 = vadd.f32 %v2478_v12, %v1834_v49  ;;  %v11923_v38 = vpop.f32.mrb[41].mxu0  ;;  %1425 = vperm.xlu1 %10135, %v10251_v6   ;;  %v10252_v49 = vld [vmem:[%s10335_s21 + $0x2f0] sm:$0xff] }
 0x325   : > { %14668 = vst [vmem:[#allocation33_spill] sm:$0xff] %v11923_v38  ;;  %v2889_v20 = vmax.f32 %v2761_v59, 0.0 }
 0x326   : > { %v2741_v63 = vadd.f32 %v11740_v53, %v2606_v0  ;;  %v1474_v58 = vpop.permute.xlu1 %1473  ;;  %v318_v0 = vld [vmem:[%s10335_s21 + $0x2f8] sm:$0xff] }
 0x327   : > { %v11928_v56 = vpop.f32.mrb[42].mxu0  ;;  %9423 = vmatprep.mubr.msk.f32.mxu1 %vm2944_vm0, %v2889_v20 }
 0x328   : > { %14669 = vst [vmem:[#allocation37_spill] sm:$0xff] %v11928_v56  ;;  %v2869_v28 = vmax.f32 %v2741_v63, 0.0  ;;  %v11931_v19 = vpop.f32.mrb[43].mxu0  ;;  %10136 = vset.pattern.permute.xlu1 %v14460_v4  ;;  %v1727_v63 = vmul.f32 %v10604_v52, %v1474_v58  ;;  %v10253_v56 = vld [vmem:[%s10335_s21 + $0x260] sm:$0xff]  ;;  %v2250_v58 = vpop.permute.xlu0 %2249 }
 0x329   : > { %14670 = vst [vmem:[#allocation39_spill] sm:$0xff] %v11931_v19  ;;  %2269 = vperm.xlu1 %10136, %v11877_v47   ;;  %v14680_v19 = vld [vmem:[#allocation80_spill] sm:$0xff] }
 0x32a   : > { %9393 = vmatprep.mubr.msk.f32.mxu0 %vm2944_vm0, %v2869_v28 }
 0x32b   : > { %v11936_v3 = vpop.f32.mrb[44].mxu0  ;;  %9394 = vmatmul.mubr.msk.f32.gmra.mrb[66].mxu0 %vm2944_vm0, %v2870_v31  ;;  %v695_v22 = vpop.permute.xlu1 %694 }
 0x32c   : > { %14671 = vst [vmem:[#allocation42_spill] sm:$0xff] %v11936_v3  ;;  %v11939_v48 = vpop.f32.mrb[45].mxu0 }
 0x32d   : > { %14672 = vst [vmem:[#allocation52_spill] sm:$0xff] %v11939_v48  ;;  %10137 = vset.pattern.permute.xlu1 %v14458_v21 }
 0x32e   : > { %1501 = vperm.xlu1 %10137, %v10252_v49  }
 0x32f   : > { %v11943_v12 = vpop.f32.mrb[46].mxu0 }
 0x330   : > { %14673 = vst [vmem:[#allocation4_spill] sm:$0xff] %v11943_v12  ;;  %v11945_v59 = vpop.f32.mrb[47].mxu0  ;;  %v1398_v17 = vpop.permute.xlu1 %1397  ;;  %v14679_v12 = vld [vmem:[#allocation41_spill] sm:$0xff] }
 0x331   : > { %14674 = vst [vmem:[#allocation11_spill] sm:$0xff] %v11945_v59  ;;  %v1083_v59 = vmul.f32 %v10607_v27, %v14679_v12 }
 0x332   : > { %10138 = vset.pattern.permute.xlu1 %v14466_v5 }
 0x333   : > { %v11949_v47 = vpop.f32.mrb[48].mxu0  ;;  %829 = vperm.xlu1 %10138, %v318_v0   ;;  %v1855_v48 = vadd.f32 %v1727_v63, %v1083_v59 }
 0x334   : > { %14675 = vst [vmem:[#allocation12_spill] sm:$0xff] %v11949_v47  ;;  %v11951_v6 = vpop.f32.mrb[49].mxu0 }
 0x335   : > { %14676 = vst [vmem:[#allocation46_spill] sm:$0xff] %v11951_v6  ;;  %v700_v20 = vpop.permute.xlu1 %699 }
 0x337   : > { %v11954_v28 = vpop.f32.mrb[50].mxu0  ;;  %10139 = vset.pattern.permute.xlu1 %v14458_v21 }
 0x338   : > { %14677 = vst [vmem:[#allocation44_spill] sm:$0xff] %v11954_v28  ;;  %v11957_v31 = vpop.f32.mrb[51].mxu0  ;;  %1505 = vperm.xlu1 %10139, %v318_v0   ;;  %v1728_v28 = vmul.f32 %v10604_v52, %v14680_v19  ;;  %v1064_v19 = vmul.f32 %v10607_v27, %v695_v22  ;;  %v14683_v22 = vld [vmem:[#allocation43_spill] sm:$0xff] }
 0x339   : > { %14678 = vst [vmem:[#allocation48_spill] sm:$0xff] %v11957_v31 }
 0x33a   : > { %v2246_v3 = vpop.permute.xlu1 %2245 }
 0x33b   : > { %v2499_v47 = vmul.f32 %v10611_v45, %v2246_v3  ;;  %v2500_v3 = vmul.f32 %v10611_v45, %v2250_v58 }
 0x33c   : > { %10140 = vset.pattern.permute.xlu1 %v14466_v5 }
 0x33d   : > { %v2627_v6 = vadd.f32 %v2499_v47, %v1855_v48  ;;  %734 = vperm.xlu1 %10140, %v10253_v56   ;;  %v1708_v48 = vmul.f32 %v10604_v52, %v1398_v17  ;;  %v10254_v17 = vld [vmem:[%s10335_s21 + $0x268] sm:$0xff] }
 0x33f   : > { %v2762_v51 = vadd.f32 %v11740_v53, %v2627_v6  ;;  %v11967_v31 = vpop.f32.mrb[52].mxu0  ;;  %v795_v38 = vpop.permute.xlu1 %794 }
 0x340   : > { %14681 = vst [vmem:[#allocation50_spill] sm:$0xff] %v11967_v31  ;;  %v1084_v12 = vmul.f32 %v10607_v27, %v795_v38  ;;  %v11970_v36 = vpop.f32.mrb[53].mxu0  ;;  %v1836_v31 = vadd.f32 %v1708_v48, %v1064_v19 }
 0x341   : > { %14682 = vst [vmem:[#allocation6_spill] sm:$0xff] %v11970_v36  ;;  %v2890_v59 = vmax.f32 %v2762_v51, 0.0  ;;  %10141 = vset.pattern.permute.xlu1 %v14460_v4  ;;  %v2254_v51 = vpop.permute.xlu0 %2253 }
 0x342   : > { %v1856_v47 = vadd.f32 %v1728_v28, %v1084_v12  ;;  %2273 = vperm.xlu1 %10141, %v10252_v49   ;;  %v1085_v12 = vmul.f32 %v10607_v27, %v14683_v22  ;;  %v2501_v48 = vmul.f32 %v10611_v45, %v2254_v51  ;;  %v10255_v51 = vld [vmem:[%s10335_s21 + $0x300] sm:$0xff] }
 0x343   : > { %9424 = vmatmul.mubr.msk.f32.gmra.mrb[6].mxu1 %vm2944_vm0, %v2890_v59  ;;  %v14684_v59 = vld [vmem:[#allocation79_spill] sm:$0xff] }
 0x344   : > { %v2628_v6 = vadd.f32 %v2500_v3, %v1856_v47  ;;  %v2170_v63 = vpop.permute.xlu1 %2169  ;;  %v1065_v47 = vmul.f32 %v10607_v27, %v700_v20 }
 0x345   : > { %v2480_v38 = vmul.f32 %v10611_v45, %v2170_v63 }
 0x346   : > { %v2763_v36 = vadd.f32 %v11740_v53, %v2628_v6  ;;  %10142 = vset.pattern.permute.xlu1 %v14466_v5 }
 0x347   : > { %v2608_v58 = vadd.f32 %v2480_v38, %v1836_v31  ;;  %739 = vperm.xlu1 %10142, %v10254_v17   ;;  %v1709_v31 = vmul.f32 %v10604_v52, %v14684_v59 }
 0x348   : > { %v2891_v41 = vmax.f32 %v2763_v36, 0.0 }
 0x349   : > { %v2743_v49 = vadd.f32 %v11740_v53, %v2608_v58  ;;  %v1482_v28 = vpop.permute.xlu1 %1481  ;;  %v1837_v38 = vadd.f32 %v1709_v31, %v1065_v47  ;;  %v301_v31 = vld [vmem:[%s10335_s21 + $0x270] sm:$0xff] }
 0x34a   : > { %v1729_v3 = vmul.f32 %v10604_v52, %v1482_v28  ;;  %9426 = vmatprep.mubr.msk.f32.mxu1 %vm2944_vm0, %v2891_v41 }
 0x34b   : > { %v2871_v19 = vmax.f32 %v2743_v49, 0.0  ;;  %10143 = vset.pattern.permute.xlu1 %v14460_v4 }
 0x34c   : > { %v1857_v36 = vadd.f32 %v1729_v3, %v1085_v12  ;;  %2277 = vperm.xlu1 %10143, %v318_v0  }
 0x34d   : > { %9396 = vmatprep.mubr.msk.f32.mxu0 %vm2944_vm0, %v2871_v19 }
 0x34e   : > { %v2629_v6 = vadd.f32 %v2501_v48, %v1857_v36  ;;  %v2174_v63 = vpop.permute.xlu1 %2173  ;;  %v10256_v48 = vld [vmem:[%s10335_s21 + $0x308] sm:$0xff] }
 0x34f   : > { %v2481_v41 = vmul.f32 %v10611_v45, %v2174_v63 }
 0x350   : > { %v2764_v58 = vadd.f32 %v11740_v53, %v2629_v6  ;;  %10144 = vset.pattern.permute.xlu1 %v14458_v21 }
 0x351   : > { %v2609_v17 = vadd.f32 %v2481_v41, %v1837_v38  ;;  %1509 = vperm.xlu1 %10144, %v10255_v51   ;;  %v10257_v51 = vld [vmem:[%s10335_s21 + $0x278] sm:$0xff] }
 0x352   : > { %v2892_v20 = vmax.f32 %v2764_v58, 0.0  ;;  %v11996_v49 = vpop.f32.mrb[54].mxu0 }
 0x353   : > { %14685 = vst [vmem:[#allocation54_spill] sm:$0xff] %v11996_v49  ;;  %v2744_v0 = vadd.f32 %v11740_v53, %v2609_v17  ;;  %v11999_v28 = vpop.f32.mrb[55].mxu0  ;;  %v1406_v22 = vpop.permute.xlu1 %1405 }
 0x354   : > { %14686 = vst [vmem:[#allocation13_spill] sm:$0xff] %v11999_v28  ;;  %9427 = vmatmul.mubr.msk.f32.gmra.mrb[8].mxu1 %vm2944_vm0, %v2892_v20  ;;  %v1710_v19 = vmul.f32 %v10604_v52, %v1406_v22 }
 0x355   : > { %v2872_v12 = vmax.f32 %v2744_v0, 0.0  ;;  %10145 = vset.pattern.permute.xlu1 %v14460_v4 }
 0x356   : > { %2201 = vperm.xlu1 %10145, %v10253_v56   ;;  %v14688_v56 = vld [vmem:[#allocation45_spill] sm:$0xff] }
 0x357   : > { %9397 = vmatmul.mubr.msk.f32.gmra.mrb[68].mxu0 %vm2944_vm0, %v2872_v12  ;;  %v1066_v6 = vmul.f32 %v10607_v27, %v14688_v56 }
 0x358   : > { %v710_v3 = vpop.permute.xlu1 %709 }
 0x359   : > { %v1838_v41 = vadd.f32 %v1710_v19, %v1066_v6  ;;  %v1067_v56 = vmul.f32 %v10607_v27, %v710_v3  ;;  %v2262_v19 = vpop.permute.xlu0 %2261 }
 0x35a   : > { %10146 = vset.pattern.permute.xlu1 %v14458_v21 }
 0x35b   : > { %1513 = vperm.xlu1 %10146, %v10256_v48  }
 0x35d   : > { %v1410_v59 = vpop.permute.xlu1 %1409 }
 0x35e   : > { %v1711_v22 = vmul.f32 %v10604_v52, %v1410_v59 }
 0x35f   : > { %10147 = vset.pattern.permute.xlu1 %v14466_v5 }
 0x360   : > { %744 = vperm.xlu1 %10147, %v301_v31  }
 0x362   : > { %v805_v47 = vpop.permute.xlu1 %804 }
 0x364   : > { %10148 = vset.pattern.permute.xlu1 %v14458_v21 }
 0x365   : > { %v12010_v36 = vpop.f32.mrb[56].mxu0  ;;  %1437 = vperm.xlu1 %10148, %v301_v31  }
 0x366   : > { %14687 = vst [vmem:[#allocation57_spill] sm:$0xff] %v12010_v36  ;;  %v12014_v63 = vpop.f32.mrb[57].mxu0 }
 0x367   : > { %14689 = vst [vmem:[#allocation59_spill] sm:$0xff] %v12014_v63  ;;  %v2178_v38 = vpop.permute.xlu1 %2177  ;;  %v14691_v63 = vld [vmem:[#allocation47_spill] sm:$0xff] }
 0x368   : > { %v2482_v58 = vmul.f32 %v10611_v45, %v2178_v38  ;;  %v1839_v38 = vadd.f32 %v1711_v22, %v1067_v56  ;;  %v1068_v3 = vmul.f32 %v10607_v27, %v14691_v63  ;;  %v2503_v56 = vmul.f32 %v10611_v45, %v2262_v19 }
 0x369   : > { %10149 = vset.pattern.permute.xlu1 %v14466_v5 }
 0x36a   : > { %v2610_v17 = vadd.f32 %v2482_v58, %v1838_v41  ;;  %749 = vperm.xlu1 %10149, %v10257_v51   ;;  %v14690_v58 = vld [vmem:[#allocation84_spill] sm:$0xff] }
 0x36c   : > { %v2745_v20 = vadd.f32 %v11740_v53, %v2610_v17  ;;  %v810_v0 = vpop.permute.xlu1 %809  ;;  %v1731_v17 = vmul.f32 %v10604_v52, %v14690_v58 }
 0x36d   : > { %v1087_v36 = vmul.f32 %v10607_v27, %v810_v0  ;;  %v14692_v0 = vld [vmem:[#allocation82_spill] sm:$0xff] }
 0x36e   : > { %v2873_v12 = vmax.f32 %v2745_v20, 0.0  ;;  %10150 = vset.pattern.permute.xlu1 %v14460_v4  ;;  %v10258_v20 = vld [vmem:[%s10335_s21 + $0x310] sm:$0xff]  ;;  %v1730_v28 = vmul.f32 %v10604_v52, %v14692_v0  ;;  %v10259_v0 = vld [vmem:[%s10335_s21 + $0x318] sm:$0xff] }
 0x36f   : > { %2285 = vperm.xlu1 %10150, %v10256_v48   ;;  %v2186_v48 = vpop.permute.xlu0 %2185  ;;  %v1859_v22 = vadd.f32 %v1731_v17, %v1087_v36 }
 0x370   : > { %9399 = vmatprep.mubr.msk.f32.mxu0 %vm2944_vm0, %v2873_v12  ;;  %v2484_v58 = vmul.f32 %v10611_v45, %v2186_v48 }
 0x371   : > { %v2182_v6 = vpop.permute.xlu1 %2181 }
 0x372   : > { %v2483_v41 = vmul.f32 %v10611_v45, %v2182_v6 }
 0x373   : > { %10151 = vset.pattern.permute.xlu1 %v14466_v5 }
 0x374   : > { %v2611_v59 = vadd.f32 %v2483_v41, %v1839_v38  ;;  %844 = vperm.xlu1 %10151, %v10258_v20   ;;  %v1086_v38 = vmul.f32 %v10607_v27, %v805_v47 }
 0x376   : > { %v2746_v12 = vadd.f32 %v11740_v53, %v2611_v59  ;;  %v1414_v49 = vpop.permute.xlu1 %1413  ;;  %v1858_v17 = vadd.f32 %v1730_v28, %v1086_v38 }
 0x377   : > { %v1712_v6 = vmul.f32 %v10604_v52, %v1414_v49  ;;  %v2631_v49 = vadd.f32 %v2503_v56, %v1859_v22 }
 0x378   : > { %v2874_v41 = vmax.f32 %v2746_v12, 0.0  ;;  %v12039_v20 = vpop.f32.mrb[58].mxu0  ;;  %10152 = vset.pattern.permute.xlu1 %v14460_v4 }
 0x379   : > { %v1840_v63 = vadd.f32 %v1712_v6, %v1068_v3  ;;  %v12042_v59 = vpop.f32.mrb[59].mxu0  ;;  %2209 = vperm.xlu1 %10152, %v301_v31   ;;  %v2766_v3 = vadd.f32 %v11740_v53, %v2631_v49 }
 0x37a   : > { %9400 = vmatmul.mubr.msk.f32.gmra.mrb[70].mxu0 %vm2944_vm0, %v2874_v41  ;;  %v10260_v41 = vld [vmem:[%s10335_s21 + $0x320] sm:$0xff] }
 0x37b   : > { %v2612_v36 = vadd.f32 %v2484_v58, %v1840_v63  ;;  %v2258_v19 = vpop.permute.xlu1 %2257  ;;  %v2894_v56 = vmax.f32 %v2766_v3, 0.0  ;;  %v324_v63 = vld [vmem:[%s10335_s21 + $0x328] sm:$0xff] }
 0x37c   : > { %v2502_v48 = vmul.f32 %v10611_v45, %v2258_v19  ;;  %v14693_v19 = vld [vmem:[#allocation49_spill] sm:$0xff] }
 0x37d   : > { %v2747_v47 = vadd.f32 %v11740_v53, %v2612_v36  ;;  %10154 = vset.pattern.permute.xlu1 %v14458_v21 }
 0x37e   : > { %v2630_v12 = vadd.f32 %v2502_v48, %v1858_v17  ;;  %1521 = vperm.xlu1 %10154, %v10259_v0   ;;  %v1069_v17 = vmul.f32 %v10607_v27, %v14693_v19 }
 0x37f   : > { %v2875_v6 = vmax.f32 %v2747_v47, 0.0 }
 0x380   : > { %v2765_v31 = vadd.f32 %v11740_v53, %v2630_v12  ;;  %v1418_v22 = vpop.permute.xlu1 %1417 }
 0x381   : > { %9402 = vmatprep.mubr.msk.f32.mxu0 %vm2944_vm0, %v2875_v6  ;;  %v1713_v36 = vmul.f32 %v10604_v52, %v1418_v22  ;;  %v14695_v22 = vld [vmem:[#allocation88_spill] sm:$0xff] }
 0x382   : > { %v2893_v28 = vmax.f32 %v2765_v31, 0.0  ;;  %10155 = vset.pattern.permute.xlu1 %v14460_v4 }
 0x383   : > { %2213 = vperm.xlu1 %10155, %v10257_v51   ;;  %v1841_v48 = vadd.f32 %v1713_v36, %v1069_v17 }
 0x384   : > { %9429 = vmatprep.mubr.msk.f32.mxu1 %vm2944_vm0, %v2893_v28  ;;  %v1714_v28 = vmul.f32 %v10604_v52, %v14695_v22 }
 0x385   : > { %9430 = vmatmul.mubr.msk.f32.gmra.mrb[10].mxu1 %vm2944_vm0, %v2894_v56  ;;  %v815_v58 = vpop.permute.xlu1 %814 }
 0x387   : > { %2293 = vperm.xlu1 %10155, %v10259_v0   ;;  %v2194_v0 = vpop.permute.xlu0 %2193 }
 0x388   : > { %v2486_v36 = vmul.f32 %v10611_v45, %v2194_v0  ;;  %v326_v0 = vld [vmem:[%s10335_s21 + $0x338] sm:$0xff] }
 0x38a   : > { %v1494_v38 = vpop.permute.xlu1 %1493 }
 0x38b   : > { %10156 = vset.pattern.permute.xlu1 %v14466_v5  ;;  %v1732_v19 = vmul.f32 %v10604_v52, %v1494_v38  ;;  %v2198_v38 = vpop.permute.xlu0 %2197 }
 0x38c   : > { %854 = vperm.xlu1 %10156, %v10260_v41  }
 0x38f   : > { %v820_v49 = vpop.permute.xlu1 %819 }
 0x390   : > { %859 = vperm.xlu1 %10156, %v324_v63  }
 0x394   : > { %10157 = vset.pattern.permute.xlu1 %v14458_v21  ;;  %v2190_v51 = vpop.permute.xlu1 %2189 }
 0x395   : > { %v2485_v47 = vmul.f32 %v10611_v45, %v2190_v51  ;;  %1529 = vperm.xlu1 %10157, %v324_v63  }
 0x397   : > { %v2613_v12 = vadd.f32 %v2485_v47, %v1841_v48  ;;  %v1088_v48 = vmul.f32 %v10607_v27, %v815_v58 }
 0x399   : > { %v2748_v3 = vadd.f32 %v11740_v53, %v2613_v12  ;;  %v12064_v6 = vpop.f32.mrb[60].mxu0  ;;  %10158 = vset.pattern.permute.xlu1 %v14460_v4  ;;  %v725_v31 = vpop.permute.xlu1 %724  ;;  %v1860_v22 = vadd.f32 %v1732_v19, %v1088_v48 }
 0x39a   : > { %14694 = vst [vmem:[#allocation8_spill] sm:$0xff] %v12064_v6  ;;  %v1070_v56 = vmul.f32 %v10607_v27, %v725_v31  ;;  %v12070_v41 = vpop.f32.mrb[61].mxu0  ;;  %2301 = vperm.xlu1 %10158, %v324_v63   ;;  %v10261_v6 = vld [vmem:[%s10335_s21 + $0x330] sm:$0xff] }
 0x39b   : > { %14696 = vst [vmem:[#allocation56_spill] sm:$0xff] %v12070_v41  ;;  %v2876_v17 = vmax.f32 %v2748_v3, 0.0 }
 0x39c   : > { %v1842_v51 = vadd.f32 %v1714_v28, %v1070_v56  ;;  %v14697_v56 = vld [vmem:[#allocation51_spill] sm:$0xff] }
 0x39d   : > { %9403 = vmatmul.mubr.msk.f32.gmra.mrb[72].mxu0 %vm2944_vm0, %v2876_v17 }
 0x39e   : > { %v2614_v47 = vadd.f32 %v2486_v36, %v1842_v51  ;;  %10159 = vset.pattern.permute.xlu1 %v14466_v5  ;;  %v2266_v12 = vpop.permute.xlu1 %2265  ;;  %v1071_v36 = vmul.f32 %v10607_v27, %v14697_v56  ;;  %v14699_v51 = vld [vmem:[#allocation86_spill] sm:$0xff] }
 0x39f   : > { %v2504_v31 = vmul.f32 %v10611_v45, %v2266_v12  ;;  %864 = vperm.xlu1 %10159, %v10261_v6   ;;  %v2487_v6 = vmul.f32 %v10611_v45, %v2198_v38  ;;  %v1733_v48 = vmul.f32 %v10604_v52, %v14699_v51 }
 0x3a0   : > { %v2749_v63 = vadd.f32 %v11740_v53, %v2614_v47  ;;  %v1089_v47 = vmul.f32 %v10607_v27, %v820_v49 }
 0x3a1   : > { %v2632_v41 = vadd.f32 %v2504_v31, %v1860_v22 }
 0x3a2   : > { %v2877_v3 = vmax.f32 %v2749_v63, 0.0 }
 0x3a3   : > { %v2767_v28 = vadd.f32 %v11740_v53, %v2632_v41  ;;  %869 = vperm.xlu1 %10159, %v326_v0   ;;  %v1426_v58 = vpop.permute.xlu1 %1425 }
 0x3a4   : > { %v1715_v17 = vmul.f32 %v10604_v52, %v1426_v58  ;;  %9405 = vmatprep.mubr.msk.f32.mxu0 %vm2944_vm0, %v2877_v3  ;;  %v12086_v19 = vpop.f32.mrb[0].mxu1  ;;  %v1861_v3 = vadd.f32 %v1733_v48, %v1089_v47  ;;  %v328_v48 = vld [vmem:[%s10335_s21 + $0x348] sm:$0xff] }
 0x3a5   : > { %14698 = vst [vmem:[#allocation62_spill] sm:$0xff] %v12086_v19  ;;  %v2895_v12 = vmax.f32 %v2767_v28, 0.0  ;;  %v12092_v41 = vpop.f32.mrb[1].mxu1  ;;  %v330_v19 = vld [vmem:[%s10335_s21 + $0x358] sm:$0xff] }
 0x3a6   : > { %14700 = vst [vmem:[#allocation60_spill] sm:$0xff] %v12092_v41  ;;  %v1843_v22 = vadd.f32 %v1715_v17, %v1071_v36 }
 0x3a7   : > { %10160 = vset.pattern.permute.xlu1 %v14458_v21  ;;  %9432 = vmatprep.mubr.msk.f32.mxu1 %vm2944_vm0, %v2895_v12 }
 0x3a8   : > { %v2615_v31 = vadd.f32 %v2487_v6, %v1843_v22  ;;  %1537 = vperm.xlu1 %10160, %v326_v0   ;;  %v2270_v63 = vpop.permute.xlu1 %2269  ;;  %v10262_v6 = vld [vmem:[%s10335_s21 + $0x340] sm:$0xff] }
 0x3a9   : > { %v2505_v38 = vmul.f32 %v10611_v45, %v2270_v63  ;;  %v14703_v63 = vld [vmem:[#allocation53_spill] sm:$0xff] }
 0x3aa   : > { %v2750_v58 = vadd.f32 %v11740_v53, %v2615_v31 }
 0x3ab   : > { %v2633_v56 = vadd.f32 %v2505_v38, %v1861_v3  ;;  %v1090_v3 = vmul.f32 %v10607_v27, %v14703_v63 }
 0x3ac   : > { %v2878_v49 = vmax.f32 %v2750_v58, 0.0  ;;  %10161 = vset.pattern.permute.xlu1 %v14460_v4 }
 0x3ad   : > { %v2768_v28 = vadd.f32 %v11740_v53, %v2633_v56  ;;  %2309 = vperm.xlu1 %10161, %v326_v0   ;;  %v1502_v36 = vpop.permute.xlu1 %1501 }
 0x3ae   : > { %9406 = vmatmul.mubr.msk.f32.gmra.mrb[74].mxu0 %vm2944_vm0, %v2878_v49  ;;  %v1734_v31 = vmul.f32 %v10604_v52, %v1502_v36 }
 0x3af   : > { %v2896_v17 = vmax.f32 %v2768_v28, 0.0  ;;  %v10263_v28 = vld [vmem:[%s10335_s21 + $0x350] sm:$0xff] }
 0x3b0   : > { %v1862_v58 = vadd.f32 %v1734_v31, %v1090_v3 }
 0x3b1   : > { %10162 = vset.pattern.permute.xlu1 %v14466_v5  ;;  %9433 = vmatmul.mubr.msk.f32.gmra.mrb[12].mxu1 %vm2944_vm0, %v2896_v17 }
 0x3b2   : > { %874 = vperm.xlu1 %10162, %v10262_v6   ;;  %v830_v51 = vpop.permute.xlu1 %829 }
 0x3b3   : > { %v1091_v63 = vmul.f32 %v10607_v27, %v830_v51 }
 0x3b6   : > { %879 = vperm.xlu1 %10162, %v328_v48  }
 0x3b7   : > { %v1506_v47 = vpop.permute.xlu1 %1505 }
 0x3b8   : > { %v1735_v36 = vmul.f32 %v10604_v52, %v1506_v47 }
 0x3ba   : > { %10163 = vset.pattern.permute.xlu1 %v14458_v21  ;;  %v1863_v3 = vadd.f32 %v1735_v36, %v1091_v63 }
 0x3bb   : > { %1545 = vperm.xlu1 %10163, %v328_v48  }
 0x3bc   : > { %v12106_v12 = vpop.f32.mrb[62].mxu0  ;;  %v735_v0 = vpop.permute.xlu1 %734 }
 0x3bd   : > { %14701 = vst [vmem:[#allocation14_spill] sm:$0xff] %v12106_v12  ;;  %v12108_v22 = vpop.f32.mrb[63].mxu0  ;;  %v14707_v12 = vld [vmem:[#allocation55_spill] sm:$0xff] }
 0x3be   : > { %14702 = vst [vmem:[#allocation10_spill] sm:$0xff] %v12108_v22  ;;  %v1072_v22 = vmul.f32 %v10607_v27, %v735_v0  ;;  %v12150_v0 = vld [vmem:[%s14425_s3] ss:$0 sm:$0xff] }
 0x3bf   : > { %10164 = vset.pattern.permute.xlu1 %v14460_v4 }
 0x3c0   : > { %2317 = vperm.xlu1 %10164, %v328_v48   ;;  %v2206_v48 = vpop.permute.xlu0 %2205 }
 0x3c1   : > { %v2274_v38 = vpop.permute.xlu1 %2273 }
 0x3c2   : > { %v2506_v56 = vmul.f32 %v10611_v45, %v2274_v38 }
 0x3c4   : > { %v2634_v49 = vadd.f32 %v2506_v56, %v1862_v58  ;;  %10165 = vset.pattern.permute.xlu1 %v14466_v5  ;;  %v2282_v47 = vpop.permute.xlu0 %2281 }
 0x3c5   : > { %884 = vperm.xlu1 %10165, %v10263_v28  }
 0x3c6   : > { %v2769_v17 = vadd.f32 %v11740_v53, %v2634_v49  ;;  %v740_v6 = vpop.permute.xlu1 %739 }
 0x3c7   : > { %v1073_v58 = vmul.f32 %v10607_v27, %v740_v6 }
 0x3c8   : > { %v2897_v41 = vmax.f32 %v2769_v17, 0.0  ;;  %v14706_v17 = vld [vmem:[#allocation92_spill] sm:$0xff] }
 0x3c9   : > { %889 = vperm.xlu1 %10165, %v330_v19   ;;  %v1717_v51 = vmul.f32 %v10604_v52, %v14706_v17 }
 0x3ca   : > { %9435 = vmatprep.mubr.msk.f32.mxu1 %vm2944_vm0, %v2897_v41  ;;  %v1092_v41 = vmul.f32 %v10607_v27, %v14707_v12 }
 0x3cb   : > { %v2278_v31 = vpop.permute.xlu1 %2277 }
 0x3cc   : > { %v2507_v38 = vmul.f32 %v10611_v45, %v2278_v31  ;;  %v1845_v31 = vadd.f32 %v1717_v51, %v1073_v58 }
 0x3cd   : > { %v12124_v56 = vpop.f32.mrb[64].mxu0  ;;  %10166 = vset.pattern.permute.xlu1 %v14458_v21 }
 0x3ce   : > { %14704 = vst [vmem:[#allocation63_spill] sm:$0xff] %v12124_v56  ;;  %v2635_v49 = vadd.f32 %v2507_v38, %v1863_v3  ;;  %v12127_v28 = vpop.f32.mrb[65].mxu0  ;;  %1553 = vperm.xlu1 %10166, %v330_v19   ;;  %v2489_v56 = vmul.f32 %v10611_v45, %v2206_v48 }
 0x3cf   : > { %14705 = vst [vmem:[#allocation15_spill] sm:$0xff] %v12127_v28  ;;  %v2508_v28 = vmul.f32 %v10611_v45, %v2282_v47 }
 0x3d0   : > { %v2770_v36 = vadd.f32 %v11740_v53, %v2635_v49  ;;  %v12134_v63 = vpop.f32.mrb[2].mxu1  ;;  %v1510_v6 = vpop.permute.xlu1 %1509  ;;  %v14710_v53 = vld [vmem:[#allocation90_spill] sm:$0xff]  ;;  %v2617_v48 = vadd.f32 %v2489_v56, %v1845_v31 }
 0x3d1   : > { %14708 = vst [vmem:[#allocation16_spill] sm:$0xff] %v12134_v63  ;;  %v1736_v3 = vmul.f32 %v10604_v52, %v1510_v6  ;;  %v12138_v38 = vpop.f32.mrb[3].mxu1  ;;  %v1716_v58 = vmul.f32 %v10604_v52, %v14710_v53 }
 0x3d2   : > { %14709 = vst [vmem:[#allocation64_spill] sm:$0xff] %v12138_v38  ;;  %v2898_v17 = vmax.f32 %v2770_v36, 0.0  ;;  %10167 = vset.pattern.permute.xlu1 %v14460_v4  ;;  %v10265_v36 = vld [vmem:[%s10335_s21 + $0x360] sm:$0xff] }
 0x3d3   : > { %v1864_v12 = vadd.f32 %v1736_v3, %v1092_v41  ;;  %2325 = vperm.xlu1 %10167, %v330_v19   ;;  %v1844_v6 = vadd.f32 %v1716_v58, %v1072_v22  ;;  %v2752_v3 = vadd.f32 %v12150_v0, %v2617_v48 }
 0x3d4   : > { %9436 = vmatmul.mubr.msk.f32.gmra.mrb[14].mxu1 %vm2944_vm0, %v2898_v17 }
 0x3d5   : > { %v2636_v49 = vadd.f32 %v2508_v28, %v1864_v12  ;;  %v2202_v51 = vpop.permute.xlu1 %2201  ;;  %v332_v28 = vld [vmem:[%s10335_s21 + $0x368] sm:$0xff]  ;;  %v2880_v12 = vmax.f32 %v2752_v3, 0.0 }
 0x3d6   : > { %v2488_v47 = vmul.f32 %v10611_v45, %v2202_v51  ;;  %v10266_v51 = vld [vmem:[%s10335_s21 + $0x370] sm:$0xff] }
 0x3d7   : > { %v2771_v41 = vadd.f32 %v12150_v0, %v2636_v49  ;;  %10168 = vset.pattern.permute.xlu1 %v14466_v5 }
 0x3d8   : > { %v2616_v19 = vadd.f32 %v2488_v47, %v1844_v6  ;;  %894 = vperm.xlu1 %10168, %v10265_v36   ;;  %v334_v6 = vld [vmem:[%s10335_s21 + $0x378] sm:$0xff]  ;;  %v14711_v47 = vld [vmem:[#allocation58_spill] sm:$0xff] }
 0x3d9   : > { %v2899_v56 = vmax.f32 %v2771_v41, 0.0  ;;  %v1093_v41 = vmul.f32 %v10607_v27, %v14711_v47 }
 0x3da   : > { %v2751_v22 = vadd.f32 %v12150_v0, %v2616_v19  ;;  %v1514_v31 = vpop.permute.xlu1 %1513 }
 0x3db   : > { %9438 = vmatprep.mubr.msk.f32.mxu1 %vm2944_vm0, %v2899_v56  ;;  %v1737_v49 = vmul.f32 %v10604_v52, %v1514_v31 }
 0x3dc   : > { %v2879_v17 = vmax.f32 %v2751_v22, 0.0  ;;  %899 = vperm.xlu1 %10168, %v332_v28   ;;  %v2290_v22 = vpop.permute.xlu0 %2289 }
 0x3dd   : > { %v1865_v36 = vadd.f32 %v1737_v49, %v1093_v41  ;;  %v2510_v49 = vmul.f32 %v10611_v45, %v2290_v22 }
 0x3de   : > { %9408 = vmatprep.mubr.msk.f32.mxu0 %vm2944_vm0, %v2879_v17 }
 0x3df   : > { %9409 = vmatmul.mubr.msk.f32.gmra.mrb[76].mxu0 %vm2944_vm0, %v2880_v12  ;;  %v745_v53 = vpop.permute.xlu1 %744  ;;  %v14713_v12 = vld [vmem:[#allocation95_spill] sm:$0xff] }
 0x3e0   : > { %10169 = vset.pattern.permute.xlu1 %v14458_v21 }
 0x3e1   : > { %1561 = vperm.xlu1 %10169, %v332_v28  }
 0x3e4   : > { %v1438_v58 = vpop.permute.xlu1 %1437 }
 0x3e5   : > { %10170 = vset.pattern.permute.xlu1 %v14460_v4  ;;  %v1718_v41 = vmul.f32 %v10604_v52, %v1438_v58 }
 0x3e6   : > { %2333 = vperm.xlu1 %10170, %v332_v28  }
 0x3e9   : > { %v750_v48 = vpop.permute.xlu1 %749 }
 0x3ea   : > { %10171 = vset.pattern.permute.xlu1 %v14466_v5 }
 0x3eb   : > { %904 = vperm.xlu1 %10171, %v10266_v51   ;;  %v1738_v51 = vmul.f32 %v10604_v52, %v14713_v12 }
 0x3ee   : > { %v2286_v19 = vpop.permute.xlu1 %2285 }
 0x3ef   : > { %v2509_v3 = vmul.f32 %v10611_v45, %v2286_v19  ;;  %909 = vperm.xlu1 %10171, %v334_v6  }
 0x3f1   : > { %v2637_v56 = vadd.f32 %v2509_v3, %v1865_v36  ;;  %v1074_v3 = vmul.f32 %v10607_v27, %v745_v53 }
 0x3f3   : > { %v2772_v28 = vadd.f32 %v12150_v0, %v2637_v56  ;;  %v12171_v17 = vpop.f32.mrb[4].mxu1  ;;  %10172 = vset.pattern.permute.xlu1 %v14458_v21  ;;  %v845_v31 = vpop.permute.xlu1 %844 }
 0x3f4   : > { %14712 = vst [vmem:[#allocation17_spill] sm:$0xff] %v12171_v17  ;;  %v1094_v63 = vmul.f32 %v10607_v27, %v845_v31  ;;  %v12177_v47 = vpop.f32.mrb[5].mxu1  ;;  %1569 = vperm.xlu1 %10172, %v334_v6   ;;  %v1846_v17 = vadd.f32 %v1718_v41, %v1074_v3 }
 0x3f5   : > { %14714 = vst [vmem:[#allocation18_spill] sm:$0xff] %v12177_v47  ;;  %v2900_v19 = vmax.f32 %v2772_v28, 0.0 }
 0x3f6   : > { %v1866_v36 = vadd.f32 %v1738_v51, %v1094_v63  ;;  %v10267_v51 = vld [vmem:[%s10335_s21 + $0x380] sm:$0xff] }
 0x3f7   : > { %9439 = vmatmul.mubr.msk.f32.gmra.mrb[16].mxu1 %vm2944_vm0, %v2900_v19 }
 0x3f8   : > { %v2638_v56 = vadd.f32 %v2510_v49, %v1866_v36  ;;  %10173 = vset.pattern.permute.xlu1 %v14460_v4  ;;  %v2210_v12 = vpop.permute.xlu1 %2209  ;;  %v1075_v49 = vmul.f32 %v10607_v27, %v750_v48  ;;  %v14715_v36 = vld [vmem:[#allocation93_spill] sm:$0xff] }
 0x3f9   : > { %v2490_v31 = vmul.f32 %v10611_v45, %v2210_v12  ;;  %2341 = vperm.xlu1 %10173, %v334_v6   ;;  %v336_v6 = vld [vmem:[%s10335_s21 + $0x388] sm:$0xff] }
 0x3fa   : > { %v2773_v22 = vadd.f32 %v12150_v0, %v2638_v56 }
 0x3fb   : > { %v2618_v47 = vadd.f32 %v2490_v31, %v1846_v17  ;;  %v1719_v17 = vmul.f32 %v10604_v52, %v14715_v36  ;;  %v14716_v31 = vld [vmem:[#allocation61_spill] sm:$0xff] }
 0x3fc   : > { %v2901_v58 = vmax.f32 %v2773_v22, 0.0  ;;  %v1095_v22 = vmul.f32 %v10607_v27, %v14716_v31 }
 0x3fd   : > { %v2753_v63 = vadd.f32 %v12150_v0, %v2618_v47  ;;  %10174 = vset.pattern.permute.xlu1 %v14466_v5  ;;  %v1522_v53 = vpop.permute.xlu1 %1521  ;;  %v1847_v3 = vadd.f32 %v1719_v17, %v1075_v49  ;;  %v2298_v49 = vpop.permute.xlu0 %2297 }
 0x3fe   : > { %v12188_v28 = vpop.f32.mrb[66].mxu0  ;;  %914 = vperm.xlu1 %10174, %v10267_v51   ;;  %9441 = vmatprep.mubr.msk.f32.mxu1 %vm2944_vm0, %v2901_v58  ;;  %v1739_v56 = vmul.f32 %v10604_v52, %v1522_v53 }
 0x3ff   : > { %v2881_v41 = vmax.f32 %v2753_v63, 0.0  ;;  %v12193_v19 = vpop.f32.mrb[67].mxu0 }
 0x400   : > { %v1867_v63 = vadd.f32 %v1739_v56, %v1095_v22 }
 0x401   : > { %9411 = vmatprep.mubr.msk.f32.mxu0 %vm2944_vm0, %v2881_v41 }
 0x402   : > { %919 = vperm.xlu1 %10174, %v336_v6   ;;  %v2214_v47 = vpop.permute.xlu1 %2213 }
 0x403   : > { %v2491_v12 = vmul.f32 %v10611_v45, %v2214_v47  ;;  %v14717_v47 = vld [vmem:[#allocation97_spill] sm:$0xff] }
 0x405   : > { %v2619_v48 = vadd.f32 %v2491_v12, %v1847_v3  ;;  %v1740_v3 = vmul.f32 %v10604_v52, %v14717_v47  ;;  %v2512_v12 = vmul.f32 %v10611_v45, %v2298_v49 }
 0x406   : > { %10175 = vset.pattern.permute.xlu1 %v14458_v21  ;;  %v2294_v58 = vpop.permute.xlu1 %2293 }
 0x407   : > { %v2754_v51 = vadd.f32 %v12150_v0, %v2619_v48  ;;  %v2511_v36 = vmul.f32 %v10611_v45, %v2294_v58  ;;  %1577 = vperm.xlu1 %10175, %v336_v6   ;;  %v10268_v58 = vld [vmem:[%s10335_s21 + $0x390] sm:$0xff] }
 0x409   : > { %v2882_v41 = vmax.f32 %v2754_v51, 0.0  ;;  %v2639_v38 = vadd.f32 %v2511_v36, %v1867_v63  ;;  %v338_v51 = vld [vmem:[%s10335_s21 + $0x398] sm:$0xff] }
 0x40b   : > { %v2774_v53 = vadd.f32 %v12150_v0, %v2639_v38  ;;  %10176 = vset.pattern.permute.xlu1 %v14460_v4  ;;  %9412 = vmatmul.mubr.msk.f32.gmra.mrb[78].mxu0 %vm2944_vm0, %v2882_v41  ;;  %v855_v17 = vpop.permute.xlu1 %854 }
 0x40c   : > { %v1096_v56 = vmul.f32 %v10607_v27, %v855_v17  ;;  %2349 = vperm.xlu1 %10176, %v336_v6  }
 0x40d   : > { %v2902_v31 = vmax.f32 %v2774_v53, 0.0 }
 0x40e   : > { %v1868_v22 = vadd.f32 %v1740_v3, %v1096_v56 }
 0x40f   : > { %9442 = vmatmul.mubr.msk.f32.gmra.mrb[18].mxu1 %vm2944_vm0, %v2902_v31  ;;  %v860_v48 = vpop.permute.xlu1 %859 }
 0x410   : > { %v2640_v38 = vadd.f32 %v2512_v12, %v1868_v22  ;;  %10177 = vset.pattern.permute.xlu1 %v14466_v5  ;;  %v1097_v53 = vmul.f32 %v10607_v27, %v860_v48  ;;  %v2306_v22 = vpop.permute.xlu0 %2305 }
 0x411   : > { %924 = vperm.xlu1 %10177, %v10268_v58   ;;  %v14720_v58 = vld [vmem:[#allocation99_spill] sm:$0xff]  ;;  %v2514_v48 = vmul.f32 %v10611_v45, %v2306_v22 }
 0x412   : > { %v2775_v63 = vadd.f32 %v12150_v0, %v2640_v38 }
 0x414   : > { %v2903_v36 = vmax.f32 %v2775_v63, 0.0  ;;  %v1530_v41 = vpop.permute.xlu1 %1529  ;;  %v1742_v63 = vmul.f32 %v10604_v52, %v14720_v58 }
 0x415   : > { %929 = vperm.xlu1 %10177, %v338_v51   ;;  %v1741_v6 = vmul.f32 %v10604_v52, %v1530_v41 }
 0x416   : > { %v12219_v17 = vpop.f32.mrb[6].mxu1  ;;  %9444 = vmatprep.mubr.msk.f32.mxu1 %vm2944_vm0, %v2903_v36 }
 0x417   : > { %14718 = vst [vmem:[#allocation75_spill] sm:$0xff] %v12219_v17  ;;  %v12222_v49 = vpop.f32.mrb[7].mxu1  ;;  %v1869_v3 = vadd.f32 %v1741_v6, %v1097_v53 }
 0x418   : > { %14719 = vst [vmem:[#allocation81_spill] sm:$0xff] %v12222_v49 }
 0x419   : > { %10178 = vset.pattern.permute.xlu1 %v14458_v21  ;;  %v2302_v47 = vpop.permute.xlu1 %2301 }
 0x41a   : > { %v2513_v56 = vmul.f32 %v10611_v45, %v2302_v47  ;;  %1585 = vperm.xlu1 %10178, %v338_v51  }
 0x41c   : > { %v2641_v12 = vadd.f32 %v2513_v56, %v1869_v3  ;;  %v10269_v3 = vld [vmem:[%s10335_s21 + $0x3a0] sm:$0xff] }
 0x41e   : > { %v2776_v31 = vadd.f32 %v12150_v0, %v2641_v12  ;;  %10179 = vset.pattern.permute.xlu1 %v14460_v4  ;;  %v865_v38 = vpop.permute.xlu1 %864  ;;  %v340_v12 = vld [vmem:[%s10335_s21 + $0x3a8] sm:$0xff] }
 0x41f   : > { %v1098_v36 = vmul.f32 %v10607_v27, %v865_v38  ;;  %2357 = vperm.xlu1 %10179, %v338_v51  }
 0x420   : > { %v2904_v41 = vmax.f32 %v2776_v31, 0.0 }
 0x421   : > { %v1870_v6 = vadd.f32 %v1742_v63, %v1098_v36 }
 0x422   : > { %9445 = vmatmul.mubr.msk.f32.gmra.mrb[20].mxu1 %vm2944_vm0, %v2904_v41  ;;  %v870_v53 = vpop.permute.xlu1 %869 }
 0x423   : > { %v2642_v47 = vadd.f32 %v2514_v48, %v1870_v6  ;;  %10180 = vset.pattern.permute.xlu1 %v14466_v5  ;;  %v1099_v38 = vmul.f32 %v10607_v27, %v870_v53 }
 0x424   : > { %934 = vperm.xlu1 %10180, %v10269_v3  }
 0x425   : > { %v2777_v56 = vadd.f32 %v12150_v0, %v2642_v47  ;;  %v2314_v47 = vpop.permute.xlu0 %2313 }
 0x427   : > { %v12238_v17 = vpop.f32.mrb[8].mxu1  ;;  %v1538_v58 = vpop.permute.xlu1 %1537  ;;  %v2905_v22 = vmax.f32 %v2777_v56, 0.0 }
 0x428   : > { %14721 = vst [vmem:[#allocation89_spill] sm:$0xff] %v12238_v17  ;;  %v12240_v49 = vpop.f32.mrb[9].mxu1  ;;  %939 = vperm.xlu1 %10180, %v340_v12   ;;  %v1743_v51 = vmul.f32 %v10604_v52, %v1538_v58  ;;  %v14725_v58 = vld [vmem:[#allocation101_spill] sm:$0xff] }
 0x429   : > { %14722 = vst [vmem:[#allocation65_spill] sm:$0xff] %v12240_v49  ;;  %9447 = vmatprep.mubr.msk.f32.mxu1 %vm2944_vm0, %v2905_v22  ;;  %v1744_v53 = vmul.f32 %v10604_v52, %v14725_v58  ;;  %v2516_v22 = vmul.f32 %v10611_v45, %v2314_v47  ;;  %v342_v49 = vld [vmem:[%s10335_s21 + $0x3b8] sm:$0xff] }
 0x42a   : > { %v12244_v31 = vpop.f32.mrb[68].mxu0  ;;  %v1871_v36 = vadd.f32 %v1743_v51, %v1099_v38 }
 0x42b   : > { %14723 = vst [vmem:[#allocation78_spill] sm:$0xff] %v12244_v31  ;;  %v12247_v63 = vpop.f32.mrb[69].mxu0 }
 0x42c   : > { %14724 = vst [vmem:[#allocation85_spill] sm:$0xff] %v12247_v63  ;;  %10181 = vset.pattern.permute.xlu1 %v14458_v21  ;;  %v2310_v48 = vpop.permute.xlu1 %2309 }
 0x42d   : > { %v2515_v41 = vmul.f32 %v10611_v45, %v2310_v48  ;;  %1593 = vperm.xlu1 %10181, %v340_v12  }
 0x42f   : > { %v2643_v6 = vadd.f32 %v2515_v41, %v1871_v36  ;;  %v10270_v41 = vld [vmem:[%s10335_s21 + $0x3b0] sm:$0xff] }
 0x431   : > { %v2778_v3 = vadd.f32 %v12150_v0, %v2643_v6  ;;  %10182 = vset.pattern.permute.xlu1 %v14460_v4  ;;  %v875_v56 = vpop.permute.xlu1 %874 }
 0x432   : > { %v1100_v17 = vmul.f32 %v10607_v27, %v875_v56  ;;  %2365 = vperm.xlu1 %10182, %v340_v12   ;;  %v8537_v56 = vld [vmem:[%s14424_s2 + $0x48] sm:$0xff] }
 0x433   : > { %v2906_v51 = vmax.f32 %v2778_v3, 0.0  ;;  %v8536_v3 = vld [vmem:[%s14424_s2 + $0x40] sm:$0xff] }
 0x434   : > { %v1872_v38 = vadd.f32 %v1744_v53, %v1100_v17 }
 0x435   : > { %9448 = vmatmul.mubr.msk.f32.gmra.mrb[22].mxu1 %vm2944_vm0, %v2906_v51  ;;  %v880_v48 = vpop.permute.xlu1 %879  ;;  %v9958_v51 = vpack.c.bf16 %v8537_v56, %v8536_v3 }
 0x436   : > { %v2644_v36 = vadd.f32 %v2516_v22, %v1872_v38  ;;  %10183 = vset.pattern.permute.xlu1 %v14466_v5  ;;  %v1101_v17 = vmul.f32 %v10607_v27, %v880_v48 }
 0x437   : > { %944 = vperm.xlu1 %10183, %v10270_v41   ;;  %9959 = vmatprep.subr.bf16.mxu1 %v9958_v51  ;;  %v14726_v41 = vld [vmem:[#allocation103_spill] sm:$0xff] }
 0x438   : > { %v2779_v6 = vadd.f32 %v12150_v0, %v2644_v36  ;;  %9961 = vmatpush3.bf16.msra.mxu1 %v9958_v51  ;;  %v344_v51 = vld [vmem:[%s10335_s21 + $0x3c8] sm:$0xff] }
 0x43a   : > { %v2907_v31 = vmax.f32 %v2779_v6, 0.0  ;;  %v1546_v58 = vpop.permute.xlu1 %1545  ;;  %v1746_v6 = vmul.f32 %v10604_v52, %v14726_v41 }
 0x43b   : > { %949 = vperm.xlu1 %10183, %v342_v49   ;;  %v1745_v47 = vmul.f32 %v10604_v52, %v1546_v58 }
 0x43c   : > { %9450 = vmatprep.mubr.msk.f32.mxu1 %vm2944_vm0, %v2907_v31  ;;  %v2322_v31 = vpop.permute.xlu0 %2321 }
 0x43d   : > { %v1873_v53 = vadd.f32 %v1745_v47, %v1101_v17  ;;  %v2518_v58 = vmul.f32 %v10611_v45, %v2322_v31 }
 0x43f   : > { %10184 = vset.pattern.permute.xlu1 %v14458_v21  ;;  %v2318_v12 = vpop.permute.xlu1 %2317 }
 0x440   : > { %v2517_v22 = vmul.f32 %v10611_v45, %v2318_v12  ;;  %1601 = vperm.xlu1 %10184, %v342_v49  }
 0x442   : > { %v2645_v38 = vadd.f32 %v2517_v22, %v1873_v53  ;;  %v10271_v53 = vld [vmem:[%s10335_s21 + $0x3c0] sm:$0xff] }
 0x444   : > { %v2780_v48 = vadd.f32 %v12150_v0, %v2645_v38  ;;  %10185 = vset.pattern.permute.xlu1 %v14460_v4  ;;  %v885_v36 = vpop.permute.xlu1 %884 }
 0x445   : > { %v1102_v47 = vmul.f32 %v10607_v27, %v885_v36  ;;  %2373 = vperm.xlu1 %10185, %v342_v49  }
 0x446   : > { %v2908_v17 = vmax.f32 %v2780_v48, 0.0 }
 0x447   : > { %v1874_v12 = vadd.f32 %v1746_v6, %v1102_v47 }
 0x448   : > { %9451 = vmatmul.mubr.msk.f32.gmra.mrb[24].mxu1 %vm2944_vm0, %v2908_v17  ;;  %v890_v3 = vpop.permute.xlu1 %889 }
 0x449   : > { %v2646_v56 = vadd.f32 %v2518_v58, %v1874_v12  ;;  %10186 = vset.pattern.permute.xlu1 %v14466_v5  ;;  %v1103_v48 = vmul.f32 %v10607_v27, %v890_v3 }
 0x44a   : > { %954 = vperm.xlu1 %10186, %v10271_v53  }
 0x44b   : > { %v2781_v22 = vadd.f32 %v12150_v0, %v2646_v56  ;;  %v14727_v56 = vld [vmem:[#allocation104_spill] sm:$0xff] }
 0x44c   : > { %v1748_v53 = vmul.f32 %v10604_v52, %v14727_v56  ;;  %v346_v56 = vld [vmem:[%s10335_s21 + $0x3d8] sm:$0xff] }
 0x44d   : > { %v2909_v38 = vmax.f32 %v2781_v22, 0.0  ;;  %v12284_v41 = vpop.f32.mrb[70].mxu0  ;;  %v1554_v31 = vpop.permute.xlu1 %1553 }
 0x44e   : > { %v12286_v63 = vpop.f32.mrb[71].mxu0  ;;  %959 = vperm.xlu1 %10186, %v344_v51   ;;  %v1747_v49 = vmul.f32 %v10604_v52, %v1554_v31 }
 0x44f   : > { %9453 = vmatprep.mubr.msk.f32.mxu1 %vm2944_vm0, %v2909_v38  ;;  %v2330_v38 = vpop.permute.xlu0 %2329 }
 0x450   : > { %v1875_v6 = vadd.f32 %v1747_v49, %v1103_v48  ;;  %v2520_v48 = vmul.f32 %v10611_v45, %v2330_v38 }
 0x452   : > { %10187 = vset.pattern.permute.xlu1 %v14458_v21  ;;  %v2326_v36 = vpop.permute.xlu1 %2325 }
 0x453   : > { %v2519_v58 = vmul.f32 %v10611_v45, %v2326_v36  ;;  %1609 = vperm.xlu1 %10187, %v344_v51  }
 0x455   : > { %v2647_v47 = vadd.f32 %v2519_v58, %v1875_v6 }
 0x457   : > { %v2782_v17 = vadd.f32 %v12150_v0, %v2647_v47  ;;  %10188 = vset.pattern.permute.xlu1 %v14460_v4  ;;  %v895_v12 = vpop.permute.xlu1 %894  ;;  %v10272_v47 = vld [vmem:[%s10335_s21 + $0x3d0] sm:$0xff] }
 0x458   : > { %v1104_v3 = vmul.f32 %v10607_v27, %v895_v12  ;;  %v12298_v22 = vpop.f32.mrb[10].mxu1  ;;  %2381 = vperm.xlu1 %10188, %v344_v51  }
 0x459   : > { %14728 = vst [vmem:[#allocation87_spill] sm:$0xff] %v12298_v22  ;;  %v2910_v31 = vmax.f32 %v2782_v17, 0.0  ;;  %v12300_v49 = vpop.f32.mrb[11].mxu1 }
 0x45a   : > { %14729 = vst [vmem:[#allocation83_spill] sm:$0xff] %v12300_v49  ;;  %v1876_v36 = vadd.f32 %v1748_v53, %v1104_v3 }
 0x45b   : > { %9454 = vmatmul.mubr.msk.f32.gmra.mrb[26].mxu1 %vm2944_vm0, %v2910_v31  ;;  %v900_v6 = vpop.permute.xlu1 %899 }
 0x45c   : > { %v2648_v58 = vadd.f32 %v2520_v48, %v1876_v36  ;;  %10189 = vset.pattern.permute.xlu1 %v14466_v5  ;;  %v1105_v53 = vmul.f32 %v10607_v27, %v900_v6  ;;  %v2338_v6 = vpop.permute.xlu0 %2337 }
 0x45d   : > { %964 = vperm.xlu1 %10189, %v10272_v47   ;;  %v14730_v47 = vld [vmem:[#allocation107_spill] sm:$0xff] }
 0x45e   : > { %v2783_v12 = vadd.f32 %v12150_v0, %v2648_v58 }
 0x460   : > { %v2911_v22 = vmax.f32 %v2783_v12, 0.0  ;;  %v1562_v51 = vpop.permute.xlu1 %1561  ;;  %v1750_v12 = vmul.f32 %v10604_v52, %v14730_v47 }
 0x461   : > { %969 = vperm.xlu1 %10189, %v346_v56   ;;  %v1749_v17 = vmul.f32 %v10604_v52, %v1562_v51 }
 0x462   : > { %9456 = vmatprep.mubr.msk.f32.mxu1 %vm2944_vm0, %v2911_v22 }
 0x463   : > { %v1877_v38 = vadd.f32 %v1749_v17, %v1105_v53  ;;  %v2522_v17 = vmul.f32 %v10611_v45, %v2338_v6 }
 0x465   : > { %10190 = vset.pattern.permute.xlu1 %v14458_v21  ;;  %v2334_v3 = vpop.permute.xlu1 %2333 }
 0x466   : > { %v2521_v31 = vmul.f32 %v10611_v45, %v2334_v3  ;;  %1617 = vperm.xlu1 %10190, %v346_v56  }
 0x468   : > { %v2649_v48 = vadd.f32 %v2521_v31, %v1877_v38 }
 0x46a   : > { %v2784_v36 = vadd.f32 %v12150_v0, %v2649_v48  ;;  %10191 = vset.pattern.permute.xlu1 %v14460_v4  ;;  %v905_v58 = vpop.permute.xlu1 %904  ;;  %v10273_v48 = vld [vmem:[%s10335_s21 + $0x3e0] sm:$0xff] }
 0x46b   : > { %v1106_v22 = vmul.f32 %v10607_v27, %v905_v58  ;;  %2389 = vperm.xlu1 %10191, %v346_v56   ;;  %v348_v56 = vld [vmem:[%s10335_s21 + $0x3e8] sm:$0xff]  ;;  %v8539_v58 = vld [vmem:[%s14424_s2 + $0x58] sm:$0xff] }
 0x46c   : > { %v2912_v51 = vmax.f32 %v2784_v36, 0.0  ;;  %v8538_v36 = vld [vmem:[%s14424_s2 + $0x50] sm:$0xff] }
 0x46d   : > { %v1878_v53 = vadd.f32 %v1750_v12, %v1106_v22  ;;  %v9962_v12 = vpack.c.bf16 %v8539_v58, %v8538_v36  ;;  %v14733_v58 = vld [vmem:[#allocation109_spill] sm:$0xff] }
 0x46e   : > { %9457 = vmatmul.mubr.msk.f32.gmra.mrb[28].mxu1 %vm2944_vm0, %v2912_v51  ;;  %v910_v3 = vpop.permute.xlu1 %909 }
 0x46f   : > { %v2650_v38 = vadd.f32 %v2522_v17, %v1878_v53  ;;  %10192 = vset.pattern.permute.xlu1 %v14466_v5  ;;  %9963 = vmatprep.subr.bf16.mxu1 %v9962_v12  ;;  %v1107_v17 = vmul.f32 %v10607_v27, %v910_v3  ;;  %v2346_v3 = vpop.permute.xlu0 %2345 }
 0x470   : > { %v12321_v31 = vpop.f32.mrb[72].mxu0  ;;  %974 = vperm.xlu1 %10192, %v10273_v48   ;;  %9965 = vmatpush3.bf16.msra.mxu1 %v9962_v12 }
 0x471   : > { %14731 = vst [vmem:[#allocation94_spill] sm:$0xff] %v12321_v31  ;;  %v2785_v47 = vadd.f32 %v12150_v0, %v2650_v38  ;;  %v12325_v49 = vpop.f32.mrb[73].mxu0 }
 0x472   : > { %14732 = vst [vmem:[#allocation66_spill] sm:$0xff] %v12325_v49 }
 0x473   : > { %v2913_v22 = vmax.f32 %v2785_v47, 0.0  ;;  %v1570_v6 = vpop.permute.xlu1 %1569 }
 0x474   : > { %979 = vperm.xlu1 %10192, %v348_v56   ;;  %v1751_v51 = vmul.f32 %v10604_v52, %v1570_v6 }
 0x475   : > { %9459 = vmatprep.mubr.msk.f32.mxu1 %vm2944_vm0, %v2913_v22  ;;  %v1752_v22 = vmul.f32 %v10604_v52, %v14733_v58  ;;  %v10274_v58 = vld [vmem:[%s10335_s21 + $0x3f0] sm:$0xff] }
 0x476   : > { %v1879_v38 = vadd.f32 %v1751_v51, %v1107_v17  ;;  %v2524_v51 = vmul.f32 %v10611_v45, %v2346_v3 }
 0x478   : > { %10193 = vset.pattern.permute.xlu1 %v14458_v21  ;;  %v2342_v53 = vpop.permute.xlu1 %2341 }
 0x479   : > { %v2523_v48 = vmul.f32 %v10611_v45, %v2342_v53  ;;  %1625 = vperm.xlu1 %10193, %v348_v56  }
 0x47b   : > { %v2651_v31 = vadd.f32 %v2523_v48, %v1879_v38 }
 0x47d   : > { %v2786_v47 = vadd.f32 %v12150_v0, %v2651_v31  ;;  %10194 = vset.pattern.permute.xlu1 %v14460_v4  ;;  %v915_v36 = vpop.permute.xlu1 %914 }
 0x47e   : > { %v1108_v12 = vmul.f32 %v10607_v27, %v915_v36  ;;  %2397 = vperm.xlu1 %10194, %v348_v56  }
 0x47f   : > { %v2914_v6 = vmax.f32 %v2786_v47, 0.0  ;;  %v350_v47 = vld [vmem:[%s10335_s21 + $0x3f8] sm:$0xff] }
 0x480   : > { %v1880_v17 = vadd.f32 %v1752_v22, %v1108_v12 }
 0x481   : > { %v12345_v53 = vpop.f32.mrb[74].mxu0  ;;  %9460 = vmatmul.mubr.msk.f32.gmra.mrb[30].mxu1 %vm2944_vm0, %v2914_v6  ;;  %v920_v31 = vpop.permute.xlu1 %919 }
 0x482   : > { %14734 = vst [vmem:[#allocation19_spill] sm:$0xff] %v12345_v53  ;;  %v2652_v38 = vadd.f32 %v2524_v51, %v1880_v17  ;;  %v12348_v48 = vpop.f32.mrb[75].mxu0  ;;  %10195 = vset.pattern.permute.xlu1 %v14466_v5  ;;  %v1109_v6 = vmul.f32 %v10607_v27, %v920_v31  ;;  %v2354_v31 = vpop.permute.xlu0 %2353 }
 0x483   : > { %984 = vperm.xlu1 %10195, %v10274_v58  }
 0x484   : > { %v2787_v36 = vadd.f32 %v12150_v0, %v2652_v38  ;;  %v12353_v56 = vpop.f32.mrb[12].mxu1 }
 0x485   : > { %14735 = vst [vmem:[#allocation91_spill] sm:$0xff] %v12353_v56  ;;  %v12356_v49 = vpop.f32.mrb[13].mxu1  ;;  %v14737_v56 = vld [vmem:[#allocation112_spill] sm:$0xff] }
 0x486   : > { %14736 = vst [vmem:[#allocation98_spill] sm:$0xff] %v12356_v49  ;;  %v2915_v22 = vmax.f32 %v2787_v36, 0.0  ;;  %v1578_v12 = vpop.permute.xlu1 %1577 }
 0x487   : > { %989 = vperm.xlu1 %10195, %v350_v47   ;;  %v1753_v3 = vmul.f32 %v10604_v52, %v1578_v12  ;;  %v1754_v12 = vmul.f32 %v10604_v52, %v14737_v56 }
 0x488   : > { %9462 = vmatprep.mubr.msk.f32.mxu1 %vm2944_vm0, %v2915_v22 }
 0x489   : > { %v1881_v51 = vadd.f32 %v1753_v3, %v1109_v6 }
 0x48b   : > { %10197 = vset.pattern.permute.xlu1 %v14458_v21  ;;  %v2350_v5 = vpop.permute.xlu1 %2349  ;;  %v2526_v21 = vmul.f32 %v10611_v45, %v2354_v31 }
 0x48c   : > { %v2525_v17 = vmul.f32 %v10611_v45, %v2350_v5  ;;  %1633 = vperm.xlu1 %10197, %v350_v47  }
 0x48e   : > { %v2653_v38 = vadd.f32 %v2525_v17, %v1881_v51 }
 0x490   : > { %v2788_v58 = vadd.f32 %v12150_v0, %v2653_v38  ;;  %10198 = vset.pattern.permute.xlu1 %v14460_v4  ;;  %v925_v36 = vpop.permute.xlu1 %924 }
 0x491   : > { %v1110_v22 = vmul.f32 %v10607_v27, %v925_v36  ;;  %2405 = vperm.xlu1 %10198, %v350_v47  }
 0x492   : > { %v2916_v49 = vmax.f32 %v2788_v58, 0.0 }
 0x493   : > { %v1882_v3 = vadd.f32 %v1754_v12, %v1110_v22  ;;  %v14738_v22 = vld [vmem:[#allocation114_spill] sm:$0xff] }
 0x494   : > { %9463 = vmatmul.mubr.msk.f32.gmra.mrb[32].mxu1 %vm2944_vm0, %v2916_v49  ;;  %v930_v6 = vpop.permute.xlu1 %929 }
 0x495   : > { %v2654_v5 = vadd.f32 %v2526_v21, %v1882_v3  ;;  %v1111_v56 = vmul.f32 %v10607_v27, %v930_v6  ;;  %v1756_v21 = vmul.f32 %v10604_v52, %v14738_v22 }
 0x497   : > { %v2789_v51 = vadd.f32 %v12150_v0, %v2654_v5  ;;  %v2362_v5 = vpop.permute.xlu0 %2361 }
 0x499   : > { %v2917_v17 = vmax.f32 %v2789_v51, 0.0  ;;  %v1586_v4 = vpop.permute.xlu1 %1585 }
 0x49a   : > { %v1755_v38 = vmul.f32 %v10604_v52, %v1586_v4  ;;  %v2528_v4 = vmul.f32 %v10611_v45, %v2362_v5 }
 0x49b   : > { %9465 = vmatprep.mubr.msk.f32.mxu1 %vm2944_vm0, %v2917_v17 }
 0x49c   : > { %v1883_v36 = vadd.f32 %v1755_v38, %v1111_v56 }
 0x49e   : > { %v2358_v47 = vpop.permute.xlu1 %2357 }
 0x49f   : > { %v2527_v58 = vmul.f32 %v10611_v45, %v2358_v47 }
 0x4a1   : > { %v2655_v31 = vadd.f32 %v2527_v58, %v1883_v36 }
 0x4a3   : > { %v2790_v12 = vadd.f32 %v12150_v0, %v2655_v31  ;;  %v935_v49 = vpop.permute.xlu1 %934 }
 0x4a4   : > { %v1112_v3 = vmul.f32 %v10607_v27, %v935_v49 }
 0x4a5   : > { %v2918_v51 = vmax.f32 %v2790_v12, 0.0 }
 0x4a6   : > { %v1884_v17 = vadd.f32 %v1756_v21, %v1112_v3 }
 0x4a7   : > { %v12380_v53 = vpop.f32.mrb[14].mxu1  ;;  %9466 = vmatmul.mubr.msk.f32.gmra.mrb[34].mxu1 %vm2944_vm0, %v2918_v51  ;;  %v940_v6 = vpop.permute.xlu1 %939 }
 0x4a8   : > { %14739 = vst [vmem:[#allocation67_spill] sm:$0xff] %v12380_v53  ;;  %v2656_v38 = vadd.f32 %v2528_v4, %v1884_v17  ;;  %v12383_v56 = vpop.f32.mrb[15].mxu1  ;;  %v1113_v12 = vmul.f32 %v10607_v27, %v940_v6 }
 0x4a9   : > { %14740 = vst [vmem:[#allocation96_spill] sm:$0xff] %v12383_v56 }
 0x4aa   : > { %v2791_v47 = vadd.f32 %v12150_v0, %v2656_v38  ;;  %v14743_v38 = vld [vmem:[#allocation116_spill] sm:$0xff] }
 0x4ac   : > { %v2919_v36 = vmax.f32 %v2791_v47, 0.0  ;;  %v1594_v58 = vpop.permute.xlu1 %1593  ;;  %v1758_v47 = vmul.f32 %v10604_v52, %v14743_v38 }
 0x4ad   : > { %v1757_v31 = vmul.f32 %v10604_v52, %v1594_v58 }
 0x4ae   : > { %9468 = vmatprep.mubr.msk.f32.mxu1 %vm2944_vm0, %v2919_v36  ;;  %v2370_v36 = vpop.permute.xlu0 %2369 }
 0x4af   : > { %v1885_v22 = vadd.f32 %v1757_v31, %v1113_v12  ;;  %v2530_v6 = vmul.f32 %v10611_v45, %v2370_v36 }
 0x4b1   : > { %v2366_v49 = vpop.permute.xlu1 %2365 }
 0x4b2   : > { %v2529_v21 = vmul.f32 %v10611_v45, %v2366_v49  ;;  %v12390_v3 = vpop.f32.mrb[76].mxu0 }
 0x4b3   : > { %14741 = vst [vmem:[#allocation102_spill] sm:$0xff] %v12390_v3  ;;  %v12392_v5 = vpop.f32.mrb[77].mxu0 }
 0x4b4   : > { %14742 = vst [vmem:[#allocation108_spill] sm:$0xff] %v12392_v5  ;;  %v2657_v51 = vadd.f32 %v2529_v21, %v1885_v22 }
 0x4b6   : > { %v2792_v4 = vadd.f32 %v12150_v0, %v2657_v51  ;;  %v945_v17 = vpop.permute.xlu1 %944 }
 0x4b7   : > { %v1114_v58 = vmul.f32 %v10607_v27, %v945_v17 }
 0x4b8   : > { %v2920_v53 = vmax.f32 %v2792_v4, 0.0 }
 0x4b9   : > { %v1886_v31 = vadd.f32 %v1758_v47, %v1114_v58  ;;  %v14744_v58 = vld [vmem:[#allocation117_spill] sm:$0xff] }
 0x4ba   : > { %9469 = vmatmul.mubr.msk.f32.gmra.mrb[36].mxu1 %vm2944_vm0, %v2920_v53  ;;  %v950_v12 = vpop.permute.xlu1 %949 }
 0x4bb   : > { %v2658_v49 = vadd.f32 %v2530_v6, %v1886_v31  ;;  %v1115_v38 = vmul.f32 %v10607_v27, %v950_v12  ;;  %v1760_v6 = vmul.f32 %v10604_v52, %v14744_v58 }
 0x4bd   : > { %v2793_v56 = vadd.f32 %v12150_v0, %v2658_v49  ;;  %v2378_v49 = vpop.permute.xlu0 %2377 }
 0x4be   : > { %v2532_v12 = vmul.f32 %v10611_v45, %v2378_v49 }
 0x4bf   : > { %v2921_v22 = vmax.f32 %v2793_v56, 0.0  ;;  %v1602_v21 = vpop.permute.xlu1 %1601 }
 0x4c0   : > { %v1759_v51 = vmul.f32 %v10604_v52, %v1602_v21 }
 0x4c1   : > { %9471 = vmatprep.mubr.msk.f32.mxu1 %vm2944_vm0, %v2921_v22 }
 0x4c2   : > { %v1887_v3 = vadd.f32 %v1759_v51, %v1115_v38 }
 0x4c4   : > { %v2374_v17 = vpop.permute.xlu1 %2373 }
 0x4c5   : > { %v2531_v4 = vmul.f32 %v10611_v45, %v2374_v17 }
 0x4c7   : > { %v2659_v36 = vadd.f32 %v2531_v4, %v1887_v3 }
 0x4c9   : > { %v2794_v47 = vadd.f32 %v12150_v0, %v2659_v36  ;;  %v955_v53 = vpop.permute.xlu1 %954 }
 0x4ca   : > { %v1116_v56 = vmul.f32 %v10607_v27, %v955_v53  ;;  %v12409_v31 = vpop.f32.mrb[16].mxu1 }
 0x4cb   : > { %14745 = vst [vmem:[#allocation20_spill] sm:$0xff] %v12409_v31  ;;  %v2922_v21 = vmax.f32 %v2794_v47, 0.0  ;;  %v12411_v22 = vpop.f32.mrb[17].mxu1 }
 0x4cc   : > { %14746 = vst [vmem:[#allocation100_spill] sm:$0xff] %v12411_v22  ;;  %v1888_v51 = vadd.f32 %v1760_v6, %v1116_v56  ;;  %v8670_v6 = vld [vmem:[%s14424_s2 + $0x60] sm:$0xff]  ;;  %v8671_v56 = vld [vmem:[%s14424_s2 + $0x68] sm:$0xff] }
 0x4cd   : > { %9472 = vmatmul.mubr.msk.f32.gmra.mrb[38].mxu1 %vm2944_vm0, %v2922_v21  ;;  %v960_v3 = vpop.permute.xlu1 %959  ;;  %v9966_v49 = vpack.c.bf16 %v8671_v56, %v8670_v6 }
 0x4ce   : > { %v2660_v38 = vadd.f32 %v2532_v12, %v1888_v51  ;;  %v1117_v53 = vmul.f32 %v10607_v27, %v960_v3  ;;  %v14747_v3 = vld [vmem:[#allocation119_spill] sm:$0xff] }
 0x4cf   : > { %9967 = vmatprep.subr.bf16.mxu0 %v9966_v49 }
 0x4d0   : > { %v2795_v17 = vadd.f32 %v12150_v0, %v2660_v38  ;;  %9969 = vmatpush3.bf16.msra.mxu0 %v9966_v49  ;;  %v1762_v38 = vmul.f32 %v10604_v52, %v14747_v3 }
 0x4d2   : > { %v2923_v4 = vmax.f32 %v2795_v17, 0.0  ;;  %v1610_v36 = vpop.permute.xlu1 %1609 }
 0x4d3   : > { %v1761_v58 = vmul.f32 %v10604_v52, %v1610_v36 }
 0x4d4   : > { %9474 = vmatprep.mubr.msk.f32.mxu1 %vm2944_vm0, %v2923_v4  ;;  %v2386_v4 = vpop.permute.xlu0 %2385 }
 0x4d5   : > { %v1889_v31 = vadd.f32 %v1761_v58, %v1117_v53  ;;  %v2534_v53 = vmul.f32 %v10611_v45, %v2386_v4 }
 0x4d7   : > { %v2382_v47 = vpop.permute.xlu1 %2381 }
 0x4d8   : > { %v2533_v22 = vmul.f32 %v10611_v45, %v2382_v47 }
 0x4da   : > { %v2661_v21 = vadd.f32 %v2533_v22, %v1889_v31 }
 0x4dc   : > { %v2796_v12 = vadd.f32 %v12150_v0, %v2661_v21  ;;  %v965_v51 = vpop.permute.xlu1 %964 }
 0x4dd   : > { %v1118_v17 = vmul.f32 %v10607_v27, %v965_v51 }
 0x4de   : > { %v2924_v36 = vmax.f32 %v2796_v12, 0.0  ;;  %v12430_v58 = vpop.f32.mrb[78].mxu0 }
 0x4df   : > { %14748 = vst [vmem:[#allocation105_spill] sm:$0xff] %v12430_v58  ;;  %v1890_v47 = vadd.f32 %v1762_v38, %v1118_v17  ;;  %v12433_v5 = vpop.f32.mrb[79].mxu0 }
 0x4e0   : > { %9475 = vmatmul.mubr.msk.f32.gmra.mrb[40].mxu1 %vm2944_vm0, %v2924_v36  ;;  %v970_v31 = vpop.permute.xlu1 %969 }
 0x4e1   : > { %v2662_v22 = vadd.f32 %v2534_v53, %v1890_v47  ;;  %v1119_v3 = vmul.f32 %v10607_v27, %v970_v31 }
 0x4e2   : > { %v12436_v6 = vpop.f32.mrb[18].mxu1 }
 0x4e3   : > { %14749 = vst [vmem:[#allocation113_spill] sm:$0xff] %v12436_v6  ;;  %v2797_v56 = vadd.f32 %v12150_v0, %v2662_v22  ;;  %v12439_v49 = vpop.f32.mrb[19].mxu1  ;;  %v14751_v6 = vld [vmem:[#allocation121_spill] sm:$0xff] }
 0x4e4   : > { %14750 = vst [vmem:[#allocation68_spill] sm:$0xff] %v12439_v49  ;;  %v1764_v22 = vmul.f32 %v10604_v52, %v14751_v6  ;;  %v2394_v49 = vpop.permute.xlu0 %2393 }
 0x4e5   : > { %v2925_v21 = vmax.f32 %v2797_v56, 0.0  ;;  %v1618_v51 = vpop.permute.xlu1 %1617 }
 0x4e6   : > { %v1763_v12 = vmul.f32 %v10604_v52, %v1618_v51  ;;  %v2536_v51 = vmul.f32 %v10611_v45, %v2394_v49 }
 0x4e7   : > { %9477 = vmatprep.mubr.msk.f32.mxu1 %vm2944_vm0, %v2925_v21 }
 0x4e8   : > { %v1891_v17 = vadd.f32 %v1763_v12, %v1119_v3 }
 0x4ea   : > { %v2390_v38 = vpop.permute.xlu1 %2389 }
 0x4eb   : > { %v2535_v4 = vmul.f32 %v10611_v45, %v2390_v38 }
 0x4ed   : > { %v2663_v36 = vadd.f32 %v2535_v4, %v1891_v17 }
 0x4ef   : > { %v2798_v53 = vadd.f32 %v12150_v0, %v2663_v36  ;;  %v975_v47 = vpop.permute.xlu1 %974 }
 0x4f0   : > { %v1120_v56 = vmul.f32 %v10607_v27, %v975_v47 }
 0x4f1   : > { %v2926_v58 = vmax.f32 %v2798_v53, 0.0 }
 0x4f2   : > { %v1892_v21 = vadd.f32 %v1764_v22, %v1120_v56  ;;  %v2402_v56 = vpop.permute.xlu0 %2401 }
 0x4f3   : > { %9478 = vmatmul.mubr.msk.f32.gmra.mrb[42].mxu1 %vm2944_vm0, %v2926_v58  ;;  %v980_v31 = vpop.permute.xlu1 %979 }
 0x4f4   : > { %v2664_v12 = vadd.f32 %v2536_v51, %v1892_v21  ;;  %v1121_v53 = vmul.f32 %v10607_v27, %v980_v31 }
 0x4f5   : > { %v12451_v3 = vpop.f32.mrb[20].mxu1 }
 0x4f6   : > { %14752 = vst [vmem:[#allocation21_spill] sm:$0xff] %v12451_v3  ;;  %v2799_v38 = vadd.f32 %v12150_v0, %v2664_v12  ;;  %v12454_v17 = vpop.f32.mrb[21].mxu1  ;;  %v14754_v12 = vld [vmem:[#allocation123_spill] sm:$0xff] }
 0x4f7   : > { %14753 = vst [vmem:[#allocation110_spill] sm:$0xff] %v12454_v17  ;;  %v1766_v3 = vmul.f32 %v10604_v52, %v14754_v12 }
 0x4f8   : > { %v2927_v4 = vmax.f32 %v2799_v38, 0.0  ;;  %v1626_v36 = vpop.permute.xlu1 %1625 }
 0x4f9   : > { %v1765_v6 = vmul.f32 %v10604_v52, %v1626_v36  ;;  %v2538_v36 = vmul.f32 %v10611_v45, %v2402_v56 }
 0x4fa   : > { %9480 = vmatprep.mubr.msk.f32.mxu1 %vm2944_vm0, %v2927_v4 }
 0x4fb   : > { %v1893_v47 = vadd.f32 %v1765_v6, %v1121_v53 }
 0x4fd   : > { %v2398_v49 = vpop.permute.xlu1 %2397 }
 0x4fe   : > { %v2537_v58 = vmul.f32 %v10611_v45, %v2398_v49 }
 0x500   : > { %v2665_v22 = vadd.f32 %v2537_v58, %v1893_v47 }
 0x502   : > { %v2800_v51 = vadd.f32 %v12150_v0, %v2665_v22  ;;  %v985_v21 = vpop.permute.xlu1 %984 }
 0x503   : > { %v1122_v38 = vmul.f32 %v10607_v27, %v985_v21 }
 0x504   : > { %v2928_v17 = vmax.f32 %v2800_v51, 0.0 }
 0x505   : > { %v1894_v4 = vadd.f32 %v1766_v3, %v1122_v38  ;;  %v4034_v38 = vld [vmem:[%s12485_s8] sm:$0xff] }
 0x506   : > { %9481 = vmatmul.mubr.msk.f32.gmra.mrb[44].mxu1 %vm2944_vm0, %v2928_v17  ;;  %v990_v31 = vpop.permute.xlu1 %989  ;;  %v12477_v17 = vld [vmem:[%s14425_s3 + $0x1] ss:$0 sm:$0xff] }
 0x507   : > { %v2666_v6 = vadd.f32 %v2538_v36, %v1894_v4  ;;  %v1123_v56 = vmul.f32 %v10607_v27, %v990_v31  ;;  %v4035_v31 = vld [vmem:[%s12485_s8 + $0x8] sm:$0xff] }
 0x508   : > { %v12466_v53 = vpop.f32.mrb[22].mxu1 }
 0x509   : > { %v2801_v49 = vadd.f32 %v12150_v0, %v2666_v6  ;;  %v12469_v47 = vpop.f32.mrb[23].mxu1 }
 0x50b   : > { %v2929_v58 = vmax.f32 %v2801_v49, 0.0  ;;  %v1634_v22 = vpop.permute.xlu1 %1633  ;;  %v3406_v49 = vadd.f32 %v12477_v17, %v11498_v10 }
 0x50c   : > { %v1767_v12 = vmul.f32 %v10604_v52, %v1634_v22  ;;  %v3396_v52 = vadd.f32 %v12477_v17, %v11472_v9 }
 0x50d   : > { %9483 = vmatprep.mubr.msk.f32.mxu1 %vm2944_vm0, %v2929_v58  ;;  %v4036_v58 = vld [vmem:[%s12485_s8 + $0x10] sm:$0xff] }
 0x50e   : > { %v1895_v51 = vadd.f32 %v1767_v12, %v1123_v56  ;;  %v4162_v6 = vmul.f32 %v4034_v38, %v3396_v52  ;;  %v4164_v12 = vmul.f32 %v4036_v58, %v3406_v49  ;;  %v3416_v56 = vadd.f32 %v12477_v17, %v11527_v62  ;;  %v4040_v38 = vld [vmem:[%s12485_s8 + $0x30] sm:$0xff]  ;;  %v4043_v58 = vld [vmem:[%s12485_s8 + $0x48] sm:$0xff] }
 0x50f   : > { %v3426_v52 = vadd.f32 %v12477_v17, %v11547_v39  ;;  %v8672_v39 = vld [vmem:[%s14424_s2 + $0x70] sm:$0xff]  ;;  %v3441_v49 = vadd.f32 %v11570_v35, %v12477_v17  ;;  %v4045_v35 = vld [vmem:[%s12485_s8 + $0x58] sm:$0xff] }
 0x510   : > { %v2406_v3 = vpop.permute.xlu1 %2405 }
 0x511   : > { %v2539_v21 = vmul.f32 %v10611_v45, %v2406_v3  ;;  %v3401_v45 = vadd.f32 %v11459_v7, %v12477_v17  ;;  %v4037_v7 = vld [vmem:[%s12485_s8 + $0x18] sm:$0xff]  ;;  %v4038_v3 = vld [vmem:[%s12485_s8 + $0x20] sm:$0xff] }
 0x513   : > { %v2667_v27 = vadd.f32 %v2539_v21, %v1895_v51  ;;  %v4163_v9 = vmul.f32 %v4035_v31, %v3401_v45  ;;  %v4039_v21 = vld [vmem:[%s12485_s8 + $0x28] sm:$0xff]  ;;  %v4041_v45 = vld [vmem:[%s12485_s8 + $0x38] sm:$0xff]  ;;  %v4042_v31 = vld [vmem:[%s12485_s8 + $0x40] sm:$0xff] }
 0x515   : > { %v2802_v36 = vadd.f32 %v12150_v0, %v2667_v27  ;;  %v3411_v0 = vadd.f32 %v11492_v42, %v12477_v17  ;;  %v3421_v42 = vadd.f32 %v11518_v57, %v12477_v17  ;;  %v4166_v27 = vmul.f32 %v4038_v3, %v3416_v56 }
 0x516   : > { %v3436_v57 = vadd.f32 %v12477_v17, %v11574_v15  ;;  %v3451_v56 = vadd.f32 %v11795_v60, %v12477_v17  ;;  %v4047_v60 = vld [vmem:[%s12485_s8 + $0x68] sm:$0xff] }
 0x517   : > { %v2930_v4 = vmax.f32 %v2802_v36, 0.0  ;;  %v4165_v51 = vmul.f32 %v4037_v7, %v3411_v0  ;;  %v4167_v62 = vmul.f32 %v4039_v21, %v3421_v42  ;;  %v3431_v36 = vadd.f32 %v11540_v26, %v12477_v17  ;;  %v4044_v7 = vld [vmem:[%s12485_s8 + $0x50] sm:$0xff] }
 0x518   : > { %v3446_v0 = vadd.f32 %v12477_v17, %v11798_v33  ;;  %v4046_v33 = vld [vmem:[%s12485_s8 + $0x60] sm:$0xff]  ;;  %v4173_v21 = vmul.f32 %v4045_v35, %v3451_v56  ;;  %v4056_v35 = vld [vmem:[%s12485_s8 + $0xb0] sm:$0xff] }
 0x519   : > { %9484 = vmatmul.mubr.msk.f32.gmra.mrb[46].mxu1 %vm2944_vm0, %v2930_v4  ;;  %v4168_v4 = vmul.f32 %v4040_v38, %v3426_v52  ;;  %v4169_v26 = vmul.f32 %v4041_v45, %v3431_v36  ;;  %v3471_v45 = vadd.f32 %v11811_v13, %v12477_v17  ;;  %v3486_v13 = vadd.f32 %v12477_v17, %v11835_v34 }
 0x51a   : > { %9494 = vmatprep.mubr.msk.f32.mxu1 %vm2944_vm0, %v4162_v6  ;;  %v8673_v6 = vld [vmem:[%s14424_s2 + $0x78] sm:$0xff]  ;;  %v4172_v3 = vmul.f32 %v4044_v7, %v3446_v0  ;;  %v4054_v0 = vld [vmem:[%s12485_s8 + $0xa0] sm:$0xff]  ;;  %v3501_v7 = vadd.f32 %v11839_v44, %v12477_v17  ;;  %v3511_v44 = vadd.f32 %v11846_v54, %v12477_v17  ;;  %v3526_v54 = vadd.f32 %v12477_v17, %v11860_v23 }
 0x51b   : > { %v12501_v22 = vpop.f32.mrb[24].mxu1  ;;  %v9970_v15 = vpack.c.bf16 %v8673_v6, %v8672_v39  ;;  %v3481_v39 = vadd.f32 %v11824_v8, %v12477_v17  ;;  %v4051_v6 = vld [vmem:[%s12485_s8 + $0x88] sm:$0xff]  ;;  %v3496_v8 = vadd.f32 %v12477_v17, %v11842_v30 }
 0x51c   : > { %v12506_v10 = vpop.f32.mrb[25].mxu1 }
 0x51d   : > { %9495 = vmatmul.mubr.msk.f32.vlgmr.msra.gmra.mrb[48].mxu1 %vm2944_vm0, %v4163_v9  ;;  %v4170_v9 = vmul.f32 %v4042_v31, %v3436_v57  ;;  %9971 = vmatprep.subr.bf16.mxu0 %v9970_v15  ;;  %v3476_v57 = vadd.f32 %v12477_v17, %v11827_v29  ;;  %v4050_v31 = vld [vmem:[%s12485_s8 + $0x80] sm:$0xff]  ;;  %v4179_v29 = vmul.f32 %v4051_v6, %v3481_v39  ;;  %v4064_v6 = vld [vmem:[%s12485_s8 + $0xf0] sm:$0xff] }
 0x51e   : > { %9497 = vmatprep.mubr.msk.f32.mxu1 %vm2944_vm0, %v4164_v12  ;;  %9973 = vmatpush3.bf16.msra.mxu0 %v9970_v15  ;;  %v4171_v12 = vmul.f32 %v4043_v58, %v3441_v49  ;;  %v4052_v49 = vld [vmem:[%s12485_s8 + $0x90] sm:$0xff]  ;;  %v3491_v15 = vadd.f32 %v11832_v43, %v12477_v17  ;;  %v4053_v58 = vld [vmem:[%s12485_s8 + $0x98] sm:$0xff]  ;;  %v4182_v56 = vmul.f32 %v4054_v0, %v3496_v8 }
 0x51f   : > { %v3506_v43 = vadd.f32 %v12477_v17, %v11848_v2  ;;  %v3516_v2 = vadd.f32 %v12477_v17, %v11855_v46  ;;  %v4068_v0 = vld [vmem:[%s12485_s8 + $0x110] sm:$0xff] }
 0x520   : > { %v4181_v34 = vmul.f32 %v4053_v58, %v3491_v15 }
 0x521   : > { %9498 = vmatmul.mubr.msk.f32.gmra.mrb[50].mxu1 %vm2944_vm0, %v4165_v51  ;;  %v3456_v51 = vadd.f32 %v12477_v17, %v11806_v16  ;;  %v3466_v16 = vadd.f32 %v12477_v17, %v11816_v18 }
 0x522   : > { %9500 = vmatprep.mubr.msk.f32.mxu1 %vm2944_vm0, %v4166_v27  ;;  %v3461_v27 = vadd.f32 %v11803_v50, %v12477_v17 }
 0x523   : > { %v4174_v38 = vmul.f32 %v4046_v33, %v3456_v51  ;;  %v4057_v33 = vld [vmem:[%s12485_s8 + $0xb8] sm:$0xff] }
 0x524   : > { %v4175_v36 = vmul.f32 %v4047_v60, %v3461_v27  ;;  %v4058_v27 = vld [vmem:[%s12485_s8 + $0xc0] sm:$0xff]  ;;  %v4185_v60 = vmul.f32 %v4057_v33, %v3511_v44  ;;  %v4071_v33 = vld [vmem:[%s12485_s8 + $0x128] sm:$0xff] }
 0x525   : > { %9501 = vmatmul.mubr.msk.f32.gmra.mrb[52].mxu1 %vm2944_vm0, %v4167_v62  ;;  %v4048_v62 = vld [vmem:[%s12485_s8 + $0x70] sm:$0xff] }
 0x526   : > { %9503 = vmatprep.mubr.msk.f32.mxu1 %vm2944_vm0, %v4168_v4  ;;  %v4049_v4 = vld [vmem:[%s12485_s8 + $0x78] sm:$0xff]  ;;  %v4176_v50 = vmul.f32 %v4048_v62, %v3466_v16  ;;  %v4059_v16 = vld [vmem:[%s12485_s8 + $0xc8] sm:$0xff]  ;;  %v4186_v62 = vmul.f32 %v4058_v27, %v3516_v2  ;;  %v4072_v27 = vld [vmem:[%s12485_s8 + $0x130] sm:$0xff] }
 0x527   : > { %v4177_v18 = vmul.f32 %v4049_v4, %v3471_v45  ;;  %v3531_v45 = vadd.f32 %v11858_v14, %v12477_v17  ;;  %v4061_v4 = vld [vmem:[%s12485_s8 + $0xd8] sm:$0xff]  ;;  %v3546_v14 = vadd.f32 %v12477_v17, %v11874_v32  ;;  %v4066_v32 = vld [vmem:[%s12485_s8 + $0x100] sm:$0xff]  ;;  %v14757_v2 = vld [vmem:[#allocation7_spill] sm:$0xff] }
 0x529   : > { %9504 = vmatmul.mubr.msk.f32.gmra.mrb[54].mxu1 %vm2944_vm0, %v4169_v26  ;;  %v4178_v26 = vmul.f32 %v4050_v31, %v3476_v57  ;;  %v4062_v57 = vld [vmem:[%s12485_s8 + $0xe0] sm:$0xff]  ;;  %v4189_v23 = vmul.f32 %v4061_v4, %v3531_v45  ;;  %v3541_v31 = vadd.f32 %v11864_v25, %v12477_v17  ;;  %v3556_v25 = vadd.f32 %v12477_v17, %v11884_v61 }
 0x52a   : > { %9506 = vmatprep.mubr.msk.f32.mxu1 %vm2944_vm0, %v4170_v9  ;;  %v4180_v9 = vmul.f32 %v4052_v49, %v3486_v13  ;;  %v4065_v13 = vld [vmem:[%s12485_s8 + $0xf8] sm:$0xff]  ;;  %v4192_v49 = vmul.f32 %v4064_v6, %v3546_v14  ;;  %v3566_v61 = vadd.f32 %v12477_v17, %v11892_v37  ;;  %v4074_v45 = vld [vmem:[%s12485_s8 + $0x140] sm:$0xff]  ;;  %v4076_v6 = vld [vmem:[%s12485_s8 + $0x150] sm:$0xff] }
 0x52b   : > { %v4194_v8 = vmul.f32 %v4066_v32, %v3556_v25  ;;  %v14763_v32 = vld [vmem:[#allocation52_spill] sm:$0xff] }
 0x52d   : > { %9507 = vmatmul.mubr.msk.f32.gmra.mrb[56].mxu1 %vm2944_vm0, %v4171_v12  ;;  %v4055_v12 = vld [vmem:[%s12485_s8 + $0xa8] sm:$0xff] }
 0x52e   : > { %v12548_v42 = vpop.f32.mrb[26].mxu1  ;;  %9509 = vmatprep.mubr.msk.f32.mxu1 %vm2944_vm0, %v4172_v3  ;;  %v4183_v51 = vmul.f32 %v4055_v12, %v3501_v7  ;;  %v3571_v7 = vadd.f32 %v11889_v40, %v12477_v17  ;;  %v4069_v12 = vld [vmem:[%s12485_s8 + $0x118] sm:$0xff]  ;;  %v3586_v40 = vadd.f32 %v12477_v17, %v14757_v2 }
 0x52f   : > { %v12553_v52 = vpop.f32.mrb[27].mxu1 }
 0x530   : > { %v4197_v37 = vmul.f32 %v4069_v12, %v3571_v7  ;;  %v14765_v7 = vld [vmem:[#allocation11_spill] sm:$0xff] }
 0x531   : > { %9510 = vmatmul.mubr.msk.f32.gmra.mrb[58].mxu1 %vm2944_vm0, %v4173_v21  ;;  %v4184_v21 = vmul.f32 %v4056_v35, %v3506_v43  ;;  %v4070_v35 = vld [vmem:[%s12485_s8 + $0x120] sm:$0xff]  ;;  %v3626_v12 = vadd.f32 %v12477_v17, %v14765_v7 }
 0x532   : > { %9512 = vmatprep.mubr.msk.f32.mxu1 %vm2944_vm0, %v4174_v38  ;;  %v3521_v38 = vadd.f32 %v11852_v11, %v12477_v17  ;;  %v3536_v11 = vadd.f32 %v12477_v17, %v11868_v55 }
 0x534   : > { %v4187_v46 = vmul.f32 %v4059_v16, %v3521_v38  ;;  %v4190_v39 = vmul.f32 %v4062_v57, %v3536_v11  ;;  %v14758_v38 = vld [vmem:[#allocation3_spill] sm:$0xff] }
 0x535   : > { %9513 = vmatmul.mubr.msk.f32.gmra.mrb[60].mxu1 %vm2944_vm0, %v4175_v36  ;;  %v4060_v36 = vld [vmem:[%s12485_s8 + $0xd0] sm:$0xff]  ;;  %v3591_v16 = vadd.f32 %v14758_v38, %v12477_v17 }
 0x536   : > { %9515 = vmatprep.mubr.msk.f32.mxu1 %vm2944_vm0, %v4176_v50  ;;  %v4188_v50 = vmul.f32 %v4060_v36, %v3526_v54  ;;  %v4200_v54 = vmul.f32 %v4072_v27, %v3586_v40  ;;  %v14759_v36 = vld [vmem:[#allocation33_spill] sm:$0xff]  ;;  %v14768_v40 = vld [vmem:[#allocation12_spill] sm:$0xff] }
 0x537   : > { %v3641_v27 = vadd.f32 %v14768_v40, %v12477_v17 }
 0x539   : > { %9516 = vmatmul.mubr.msk.f32.gmra.mrb[62].mxu1 %vm2944_vm0, %v4177_v18  ;;  %v4063_v18 = vld [vmem:[%s12485_s8 + $0xe8] sm:$0xff] }
 0x53a   : > { %9518 = vmatprep.mubr.msk.f32.mxu1 %vm2944_vm0, %v4178_v26  ;;  %v4191_v55 = vmul.f32 %v4063_v18, %v3541_v31  ;;  %v3551_v26 = vadd.f32 %v11871_v24, %v12477_v17  ;;  %v3561_v24 = vadd.f32 %v11881_v1, %v12477_v17  ;;  %v14755_v1 = vld [vmem:[#allocation2_spill] sm:$0xff]  ;;  %v14761_v18 = vld [vmem:[#allocation39_spill] sm:$0xff] }
 0x53b   : > { %v3576_v43 = vadd.f32 %v12477_v17, %v14755_v1 }
 0x53c   : > { %v4193_v58 = vmul.f32 %v4065_v13, %v3551_v26  ;;  %v14762_v26 = vld [vmem:[#allocation37_spill] sm:$0xff] }
 0x53d   : > { %9519 = vmatmul.mubr.msk.f32.gmra.mrb[64].mxu1 %vm2944_vm0, %v4179_v29  ;;  %v3611_v13 = vadd.f32 %v14762_v26, %v12477_v17 }
 0x53e   : > { %9521 = vmatprep.mubr.msk.f32.mxu1 %vm2944_vm0, %v4180_v9  ;;  %v4067_v9 = vld [vmem:[%s12485_s8 + $0x108] sm:$0xff] }
 0x541   : > { %v12591_v3 = vpop.f32.mrb[28].mxu1  ;;  %9522 = vmatmul.mubr.msk.f32.gmra.mrb[66].mxu1 %vm2944_vm0, %v4181_v34  ;;  %v4195_v34 = vmul.f32 %v4067_v9, %v3561_v24  ;;  %v4078_v24 = vld [vmem:[%s12485_s8 + $0x160] sm:$0xff] }
 0x542   : > { %v12594_v30 = vpop.f32.mrb[29].mxu1  ;;  %9524 = vmatprep.mubr.msk.f32.mxu1 %vm2944_vm0, %v4182_v56  ;;  %v4196_v56 = vmul.f32 %v4068_v0, %v3566_v61  ;;  %v4079_v0 = vld [vmem:[%s12485_s8 + $0x168] sm:$0xff] }
 0x545   : > { %9525 = vmatmul.mubr.msk.f32.gmra.mrb[68].mxu1 %vm2944_vm0, %v4183_v51  ;;  %v14756_v51 = vld [vmem:[#allocation35_spill] sm:$0xff] }
 0x546   : > { %9527 = vmatprep.mubr.msk.f32.mxu1 %vm2944_vm0, %v4184_v21  ;;  %v3581_v44 = vadd.f32 %v14756_v51, %v12477_v17  ;;  %v4198_v21 = vmul.f32 %v4070_v35, %v3576_v43  ;;  %v14766_v43 = vld [vmem:[#allocation4_spill] sm:$0xff] }
 0x547   : > { %v3631_v35 = vadd.f32 %v14766_v43, %v12477_v17 }
 0x549   : > { %9528 = vmatmul.mubr.msk.f32.gmra.mrb[70].mxu1 %vm2944_vm0, %v4185_v60  ;;  %v4199_v60 = vmul.f32 %v4071_v33, %v3581_v44  ;;  %v14767_v44 = vld [vmem:[#allocation46_spill] sm:$0xff] }
 0x54a   : > { %9530 = vmatprep.mubr.msk.f32.mxu1 %vm2944_vm0, %v4186_v62  ;;  %v4073_v62 = vld [vmem:[%s12485_s8 + $0x138] sm:$0xff]  ;;  %v3636_v33 = vadd.f32 %v12477_v17, %v14767_v44  ;;  %v4092_v44 = vld [vmem:[%s12485_s8 + $0x1d0] sm:$0xff] }
 0x54b   : > { %v4201_v4 = vmul.f32 %v4073_v62, %v3591_v16  ;;  %v14769_v16 = vld [vmem:[#allocation48_spill] sm:$0xff] }
 0x54c   : > { %v3646_v62 = vadd.f32 %v12477_v17, %v14769_v16 }
 0x54d   : > { %9531 = vmatmul.mubr.msk.f32.gmra.mrb[72].mxu1 %vm2944_vm0, %v4187_v46  ;;  %v3596_v46 = vadd.f32 %v12477_v17, %v14759_v36 }
 0x54e   : > { %9533 = vmatprep.mubr.msk.f32.mxu1 %vm2944_vm0, %v4188_v50  ;;  %v14760_v50 = vld [vmem:[#allocation9_spill] sm:$0xff] }
 0x54f   : > { %v3601_v11 = vadd.f32 %v14760_v50, %v12477_v17  ;;  %v4202_v31 = vmul.f32 %v4074_v45, %v3596_v46  ;;  %v14770_v45 = vld [vmem:[#allocation44_spill] sm:$0xff] }
 0x551   : > { %9534 = vmatmul.mubr.msk.f32.gmra.mrb[74].mxu1 %vm2944_vm0, %v4189_v23  ;;  %v4075_v23 = vld [vmem:[%s12485_s8 + $0x148] sm:$0xff] }
 0x552   : > { %9536 = vmatprep.mubr.msk.f32.mxu1 %vm2944_vm0, %v4190_v39  ;;  %v3606_v39 = vadd.f32 %v12477_v17, %v14761_v18 }
 0x554   : > { %v12634_v29 = vpop.f32.mrb[30].mxu1  ;;  %v4204_v25 = vmul.f32 %v4076_v6, %v3606_v39  ;;  %v4086_v39 = vld [vmem:[%s12485_s8 + $0x1a0] sm:$0xff] }
 0x555   : > { %v12637_v15 = vpop.f32.mrb[31].mxu1  ;;  %9537 = vmatmul.mubr.msk.f32.gmra.mrb[76].mxu1 %vm2944_vm0, %v4191_v55  ;;  %v4203_v55 = vmul.f32 %v4075_v23, %v3601_v11  ;;  %v4085_v11 = vld [vmem:[%s12485_s8 + $0x198] sm:$0xff] }
 0x556   : > { %9539 = vmatprep.mubr.msk.f32.mxu1 %vm2944_vm0, %v4192_v49  ;;  %v4077_v49 = vld [vmem:[%s12485_s8 + $0x158] sm:$0xff] }
 0x557   : > { %v4205_v9 = vmul.f32 %v4077_v49, %v3611_v13  ;;  %v4087_v13 = vld [vmem:[%s12485_s8 + $0x1a8] sm:$0xff] }
 0x559   : > { %9540 = vmatmul.mubr.msk.f32.gmra.mrb[78].mxu1 %vm2944_vm0, %v4193_v58  ;;  %v3616_v58 = vadd.f32 %v12477_v17, %v14763_v32 }
 0x55a   : > { %9542 = vmatprep.mubr.msk.f32.mxu1 %vm2944_vm0, %v4194_v8  ;;  %v14764_v8 = vld [vmem:[#allocation42_spill] sm:$0xff] }
 0x55b   : > { %v3621_v61 = vadd.f32 %v14764_v8, %v12477_v17 }
 0x55d   : > { %9543 = vmatmul.mubr.msk.f32.gmra.mrb[80].mxu1 %vm2944_vm0, %v4195_v34  ;;  %v4206_v34 = vmul.f32 %v4078_v24, %v3616_v58  ;;  %v4207_v1 = vmul.f32 %v4079_v0, %v3621_v61  ;;  %v4088_v58 = vld [vmem:[%s12485_s8 + $0x1b0] sm:$0xff]  ;;  %v4089_v61 = vld [vmem:[%s12485_s8 + $0x1b8] sm:$0xff] }
 0x55e   : > { %9545 = vmatprep.mubr.msk.f32.mxu1 %vm2944_vm0, %v4196_v56  ;;  %v4080_v56 = vld [vmem:[%s12485_s8 + $0x170] sm:$0xff] }
 0x55f   : > { %v4208_v51 = vmul.f32 %v4080_v56, %v3626_v12  ;;  %v4090_v12 = vld [vmem:[%s12485_s8 + $0x1c0] sm:$0xff] }
 0x561   : > { %9546 = vmatmul.mubr.msk.f32.gmra.mrb[82].mxu1 %vm2944_vm0, %v4197_v37  ;;  %v4081_v37 = vld [vmem:[%s12485_s8 + $0x178] sm:$0xff] }
 0x562   : > { %9548 = vmatprep.mubr.msk.f32.mxu1 %vm2944_vm0, %v4198_v21  ;;  %v4082_v21 = vld [vmem:[%s12485_s8 + $0x180] sm:$0xff]  ;;  %v4209_v2 = vmul.f32 %v4081_v37, %v3631_v35  ;;  %v4091_v35 = vld [vmem:[%s12485_s8 + $0x1c8] sm:$0xff] }
 0x563   : > { %v4210_v38 = vmul.f32 %v4082_v21, %v3636_v33  ;;  %v3691_v21 = vadd.f32 %v12039_v20, %v12477_v17 }
 0x565   : > { %9549 = vmatmul.mubr.msk.f32.gmra.mrb[84].mxu1 %vm2944_vm0, %v4199_v60  ;;  %v4083_v60 = vld [vmem:[%s12485_s8 + $0x188] sm:$0xff] }
 0x566   : > { %9551 = vmatprep.mubr.msk.f32.mxu1 %vm2944_vm0, %v4200_v54  ;;  %v4084_v54 = vld [vmem:[%s12485_s8 + $0x190] sm:$0xff]  ;;  %v4211_v46 = vmul.f32 %v4083_v60, %v3641_v27 }
 0x567   : > { %v12675_v57 = vpop.f32.mrb[32].mxu1  ;;  %v4212_v23 = vmul.f32 %v4084_v54, %v3646_v62  ;;  %v14777_v27 = vld [vmem:[#allocation56_spill] sm:$0xff] }
 0x568   : > { %v12680_v14 = vpop.f32.mrb[33].mxu1  ;;  %v3696_v60 = vadd.f32 %v12477_v17, %v14777_v27  ;;  %v14778_v54 = vld [vmem:[#allocation8_spill] sm:$0xff]  ;;  %v3751_v27 = vadd.f32 %v12284_v41, %v12477_v17  ;;  %v3766_v41 = vadd.f32 %v12477_v17, %v12348_v48 }
 0x569   : > { %9552 = vmatmul.mubr.msk.f32.gmra.mrb[86].mxu1 %vm2944_vm0, %v4201_v4  ;;  %v3651_v4 = vadd.f32 %v14770_v45, %v12477_v17  ;;  %v3701_v20 = vadd.f32 %v14778_v54, %v12477_v17  ;;  %v4106_v54 = vld [vmem:[%s12485_s8 + $0x240] sm:$0xff] }
 0x56a   : > { %9554 = vmatprep.mubr.msk.f32.mxu1 %vm2944_vm0, %v4202_v31  ;;  %v14771_v31 = vld [vmem:[#allocation6_spill] sm:$0xff] }
 0x56b   : > { %v3656_v18 = vadd.f32 %v12477_v17, %v14771_v31  ;;  %v4213_v6 = vmul.f32 %v4085_v11, %v3651_v4  ;;  %v14779_v4 = vld [vmem:[#allocation10_spill] sm:$0xff] }
 0x56c   : > { %v3706_v11 = vadd.f32 %v12477_v17, %v14779_v4  ;;  %v4107_v4 = vld [vmem:[%s12485_s8 + $0x248] sm:$0xff] }
 0x56d   : > { %9555 = vmatmul.mubr.msk.f32.gmra.mrb[88].mxu1 %vm2944_vm0, %v4203_v55  ;;  %v14772_v55 = vld [vmem:[#allocation50_spill] sm:$0xff]  ;;  %v4214_v49 = vmul.f32 %v4086_v39, %v3656_v18 }
 0x56e   : > { %9557 = vmatprep.mubr.msk.f32.mxu1 %vm2944_vm0, %v4204_v25  ;;  %v3661_v26 = vadd.f32 %v14772_v55, %v12477_v17  ;;  %v14773_v25 = vld [vmem:[#allocation13_spill] sm:$0xff]  ;;  %v14780_v18 = vld [vmem:[#allocation14_spill] sm:$0xff] }
 0x56f   : > { %v3666_v32 = vadd.f32 %v12477_v17, %v14773_v25  ;;  %v3711_v39 = vadd.f32 %v14780_v18, %v12477_v17  ;;  %v14787_v18 = vld [vmem:[#allocation19_spill] sm:$0xff] }
 0x570   : > { %v4215_v24 = vmul.f32 %v4087_v13, %v3661_v26  ;;  %v14781_v26 = vld [vmem:[#allocation15_spill] sm:$0xff] }
 0x571   : > { %9558 = vmatmul.mubr.msk.f32.gmra.mrb[90].mxu1 %vm2944_vm0, %v4205_v9  ;;  %v14774_v9 = vld [vmem:[#allocation54_spill] sm:$0xff]  ;;  %v4216_v0 = vmul.f32 %v4088_v58, %v3666_v32  ;;  %v3716_v13 = vadd.f32 %v12477_v17, %v14781_v26  ;;  %v14782_v32 = vld [vmem:[#allocation63_spill] sm:$0xff]  ;;  %v14788_v26 = vld [vmem:[#allocation108_spill] sm:$0xff] }
 0x572   : > { %9560 = vmatprep.mubr.msk.f32.mxu1 %vm2944_vm0, %v4206_v34  ;;  %v3671_v8 = vadd.f32 %v14774_v9, %v12477_v17  ;;  %v14775_v34 = vld [vmem:[#allocation59_spill] sm:$0xff]  ;;  %v3721_v58 = vadd.f32 %v14782_v32, %v12477_v17 }
 0x573   : > { %v3676_v7 = vadd.f32 %v12477_v17, %v14775_v34  ;;  %v3731_v34 = vadd.f32 %v12188_v28, %v12477_v17  ;;  %v3746_v28 = vadd.f32 %v12477_v17, %v12286_v63 }
 0x574   : > { %v4217_v56 = vmul.f32 %v4089_v61, %v3671_v8  ;;  %v3726_v8 = vadd.f32 %v12477_v17, %v12193_v19  ;;  %v4100_v61 = vld [vmem:[%s12485_s8 + $0x210] sm:$0xff] }
 0x575   : > { %9561 = vmatmul.mubr.msk.f32.gmra.mrb[92].mxu1 %vm2944_vm0, %v4207_v1  ;;  %v14776_v1 = vld [vmem:[#allocation57_spill] sm:$0xff]  ;;  %v4218_v37 = vmul.f32 %v4090_v12, %v3676_v7 }
 0x576   : > { %9563 = vmatprep.mubr.msk.f32.mxu1 %vm2944_vm0, %v4208_v51  ;;  %v3681_v43 = vadd.f32 %v14776_v1, %v12477_v17  ;;  %v3686_v51 = vadd.f32 %v12477_v17, %v12042_v59  ;;  %v4101_v7 = vld [vmem:[%s12485_s8 + $0x218] sm:$0xff]  ;;  %v4228_v12 = vmul.f32 %v4100_v61, %v3726_v8  ;;  %v4112_v8 = vld [vmem:[%s12485_s8 + $0x270] sm:$0xff] }
 0x577   : > { %v4229_v19 = vmul.f32 %v4101_v7, %v3731_v34 }
 0x578   : > { %v4219_v33 = vmul.f32 %v4091_v35, %v3681_v43  ;;  %v4220_v40 = vmul.f32 %v4092_v44, %v3686_v51  ;;  %v4102_v43 = vld [vmem:[%s12485_s8 + $0x220] sm:$0xff]  ;;  %v4103_v51 = vld [vmem:[%s12485_s8 + $0x228] sm:$0xff] }
 0x579   : > { %9564 = vmatmul.mubr.msk.f32.gmra.mrb[94].mxu1 %vm2944_vm0, %v4209_v2  ;;  %v4093_v2 = vld [vmem:[%s12485_s8 + $0x1d8] sm:$0xff]  ;;  %v14784_v35 = vld [vmem:[#allocation78_spill] sm:$0xff] }
 0x57a   : > { %v12716_v36 = vpop.f32.mrb[34].mxu1  ;;  %9566 = vmatprep.mubr.msk.f32.mxu1 %vm2944_vm0, %v4210_v38  ;;  %v4094_v38 = vld [vmem:[%s12485_s8 + $0x1e0] sm:$0xff]  ;;  %v4221_v62 = vmul.f32 %v4093_v2, %v3691_v21  ;;  %v4104_v21 = vld [vmem:[%s12485_s8 + $0x230] sm:$0xff] }
 0x57b   : > { %v12721_v50 = vpop.f32.mrb[35].mxu1  ;;  %v4222_v45 = vmul.f32 %v4094_v38, %v3696_v60  ;;  %v4105_v60 = vld [vmem:[%s12485_s8 + $0x238] sm:$0xff]  ;;  %v4232_v38 = vmul.f32 %v4104_v21, %v3746_v28  ;;  %v14793_v21 = vld [vmem:[#allocation64_spill] sm:$0xff] }
 0x57d   : > { %9567 = vmatmul.mubr.msk.f32.gmra.mrb[96].mxu1 %vm2944_vm0, %v4211_v46  ;;  %v4095_v46 = vld [vmem:[%s12485_s8 + $0x1e8] sm:$0xff] }
 0x57e   : > { %9569 = vmatprep.mubr.msk.f32.mxu1 %vm2944_vm0, %v4212_v23  ;;  %v4096_v23 = vld [vmem:[%s12485_s8 + $0x1f0] sm:$0xff]  ;;  %v4223_v31 = vmul.f32 %v4095_v46, %v3701_v20  ;;  %v4233_v20 = vmul.f32 %v4105_v60, %v3751_v27  ;;  %v14786_v46 = vld [vmem:[#allocation94_spill] sm:$0xff] }
 0x57f   : > { %v4224_v55 = vmul.f32 %v4096_v23, %v3706_v11  ;;  %v4108_v23 = vld [vmem:[%s12485_s8 + $0x250] sm:$0xff] }
 0x580   : > { %v4116_v27 = vld [vmem:[%s12485_s8 + $0x290] sm:$0xff] }
 0x581   : > { %9570 = vmatmul.mubr.msk.f32.gmra.mrb[98].mxu1 %vm2944_vm0, %v4213_v6  ;;  %v4097_v6 = vld [vmem:[%s12485_s8 + $0x1f8] sm:$0xff] }
 0x582   : > { %9572 = vmatprep.mubr.msk.f32.mxu1 %vm2944_vm0, %v4214_v49  ;;  %v4098_v49 = vld [vmem:[%s12485_s8 + $0x200] sm:$0xff]  ;;  %v4225_v25 = vmul.f32 %v4097_v6, %v3711_v39  ;;  %v3771_v39 = vadd.f32 %v14787_v18, %v12477_v17  ;;  %v4109_v6 = vld [vmem:[%s12485_s8 + $0x258] sm:$0xff] }
 0x583   : > { %v4226_v9 = vmul.f32 %v4098_v49, %v3716_v13  ;;  %v3776_v13 = vadd.f32 %v12477_v17, %v14788_v26  ;;  %v4110_v49 = vld [vmem:[%s12485_s8 + $0x260] sm:$0xff]  ;;  %v14797_v18 = vld [vmem:[#allocation81_spill] sm:$0xff]  ;;  %v14798_v26 = vld [vmem:[#allocation75_spill] sm:$0xff] }
 0x584   : > { %v4237_v48 = vmul.f32 %v4109_v6, %v3771_v39  ;;  %v3826_v39 = vadd.f32 %v12477_v17, %v14797_v18  ;;  %v4120_v6 = vld [vmem:[%s12485_s8 + $0x2b0] sm:$0xff] }
 0x585   : > { %9573 = vmatmul.mubr.msk.f32.gmra.mrb[100].mxu1 %vm2944_vm0, %v4215_v24  ;;  %v4099_v24 = vld [vmem:[%s12485_s8 + $0x208] sm:$0xff] }
 0x586   : > { %9575 = vmatprep.mubr.msk.f32.mxu1 %vm2944_vm0, %v4216_v0  ;;  %v4227_v0 = vmul.f32 %v4099_v24, %v3721_v58  ;;  %v4111_v58 = vld [vmem:[%s12485_s8 + $0x268] sm:$0xff]  ;;  %v4238_v24 = vmul.f32 %v4110_v49, %v3776_v13  ;;  %v3831_v13 = vadd.f32 %v14798_v26, %v12477_v17  ;;  %v4121_v49 = vld [vmem:[%s12485_s8 + $0x2b8] sm:$0xff] }
 0x589   : > { %9576 = vmatmul.mubr.msk.f32.gmra.mrb[102].mxu1 %vm2944_vm0, %v4217_v56  ;;  %v14783_v56 = vld [vmem:[#allocation85_spill] sm:$0xff] }
 0x58a   : > { %9578 = vmatprep.mubr.msk.f32.mxu1 %vm2944_vm0, %v4218_v37  ;;  %v3736_v1 = vadd.f32 %v12477_v17, %v14783_v56  ;;  %v3741_v37 = vadd.f32 %v14784_v35, %v12477_v17  ;;  %v14792_v35 = vld [vmem:[#allocation62_spill] sm:$0xff] }
 0x58c   : > { %v4230_v44 = vmul.f32 %v4102_v43, %v3736_v1  ;;  %v4113_v1 = vld [vmem:[%s12485_s8 + $0x278] sm:$0xff] }
 0x58d   : > { %v12759_v16 = vpop.f32.mrb[36].mxu1  ;;  %9579 = vmatmul.mubr.msk.f32.gmra.mrb[104].mxu1 %vm2944_vm0, %v4219_v33 }
 0x58e   : > { %v12762_v59 = vpop.f32.mrb[37].mxu1  ;;  %9581 = vmatprep.mubr.msk.f32.mxu1 %vm2944_vm0, %v4220_v40  ;;  %v4231_v40 = vmul.f32 %v4103_v51, %v3741_v37  ;;  %v3801_v37 = vadd.f32 %v14792_v35, %v12477_v17  ;;  %v14802_v35 = vld [vmem:[#allocation87_spill] sm:$0xff] }
 0x591   : > { %9582 = vmatmul.mubr.msk.f32.gmra.mrb[106].mxu1 %vm2944_vm0, %v4221_v62  ;;  %v14785_v62 = vld [vmem:[#allocation66_spill] sm:$0xff] }
 0x592   : > { %9584 = vmatprep.mubr.msk.f32.mxu1 %vm2944_vm0, %v4222_v45  ;;  %v3756_v63 = vadd.f32 %v12477_v17, %v14785_v62  ;;  %v3761_v45 = vadd.f32 %v14786_v46, %v12477_v17 }
 0x594   : > { %v4234_v11 = vmul.f32 %v4106_v54, %v3756_v63  ;;  %v4117_v63 = vld [vmem:[%s12485_s8 + $0x298] sm:$0xff] }
 0x595   : > { %9585 = vmatmul.mubr.msk.f32.gmra.mrb[108].mxu1 %vm2944_vm0, %v4223_v31  ;;  %v4235_v31 = vmul.f32 %v4107_v4, %v3761_v45  ;;  %v4118_v45 = vld [vmem:[%s12485_s8 + $0x2a0] sm:$0xff] }
 0x596   : > { %9587 = vmatprep.mubr.msk.f32.mxu1 %vm2944_vm0, %v4224_v55  ;;  %v4236_v55 = vmul.f32 %v4108_v23, %v3766_v41  ;;  %v4119_v23 = vld [vmem:[%s12485_s8 + $0x2a8] sm:$0xff] }
 0x599   : > { %9588 = vmatmul.mubr.msk.f32.gmra.mrb[110].mxu1 %vm2944_vm0, %v4225_v25  ;;  %v14789_v25 = vld [vmem:[#allocation102_spill] sm:$0xff] }
 0x59a   : > { %9590 = vmatprep.mubr.msk.f32.mxu1 %vm2944_vm0, %v4226_v9  ;;  %v3781_v32 = vadd.f32 %v14789_v25, %v12477_v17  ;;  %v3786_v9 = vadd.f32 %v12477_v17, %v12433_v5  ;;  %v14799_v25 = vld [vmem:[#allocation65_spill] sm:$0xff] }
 0x59c   : > { %v4239_v61 = vmul.f32 %v4111_v58, %v3781_v32  ;;  %v4240_v43 = vmul.f32 %v4112_v8, %v3786_v9  ;;  %v3836_v32 = vadd.f32 %v12477_v17, %v14799_v25  ;;  %v4122_v58 = vld [vmem:[%s12485_s8 + $0x2c0] sm:$0xff]  ;;  %v4249_v9 = vmul.f32 %v4121_v49, %v3831_v13  ;;  %v14800_v8 = vld [vmem:[#allocation89_spill] sm:$0xff]  ;;  %v4131_v13 = vld [vmem:[%s12485_s8 + $0x308] sm:$0xff] }
 0x59d   : > { %9591 = vmatmul.mubr.msk.f32.gmra.mrb[112].mxu1 %vm2944_vm0, %v4227_v0  ;;  %v14790_v0 = vld [vmem:[#allocation105_spill] sm:$0xff] }
 0x59e   : > { %9593 = vmatprep.mubr.msk.f32.mxu1 %vm2944_vm0, %v4228_v12  ;;  %v3791_v34 = vadd.f32 %v14790_v0, %v12477_v17  ;;  %v14791_v12 = vld [vmem:[#allocation60_spill] sm:$0xff] }
 0x59f   : > { %v3796_v56 = vadd.f32 %v12477_v17, %v14791_v12  ;;  %v4250_v12 = vmul.f32 %v4122_v58, %v3836_v32  ;;  %v4132_v32 = vld [vmem:[%s12485_s8 + $0x310] sm:$0xff] }
 0x5a0   : > { %v12802_v33 = vpop.f32.mrb[38].mxu1  ;;  %v4241_v51 = vmul.f32 %v4113_v1, %v3791_v34  ;;  %v4123_v34 = vld [vmem:[%s12485_s8 + $0x2c8] sm:$0xff] }
 0x5a1   : > { %v12805_v2 = vpop.f32.mrb[39].mxu1  ;;  %9594 = vmatmul.mubr.msk.f32.gmra.mrb[114].mxu1 %vm2944_vm0, %v4229_v19  ;;  %v4114_v19 = vld [vmem:[%s12485_s8 + $0x280] sm:$0xff] }
 0x5a2   : > { %9596 = vmatprep.mubr.msk.f32.mxu1 %vm2944_vm0, %v4230_v44  ;;  %v4115_v44 = vld [vmem:[%s12485_s8 + $0x288] sm:$0xff]  ;;  %v4242_v28 = vmul.f32 %v4114_v19, %v3796_v56 }
 0x5a3   : > { %v4243_v60 = vmul.f32 %v4115_v44, %v3801_v37  ;;  %v14801_v56 = vld [vmem:[#allocation83_spill] sm:$0xff]  ;;  %v3851_v37 = vadd.f32 %v14802_v35, %v12477_v17 }
 0x5a4   : > { %v3846_v1 = vadd.f32 %v12477_v17, %v14801_v56 }
 0x5a5   : > { %9597 = vmatmul.mubr.msk.f32.gmra.mrb[116].mxu1 %vm2944_vm0, %v4231_v40  ;;  %v3806_v40 = vadd.f32 %v12477_v17, %v14793_v21 }
 0x5a6   : > { %9599 = vmatprep.mubr.msk.f32.mxu1 %vm2944_vm0, %v4232_v38  ;;  %v14794_v38 = vld [vmem:[#allocation16_spill] sm:$0xff] }
 0x5a7   : > { %v3811_v62 = vadd.f32 %v14794_v38, %v12477_v17  ;;  %v4244_v54 = vmul.f32 %v4116_v27, %v3806_v40  ;;  %v4126_v40 = vld [vmem:[%s12485_s8 + $0x2e0] sm:$0xff] }
 0x5a9   : > { %9600 = vmatmul.mubr.msk.f32.gmra.mrb[118].mxu1 %vm2944_vm0, %v4233_v20  ;;  %v14795_v20 = vld [vmem:[#allocation18_spill] sm:$0xff]  ;;  %v4245_v4 = vmul.f32 %v4117_v63, %v3811_v62  ;;  %v4127_v62 = vld [vmem:[%s12485_s8 + $0x2e8] sm:$0xff] }
 0x5aa   : > { %9602 = vmatprep.mubr.msk.f32.mxu1 %vm2944_vm0, %v4234_v11  ;;  %v3816_v46 = vadd.f32 %v12477_v17, %v14795_v20  ;;  %v14796_v11 = vld [vmem:[#allocation17_spill] sm:$0xff] }
 0x5ab   : > { %v3821_v41 = vadd.f32 %v14796_v11, %v12477_v17 }
 0x5ad   : > { %9603 = vmatmul.mubr.msk.f32.gmra.mrb[120].mxu1 %vm2944_vm0, %v4235_v31  ;;  %v4246_v31 = vmul.f32 %v4118_v45, %v3816_v46  ;;  %v4128_v46 = vld [vmem:[%s12485_s8 + $0x2f0] sm:$0xff] }
 0x5ae   : > { %9605 = vmatprep.mubr.msk.f32.mxu1 %vm2944_vm0, %v4236_v55  ;;  %v4247_v55 = vmul.f32 %v4119_v23, %v3821_v41  ;;  %v4129_v41 = vld [vmem:[%s12485_s8 + $0x2f8] sm:$0xff] }
 0x5b1   : > { %9606 = vmatmul.mubr.msk.f32.gmra.mrb[122].mxu1 %vm2944_vm0, %v4237_v48  ;;  %v4248_v48 = vmul.f32 %v4120_v6, %v3826_v39  ;;  %v4130_v39 = vld [vmem:[%s12485_s8 + $0x300] sm:$0xff] }
 0x5b2   : > { %9608 = vmatprep.mubr.msk.f32.mxu1 %vm2944_vm0, %v4238_v24 }
 0x5b3   : > { %v12843_v7 = vpop.f32.mrb[40].mxu1 }
 0x5b4   : > { %v12848_v5 = vpop.f32.mrb[41].mxu1 }
 0x5b5   : > { %9609 = vmatmul.mubr.msk.f32.gmra.mrb[124].mxu1 %vm2944_vm0, %v4239_v61  ;;  %v3841_v61 = vadd.f32 %v14800_v8, %v12477_v17 }
 0x5b6   : > { %9611 = vmatprep.mubr.msk.f32.mxu1 %vm2944_vm0, %v4240_v43  ;;  %v4124_v43 = vld [vmem:[%s12485_s8 + $0x2d0] sm:$0xff] }
 0x5b7   : > { %v4251_v19 = vmul.f32 %v4123_v34, %v3841_v61  ;;  %v4252_v44 = vmul.f32 %v4124_v43, %v3846_v1  ;;  %v14810_v61 = vld [vmem:[#allocation113_spill] sm:$0xff]  ;;  %v14811_v1 = vld [vmem:[#allocation110_spill] sm:$0xff] }
 0x5b8   : > { %v3891_v34 = vadd.f32 %v14810_v61, %v12477_v17  ;;  %v3896_v43 = vadd.f32 %v12477_v17, %v14811_v1  ;;  %v4145_v61 = vld [vmem:[%s12485_s8 + $0x378] sm:$0xff]  ;;  %v4146_v1 = vld [vmem:[%s12485_s8 + $0x380] sm:$0xff] }
 0x5b9   : > { %9612 = vmatmul.mubr.msk.f32.gmra.mrb[126].mxu1 %vm2944_vm0, %v4241_v51  ;;  %v4125_v51 = vld [vmem:[%s12485_s8 + $0x2d8] sm:$0xff] }
 0x5ba   : > { %9614 = vmatprep.mubr.msk.f32.mxu1 %vm2944_vm0, %v4242_v28  ;;  %v14803_v28 = vld [vmem:[#allocation98_spill] sm:$0xff]  ;;  %v4253_v27 = vmul.f32 %v4125_v51, %v3851_v37  ;;  %v14812_v37 = vld [vmem:[#allocation21_spill] sm:$0xff] }
 0x5bb   : > { %v3856_v21 = vadd.f32 %v12477_v17, %v14803_v28  ;;  %v3901_v51 = vadd.f32 %v14812_v37, %v12477_v17 }
 0x5bd   : > { %9615 = vmatmul.mubr.msk.f32.gmra.mrb[128].mxu1 %vm2944_vm0, %v4243_v60  ;;  %v14804_v60 = vld [vmem:[#allocation91_spill] sm:$0xff]  ;;  %v4254_v63 = vmul.f32 %v4126_v40, %v3856_v21  ;;  %v3906_v21 = vadd.f32 %v12477_v17, %v12469_v47  ;;  %v4136_v40 = vld [vmem:[%s12485_s8 + $0x330] sm:$0xff] }
 0x5be   : > { %9617 = vmatprep.mubr.msk.f32.mxu1 %vm2944_vm0, %v4244_v54  ;;  %v3861_v38 = vadd.f32 %v14804_v60, %v12477_v17  ;;  %v14805_v54 = vld [vmem:[#allocation96_spill] sm:$0xff]  ;;  %v3911_v60 = vadd.f32 %v12466_v53, %v12477_v17  ;;  %v3926_v53 = vadd.f32 %v12477_v17, %v12553_v52 }
 0x5bf   : > { %v3866_v20 = vadd.f32 %v12477_v17, %v14805_v54  ;;  %v4138_v54 = vld [vmem:[%s12485_s8 + $0x340] sm:$0xff] }
 0x5c0   : > { %v4255_v45 = vmul.f32 %v4127_v62, %v3861_v38  ;;  %v4137_v38 = vld [vmem:[%s12485_s8 + $0x338] sm:$0xff]  ;;  %v4264_v62 = vmul.f32 %v4136_v40, %v3906_v21 }
 0x5c1   : > { %9618 = vmatmul.mubr.msk.f32.gmra.mrb[130].mxu1 %vm2944_vm0, %v4245_v4  ;;  %v14806_v4 = vld [vmem:[#allocation67_spill] sm:$0xff]  ;;  %v4256_v23 = vmul.f32 %v4128_v46, %v3866_v20  ;;  %v4265_v47 = vmul.f32 %v4137_v38, %v3911_v60  ;;  %v3921_v20 = vadd.f32 %v12501_v22, %v12477_v17  ;;  %v3936_v22 = vadd.f32 %v12477_v17, %v12594_v30 }
 0x5c2   : > { %9620 = vmatprep.mubr.msk.f32.mxu1 %vm2944_vm0, %v4246_v31  ;;  %v3871_v11 = vadd.f32 %v14806_v4, %v12477_v17  ;;  %v14807_v31 = vld [vmem:[#allocation100_spill] sm:$0xff]  ;;  %v4139_v46 = vld [vmem:[%s12485_s8 + $0x348] sm:$0xff] }
 0x5c3   : > { %v3876_v18 = vadd.f32 %v12477_v17, %v14807_v31  ;;  %v4140_v4 = vld [vmem:[%s12485_s8 + $0x350] sm:$0xff]  ;;  %v4143_v30 = vld [vmem:[%s12485_s8 + $0x368] sm:$0xff] }
 0x5c4   : > { %v4257_v6 = vmul.f32 %v4129_v41, %v3871_v11  ;;  %v3931_v11 = vadd.f32 %v12548_v42, %v12477_v17  ;;  %v4141_v41 = vld [vmem:[%s12485_s8 + $0x358] sm:$0xff]  ;;  %v12980_v42 = vld [vmem:[%s14425_s3 + $0x2] ss:$0 sm:$0xff] }
 0x5c5   : > { %9621 = vmatmul.mubr.msk.f32.gmra.mrb[132].mxu1 %vm2944_vm0, %v4247_v55  ;;  %v14808_v55 = vld [vmem:[#allocation20_spill] sm:$0xff]  ;;  %v4258_v49 = vmul.f32 %v4130_v39, %v3876_v18  ;;  %v4142_v18 = vld [vmem:[%s12485_s8 + $0x360] sm:$0xff] }
 0x5c6   : > { %v12884_v24 = vpop.f32.mrb[42].mxu1  ;;  %9623 = vmatprep.mubr.msk.f32.mxu1 %vm2944_vm0, %v4248_v48  ;;  %v3881_v26 = vadd.f32 %v14808_v55, %v12477_v17  ;;  %v14809_v48 = vld [vmem:[#allocation68_spill] sm:$0xff]  ;;  %v4269_v39 = vmul.f32 %v4141_v41, %v3931_v11  ;;  %v4270_v55 = vmul.f32 %v4142_v18, %v3936_v22 }
 0x5c7   : > { %v12889_v0 = vpop.f32.mrb[43].mxu1  ;;  %v3886_v25 = vadd.f32 %v12477_v17, %v14809_v48 }
 0x5c8   : > { %v4259_v8 = vmul.f32 %v4131_v13, %v3881_v26  ;;  %v3946_v26 = vadd.f32 %v12477_v17, %v12637_v15  ;;  %v3956_v15 = vadd.f32 %v12477_v17, %v12680_v14  ;;  %v3961_v14 = vadd.f32 %v12675_v57, %v12477_v17 }
 0x5c9   : > { %9624 = vmatmul.mubr.msk.f32.gmra.mrb[134].mxu1 %vm2944_vm0, %v4249_v9  ;;  %v4260_v56 = vmul.f32 %v4132_v32, %v3886_v25 }
 0x5ca   : > { %9626 = vmatprep.mubr.msk.f32.mxu1 %vm2944_vm0, %v4250_v12  ;;  %v4133_v12 = vld [vmem:[%s12485_s8 + $0x318] sm:$0xff] }
 0x5cb   : > { %v4261_v35 = vmul.f32 %v4133_v12, %v3891_v34 }
 0x5cd   : > { %9627 = vmatmul.mubr.msk.f32.gmra.mrb[136].mxu1 %vm2944_vm0, %v4251_v19  ;;  %v4134_v19 = vld [vmem:[%s12485_s8 + $0x320] sm:$0xff] }
 0x5ce   : > { %9629 = vmatprep.mubr.msk.f32.mxu1 %vm2944_vm0, %v4252_v44  ;;  %v4135_v44 = vld [vmem:[%s12485_s8 + $0x328] sm:$0xff]  ;;  %v4262_v28 = vmul.f32 %v4134_v19, %v3896_v43 }
 0x5d1   : > { %9630 = vmatmul.mubr.msk.f32.gmra.mrb[138].mxu1 %vm2944_vm0, %v4253_v27  ;;  %v4263_v27 = vmul.f32 %v4135_v44, %v3901_v51  ;;  %v4147_v51 = vld [vmem:[%s12485_s8 + $0x388] sm:$0xff]  ;;  %v4274_v44 = vmul.f32 %v4146_v1, %v3956_v15 }
 0x5d2   : > { %9632 = vmatprep.mubr.msk.f32.mxu1 %vm2944_vm0, %v4254_v63  ;;  %v3916_v63 = vadd.f32 %v12477_v17, %v12506_v10  ;;  %v4267_v10 = vmul.f32 %v4139_v46, %v3921_v20  ;;  %v4155_v1 = vld [vmem:[%s12485_s8 + $0x3c8] sm:$0xff] }
 0x5d5   : > { %9633 = vmatmul.mubr.msk.f32.gmra.mrb[140].mxu1 %vm2944_vm0, %v4255_v45  ;;  %v4266_v45 = vmul.f32 %v4138_v54, %v3916_v63  ;;  %v4275_v63 = vmul.f32 %v4147_v51, %v3961_v14  ;;  %v4149_v54 = vld [vmem:[%s12485_s8 + $0x398] sm:$0xff] }
 0x5d6   : > { %9635 = vmatprep.mubr.msk.f32.mxu1 %vm2944_vm0, %v4256_v23  ;;  %v4268_v23 = vmul.f32 %v4140_v4, %v3926_v53  ;;  %v4150_v53 = vld [vmem:[%s12485_s8 + $0x3a0] sm:$0xff] }
 0x5d9   : > { %v12927_v58 = vpop.f32.mrb[44].mxu1  ;;  %9636 = vmatmul.mubr.msk.f32.gmra.mrb[142].mxu1 %vm2944_vm0, %v4257_v6  ;;  %v3941_v6 = vadd.f32 %v12591_v3, %v12477_v17  ;;  %v3951_v3 = vadd.f32 %v12634_v29, %v12477_v17 }
 0x5da   : > { %v12930_v9 = vpop.f32.mrb[45].mxu1  ;;  %9638 = vmatprep.mubr.msk.f32.mxu1 %vm2944_vm0, %v4258_v49  ;;  %v4144_v49 = vld [vmem:[%s12485_s8 + $0x370] sm:$0xff] }
 0x5db   : > { %v4272_v34 = vmul.f32 %v4144_v49, %v3946_v26  ;;  %v4273_v29 = vmul.f32 %v4145_v61, %v3951_v3  ;;  %v4154_v61 = vld [vmem:[%s12485_s8 + $0x3c0] sm:$0xff] }
 0x5dd   : > { %9639 = vmatmul.mubr.msk.f32.gmra.mrb[144].mxu1 %vm2944_vm0, %v4259_v8  ;;  %v4271_v8 = vmul.f32 %v4143_v30, %v3941_v6  ;;  %v4152_v30 = vld [vmem:[%s12485_s8 + $0x3b0] sm:$0xff] }
 0x5de   : > { %9641 = vmatprep.mubr.msk.f32.mxu1 %vm2944_vm0, %v4260_v56 }
 0x5e1   : > { %9642 = vmatmul.mubr.msk.f32.gmra.mrb[146].mxu1 %vm2944_vm0, %v4261_v35 }
 0x5e2   : > { %9644 = vmatprep.mubr.msk.f32.mxu1 %vm2944_vm0, %v4262_v28  ;;  %v3966_v28 = vadd.f32 %v12477_v17, %v12721_v50  ;;  %v13018_v17 = vld [vmem:[%s14425_s3 + $0x1] ss:$0 sm:$0xff] }
 0x5e3   : > { %v3971_v50 = vadd.f32 %v13018_v17, %v12716_v36  ;;  %v3976_v20 = vadd.f32 %v13018_v17, %v12762_v59  ;;  %v3981_v59 = vadd.f32 %v13018_v17, %v12759_v16  ;;  %v3986_v18 = vadd.f32 %v13018_v17, %v12805_v2 }
 0x5e4   : > { %v3991_v2 = vadd.f32 %v13018_v17, %v12802_v33 }
 0x5e5   : > { %9645 = vmatmul.mubr.msk.f32.gmra.mrb[148].mxu1 %vm2944_vm0, %v4263_v27  ;;  %v4148_v27 = vld [vmem:[%s12485_s8 + $0x390] sm:$0xff]  ;;  %v4277_v41 = vmul.f32 %v4149_v54, %v3971_v50  ;;  %v4278_v22 = vmul.f32 %v4150_v53, %v3976_v20 }
 0x5e6   : > { %9647 = vmatprep.mubr.msk.f32.mxu1 %vm2944_vm0, %v4264_v62 }
 0x5e9   : > { %9648 = vmatmul.mubr.msk.f32.gmra.mrb[150].mxu1 %vm2944_vm0, %v4265_v47  ;;  %v4276_v47 = vmul.f32 %v4148_v27, %v3966_v28  ;;  %v4016_v27 = vadd.f32 %v13018_v17, %v12930_v9  ;;  %v4021_v9 = vadd.f32 %v13018_v17, %v12927_v58 }
 0x5ea   : > { %9650 = vmatprep.mubr.msk.f32.mxu1 %vm2944_vm0, %v4266_v45 }
 0x5ec   : > { %v12970_v31 = vpop.f32.mrb[46].mxu1 }
 0x5ed   : > { %v12973_v52 = vpop.f32.mrb[47].mxu1  ;;  %9651 = vmatmul.mubr.msk.f32.gmra.mrb[152].mxu1 %vm2944_vm0, %v4267_v10 }
 0x5ee   : > { %9653 = vmatprep.mubr.msk.f32.mxu1 %vm2944_vm0, %v4268_v23  ;;  %v4151_v23 = vld [vmem:[%s12485_s8 + $0x3a8] sm:$0xff] }
 0x5ef   : > { %v4279_v49 = vmul.f32 %v4151_v23, %v3981_v59  ;;  %v4031_v59 = vadd.f32 %v13018_v17, %v12970_v31 }
 0x5f0   : > { %v9496_v13 = vpop.f32.mrb[48].mxu1 }
 0x5f1   : > { %v4759_v48 = vadd.f32 %v9496_v13, %v12980_v42  ;;  %v4753_v25 = vpop.f32.mrb[49].mxu1  ;;  %9654 = vmatmul.mubr.msk.f32.gmra.mrb[154].mxu1 %vm2944_vm0, %v4269_v39 }
 0x5f2   : > { %v4754_v32 = vadd.f32 %v12980_v42, %v4753_v25  ;;  %9656 = vmatprep.mubr.msk.f32.mxu1 %vm2944_vm0, %v4270_v55  ;;  %v4280_v25 = vmul.f32 %v4152_v30, %v3986_v18 }
 0x5f3   : > { %v5393_v43 = vmax.f32 %v4759_v48, 0.0  ;;  %v4153_v48 = vld [vmem:[%s12485_s8 + $0x3b8] sm:$0xff] }
 0x5f4   : > { %v5392_v12 = vmax.f32 %v4754_v32, 0.0  ;;  %v9499_v56 = vpop.f32.mrb[50].mxu1  ;;  %v3996_v32 = vadd.f32 %v13018_v17, %v12848_v5  ;;  %v4001_v5 = vadd.f32 %v13018_v17, %v12843_v7 }
 0x5f5   : > { %v4769_v19 = vadd.f32 %v9499_v56, %v12980_v42  ;;  %v4763_v35 = vpop.f32.mrb[51].mxu1  ;;  %9657 = vmatmul.mubr.msk.f32.gmra.mrb[156].mxu1 %vm2944_vm0, %v4271_v8  ;;  %v4281_v56 = vmul.f32 %v4153_v48, %v3991_v2 }
 0x5f6   : > { %v4764_v37 = vadd.f32 %v12980_v42, %v4763_v35  ;;  %9659 = vmatprep.mubr.msk.f32.mxu1 %vm2944_vm0, %v4272_v34  ;;  %9694 = vmatprep.mubr.msk.f32.mxu0 %vm2944_vm0, %v5392_v12  ;;  %v4283_v28 = vmul.f32 %v4155_v1, %v4001_v5 }
 0x5f7   : > { %9695 = vmatmul.mubr.msk.f32.vlgmr.msra.gmra.mrb[80].mxu0 %vm2944_vm0, %v5393_v43  ;;  %v5395_v60 = vmax.f32 %v4769_v19, 0.0  ;;  %v4282_v43 = vmul.f32 %v4154_v61, %v3996_v32  ;;  %v4006_v19 = vadd.f32 %v13018_v17, %v12889_v0  ;;  %v4011_v0 = vadd.f32 %v13018_v17, %v12884_v24 }
 0x5f8   : > { %v5394_v21 = vmax.f32 %v4764_v37, 0.0  ;;  %v9502_v40 = vpop.f32.mrb[52].mxu1 }
 0x5f9   : > { %v4779_v38 = vadd.f32 %v9502_v40, %v12980_v42  ;;  %v4773_v62 = vpop.f32.mrb[53].mxu1  ;;  %9660 = vmatmul.mubr.msk.f32.gmra.mrb[158].mxu1 %vm2944_vm0, %v4273_v29  ;;  %v4156_v29 = vld [vmem:[%s12485_s8 + $0x3d0] sm:$0xff] }
 0x5fa   : > { %v4774_v57 = vadd.f32 %v12980_v42, %v4773_v62  ;;  %9662 = vmatprep.mubr.msk.f32.mxu1 %vm2944_vm0, %v4274_v44  ;;  %9697 = vmatprep.mubr.msk.f32.mxu0 %vm2944_vm0, %v5394_v21  ;;  %v4157_v21 = vld [vmem:[%s12485_s8 + $0x3d8] sm:$0xff]  ;;  %v4284_v40 = vmul.f32 %v4156_v29, %v4006_v19  ;;  %v4158_v62 = vld [vmem:[%s12485_s8 + $0x3e0] sm:$0xff] }
 0x5fb   : > { %9698 = vmatmul.mubr.msk.f32.gmra.mrb[82].mxu0 %vm2944_vm0, %v5395_v60  ;;  %v5397_v4 = vmax.f32 %v4779_v38, 0.0  ;;  %v4285_v54 = vmul.f32 %v4157_v21, %v4011_v0  ;;  %v4286_v20 = vmul.f32 %v4158_v62, %v4016_v27 }
 0x5fc   : > { %v5396_v46 = vmax.f32 %v4774_v57, 0.0  ;;  %v9505_v45 = vpop.f32.mrb[54].mxu1 }
 0x5fd   : > { %v4789_v10 = vadd.f32 %v9505_v45, %v12980_v42  ;;  %v4783_v11 = vpop.f32.mrb[55].mxu1  ;;  %9663 = vmatmul.mubr.msk.f32.gmra.mrb[160].mxu1 %vm2944_vm0, %v4275_v63 }
 0x5fe   : > { %v4784_v36 = vadd.f32 %v12980_v42, %v4783_v11  ;;  %9665 = vmatprep.mubr.msk.f32.mxu1 %vm2944_vm0, %v4276_v47  ;;  %9700 = vmatprep.mubr.msk.f32.mxu0 %vm2944_vm0, %v5396_v46  ;;  %v4159_v47 = vld [vmem:[%s12485_s8 + $0x3e8] sm:$0xff]  ;;  %v4026_v46 = vadd.f32 %v13018_v17, %v12973_v52  ;;  %v4161_v52 = vld [vmem:[%s12485_s8 + $0x3f8] sm:$0xff] }
 0x5ff   : > { %9701 = vmatmul.mubr.msk.f32.gmra.mrb[84].mxu0 %vm2944_vm0, %v5397_v4  ;;  %v5399_v55 = vmax.f32 %v4789_v10, 0.0  ;;  %v4160_v4 = vld [vmem:[%s12485_s8 + $0x3f0] sm:$0xff]  ;;  %v4287_v58 = vmul.f32 %v4159_v47, %v4021_v9 }
 0x600   : > { %v5398_v39 = vmax.f32 %v4784_v36, 0.0  ;;  %v9508_v6 = vpop.f32.mrb[56].mxu1  ;;  %v4288_v23 = vmul.f32 %v4160_v4, %v4026_v46 }
 0x601   : > { %v4799_v26 = vadd.f32 %v9508_v6, %v12980_v42  ;;  %v4793_v13 = vpop.f32.mrb[57].mxu1  ;;  %9666 = vmatmul.mubr.msk.f32.gmra.mrb[162].mxu1 %vm2944_vm0, %v4277_v41 }
 0x602   : > { %v4794_v16 = vadd.f32 %v12980_v42, %v4793_v13  ;;  %9668 = vmatprep.mubr.msk.f32.mxu1 %vm2944_vm0, %v4278_v22  ;;  %9703 = vmatprep.mubr.msk.f32.mxu0 %vm2944_vm0, %v5398_v39 }
 0x603   : > { %9704 = vmatmul.mubr.msk.f32.gmra.mrb[86].mxu0 %vm2944_vm0, %v5399_v55  ;;  %v5401_v34 = vmax.f32 %v4799_v26, 0.0  ;;  %v4289_v26 = vmul.f32 %v4161_v52, %v4031_v59 }
 0x604   : > { %v5400_v8 = vmax.f32 %v4794_v16, 0.0  ;;  %v9511_v3 = vpop.f32.mrb[58].mxu1 }
 0x605   : > { %v4809_v15 = vadd.f32 %v9511_v3, %v12980_v42  ;;  %v4803_v12 = vpop.f32.mrb[59].mxu1  ;;  %9669 = vmatmul.mubr.msk.f32.gmra.mrb[164].mxu1 %vm2944_vm0, %v4279_v49 }
 0x606   : > { %v4804_v33 = vadd.f32 %v12980_v42, %v4803_v12  ;;  %9671 = vmatprep.mubr.msk.f32.mxu1 %vm2944_vm0, %v4280_v25  ;;  %9706 = vmatprep.mubr.msk.f32.mxu0 %vm2944_vm0, %v5400_v8 }
 0x607   : > { %9707 = vmatmul.mubr.msk.f32.gmra.mrb[88].mxu0 %vm2944_vm0, %v5401_v34  ;;  %v5403_v14 = vmax.f32 %v4809_v15, 0.0 }
 0x608   : > { %v5402_v35 = vmax.f32 %v4804_v33, 0.0  ;;  %v9514_v37 = vpop.f32.mrb[60].mxu1 }
 0x609   : > { %v4819_v51 = vadd.f32 %v9514_v37, %v12980_v42  ;;  %v4813_v44 = vpop.f32.mrb[61].mxu1  ;;  %9672 = vmatmul.mubr.msk.f32.gmra.mrb[166].mxu1 %vm2944_vm0, %v4281_v56 }
 0x60a   : > { %v4814_v7 = vadd.f32 %v12980_v42, %v4813_v44  ;;  %9674 = vmatprep.mubr.msk.f32.mxu1 %vm2944_vm0, %v4282_v43  ;;  %9709 = vmatprep.mubr.msk.f32.mxu0 %vm2944_vm0, %v5402_v35 }
 0x60b   : > { %9710 = vmatmul.mubr.msk.f32.gmra.mrb[90].mxu0 %vm2944_vm0, %v5403_v14  ;;  %v5405_v57 = vmax.f32 %v4819_v51, 0.0 }
 0x60c   : > { %v5404_v60 = vmax.f32 %v4814_v7, 0.0  ;;  %v9517_v38 = vpop.f32.mrb[62].mxu1 }
 0x60d   : > { %v4829_v63 = vadd.f32 %v9517_v38, %v12980_v42  ;;  %v4823_v50 = vpop.f32.mrb[63].mxu1  ;;  %9675 = vmatmul.mubr.msk.f32.gmra.mrb[168].mxu1 %vm2944_vm0, %v4283_v28 }
 0x60e   : > { %v4824_v24 = vadd.f32 %v12980_v42, %v4823_v50  ;;  %9677 = vmatprep.mubr.msk.f32.mxu1 %vm2944_vm0, %v4284_v40  ;;  %9712 = vmatprep.mubr.msk.f32.mxu0 %vm2944_vm0, %v5404_v60 }
 0x60f   : > { %9713 = vmatmul.mubr.msk.f32.gmra.mrb[92].mxu0 %vm2944_vm0, %v5405_v57  ;;  %v5407_v10 = vmax.f32 %v4829_v63, 0.0 }
 0x610   : > { %v5406_v45 = vmax.f32 %v4824_v24, 0.0  ;;  %v9520_v53 = vpop.f32.mrb[64].mxu1 }
 0x611   : > { %v4839_v11 = vadd.f32 %v9520_v53, %v12980_v42  ;;  %v4833_v36 = vpop.f32.mrb[65].mxu1  ;;  %9678 = vmatmul.mubr.msk.f32.gmra.mrb[170].mxu1 %vm2944_vm0, %v4285_v54 }
 0x612   : > { %v4834_v41 = vadd.f32 %v12980_v42, %v4833_v36  ;;  %9680 = vmatprep.mubr.msk.f32.mxu1 %vm2944_vm0, %v4286_v20  ;;  %9715 = vmatprep.mubr.msk.f32.mxu0 %vm2944_vm0, %v5406_v45 }
 0x613   : > { %9716 = vmatmul.mubr.msk.f32.gmra.mrb[94].mxu0 %vm2944_vm0, %v5407_v10  ;;  %v5409_v39 = vmax.f32 %v4839_v11, 0.0 }
 0x614   : > { %v5408_v22 = vmax.f32 %v4834_v41, 0.0  ;;  %v9523_v18 = vpop.f32.mrb[66].mxu1 }
 0x615   : > { %v4849_v6 = vadd.f32 %v9523_v18, %v12980_v42  ;;  %v4843_v30 = vpop.f32.mrb[67].mxu1  ;;  %9681 = vmatmul.mubr.msk.f32.gmra.mrb[172].mxu1 %vm2944_vm0, %v4287_v58 }
 0x616   : > { %v4844_v55 = vadd.f32 %v12980_v42, %v4843_v30  ;;  %9683 = vmatprep.mubr.msk.f32.mxu1 %vm2944_vm0, %v4288_v23  ;;  %9718 = vmatprep.mubr.msk.f32.mxu0 %vm2944_vm0, %v5408_v22 }
 0x617   : > { %9719 = vmatmul.mubr.msk.f32.gmra.mrb[96].mxu0 %vm2944_vm0, %v5409_v39  ;;  %v5411_v13 = vmax.f32 %v4849_v6, 0.0 }
 0x618   : > { %v5410_v31 = vmax.f32 %v4844_v55, 0.0  ;;  %v9526_v17 = vpop.f32.mrb[68].mxu1 }
 0x619   : > { %v4859_v16 = vadd.f32 %v9526_v17, %v12980_v42  ;;  %v4853_v49 = vpop.f32.mrb[69].mxu1  ;;  %9684 = vmatmul.mubr.msk.f32.gmra.mrb[174].mxu1 %vm2944_vm0, %v4289_v26  ;;  %v8804_v26 = vld [vmem:[%s14424_s2 + $0x80] sm:$0xff] }
 0x61a   : > { %v4854_v2 = vadd.f32 %v12980_v42, %v4853_v49  ;;  %9721 = vmatprep.mubr.msk.f32.mxu0 %vm2944_vm0, %v5410_v31  ;;  %v8805_v31 = vld [vmem:[%s14424_s2 + $0x88] sm:$0xff] }
 0x61b   : > { %9722 = vmatmul.mubr.msk.f32.gmra.mrb[98].mxu0 %vm2944_vm0, %v5411_v13  ;;  %v5413_v32 = vmax.f32 %v4859_v16, 0.0  ;;  %v9974_v49 = vpack.c.bf16 %v8805_v31, %v8804_v26 }
 0x61c   : > { %v5412_v48 = vmax.f32 %v4854_v2, 0.0  ;;  %v9529_v25 = vpop.f32.mrb[70].mxu1 }
 0x61d   : > { %v4869_v8 = vadd.f32 %v9529_v25, %v12980_v42  ;;  %v4863_v3 = vpop.f32.mrb[71].mxu1  ;;  %9975 = vmatprep.subr.bf16.mxu1 %v9974_v49 }
 0x61e   : > { %v4864_v61 = vadd.f32 %v12980_v42, %v4863_v3  ;;  %9724 = vmatprep.mubr.msk.f32.mxu0 %vm2944_vm0, %v5412_v48  ;;  %9977 = vmatpush3.bf16.msra.mxu1 %v9974_v49 }
 0x61f   : > { %9725 = vmatmul.mubr.msk.f32.gmra.mrb[100].mxu0 %vm2944_vm0, %v5413_v32  ;;  %v5415_v12 = vmax.f32 %v4869_v8, 0.0 }
 0x620   : > { %v5414_v34 = vmax.f32 %v4864_v61, 0.0  ;;  %v9532_v15 = vpop.f32.mrb[72].mxu1 }
 0x621   : > { %v4879_v33 = vadd.f32 %v9532_v15, %v12980_v42  ;;  %v4873_v56 = vpop.f32.mrb[73].mxu1 }
 0x622   : > { %v4874_v5 = vadd.f32 %v12980_v42, %v4873_v56  ;;  %9727 = vmatprep.mubr.msk.f32.mxu0 %vm2944_vm0, %v5414_v34 }
 0x623   : > { %9728 = vmatmul.mubr.msk.f32.gmra.mrb[102].mxu0 %vm2944_vm0, %v5415_v12  ;;  %v5417_v19 = vmax.f32 %v4879_v33, 0.0 }
 0x624   : > { %v5416_v1 = vmax.f32 %v4874_v5, 0.0  ;;  %v9535_v43 = vpop.f32.mrb[74].mxu1 }
 0x625   : > { %v4889_v35 = vadd.f32 %v9535_v43, %v12980_v42  ;;  %v4883_v37 = vpop.f32.mrb[75].mxu1 }
 0x626   : > { %v4884_v29 = vadd.f32 %v12980_v42, %v4883_v37  ;;  %9730 = vmatprep.mubr.msk.f32.mxu0 %vm2944_vm0, %v5416_v1 }
 0x627   : > { %9731 = vmatmul.mubr.msk.f32.gmra.mrb[104].mxu0 %vm2944_vm0, %v5417_v19  ;;  %v5419_v44 = vmax.f32 %v4889_v35, 0.0 }
 0x628   : > { %v5418_v14 = vmax.f32 %v4884_v29, 0.0  ;;  %v9538_v51 = vpop.f32.mrb[76].mxu1 }
 0x629   : > { %v4899_v7 = vadd.f32 %v9538_v51, %v12980_v42  ;;  %v4893_v28 = vpop.f32.mrb[77].mxu1 }
 0x62a   : > { %v4894_v0 = vadd.f32 %v12980_v42, %v4893_v28  ;;  %9733 = vmatprep.mubr.msk.f32.mxu0 %vm2944_vm0, %v5418_v14 }
 0x62b   : > { %9734 = vmatmul.mubr.msk.f32.gmra.mrb[106].mxu0 %vm2944_vm0, %v5419_v44  ;;  %v5421_v27 = vmax.f32 %v4899_v7, 0.0 }
 0x62c   : > { %v5420_v21 = vmax.f32 %v4894_v0, 0.0  ;;  %v9541_v40 = vpop.f32.mrb[78].mxu1 }
 0x62d   : > { %v4909_v60 = vadd.f32 %v9541_v40, %v12980_v42  ;;  %v4903_v38 = vpop.f32.mrb[79].mxu1 }
 0x62e   : > { %v4904_v62 = vadd.f32 %v12980_v42, %v4903_v38  ;;  %9736 = vmatprep.mubr.msk.f32.mxu0 %vm2944_vm0, %v5420_v21 }
 0x62f   : > { %9737 = vmatmul.mubr.msk.f32.gmra.mrb[108].mxu0 %vm2944_vm0, %v5421_v27  ;;  %v5423_v50 = vmax.f32 %v4909_v60, 0.0 }
 0x630   : > { %v5422_v57 = vmax.f32 %v4904_v62, 0.0  ;;  %v9544_v63 = vpop.f32.mrb[80].mxu1 }
 0x631   : > { %v4919_v24 = vadd.f32 %v9544_v63, %v12980_v42  ;;  %v4913_v54 = vpop.f32.mrb[81].mxu1 }
 0x632   : > { %v4914_v9 = vadd.f32 %v12980_v42, %v4913_v54  ;;  %9739 = vmatprep.mubr.msk.f32.mxu0 %vm2944_vm0, %v5422_v57 }
 0x633   : > { %9740 = vmatmul.mubr.msk.f32.gmra.mrb[110].mxu0 %vm2944_vm0, %v5423_v50  ;;  %v5425_v46 = vmax.f32 %v4919_v24, 0.0 }
 0x634   : > { %v5424_v47 = vmax.f32 %v4914_v9, 0.0  ;;  %v9547_v20 = vpop.f32.mrb[82].mxu1 }
 0x635   : > { %v4929_v45 = vadd.f32 %v9547_v20, %v12980_v42  ;;  %v4923_v53 = vpop.f32.mrb[83].mxu1 }
 0x636   : > { %v4924_v4 = vadd.f32 %v12980_v42, %v4923_v53  ;;  %9742 = vmatprep.mubr.msk.f32.mxu0 %vm2944_vm0, %v5424_v47 }
 0x637   : > { %9743 = vmatmul.mubr.msk.f32.gmra.mrb[112].mxu0 %vm2944_vm0, %v5425_v46  ;;  %v5427_v36 = vmax.f32 %v4929_v45, 0.0 }
 0x638   : > { %v5426_v10 = vmax.f32 %v4924_v4, 0.0  ;;  %v9550_v11 = vpop.f32.mrb[84].mxu1 }
 0x639   : > { %v4939_v41 = vadd.f32 %v9550_v11, %v12980_v42  ;;  %v4933_v58 = vpop.f32.mrb[85].mxu1 }
 0x63a   : > { %v4934_v59 = vadd.f32 %v12980_v42, %v4933_v58  ;;  %9745 = vmatprep.mubr.msk.f32.mxu0 %vm2944_vm0, %v5426_v10 }
 0x63b   : > { %9746 = vmatmul.mubr.msk.f32.gmra.mrb[114].mxu0 %vm2944_vm0, %v5427_v36  ;;  %v5429_v22 = vmax.f32 %v4939_v41, 0.0 }
 0x63c   : > { %v5428_v52 = vmax.f32 %v4934_v59, 0.0  ;;  %v9553_v23 = vpop.f32.mrb[86].mxu1 }
 0x63d   : > { %v4949_v18 = vadd.f32 %v9553_v23, %v12980_v42  ;;  %v4943_v39 = vpop.f32.mrb[87].mxu1 }
 0x63e   : > { %v4944_v6 = vadd.f32 %v12980_v42, %v4943_v39  ;;  %9748 = vmatprep.mubr.msk.f32.mxu0 %vm2944_vm0, %v5428_v52 }
 0x63f   : > { %9749 = vmatmul.mubr.msk.f32.gmra.mrb[116].mxu0 %vm2944_vm0, %v5429_v22  ;;  %v5431_v17 = vmax.f32 %v4949_v18, 0.0 }
 0x640   : > { %v5430_v30 = vmax.f32 %v4944_v6, 0.0  ;;  %v9556_v55 = vpop.f32.mrb[88].mxu1 }
 0x641   : > { %v4959_v13 = vadd.f32 %v9556_v55, %v12980_v42  ;;  %v4953_v16 = vpop.f32.mrb[89].mxu1 }
 0x642   : > { %v4954_v2 = vadd.f32 %v12980_v42, %v4953_v16  ;;  %9751 = vmatprep.mubr.msk.f32.mxu0 %vm2944_vm0, %v5430_v30 }
 0x643   : > { %9752 = vmatmul.mubr.msk.f32.gmra.mrb[118].mxu0 %vm2944_vm0, %v5431_v17  ;;  %v5433_v32 = vmax.f32 %v4959_v13, 0.0 }
 0x644   : > { %v5432_v48 = vmax.f32 %v4954_v2, 0.0  ;;  %v9559_v25 = vpop.f32.mrb[90].mxu1 }
 0x645   : > { %v4969_v8 = vadd.f32 %v9559_v25, %v12980_v42  ;;  %v4963_v3 = vpop.f32.mrb[91].mxu1 }
 0x646   : > { %v4964_v61 = vadd.f32 %v12980_v42, %v4963_v3  ;;  %9754 = vmatprep.mubr.msk.f32.mxu0 %vm2944_vm0, %v5432_v48 }
 0x647   : > { %9755 = vmatmul.mubr.msk.f32.gmra.mrb[120].mxu0 %vm2944_vm0, %v5433_v32  ;;  %v5435_v12 = vmax.f32 %v4969_v8, 0.0 }
 0x648   : > { %v5434_v34 = vmax.f32 %v4964_v61, 0.0  ;;  %v9562_v15 = vpop.f32.mrb[92].mxu1 }
 0x649   : > { %v4979_v33 = vadd.f32 %v9562_v15, %v12980_v42  ;;  %v4973_v56 = vpop.f32.mrb[93].mxu1 }
 0x64a   : > { %v4974_v5 = vadd.f32 %v12980_v42, %v4973_v56  ;;  %9757 = vmatprep.mubr.msk.f32.mxu0 %vm2944_vm0, %v5434_v34 }
 0x64b   : > { %9758 = vmatmul.mubr.msk.f32.gmra.mrb[122].mxu0 %vm2944_vm0, %v5435_v12  ;;  %v5437_v19 = vmax.f32 %v4979_v33, 0.0 }
 0x64c   : > { %v5436_v1 = vmax.f32 %v4974_v5, 0.0  ;;  %v9565_v43 = vpop.f32.mrb[94].mxu1 }
 0x64d   : > { %v4989_v35 = vadd.f32 %v9565_v43, %v12980_v42  ;;  %v4983_v37 = vpop.f32.mrb[95].mxu1 }
 0x64e   : > { %v4984_v29 = vadd.f32 %v12980_v42, %v4983_v37  ;;  %9760 = vmatprep.mubr.msk.f32.mxu0 %vm2944_vm0, %v5436_v1 }
 0x64f   : > { %9761 = vmatmul.mubr.msk.f32.gmra.mrb[124].mxu0 %vm2944_vm0, %v5437_v19  ;;  %v5439_v44 = vmax.f32 %v4989_v35, 0.0 }
 0x650   : > { %v5438_v14 = vmax.f32 %v4984_v29, 0.0  ;;  %v9568_v51 = vpop.f32.mrb[96].mxu1 }
 0x651   : > { %v4999_v7 = vadd.f32 %v9568_v51, %v12980_v42  ;;  %v4993_v28 = vpop.f32.mrb[97].mxu1 }
 0x652   : > { %v4994_v0 = vadd.f32 %v12980_v42, %v4993_v28  ;;  %9763 = vmatprep.mubr.msk.f32.mxu0 %vm2944_vm0, %v5438_v14 }
 0x653   : > { %9764 = vmatmul.mubr.msk.f32.gmra.mrb[126].mxu0 %vm2944_vm0, %v5439_v44  ;;  %v5441_v27 = vmax.f32 %v4999_v7, 0.0 }
 0x654   : > { %v5440_v21 = vmax.f32 %v4994_v0, 0.0  ;;  %v9571_v40 = vpop.f32.mrb[98].mxu1 }
 0x655   : > { %v5009_v60 = vadd.f32 %v9571_v40, %v12980_v42  ;;  %v5003_v38 = vpop.f32.mrb[99].mxu1 }
 0x656   : > { %v5004_v62 = vadd.f32 %v12980_v42, %v5003_v38  ;;  %9766 = vmatprep.mubr.msk.f32.mxu0 %vm2944_vm0, %v5440_v21 }
 0x657   : > { %9767 = vmatmul.mubr.msk.f32.gmra.mrb[128].mxu0 %vm2944_vm0, %v5441_v27  ;;  %v5443_v50 = vmax.f32 %v5009_v60, 0.0 }
 0x658   : > { %v5442_v57 = vmax.f32 %v5004_v62, 0.0  ;;  %v9574_v63 = vpop.f32.mrb[100].mxu1 }
 0x659   : > { %v5019_v24 = vadd.f32 %v9574_v63, %v12980_v42  ;;  %v5013_v54 = vpop.f32.mrb[101].mxu1 }
 0x65a   : > { %v5014_v9 = vadd.f32 %v12980_v42, %v5013_v54  ;;  %9769 = vmatprep.mubr.msk.f32.mxu0 %vm2944_vm0, %v5442_v57 }
 0x65b   : > { %9770 = vmatmul.mubr.msk.f32.gmra.mrb[130].mxu0 %vm2944_vm0, %v5443_v50  ;;  %v5445_v46 = vmax.f32 %v5019_v24, 0.0 }
 0x65c   : > { %v5444_v47 = vmax.f32 %v5014_v9, 0.0  ;;  %v9577_v20 = vpop.f32.mrb[102].mxu1 }
 0x65d   : > { %v5029_v45 = vadd.f32 %v9577_v20, %v12980_v42  ;;  %v5023_v53 = vpop.f32.mrb[103].mxu1 }
 0x65e   : > { %v5024_v4 = vadd.f32 %v12980_v42, %v5023_v53  ;;  %9772 = vmatprep.mubr.msk.f32.mxu0 %vm2944_vm0, %v5444_v47 }
 0x65f   : > { %9773 = vmatmul.mubr.msk.f32.gmra.mrb[132].mxu0 %vm2944_vm0, %v5445_v46  ;;  %v5447_v36 = vmax.f32 %v5029_v45, 0.0 }
 0x660   : > { %v5446_v10 = vmax.f32 %v5024_v4, 0.0  ;;  %v9580_v11 = vpop.f32.mrb[104].mxu1 }
 0x661   : > { %v5039_v41 = vadd.f32 %v9580_v11, %v12980_v42  ;;  %v5033_v58 = vpop.f32.mrb[105].mxu1 }
 0x662   : > { %v5034_v59 = vadd.f32 %v12980_v42, %v5033_v58  ;;  %9775 = vmatprep.mubr.msk.f32.mxu0 %vm2944_vm0, %v5446_v10 }
 0x663   : > { %9776 = vmatmul.mubr.msk.f32.gmra.mrb[134].mxu0 %vm2944_vm0, %v5447_v36  ;;  %v5449_v22 = vmax.f32 %v5039_v41, 0.0 }
 0x664   : > { %v5448_v52 = vmax.f32 %v5034_v59, 0.0  ;;  %v9583_v23 = vpop.f32.mrb[106].mxu1  ;;  %v8806_v59 = vld [vmem:[%s14424_s2 + $0x90] sm:$0xff] }
 0x665   : > { %v5049_v18 = vadd.f32 %v9583_v23, %v12980_v42  ;;  %v5043_v39 = vpop.f32.mrb[107].mxu1 }
 0x666   : > { %v5044_v6 = vadd.f32 %v12980_v42, %v5043_v39  ;;  %9778 = vmatprep.mubr.msk.f32.mxu0 %vm2944_vm0, %v5448_v52  ;;  %v8807_v52 = vld [vmem:[%s14424_s2 + $0x98] sm:$0xff] }
 0x667   : > { %9779 = vmatmul.mubr.msk.f32.gmra.mrb[136].mxu0 %vm2944_vm0, %v5449_v22  ;;  %v5451_v26 = vmax.f32 %v5049_v18, 0.0  ;;  %v9978_v39 = vpack.c.bf16 %v8807_v52, %v8806_v59 }
 0x668   : > { %v5450_v30 = vmax.f32 %v5044_v6, 0.0  ;;  %v9586_v55 = vpop.f32.mrb[108].mxu1 }
 0x669   : > { %v5059_v31 = vadd.f32 %v9586_v55, %v12980_v42  ;;  %v5053_v17 = vpop.f32.mrb[109].mxu1  ;;  %9979 = vmatprep.subr.bf16.mxu1 %v9978_v39 }
 0x66a   : > { %v5054_v13 = vadd.f32 %v12980_v42, %v5053_v17  ;;  %9781 = vmatprep.mubr.msk.f32.mxu0 %vm2944_vm0, %v5450_v30  ;;  %9981 = vmatpush3.bf16.msra.mxu1 %v9978_v39 }
 0x66b   : > { %9782 = vmatmul.mubr.msk.f32.gmra.mrb[138].mxu0 %vm2944_vm0, %v5451_v26  ;;  %v5453_v2 = vmax.f32 %v5059_v31, 0.0 }
 0x66c   : > { %v5452_v16 = vmax.f32 %v5054_v13, 0.0  ;;  %v9589_v49 = vpop.f32.mrb[110].mxu1 }
 0x66d   : > { %v5069_v48 = vadd.f32 %v9589_v49, %v12980_v42  ;;  %v5063_v25 = vpop.f32.mrb[111].mxu1 }
 0x66e   : > { %v5064_v32 = vadd.f32 %v12980_v42, %v5063_v25  ;;  %9784 = vmatprep.mubr.msk.f32.mxu0 %vm2944_vm0, %v5452_v16 }
 0x66f   : > { %9785 = vmatmul.mubr.msk.f32.gmra.mrb[140].mxu0 %vm2944_vm0, %v5453_v2  ;;  %v5455_v61 = vmax.f32 %v5069_v48, 0.0 }
 0x670   : > { %v5454_v8 = vmax.f32 %v5064_v32, 0.0  ;;  %v9592_v3 = vpop.f32.mrb[112].mxu1 }
 0x671   : > { %v5079_v34 = vadd.f32 %v9592_v3, %v12980_v42  ;;  %v5073_v15 = vpop.f32.mrb[113].mxu1 }
 0x672   : > { %v5074_v12 = vadd.f32 %v12980_v42, %v5073_v15  ;;  %9787 = vmatprep.mubr.msk.f32.mxu0 %vm2944_vm0, %v5454_v8 }
 0x673   : > { %9788 = vmatmul.mubr.msk.f32.gmra.mrb[142].mxu0 %vm2944_vm0, %v5455_v61  ;;  %v5457_v5 = vmax.f32 %v5079_v34, 0.0 }
 0x674   : > { %v5456_v33 = vmax.f32 %v5074_v12, 0.0  ;;  %v9595_v56 = vpop.f32.mrb[114].mxu1 }
 0x675   : > { %v5089_v1 = vadd.f32 %v9595_v56, %v12980_v42  ;;  %v5083_v43 = vpop.f32.mrb[115].mxu1 }
 0x676   : > { %v5084_v19 = vadd.f32 %v12980_v42, %v5083_v43  ;;  %9790 = vmatprep.mubr.msk.f32.mxu0 %vm2944_vm0, %v5456_v33 }
 0x677   : > { %9791 = vmatmul.mubr.msk.f32.gmra.mrb[144].mxu0 %vm2944_vm0, %v5457_v5  ;;  %v5459_v29 = vmax.f32 %v5089_v1, 0.0 }
 0x678   : > { %v5458_v35 = vmax.f32 %v5084_v19, 0.0  ;;  %v9598_v37 = vpop.f32.mrb[116].mxu1 }
 0x679   : > { %v5099_v14 = vadd.f32 %v9598_v37, %v12980_v42  ;;  %v5093_v51 = vpop.f32.mrb[117].mxu1 }
 0x67a   : > { %v5094_v44 = vadd.f32 %v12980_v42, %v5093_v51  ;;  %9793 = vmatprep.mubr.msk.f32.mxu0 %vm2944_vm0, %v5458_v35 }
 0x67b   : > { %9794 = vmatmul.mubr.msk.f32.gmra.mrb[146].mxu0 %vm2944_vm0, %v5459_v29  ;;  %v5461_v0 = vmax.f32 %v5099_v14, 0.0 }
 0x67c   : > { %v5460_v7 = vmax.f32 %v5094_v44, 0.0  ;;  %v9601_v28 = vpop.f32.mrb[118].mxu1 }
 0x67d   : > { %v5109_v21 = vadd.f32 %v9601_v28, %v12980_v42  ;;  %v5103_v40 = vpop.f32.mrb[119].mxu1 }
 0x67e   : > { %v5104_v27 = vadd.f32 %v12980_v42, %v5103_v40  ;;  %9796 = vmatprep.mubr.msk.f32.mxu0 %vm2944_vm0, %v5460_v7 }
 0x67f   : > { %9797 = vmatmul.mubr.msk.f32.gmra.mrb[148].mxu0 %vm2944_vm0, %v5461_v0  ;;  %v5463_v62 = vmax.f32 %v5109_v21, 0.0 }
 0x680   : > { %v5462_v60 = vmax.f32 %v5104_v27, 0.0  ;;  %v9604_v38 = vpop.f32.mrb[120].mxu1 }
 0x681   : > { %v5119_v57 = vadd.f32 %v9604_v38, %v12980_v42  ;;  %v5113_v63 = vpop.f32.mrb[121].mxu1 }
 0x682   : > { %v5114_v50 = vadd.f32 %v12980_v42, %v5113_v63  ;;  %9799 = vmatprep.mubr.msk.f32.mxu0 %vm2944_vm0, %v5462_v60 }
 0x683   : > { %9800 = vmatmul.mubr.msk.f32.gmra.mrb[150].mxu0 %vm2944_vm0, %v5463_v62  ;;  %v5465_v9 = vmax.f32 %v5119_v57, 0.0 }
 0x684   : > { %v5464_v24 = vmax.f32 %v5114_v50, 0.0  ;;  %v9607_v54 = vpop.f32.mrb[122].mxu1 }
 0x685   : > { %v5129_v47 = vadd.f32 %v9607_v54, %v12980_v42  ;;  %v5123_v20 = vpop.f32.mrb[123].mxu1 }
 0x686   : > { %v5124_v46 = vadd.f32 %v12980_v42, %v5123_v20  ;;  %9802 = vmatprep.mubr.msk.f32.mxu0 %vm2944_vm0, %v5464_v24 }
 0x687   : > { %9803 = vmatmul.mubr.msk.f32.gmra.mrb[152].mxu0 %vm2944_vm0, %v5465_v9  ;;  %v5467_v4 = vmax.f32 %v5129_v47, 0.0 }
 0x688   : > { %v5466_v45 = vmax.f32 %v5124_v46, 0.0  ;;  %v9610_v53 = vpop.f32.mrb[124].mxu1 }
 0x689   : > { %v5139_v10 = vadd.f32 %v9610_v53, %v12980_v42  ;;  %v5133_v11 = vpop.f32.mrb[125].mxu1 }
 0x68a   : > { %v5134_v36 = vadd.f32 %v12980_v42, %v5133_v11  ;;  %9805 = vmatprep.mubr.msk.f32.mxu0 %vm2944_vm0, %v5466_v45 }
 0x68b   : > { %9806 = vmatmul.mubr.msk.f32.gmra.mrb[154].mxu0 %vm2944_vm0, %v5467_v4  ;;  %v5469_v23 = vmax.f32 %v5139_v10, 0.0 }
 0x68c   : > { %v5468_v41 = vmax.f32 %v5134_v36, 0.0  ;;  %v9613_v58 = vpop.f32.mrb[126].mxu1 }
 0x68d   : > { %v5149_v22 = vadd.f32 %v9613_v58, %v12980_v42  ;;  %v5143_v18 = vpop.f32.mrb[127].mxu1 }
 0x68e   : > { %v5144_v6 = vadd.f32 %v12980_v42, %v5143_v18  ;;  %9808 = vmatprep.mubr.msk.f32.mxu0 %vm2944_vm0, %v5468_v41 }
 0x68f   : > { %9809 = vmatmul.mubr.msk.f32.gmra.mrb[156].mxu0 %vm2944_vm0, %v5469_v23  ;;  %v5471_v26 = vmax.f32 %v5149_v22, 0.0 }
 0x690   : > { %v5470_v30 = vmax.f32 %v5144_v6, 0.0  ;;  %v9616_v55 = vpop.f32.mrb[128].mxu1 }
 0x691   : > { %v5159_v31 = vadd.f32 %v9616_v55, %v12980_v42  ;;  %v5153_v17 = vpop.f32.mrb[129].mxu1 }
 0x692   : > { %v5154_v13 = vadd.f32 %v12980_v42, %v5153_v17  ;;  %9811 = vmatprep.mubr.msk.f32.mxu0 %vm2944_vm0, %v5470_v30 }
 0x693   : > { %9812 = vmatmul.mubr.msk.f32.gmra.mrb[158].mxu0 %vm2944_vm0, %v5471_v26  ;;  %v5473_v2 = vmax.f32 %v5159_v31, 0.0 }
 0x694   : > { %v5472_v16 = vmax.f32 %v5154_v13, 0.0  ;;  %v9619_v49 = vpop.f32.mrb[130].mxu1 }
 0x695   : > { %v5169_v48 = vadd.f32 %v9619_v49, %v12980_v42  ;;  %v5163_v25 = vpop.f32.mrb[131].mxu1 }
 0x696   : > { %v5164_v32 = vadd.f32 %v12980_v42, %v5163_v25  ;;  %9814 = vmatprep.mubr.msk.f32.mxu0 %vm2944_vm0, %v5472_v16 }
 0x697   : > { %9815 = vmatmul.mubr.msk.f32.gmra.mrb[160].mxu0 %vm2944_vm0, %v5473_v2  ;;  %v5475_v61 = vmax.f32 %v5169_v48, 0.0 }
 0x698   : > { %v5474_v8 = vmax.f32 %v5164_v32, 0.0  ;;  %v9622_v3 = vpop.f32.mrb[132].mxu1 }
 0x699   : > { %v5179_v34 = vadd.f32 %v9622_v3, %v12980_v42  ;;  %v5173_v15 = vpop.f32.mrb[133].mxu1 }
 0x69a   : > { %v5174_v12 = vadd.f32 %v12980_v42, %v5173_v15  ;;  %9817 = vmatprep.mubr.msk.f32.mxu0 %vm2944_vm0, %v5474_v8 }
 0x69b   : > { %9818 = vmatmul.mubr.msk.f32.gmra.mrb[162].mxu0 %vm2944_vm0, %v5475_v61  ;;  %v5477_v5 = vmax.f32 %v5179_v34, 0.0 }
 0x69c   : > { %v5476_v33 = vmax.f32 %v5174_v12, 0.0  ;;  %v9625_v56 = vpop.f32.mrb[134].mxu1 }
 0x69d   : > { %v5189_v1 = vadd.f32 %v9625_v56, %v12980_v42  ;;  %v5183_v43 = vpop.f32.mrb[135].mxu1 }
 0x69e   : > { %v5184_v19 = vadd.f32 %v12980_v42, %v5183_v43  ;;  %9820 = vmatprep.mubr.msk.f32.mxu0 %vm2944_vm0, %v5476_v33  ;;  %v13290_v33 = vld [vmem:[%s14425_s3 + $0x2] ss:$0 sm:$0xff] }
 0x69f   : > { %9821 = vmatmul.mubr.msk.f32.gmra.mrb[164].mxu0 %vm2944_vm0, %v5477_v5  ;;  %v5479_v29 = vmax.f32 %v5189_v1, 0.0 }
 0x6a0   : > { %v5478_v35 = vmax.f32 %v5184_v19, 0.0  ;;  %v9628_v37 = vpop.f32.mrb[136].mxu1  ;;  %v13299_v19 = vld [vmem:[%s14425_s3 + $0x3] ss:$0 sm:$0xff] }
 0x6a1   : > { %v5199_v14 = vadd.f32 %v9628_v37, %v12980_v42  ;;  %v5193_v51 = vpop.f32.mrb[137].mxu1 }
 0x6a2   : > { %v5194_v44 = vadd.f32 %v12980_v42, %v5193_v51  ;;  %9823 = vmatprep.mubr.msk.f32.mxu0 %vm2944_vm0, %v5478_v35 }
 0x6a3   : > { %9824 = vmatmul.mubr.msk.f32.gmra.mrb[166].mxu0 %vm2944_vm0, %v5479_v29  ;;  %v5481_v0 = vmax.f32 %v5199_v14, 0.0 }
 0x6a4   : > { %v5480_v7 = vmax.f32 %v5194_v44, 0.0  ;;  %v9631_v28 = vpop.f32.mrb[138].mxu1 }
 0x6a5   : > { %v5209_v21 = vadd.f32 %v9631_v28, %v12980_v42  ;;  %v5203_v40 = vpop.f32.mrb[139].mxu1 }
 0x6a6   : > { %v5204_v27 = vadd.f32 %v12980_v42, %v5203_v40  ;;  %9826 = vmatprep.mubr.msk.f32.mxu0 %vm2944_vm0, %v5480_v7 }
 0x6a7   : > { %9827 = vmatmul.mubr.msk.f32.gmra.mrb[168].mxu0 %vm2944_vm0, %v5481_v0  ;;  %v5483_v62 = vmax.f32 %v5209_v21, 0.0 }
 0x6a8   : > { %v5482_v60 = vmax.f32 %v5204_v27, 0.0  ;;  %v9634_v38 = vpop.f32.mrb[140].mxu1 }
 0x6a9   : > { %v5219_v57 = vadd.f32 %v9634_v38, %v12980_v42  ;;  %v5213_v63 = vpop.f32.mrb[141].mxu1 }
 0x6aa   : > { %v5214_v50 = vadd.f32 %v12980_v42, %v5213_v63  ;;  %9829 = vmatprep.mubr.msk.f32.mxu0 %vm2944_vm0, %v5482_v60 }
 0x6ab   : > { %9830 = vmatmul.mubr.msk.f32.gmra.mrb[170].mxu0 %vm2944_vm0, %v5483_v62  ;;  %v5485_v9 = vmax.f32 %v5219_v57, 0.0 }
 0x6ac   : > { %v5484_v24 = vmax.f32 %v5214_v50, 0.0  ;;  %v9637_v54 = vpop.f32.mrb[142].mxu1 }
 0x6ad   : > { %v5229_v47 = vadd.f32 %v9637_v54, %v12980_v42  ;;  %v5223_v20 = vpop.f32.mrb[143].mxu1 }
 0x6ae   : > { %v5224_v46 = vadd.f32 %v12980_v42, %v5223_v20  ;;  %9832 = vmatprep.mubr.msk.f32.mxu0 %vm2944_vm0, %v5484_v24 }
 0x6af   : > { %9833 = vmatmul.mubr.msk.f32.gmra.mrb[172].mxu0 %vm2944_vm0, %v5485_v9  ;;  %v5487_v4 = vmax.f32 %v5229_v47, 0.0 }
 0x6b0   : > { %v5486_v45 = vmax.f32 %v5224_v46, 0.0  ;;  %v9640_v53 = vpop.f32.mrb[144].mxu1 }
 0x6b1   : > { %v5239_v10 = vadd.f32 %v9640_v53, %v12980_v42  ;;  %v5233_v11 = vpop.f32.mrb[145].mxu1 }
 0x6b2   : > { %v5234_v36 = vadd.f32 %v12980_v42, %v5233_v11  ;;  %9835 = vmatprep.mubr.msk.f32.mxu0 %vm2944_vm0, %v5486_v45 }
 0x6b3   : > { %9836 = vmatmul.mubr.msk.f32.gmra.mrb[174].mxu0 %vm2944_vm0, %v5487_v4  ;;  %v5489_v59 = vmax.f32 %v5239_v10, 0.0 }
 0x6b4   : > { %v5488_v41 = vmax.f32 %v5234_v36, 0.0  ;;  %v9643_v58 = vpop.f32.mrb[146].mxu1 }
 0x6b5   : > { %v5249_v52 = vadd.f32 %v9643_v58, %v12980_v42  ;;  %v5243_v23 = vpop.f32.mrb[147].mxu1 }
 0x6b6   : > { %v5244_v22 = vadd.f32 %v12980_v42, %v5243_v23  ;;  %9838 = vmatprep.mubr.msk.f32.mxu0 %vm2944_vm0, %v5488_v41 }
 0x6b7   : > { %9839 = vmatmul.mubr.msk.f32.gmra.mrb[176].mxu0 %vm2944_vm0, %v5489_v59  ;;  %v5491_v6 = vmax.f32 %v5249_v52, 0.0 }
 0x6b8   : > { %v5490_v18 = vmax.f32 %v5244_v22, 0.0  ;;  %v9646_v39 = vpop.f32.mrb[148].mxu1 }
 0x6b9   : > { %v5259_v30 = vadd.f32 %v9646_v39, %v12980_v42  ;;  %v5253_v55 = vpop.f32.mrb[149].mxu1 }
 0x6ba   : > { %v5254_v26 = vadd.f32 %v12980_v42, %v5253_v55  ;;  %9841 = vmatprep.mubr.msk.f32.mxu0 %vm2944_vm0, %v5490_v18 }
 0x6bb   : > { %9842 = vmatmul.mubr.msk.f32.gmra.mrb[178].mxu0 %vm2944_vm0, %v5491_v6  ;;  %v5493_v13 = vmax.f32 %v5259_v30, 0.0 }
 0x6bc   : > { %v5492_v31 = vmax.f32 %v5254_v26, 0.0  ;;  %v9649_v17 = vpop.f32.mrb[150].mxu1 }
 0x6bd   : > { %v5269_v16 = vadd.f32 %v9649_v17, %v12980_v42  ;;  %v5263_v49 = vpop.f32.mrb[151].mxu1 }
 0x6be   : > { %v5264_v2 = vadd.f32 %v12980_v42, %v5263_v49  ;;  %9844 = vmatprep.mubr.msk.f32.mxu0 %vm2944_vm0, %v5492_v31 }
 0x6bf   : > { %9845 = vmatmul.mubr.msk.f32.gmra.mrb[180].mxu0 %vm2944_vm0, %v5493_v13  ;;  %v5495_v32 = vmax.f32 %v5269_v16, 0.0 }
 0x6c0   : > { %v5494_v48 = vmax.f32 %v5264_v2, 0.0  ;;  %v9652_v25 = vpop.f32.mrb[152].mxu1 }
 0x6c1   : > { %v5279_v8 = vadd.f32 %v9652_v25, %v12980_v42  ;;  %v5273_v3 = vpop.f32.mrb[153].mxu1 }
 0x6c2   : > { %v5274_v61 = vadd.f32 %v12980_v42, %v5273_v3  ;;  %9847 = vmatprep.mubr.msk.f32.mxu0 %vm2944_vm0, %v5494_v48 }
 0x6c3   : > { %9848 = vmatmul.mubr.msk.f32.gmra.mrb[182].mxu0 %vm2944_vm0, %v5495_v32  ;;  %v5497_v12 = vmax.f32 %v5279_v8, 0.0 }
 0x6c4   : > { %v5496_v34 = vmax.f32 %v5274_v61, 0.0  ;;  %v9655_v15 = vpop.f32.mrb[154].mxu1 }
 0x6c5   : > { %v5289_v56 = vadd.f32 %v13290_v33, %v9655_v15  ;;  %v5283_v5 = vpop.f32.mrb[155].mxu1 }
 0x6c6   : > { %v5284_v1 = vadd.f32 %v13290_v33, %v5283_v5  ;;  %9850 = vmatprep.mubr.msk.f32.mxu0 %vm2944_vm0, %v5496_v34 }
 0x6c7   : > { %9851 = vmatmul.mubr.msk.f32.gmra.mrb[184].mxu0 %vm2944_vm0, %v5497_v12  ;;  %v5499_v35 = vmax.f32 %v5289_v56, 0.0 }
 0x6c8   : > { %v5498_v42 = vmax.f32 %v5284_v1, 0.0  ;;  %v9658_v43 = vpop.f32.mrb[156].mxu1 }
 0x6c9   : > { %v5299_v37 = vadd.f32 %v13290_v33, %v9658_v43  ;;  %v5293_v29 = vpop.f32.mrb[157].mxu1 }
 0x6ca   : > { %v5294_v14 = vadd.f32 %v13290_v33, %v5293_v29  ;;  %v9696_v51 = vpop.f32.mrb[80].mxu0  ;;  %9853 = vmatprep.mubr.msk.f32.mxu0 %vm2944_vm0, %v5498_v42 }
 0x6cb   : > { %v5989_v44 = vadd.f32 %v9696_v51, %v13299_v19  ;;  %v5983_v7 = vpop.f32.mrb[81].mxu0  ;;  %9854 = vmatmul.mubr.msk.f32.gmra.mrb[186].mxu0 %vm2944_vm0, %v5499_v35  ;;  %v5501_v40 = vmax.f32 %v5299_v37, 0.0 }
 0x6cc   : > { %v5500_v28 = vmax.f32 %v5294_v14, 0.0  ;;  %v5984_v0 = vadd.f32 %v13299_v19, %v5983_v7  ;;  %v9661_v21 = vpop.f32.mrb[158].mxu1 }
 0x6cd   : > { %v6629_v27 = vsel %vm2944_vm0, %v5989_v44, 0.0  ;;  %v5309_v60 = vadd.f32 %v13290_v33, %v9661_v21  ;;  %v5303_v38 = vpop.f32.mrb[159].mxu1 }
 0x6ce   : > { %v6630_v62 = vrot.slane %v6629_v27, 4  ;;  %v6622_v57 = vsel %vm2944_vm0, %v5984_v0, 0.0  ;;  %v5304_v63 = vadd.f32 %v13290_v33, %v5303_v38  ;;  %v9699_v50 = vpop.f32.mrb[82].mxu0  ;;  %9856 = vmatprep.mubr.msk.f32.mxu0 %vm2944_vm0, %v5500_v28 }
 0x6cf   : > { %v6623_v24 = vrot.slane %v6622_v57, 4  ;;  %v5999_v54 = vadd.f32 %v9699_v50, %v13299_v19  ;;  %v5993_v9 = vpop.f32.mrb[83].mxu0  ;;  %9857 = vmatmul.mubr.msk.f32.gmra.mrb[188].mxu0 %vm2944_vm0, %v5501_v40  ;;  %v5503_v4 = vmax.f32 %v5309_v60, 0.0 }
 0x6d0   : > { %v6631_v47 = vadd.f32 %v6630_v62, %v6629_v27  ;;  %v5502_v20 = vmax.f32 %v5304_v63, 0.0  ;;  %v5994_v46 = vadd.f32 %v13299_v19, %v5993_v9  ;;  %v9664_v45 = vpop.f32.mrb[160].mxu1 }
 0x6d1   : > { %v6624_v53 = vadd.f32 %v6623_v24, %v6622_v57  ;;  %v6643_v10 = vsel %vm2944_vm0, %v5999_v54, 0.0  ;;  %v5319_v11 = vadd.f32 %v13290_v33, %v9664_v45  ;;  %v5313_v36 = vpop.f32.mrb[161].mxu1 }
 0x6d2   : > { %v6632_v41 = vrot.slane %v6631_v47, 2  ;;  %v6644_v58 = vrot.slane %v6643_v10, 4  ;;  %v6636_v59 = vsel %vm2944_vm0, %v5994_v46, 0.0  ;;  %v5314_v52 = vadd.f32 %v13290_v33, %v5313_v36  ;;  %v9702_v23 = vpop.f32.mrb[84].mxu0  ;;  %9859 = vmatprep.mubr.msk.f32.mxu0 %vm2944_vm0, %v5502_v20 }
 0x6d3   : > { %v6625_v22 = vrot.slane %v6624_v53, 2  ;;  %v6637_v18 = vrot.slane %v6636_v59, 4  ;;  %v5505_v39 = vmax.f32 %v5319_v11, 0.0  ;;  %v6009_v6 = vadd.f32 %v9702_v23, %v13299_v19  ;;  %v6003_v30 = vpop.f32.mrb[85].mxu0  ;;  %9860 = vmatmul.mubr.msk.f32.gmra.mrb[190].mxu0 %vm2944_vm0, %v5503_v4 }
 0x6d4   : > { %v6633_v55 = vadd.f32 %v6632_v41, %v6631_v47  ;;  %v6645_v26 = vadd.f32 %v6644_v58, %v6643_v10  ;;  %v5504_v31 = vmax.f32 %v5314_v52, 0.0  ;;  %v6004_v17 = vadd.f32 %v13299_v19, %v6003_v30  ;;  %v9667_v13 = vpop.f32.mrb[162].mxu1 }
 0x6d5   : > { %v6626_v16 = vadd.f32 %v6625_v22, %v6624_v53  ;;  %v6638_v49 = vadd.f32 %v6637_v18, %v6636_v59  ;;  %v6657_v2 = vsel %vm2944_vm0, %v6009_v6, 0.0  ;;  %v5329_v48 = vadd.f32 %v13290_v33, %v9667_v13  ;;  %v5323_v25 = vpop.f32.mrb[163].mxu1 }
 0x6d6   : > { %v6634_v32 = vrot.slane %v6633_v55, 1  ;;  %v6646_v8 = vrot.slane %v6645_v26, 2  ;;  %v6658_v3 = vrot.slane %v6657_v2, 4  ;;  %v6650_v61 = vsel %vm2944_vm0, %v6004_v17, 0.0  ;;  %v9705_v34 = vpop.f32.mrb[86].mxu0  ;;  %9862 = vmatprep.mubr.msk.f32.mxu0 %vm2944_vm0, %v5504_v31 }
 0x6d7   : > { %v6627_v15 = vrot.slane %v6626_v16, 1  ;;  %v6639_v12 = vrot.slane %v6638_v49, 2  ;;  %v6651_v56 = vrot.slane %v6650_v61, 4  ;;  %v5507_v5 = vmax.f32 %v5329_v48, 0.0  ;;  %v6013_v1 = vpop.f32.mrb[87].mxu0  ;;  %9863 = vmatmul.mubr.msk.f32.gmra.mrb[192].mxu0 %vm2944_vm0, %v5505_v39 }
 0x6d8   : > { %v6635_v42 = vadd.f32 %v6634_v32, %v6633_v55  ;;  %v6647_v43 = vadd.f32 %v6646_v8, %v6645_v26  ;;  %v6659_v35 = vadd.f32 %v6658_v3, %v6657_v2  ;;  %v5324_v37 = vadd.f32 %v13290_v33, %v5323_v25  ;;  %v9670_v29 = vpop.f32.mrb[164].mxu1 }
 0x6d9   : > { %v6628_v14 = vadd.f32 %v6627_v15, %v6626_v16  ;;  %v6640_v51 = vadd.f32 %v6639_v12, %v6638_v49  ;;  %v6652_v44 = vadd.f32 %v6651_v56, %v6650_v61  ;;  %v6019_v7 = vadd.f32 %v9705_v34, %v13299_v19  ;;  %v5333_v28 = vpop.f32.mrb[165].mxu1 }
 0x6da   : > { %v7520_v0 = vmul.f32 0.125, %v6635_v42  ;;  %v6648_v21 = vrot.slane %v6647_v43, 1  ;;  %v6660_v40 = vrot.slane %v6659_v35, 2  ;;  %v5506_v27 = vmax.f32 %v5324_v37, 0.0  ;;  %v9708_v60 = vpop.f32.mrb[88].mxu0 }
 0x6db   : > { %v7519_v38 = vmul.f32 0.125, %v6628_v14  ;;  %v6641_v62 = vrot.slane %v6640_v51, 1  ;;  %v6653_v57 = vrot.slane %v6652_v44, 2  ;;  %v6671_v63 = vsel %vm2944_vm0, %v6019_v7, 0.0  ;;  %v6023_v50 = vpop.f32.mrb[89].mxu0 }
 0x6dc   : > { %v6649_v24 = vadd.f32 %v6648_v21, %v6647_v43  ;;  %v6661_v54 = vadd.f32 %v6660_v40, %v6659_v35  ;;  %v6672_v9 = vrot.slane %v6671_v63, 4  ;;  %v6014_v47 = vadd.f32 %v13299_v19, %v6013_v1  ;;  %9865 = vmatprep.mubr.msk.f32.mxu0 %vm2944_vm0, %v5506_v27  ;;  %v9673_v20 = vpop.f32.mrb[166].mxu1 }
 0x6dd   : > { %v7789_v46 = vsel %vm7788_vm1, %v7520_v0, %v7519_v38  ;;  %v6642_v45 = vadd.f32 %v6641_v62, %v6640_v51  ;;  %v6654_v53 = vadd.f32 %v6653_v57, %v6652_v44  ;;  %v5339_v4 = vadd.f32 %v13290_v33, %v9670_v29  ;;  %9866 = vmatmul.mubr.msk.f32.gmra.mrb[194].mxu0 %vm2944_vm0, %v5507_v5  ;;  %v5343_v10 = vpop.f32.mrb[167].mxu1 }
 0x6de   : > { %v13336_v11 = vmul.f32 0.125, %v6649_v24  ;;  %v6662_v36 = vrot.slane %v6661_v54, 1  ;;  %v6673_v41 = vadd.f32 %v6672_v9, %v6671_v63  ;;  %v6664_v58 = vsel %vm2944_vm0, %v6014_v47, 0.0  ;;  %v9711_v59 = vpop.f32.mrb[90].mxu0 }
 0x6df   : > { %v7521_v52 = vmul.f32 0.125, %v6642_v45  ;;  %v6655_v23 = vrot.slane %v6654_v53, 1  ;;  %v6665_v22 = vrot.slane %v6664_v58, 4  ;;  %v5509_v18 = vmax.f32 %v5339_v4, 0.0  ;;  %v6033_v39 = vpop.f32.mrb[91].mxu0 }
 0x6e0   : > { %v6663_v6 = vadd.f32 %v6662_v36, %v6661_v54  ;;  %v6674_v30 = vrot.slane %v6673_v41, 2  ;;  %v5334_v55 = vadd.f32 %v13290_v33, %v5333_v28  ;;  %v6029_v26 = vadd.f32 %v9708_v60, %v13299_v19  ;;  %v9676_v31 = vpop.f32.mrb[168].mxu1 }
 0x6e1   : > { %v13342_v17 = vsel %vm7790_vm2, %v7521_v52, %v7789_v46  ;;  %v6656_v13 = vadd.f32 %v6655_v23, %v6654_v53  ;;  %v6666_v16 = vadd.f32 %v6665_v22, %v6664_v58  ;;  %v6024_v49 = vadd.f32 %v13299_v19, %v6023_v50  ;;  %v5353_v2 = vpop.f32.mrb[169].mxu1 }
 0x6e2   : > { %v13345_v48 = vmul.f32 0.125, %v6663_v6  ;;  %v6675_v25 = vadd.f32 %v6674_v30, %v6673_v41  ;;  %v5508_v32 = vmax.f32 %v5334_v55, 0.0  ;;  %v6685_v8 = vsel %vm2944_vm0, %v6029_v26, 0.0  ;;  %v9714_v3 = vpop.f32.mrb[92].mxu0 }
 0x6e3   : > { %v13348_v61 = vmul.f32 0.125, %v6656_v13  ;;  %v6667_v34 = vrot.slane %v6666_v16, 2  ;;  %v6686_v15 = vrot.slane %v6685_v8, 4  ;;  %v6678_v12 = vsel %vm2944_vm0, %v6024_v49, 0.0  ;;  %v6043_v56 = vpop.f32.mrb[93].mxu0 }
 0x6e4   : > { %v6676_v5 = vrot.slane %v6675_v25, 1  ;;  %v6679_v1 = vrot.slane %v6678_v12, 4  ;;  %v5349_v42 = vadd.f32 %v13290_v33, %v9673_v20  ;;  %v5344_v43 = vadd.f32 %v13290_v33, %v5343_v10  ;;  %9868 = vmatprep.mubr.msk.f32.mxu0 %vm2944_vm0, %v5508_v32  ;;  %v9679_v35 = vpop.f32.mrb[170].mxu1 }
 0x6e5   : > { %v6668_v37 = vadd.f32 %v6667_v34, %v6666_v16  ;;  %v6687_v29 = vadd.f32 %v6686_v15, %v6685_v8  ;;  %v6039_v14 = vadd.f32 %v9711_v59, %v13299_v19  ;;  %v6034_v51 = vadd.f32 %v13299_v19, %v6033_v39  ;;  %9869 = vmatmul.mubr.msk.f32.gmra.mrb[196].mxu0 %vm2944_vm0, %v5509_v18  ;;  %v5363_v44 = vpop.f32.mrb[171].mxu1 }
 0x6e6   : > { %v13357_v7 = vadd.f32 %v6676_v5, %v6675_v25  ;;  %v6680_v28 = vadd.f32 %v6679_v1, %v6678_v12  ;;  %v5511_v0 = vmax.f32 %v5349_v42, 0.0  ;;  %v5510_v21 = vmax.f32 %v5344_v43, 0.0  ;;  %v9717_v40 = vpop.f32.mrb[94].mxu0 }
 0x6e7   : > { %v6669_v27 = vrot.slane %v6668_v37, 1  ;;  %v6688_v60 = vrot.slane %v6687_v29, 2  ;;  %v6699_v38 = vsel %vm2944_vm0, %v6039_v14, 0.0  ;;  %v6692_v62 = vsel %vm2944_vm0, %v6034_v51, 0.0  ;;  %v6053_v57 = vpop.f32.mrb[95].mxu0 }
 0x6e8   : > { %v6681_v63 = vrot.slane %v6680_v28, 2  ;;  %v6700_v50 = vrot.slane %v6699_v38, 4  ;;  %v6693_v24 = vrot.slane %v6692_v62, 4  ;;  %v5359_v54 = vadd.f32 %v13290_v33, %v9676_v31  ;;  %9871 = vmatprep.mubr.msk.f32.mxu0 %vm2944_vm0, %v5510_v21  ;;  %v9682_v9 = vpop.f32.mrb[172].mxu1 }
 0x6e9   : > { %v6670_v47 = vadd.f32 %v6669_v27, %v6668_v37  ;;  %v6689_v20 = vadd.f32 %v6688_v60, %v6687_v29  ;;  %v5354_v46 = vadd.f32 %v13290_v33, %v5353_v2  ;;  %v6049_v45 = vadd.f32 %v9714_v3, %v13299_v19  ;;  %9872 = vmatmul.mubr.msk.f32.gmra.mrb[198].mxu0 %vm2944_vm0, %v5511_v0  ;;  %v5373_v53 = vpop.f32.mrb[173].mxu1 }
 0x6ea   : > { %v6682_v4 = vadd.f32 %v6681_v63, %v6680_v28  ;;  %v6701_v10 = vadd.f32 %v6700_v50, %v6699_v38  ;;  %v6694_v36 = vadd.f32 %v6693_v24, %v6692_v62  ;;  %v5513_v41 = vmax.f32 %v5359_v54, 0.0  ;;  %v9720_v58 = vpop.f32.mrb[96].mxu0 }
 0x6eb   : > { %v13366_v59 = vmul.f32 0.125, %v6670_v47  ;;  %v6690_v52 = vrot.slane %v6689_v20, 1  ;;  %v5512_v23 = vmax.f32 %v5354_v46, 0.0  ;;  %v6713_v22 = vsel %vm2944_vm0, %v6049_v45, 0.0  ;;  %v6063_v18 = vpop.f32.mrb[97].mxu0 }
 0x6ec   : > { %v6683_v39 = vrot.slane %v6682_v4, 1  ;;  %v6702_v6 = vrot.slane %v6701_v10, 2  ;;  %v6695_v30 = vrot.slane %v6694_v36, 2  ;;  %v6714_v55 = vrot.slane %v6713_v22, 4  ;;  %v13369_v26 = vpop.f32.mrb[174].mxu1 }
 0x6ed   : > { %v6691_v31 = vadd.f32 %v6690_v52, %v6689_v20  ;;  %v6044_v13 = vadd.f32 %v13299_v19, %v6043_v56  ;;  %v5369_v16 = vadd.f32 %v13290_v33, %v9679_v35  ;;  %v5364_v49 = vadd.f32 %v13290_v33, %v5363_v44  ;;  %9874 = vmatprep.mubr.msk.f32.mxu0 %vm2944_vm0, %v5512_v23  ;;  %v13375_v2 = vpop.f32.mrb[175].mxu1 }
 0x6ee   : > { %v6684_v25 = vadd.f32 %v6683_v39, %v6682_v4  ;;  %v6703_v32 = vadd.f32 %v6702_v6, %v6701_v10  ;;  %v6696_v8 = vadd.f32 %v6695_v30, %v6694_v36  ;;  %v6715_v3 = vadd.f32 %v6714_v55, %v6713_v22  ;;  %9875 = vmatmul.mubr.msk.f32.gmra.mrb[200].mxu0 %vm2944_vm0, %v5513_v41  ;;  %v13378_v34 = vpop.f32.mrb[98].mxu0 }
 0x6ef   : > { %v7528_v15 = vmul.f32 0.125, %v6691_v31  ;;  %v6706_v12 = vsel %vm2944_vm0, %v6044_v13, 0.0  ;;  %v5515_v56 = vmax.f32 %v5369_v16, 0.0  ;;  %v5514_v5 = vmax.f32 %v5364_v49, 0.0  ;;  %v13381_v1 = vpop.f32.mrb[99].mxu0 }
 0x6f0   : > { %v7527_v42 = vmul.f32 0.125, %v6684_v25  ;;  %v6704_v43 = vrot.slane %v6703_v32, 1  ;;  %v6697_v35 = vrot.slane %v6696_v8, 1  ;;  %v6716_v37 = vrot.slane %v6715_v3, 2 }
 0x6f1   : > { %v6707_v29 = vrot.slane %v6706_v12, 4  ;;  %v6059_v14 = vadd.f32 %v9717_v40, %v13299_v19  ;;  %v6054_v51 = vadd.f32 %v13299_v19, %v6053_v57  ;;  %v5379_v44 = vadd.f32 %v13290_v33, %v9682_v9  ;;  %9877 = vmatprep.mubr.msk.f32.mxu0 %vm2944_vm0, %v5514_v5 }
 0x6f2   : > { %v7802_v28 = vsel %vm7788_vm1, %v7528_v15, %v7527_v42  ;;  %v6705_v0 = vadd.f32 %v6704_v43, %v6703_v32  ;;  %v6698_v21 = vadd.f32 %v6697_v35, %v6696_v8  ;;  %v6717_v27 = vadd.f32 %v6716_v37, %v6715_v3  ;;  %9878 = vmatmul.mubr.msk.f32.gmra.mrb[202].mxu0 %vm2944_vm0, %v5515_v56  ;;  %v13389_v60 = vpop.f32.mrb[100].mxu0 }
 0x6f3   : > { %v6708_v38 = vadd.f32 %v6707_v29, %v6706_v12  ;;  %v6727_v62 = vsel %vm2944_vm0, %v6059_v14, 0.0  ;;  %v6720_v40 = vsel %vm2944_vm0, %v6054_v51, 0.0  ;;  %v5517_v63 = vmax.f32 %v5379_v44, 0.0  ;;  %v13393_v57 = vpop.f32.mrb[101].mxu0 }
 0x6f4   : > { %v7530_v50 = vmul.f32 0.125, %v6705_v0  ;;  %v7529_v24 = vmul.f32 0.125, %v6698_v21  ;;  %v6718_v54 = vrot.slane %v6717_v27, 1  ;;  %v6728_v9 = vrot.slane %v6727_v62, 4 }
 0x6f5   : > { %v6709_v47 = vrot.slane %v6708_v38, 2  ;;  %v6721_v20 = vrot.slane %v6720_v40, 4  ;;  %v5374_v46 = vadd.f32 %v13290_v33, %v5373_v53  ;;  %v6069_v45 = vadd.f32 %v9720_v58, %v13299_v19 }
 0x6f6   : > { %v7803_v4 = vsel %vm7790_vm2, %v7529_v24, %v7802_v28  ;;  %v6719_v10 = vadd.f32 %v6718_v54, %v6717_v27  ;;  %v6729_v36 = vadd.f32 %v6728_v9, %v6727_v62  ;;  %v6064_v41 = vadd.f32 %v13299_v19, %v6063_v18  ;;  %v13399_v52 = vpop.f32.mrb[102].mxu0 }
 0x6f7   : > { %v6710_v23 = vadd.f32 %v6709_v47, %v6708_v38  ;;  %v7804_v22 = vsel %vm7792_vm3, %v7530_v50, %v7803_v4  ;;  %v6722_v39 = vadd.f32 %v6721_v20, %v6720_v40  ;;  %v5516_v6 = vmax.f32 %v5374_v46, 0.0  ;;  %v13402_v30 = vpop.f32.mrb[103].mxu0 }
 0x6f8   : > { %v13404_v53 = vmul.f32 0.125, %v6719_v10  ;;  %v6730_v58 = vrot.slane %v6729_v36, 2  ;;  %v6741_v55 = vsel %vm2944_vm0, %v6069_v45, 0.0  ;;  %v6734_v31 = vsel %vm2944_vm0, %v6064_v41, 0.0 }
 0x6f9   : > { %v6711_v13 = vrot.slane %v6710_v23, 1  ;;  %v6723_v16 = vrot.slane %v6722_v39, 2  ;;  %v6742_v18 = vrot.slane %v6741_v55, 4  ;;  %v6735_v49 = vrot.slane %v6734_v31, 4  ;;  %9880 = vmatprep.mubr.msk.f32.mxu0 %vm2944_vm0, %v5516_v6 }
 0x6fa   : > { %v6731_v25 = vadd.f32 %v6730_v58, %v6729_v36  ;;  %v7526_v32 = vmul.f32 0.125, %v13357_v7  ;;  %v7793_v8 = vsel %vm7792_vm3, %v13336_v11, %v13342_v17  ;;  %v5389_v3 = vadd.f32 %v13290_v33, %v13369_v26  ;;  %9881 = vmatmul.mubr.msk.f32.gmra.mrb[204].mxu0 %vm2944_vm0, %v5517_v63  ;;  %v13416_v15 = vpop.f32.mrb[104].mxu0 }
 0x6fb   : > { %v6712_v12 = vadd.f32 %v6711_v13, %v6710_v23  ;;  %v6724_v56 = vadd.f32 %v6723_v16, %v6722_v39  ;;  %v6743_v5 = vadd.f32 %v6742_v18, %v6741_v55  ;;  %v6736_v42 = vadd.f32 %v6735_v49, %v6734_v31  ;;  %v13418_v43 = vpop.f32.mrb[105].mxu0 }
 0x6fc   : > { %v6732_v35 = vrot.slane %v6731_v25, 1  ;;  %v7795_v7 = vsel %vm7794_vm4, %v13348_v61, %v7793_v8  ;;  %v5519_v37 = vmax.f32 %v5389_v3, 0.0  ;;  %v5384_v11 = vadd.f32 %v13290_v33, %v13375_v2 }
 0x6fd   : > { %v7531_v17 = vmul.f32 0.125, %v6712_v12  ;;  %v6725_v26 = vrot.slane %v6724_v56, 1  ;;  %v6744_v29 = vrot.slane %v6743_v5, 2  ;;  %v6737_v14 = vrot.slane %v6736_v42, 2 }
 0x6fe   : > { %v6733_v51 = vadd.f32 %v6732_v35, %v6731_v25  ;;  %v7797_v44 = vsel %vm7796_vm5, %v13345_v48, %v7795_v7  ;;  %v5518_v28 = vmax.f32 %v5384_v11, 0.0  ;;  %v6079_v0 = vadd.f32 %v13378_v34, %v13299_v19  ;;  %v13428_v21 = vpop.f32.mrb[106].mxu0 }
 0x6ff   : > { %v13431_v61 = vsel %vm7794_vm4, %v7531_v17, %v7804_v22  ;;  %v6726_v27 = vadd.f32 %v6725_v26, %v6724_v56  ;;  %v6745_v38 = vadd.f32 %v6744_v29, %v6743_v5  ;;  %v6738_v33 = vadd.f32 %v6737_v14, %v6736_v42  ;;  %v13433_v2 = vpop.f32.mrb[107].mxu0 }
 0x700   : > { %v13435_v62 = vmul.f32 0.125, %v6733_v51  ;;  %v7799_v40 = vsel %vm7798_vm6, %v13366_v59, %v7797_v44  ;;  %v6755_v48 = vsel %vm2944_vm0, %v6079_v0, 0.0  ;;  %v6074_v34 = vadd.f32 %v13299_v19, %v13381_v1  ;;  %9883 = vmatprep.mubr.msk.f32.mxu0 %vm2944_vm0, %v5518_v28 }
 0x701   : > { %v13443_v63 = vmul.f32 0.125, %v6726_v27  ;;  %v6746_v50 = vrot.slane %v6745_v38, 1  ;;  %v6739_v24 = vrot.slane %v6738_v33, 1  ;;  %v7801_v54 = vsel %vm7800_vm7, %v7526_v32, %v7799_v40  ;;  %9884 = vmatmul.mubr.msk.f32.gmra.mrb[206].mxu0 %vm2944_vm0, %v5519_v37 }
 0x702   : > { %9894 = vmatprep.mubr.msk.f32.mxu1 %vm2944_vm0, %v7801_v54  ;;  %v6756_v9 = vrot.slane %v6755_v48, 4  ;;  %v6748_v59 = vsel %vm2944_vm0, %v6074_v34, 0.0  ;;  %v6089_v47 = vadd.f32 %v13389_v60, %v13299_v19  ;;  %v6084_v1 = vadd.f32 %v13299_v19, %v13393_v57  ;;  %v13453_v20 = vpop.f32.mrb[108].mxu0 }
 0x703   : > { %v6747_v46 = vadd.f32 %v6746_v50, %v6745_v38  ;;  %v6740_v45 = vadd.f32 %v6739_v24, %v6738_v33  ;;  %v6749_v4 = vrot.slane %v6748_v59, 4  ;;  %v6099_v10 = vadd.f32 %v13399_v52, %v13299_v19  ;;  %v13457_v36 = vpop.f32.mrb[109].mxu0 }
 0x704   : > { %v6757_v41 = vadd.f32 %v6756_v9, %v6755_v48  ;;  %v6769_v23 = vsel %vm2944_vm0, %v6089_v47, 0.0  ;;  %v6762_v22 = vsel %vm2944_vm0, %v6084_v1, 0.0  ;;  %v6094_v60 = vadd.f32 %v13299_v19, %v13402_v30 }
 0x705   : > { %v7536_v39 = vmul.f32 0.125, %v6747_v46  ;;  %v7535_v57 = vmul.f32 0.125, %v6740_v45  ;;  %v6750_v6 = vadd.f32 %v6749_v4, %v6748_v59  ;;  %v6770_v58 = vrot.slane %v6769_v23, 4 }
 0x706   : > { %v6758_v55 = vrot.slane %v6757_v41, 2  ;;  %v6763_v31 = vrot.slane %v6762_v22, 4  ;;  %v6783_v13 = vsel %vm2944_vm0, %v6099_v10, 0.0  ;;  %v6776_v52 = vsel %vm2944_vm0, %v6094_v60, 0.0  ;;  %v13465_v16 = vpop.f32.mrb[110].mxu0 }
 0x707   : > { %v7809_v18 = vsel %vm7788_vm1, %v7536_v39, %v7535_v57  ;;  %v6751_v49 = vrot.slane %v6750_v6, 2  ;;  %v6771_v25 = vadd.f32 %v6770_v58, %v6769_v23  ;;  %v6784_v32 = vrot.slane %v6783_v13, 4  ;;  %v13468_v8 = vpop.f32.mrb[111].mxu0 }
 0x708   : > { %v6759_v30 = vadd.f32 %v6758_v55, %v6757_v41  ;;  %v6764_v3 = vadd.f32 %v6763_v31, %v6762_v22  ;;  %v6777_v12 = vrot.slane %v6776_v52, 4  ;;  %v6109_v56 = vadd.f32 %v13416_v15, %v13299_v19 }
 0x709   : > { %v6752_v5 = vadd.f32 %v6751_v49, %v6750_v6  ;;  %v6772_v42 = vrot.slane %v6771_v25, 2  ;;  %v6785_v35 = vadd.f32 %v6784_v32, %v6783_v13  ;;  %v6104_v7 = vadd.f32 %v13299_v19, %v13418_v43 }
 0x70a   : > { %v6760_v37 = vrot.slane %v6759_v30, 1  ;;  %v6765_v11 = vrot.slane %v6764_v3, 2  ;;  %v6778_v17 = vadd.f32 %v6777_v12, %v6776_v52  ;;  %v6797_v26 = vsel %vm2944_vm0, %v6109_v56, 0.0  ;;  %v13475_v29 = vpop.f32.mrb[112].mxu0 }
 0x70b   : > { %v6753_v14 = vrot.slane %v6752_v5, 1  ;;  %v6773_v51 = vadd.f32 %v6772_v42, %v6771_v25  ;;  %v6786_v44 = vrot.slane %v6785_v35, 2  ;;  %v6798_v28 = vrot.slane %v6797_v26, 4  ;;  %v13477_v0 = vpop.f32.mrb[113].mxu0 }
 0x70c   : > { %v6761_v15 = vadd.f32 %v6760_v37, %v6759_v30  ;;  %v6766_v27 = vadd.f32 %v6765_v11, %v6764_v3  ;;  %v6779_v38 = vrot.slane %v6778_v17, 2  ;;  %v6790_v33 = vsel %vm2944_vm0, %v6104_v7, 0.0 }
 0x70d   : > { %v6754_v40 = vadd.f32 %v6753_v14, %v6752_v5  ;;  %v6774_v43 = vrot.slane %v6773_v51, 1  ;;  %v6787_v48 = vadd.f32 %v6786_v44, %v6785_v35  ;;  %v6799_v34 = vadd.f32 %v6798_v28, %v6797_v26 }
 0x70e   : > { %v13480_v50 = vmul.f32 0.125, %v6761_v15  ;;  %v6767_v24 = vrot.slane %v6766_v27, 1  ;;  %v6780_v54 = vadd.f32 %v6779_v38, %v6778_v17  ;;  %v6791_v9 = vrot.slane %v6790_v33, 4  ;;  %v13482_v59 = vpop.f32.mrb[114].mxu0 }
 0x70f   : > { %v7537_v47 = vmul.f32 0.125, %v6754_v40  ;;  %v6775_v1 = vadd.f32 %v6774_v43, %v6773_v51  ;;  %v6788_v46 = vrot.slane %v6787_v48, 1  ;;  %v6800_v45 = vrot.slane %v6799_v34, 2  ;;  %v13484_v4 = vpop.f32.mrb[115].mxu0 }
 0x710   : > { %v6768_v10 = vadd.f32 %v6767_v24, %v6766_v27  ;;  %v6781_v41 = vrot.slane %v6780_v54, 1  ;;  %v6792_v23 = vadd.f32 %v6791_v9, %v6790_v33  ;;  %v7806_v22 = vsel %vm7796_vm5, %v13404_v53, %v13431_v61 }
 0x711   : > { %v13490_v60 = vsel %vm7790_vm2, %v7537_v47, %v7809_v18  ;;  %v13492_v39 = vmul.f32 0.125, %v6775_v1  ;;  %v13494_v57 = vadd.f32 %v6788_v46, %v6787_v48  ;;  %v6801_v6 = vadd.f32 %v6800_v45, %v6799_v34 }
 0x712   : > { %v13496_v58 = vmul.f32 0.125, %v6768_v10  ;;  %v6782_v55 = vadd.f32 %v6781_v41, %v6780_v54  ;;  %v6793_v31 = vrot.slane %v6792_v23, 2  ;;  %v7807_v13 = vsel %vm7798_vm6, %v13443_v63, %v7806_v22  ;;  %v13500_v52 = vpop.f32.mrb[116].mxu0 }
 0x713   : > { %v6802_v49 = vrot.slane %v6801_v6, 1  ;;  %v7808_v53 = vsel %vm7800_vm7, %v13435_v62, %v7807_v13  ;;  %v6119_v61 = vadd.f32 %v13428_v21, %v13299_v19  ;;  %v6114_v18 = vadd.f32 %v13299_v19, %v13433_v2  ;;  %v13508_v25 = vpop.f32.mrb[117].mxu0 }
 0x714   : > { %v13510_v32 = vmul.f32 0.125, %v6782_v55  ;;  %v6794_v30 = vadd.f32 %v6793_v31, %v6792_v23  ;;  %9895 = vmatmul.mubr.msk.f32.vlgmr.msra.gmra.mrb[176].mxu1 %vm2944_vm0, %v7808_v53  ;;  %v6129_v63 = vadd.f32 %v13453_v20, %v13299_v19  ;;  %v6124_v3 = vadd.f32 %v13299_v19, %v13457_v36 }
 0x715   : > { %v6803_v62 = vadd.f32 %v6802_v49, %v6801_v6  ;;  %v6811_v12 = vsel %vm2944_vm0, %v6119_v61, 0.0  ;;  %v6804_v21 = vsel %vm2944_vm0, %v6114_v18, 0.0  ;;  %v6139_v2 = vadd.f32 %v13465_v16, %v13299_v19 }
 0x716   : > { %v6795_v56 = vrot.slane %v6794_v30, 1  ;;  %v6812_v5 = vrot.slane %v6811_v12, 4  ;;  %v6805_v42 = vrot.slane %v6804_v21, 4  ;;  %v6825_v35 = vsel %vm2944_vm0, %v6129_v63, 0.0  ;;  %v13522_v7 = vpop.f32.mrb[118].mxu0 }
 0x717   : > { %v7544_v37 = vmul.f32 0.125, %v6803_v62  ;;  %v6826_v20 = vrot.slane %v6825_v35, 4  ;;  %v6818_v11 = vsel %vm2944_vm0, %v6124_v3, 0.0  ;;  %v6839_v36 = vsel %vm2944_vm0, %v6139_v2, 0.0  ;;  %v13526_v17 = vpop.f32.mrb[119].mxu0 }
 0x718   : > { %v6796_v26 = vadd.f32 %v6795_v56, %v6794_v30  ;;  %v6813_v14 = vadd.f32 %v6812_v5, %v6811_v12  ;;  %v6806_v51 = vadd.f32 %v6805_v42, %v6804_v21  ;;  %v6819_v44 = vrot.slane %v6818_v11, 4 }
 0x719   : > { %v6827_v16 = vadd.f32 %v6826_v20, %v6825_v35  ;;  %v6840_v28 = vrot.slane %v6839_v36, 4  ;;  %v6134_v15 = vadd.f32 %v13299_v19, %v13468_v8  ;;  %v6149_v27 = vadd.f32 %v13475_v29, %v13299_v19 }
 0x71a   : > { %v7543_v38 = vmul.f32 0.125, %v6796_v26  ;;  %v6814_v33 = vrot.slane %v6813_v14, 2  ;;  %v6807_v40 = vrot.slane %v6806_v51, 2  ;;  %v6820_v43 = vadd.f32 %v6819_v44, %v6818_v11  ;;  %v13532_v48 = vpop.f32.mrb[120].mxu0 }
 0x71b   : > { %v6828_v34 = vrot.slane %v6827_v16, 2  ;;  %v6841_v24 = vadd.f32 %v6840_v28, %v6839_v36  ;;  %v6832_v54 = vsel %vm2944_vm0, %v6134_v15, 0.0  ;;  %v6853_v9 = vsel %vm2944_vm0, %v6149_v27, 0.0  ;;  %v13536_v47 = vpop.f32.mrb[121].mxu0 }
 0x71c   : > { %v7816_v1 = vsel %vm7788_vm1, %v7544_v37, %v7543_v38  ;;  %v6815_v8 = vadd.f32 %v6814_v33, %v6813_v14  ;;  %v6808_v46 = vadd.f32 %v6807_v40, %v6806_v51  ;;  %v6821_v45 = vrot.slane %v6820_v43, 2 }
 0x71d   : > { %v6829_v29 = vadd.f32 %v6828_v34, %v6827_v16  ;;  %v6842_v10 = vrot.slane %v6841_v24, 2  ;;  %v6833_v41 = vrot.slane %v6832_v54, 4  ;;  %v6854_v23 = vrot.slane %v6853_v9, 4 }
 0x71e   : > { %v6816_v22 = vrot.slane %v6815_v8, 1  ;;  %v6809_v6 = vrot.slane %v6808_v46, 1  ;;  %v6822_v55 = vadd.f32 %v6821_v45, %v6820_v43  ;;  %v6144_v31 = vadd.f32 %v13299_v19, %v13477_v0  ;;  %v13541_v13 = vpop.f32.mrb[122].mxu0 }
 0x71f   : > { %v6830_v49 = vrot.slane %v6829_v29, 1  ;;  %v6843_v53 = vadd.f32 %v6842_v10, %v6841_v24  ;;  %v6834_v61 = vadd.f32 %v6833_v41, %v6832_v54  ;;  %v6855_v18 = vadd.f32 %v6854_v23, %v6853_v9  ;;  %v13543_v30 = vpop.f32.mrb[123].mxu0 }
 0x720   : > { %v6817_v63 = vadd.f32 %v6816_v22, %v6815_v8  ;;  %v6810_v3 = vadd.f32 %v6809_v6, %v6808_v46  ;;  %v6823_v62 = vrot.slane %v6822_v55, 1  ;;  %v6846_v12 = vsel %vm2944_vm0, %v6144_v31, 0.0 }
 0x721   : > { %v6831_v21 = vadd.f32 %v6830_v49, %v6829_v29  ;;  %v6844_v2 = vrot.slane %v6843_v53, 1  ;;  %v6835_v56 = vrot.slane %v6834_v61, 2  ;;  %v6856_v5 = vrot.slane %v6855_v18, 2 }
 0x722   : > { %v13546_v42 = vmul.f32 0.125, %v6817_v63  ;;  %v7545_v0 = vmul.f32 0.125, %v6810_v3  ;;  %v6824_v35 = vadd.f32 %v6823_v62, %v6822_v55  ;;  %v6847_v37 = vrot.slane %v6846_v12, 4  ;;  %v13548_v20 = vpop.f32.mrb[124].mxu0 }
 0x723   : > { %v13550_v11 = vmul.f32 0.125, %v6831_v21  ;;  %v13552_v36 = vadd.f32 %v6844_v2, %v6843_v53  ;;  %v6836_v26 = vadd.f32 %v6835_v56, %v6834_v61  ;;  %v6857_v14 = vadd.f32 %v6856_v5, %v6855_v18  ;;  %v13554_v51 = vpop.f32.mrb[125].mxu0 }
 0x724   : > { %v13557_v44 = vsel %vm7790_vm2, %v7545_v0, %v7816_v1  ;;  %v13559_v16 = vmul.f32 0.125, %v6824_v35  ;;  %v6848_v28 = vadd.f32 %v6847_v37, %v6846_v12  ;;  %v7542_v15 = vmul.f32 0.125, %v13494_v57 }
 0x725   : > { %v6837_v27 = vrot.slane %v6836_v26, 1  ;;  %v6858_v38 = vrot.slane %v6857_v14, 1  ;;  %v7811_v33 = vsel %vm7792_vm3, %v13480_v50, %v13490_v60  ;;  %v6159_v40 = vadd.f32 %v13482_v59, %v13299_v19 }
 0x726   : > { %v6849_v43 = vrot.slane %v6848_v28, 2  ;;  %v7812_v34 = vsel %vm7794_vm4, %v13496_v58, %v7811_v33  ;;  %v6154_v24 = vadd.f32 %v13299_v19, %v13484_v4  ;;  %v6169_v54 = vadd.f32 %v13500_v52, %v13299_v19  ;;  %v13573_v57 = vpop.f32.mrb[126].mxu0 }
 0x727   : > { %v6838_v9 = vadd.f32 %v6837_v27, %v6836_v26  ;;  %v6859_v1 = vadd.f32 %v6858_v38, %v6857_v14  ;;  %v7813_v50 = vsel %vm7796_vm5, %v13492_v39, %v7812_v34  ;;  %v6867_v60 = vsel %vm2944_vm0, %v6159_v40, 0.0  ;;  %v13578_v59 = vpop.f32.mrb[127].mxu0 }
 0x728   : > { %v6850_v8 = vadd.f32 %v6849_v43, %v6848_v28  ;;  %v7814_v58 = vsel %vm7798_vm6, %v13510_v32, %v7813_v50  ;;  %v6868_v46 = vrot.slane %v6867_v60, 4  ;;  %v6860_v4 = vsel %vm2944_vm0, %v6154_v24, 0.0 }
 0x729   : > { %v13583_v45 = vmul.f32 0.125, %v6838_v9  ;;  %v7552_v52 = vmul.f32 0.125, %v6859_v1  ;;  %v7815_v29 = vsel %vm7800_vm7, %v7542_v15, %v7814_v58  ;;  %v6861_v10 = vrot.slane %v6860_v4, 4 }
 0x72a   : > { %v6851_v41 = vrot.slane %v6850_v8, 1  ;;  %9897 = vmatprep.mubr.msk.f32.mxu1 %vm2944_vm0, %v7815_v29  ;;  %v6869_v39 = vadd.f32 %v6868_v46, %v6867_v60  ;;  %v6881_v23 = vsel %vm2944_vm0, %v6169_v54, 0.0  ;;  %v6164_v22 = vadd.f32 %v13299_v19, %v13508_v25  ;;  %v13590_v6 = vpop.f32.mrb[128].mxu0  ;;  %v13612_v54 = vld [vmem:[%s14425_s3 + $0x3] ss:$0 sm:$0xff] }
 0x72b   : > { %v6862_v32 = vadd.f32 %v6861_v10, %v6860_v4  ;;  %v6882_v55 = vrot.slane %v6881_v23, 4  ;;  %v6179_v31 = vadd.f32 %v13522_v7, %v13299_v19  ;;  %v6174_v49 = vadd.f32 %v13299_v19, %v13526_v17  ;;  %v13596_v53 = vpop.f32.mrb[129].mxu0 }
 0x72c   : > { %v6852_v61 = vadd.f32 %v6851_v41, %v6850_v8  ;;  %v6870_v18 = vrot.slane %v6869_v39, 2  ;;  %v6874_v63 = vsel %vm2944_vm0, %v6164_v22, 0.0  ;;  %v6189_v3 = vadd.f32 %v13532_v48, %v13299_v19 }
 0x72d   : > { %v6863_v25 = vrot.slane %v6862_v32, 2  ;;  %v6883_v62 = vadd.f32 %v6882_v55, %v6881_v23  ;;  %v6875_v12 = vrot.slane %v6874_v63, 4  ;;  %v6895_v21 = vsel %vm2944_vm0, %v6179_v31, 0.0 }
 0x72e   : > { %v7551_v2 = vmul.f32 0.125, %v6852_v61  ;;  %v6871_v56 = vadd.f32 %v6870_v18, %v6869_v39  ;;  %v6896_v7 = vrot.slane %v6895_v21, 4  ;;  %v6888_v5 = vsel %vm2944_vm0, %v6174_v49, 0.0  ;;  %v13603_v17 = vpop.f32.mrb[130].mxu0 }
 0x72f   : > { %v6864_v0 = vadd.f32 %v6863_v25, %v6862_v32  ;;  %v6884_v35 = vrot.slane %v6883_v62, 2  ;;  %v6876_v37 = vadd.f32 %v6875_v12, %v6874_v63  ;;  %v6889_v26 = vrot.slane %v6888_v5, 4  ;;  %v13605_v14 = vpop.f32.mrb[131].mxu0 }
 0x730   : > { %v7823_v19 = vsel %vm7788_vm1, %v7552_v52, %v7551_v2  ;;  %v6872_v48 = vrot.slane %v6871_v56, 1  ;;  %v6897_v28 = vadd.f32 %v6896_v7, %v6895_v21  ;;  %v6909_v15 = vsel %vm2944_vm0, %v6189_v3, 0.0 }
 0x731   : > { %v6865_v27 = vrot.slane %v6864_v0, 1  ;;  %v6885_v38 = vadd.f32 %v6884_v35, %v6883_v62  ;;  %v6877_v33 = vrot.slane %v6876_v37, 2  ;;  %v6890_v40 = vadd.f32 %v6889_v26, %v6888_v5 }
 0x732   : > { %v6873_v43 = vadd.f32 %v6872_v48, %v6871_v56  ;;  %v6898_v34 = vrot.slane %v6897_v28, 2  ;;  %v6910_v24 = vrot.slane %v6909_v15, 4  ;;  %v6184_v9 = vadd.f32 %v13612_v54, %v13536_v47  ;;  %v13616_v1 = vpop.f32.mrb[132].mxu0 }
 0x733   : > { %v6866_v50 = vadd.f32 %v6865_v27, %v6864_v0  ;;  %v6886_v60 = vrot.slane %v6885_v38, 1  ;;  %v6878_v8 = vadd.f32 %v6877_v33, %v6876_v37  ;;  %v6891_v58 = vrot.slane %v6890_v40, 2  ;;  %v13618_v46 = vpop.f32.mrb[133].mxu0 }
 0x734   : > { %v13620_v4 = vmul.f32 0.125, %v6873_v43  ;;  %v6899_v52 = vadd.f32 %v6898_v34, %v6897_v28  ;;  %v6911_v29 = vadd.f32 %v6910_v24, %v6909_v15  ;;  %v6902_v10 = vsel %vm2944_vm0, %v6184_v9, 0.0 }
 0x735   : > { %v7553_v41 = vmul.f32 0.125, %v6866_v50  ;;  %v6887_v39 = vadd.f32 %v6886_v60, %v6885_v38  ;;  %v6879_v23 = vrot.slane %v6878_v8, 1  ;;  %v6892_v22 = vadd.f32 %v6891_v58, %v6890_v40 }
 0x736   : > { %v6900_v32 = vrot.slane %v6899_v52, 1  ;;  %v6912_v47 = vrot.slane %v6911_v29, 2  ;;  %v6903_v55 = vrot.slane %v6902_v10, 4  ;;  %v7550_v31 = vmul.f32 0.125, %v13552_v36  ;;  %v13624_v49 = vpop.f32.mrb[134].mxu0 }
 0x737   : > { %v13627_v61 = vsel %vm7790_vm2, %v7553_v41, %v7823_v19  ;;  %v13629_v18 = vmul.f32 0.125, %v6887_v39  ;;  %v6880_v63 = vadd.f32 %v6879_v23, %v6878_v8  ;;  %v6893_v3 = vrot.slane %v6892_v22, 1  ;;  %v13631_v25 = vpop.f32.mrb[135].mxu0 }
 0x738   : > { %v13633_v62 = vadd.f32 %v6900_v32, %v6899_v52  ;;  %v6913_v12 = vadd.f32 %v6912_v47, %v6911_v29  ;;  %v6904_v21 = vadd.f32 %v6903_v55, %v6902_v10  ;;  %v7818_v2 = vsel %vm7792_vm3, %v13546_v42, %v13557_v44 }
 0x739   : > { %v13638_v36 = vmul.f32 0.125, %v6880_v63  ;;  %v6894_v56 = vadd.f32 %v6893_v3, %v6892_v22  ;;  %v7819_v7 = vsel %vm7794_vm4, %v13559_v16, %v7818_v2  ;;  %v6199_v5 = vadd.f32 %v13612_v54, %v13541_v13 }
 0x73a   : > { %v6914_v0 = vrot.slane %v6913_v12, 1  ;;  %v6905_v35 = vrot.slane %v6904_v21, 2  ;;  %v7820_v37 = vsel %vm7796_vm5, %v13550_v11, %v7819_v7  ;;  %v6194_v26 = vadd.f32 %v13612_v54, %v13543_v30  ;;  %v13648_v19 = vpop.f32.mrb[136].mxu0 }
 0x73b   : > { %v13650_v42 = vmul.f32 0.125, %v6894_v56  ;;  %v7821_v44 = vsel %vm7798_vm6, %v13583_v45, %v7820_v37  ;;  %v6923_v16 = vsel %vm2944_vm0, %v6199_v5, 0.0  ;;  %v6209_v13 = vadd.f32 %v13612_v54, %v13548_v20  ;;  %v13657_v48 = vpop.f32.mrb[137].mxu0 }
 0x73c   : > { %v6915_v28 = vadd.f32 %v6914_v0, %v6913_v12  ;;  %v6906_v15 = vadd.f32 %v6905_v35, %v6904_v21  ;;  %v7822_v11 = vsel %vm7800_vm7, %v7550_v31, %v7821_v44  ;;  %v6924_v27 = vrot.slane %v6923_v16, 4 }
 0x73d   : > { %9898 = vmatmul.mubr.msk.f32.gmra.mrb[178].mxu1 %vm2944_vm0, %v7822_v11  ;;  %v6916_v30 = vsel %vm2944_vm0, %v6194_v26, 0.0  ;;  %v6937_v38 = vsel %vm2944_vm0, %v6209_v13, 0.0  ;;  %v6204_v45 = vadd.f32 %v13612_v54, %v13554_v51  ;;  %v6219_v33 = vadd.f32 %v13612_v54, %v13573_v57 }
 0x73e   : > { %v7560_v20 = vmul.f32 0.125, %v6915_v28  ;;  %v6907_v40 = vrot.slane %v6906_v15, 1  ;;  %v6925_v43 = vadd.f32 %v6924_v27, %v6923_v16  ;;  %v6917_v34 = vrot.slane %v6916_v30, 4  ;;  %v13667_v24 = vpop.f32.mrb[138].mxu0 }
 0x73f   : > { %v6938_v9 = vrot.slane %v6937_v38, 4  ;;  %v6930_v50 = vsel %vm2944_vm0, %v6204_v45, 0.0  ;;  %v6951_v60 = vsel %vm2944_vm0, %v6219_v33, 0.0  ;;  %v6214_v8 = vadd.f32 %v13612_v54, %v13578_v59  ;;  %v13673_v58 = vpop.f32.mrb[139].mxu0 }
 0x740   : > { %v6908_v51 = vadd.f32 %v6907_v40, %v6906_v15  ;;  %v6926_v52 = vrot.slane %v6925_v43, 2  ;;  %v6918_v29 = vadd.f32 %v6917_v34, %v6916_v30  ;;  %v6931_v57 = vrot.slane %v6930_v50, 4 }
 0x741   : > { %v6939_v10 = vadd.f32 %v6938_v9, %v6937_v38  ;;  %v6952_v41 = vrot.slane %v6951_v60, 4  ;;  %v6944_v39 = vsel %vm2944_vm0, %v6214_v8, 0.0  ;;  %v6229_v23 = vadd.f32 %v13612_v54, %v13590_v6 }
 0x742   : > { %v7559_v22 = vmul.f32 0.125, %v6908_v51  ;;  %v6927_v32 = vadd.f32 %v6926_v52, %v6925_v43  ;;  %v6919_v47 = vrot.slane %v6918_v29, 2  ;;  %v6932_v55 = vadd.f32 %v6931_v57, %v6930_v50  ;;  %v13678_v31 = vpop.f32.mrb[140].mxu0 }
 0x743   : > { %v6940_v59 = vrot.slane %v6939_v10, 2  ;;  %v6953_v63 = vadd.f32 %v6952_v41, %v6951_v60  ;;  %v6945_v3 = vrot.slane %v6944_v39, 4  ;;  %v6965_v12 = vsel %vm2944_vm0, %v6229_v23, 0.0  ;;  %v13681_v21 = vpop.f32.mrb[141].mxu0 }
 0x744   : > { %v7830_v2 = vsel %vm7788_vm1, %v7560_v20, %v7559_v22  ;;  %v6928_v56 = vrot.slane %v6927_v32, 1  ;;  %v6920_v7 = vadd.f32 %v6919_v47, %v6918_v29  ;;  %v6933_v5 = vrot.slane %v6932_v55, 2 }
 0x745   : > { %v6941_v0 = vadd.f32 %v6940_v59, %v6939_v10  ;;  %v6954_v6 = vrot.slane %v6953_v63, 2  ;;  %v6946_v35 = vadd.f32 %v6945_v3, %v6944_v39  ;;  %v6966_v37 = vrot.slane %v6965_v12, 4 }
 0x746   : > { %v6929_v26 = vadd.f32 %v6928_v56, %v6927_v32  ;;  %v6921_v44 = vrot.slane %v6920_v7, 1  ;;  %v6934_v16 = vadd.f32 %v6933_v5, %v6932_v55  ;;  %v6224_v13 = vadd.f32 %v13612_v54, %v13596_v53  ;;  %v13686_v28 = vpop.f32.mrb[142].mxu0 }
 0x747   : > { %v6942_v15 = vrot.slane %v6941_v0, 1  ;;  %v6955_v11 = vadd.f32 %v6954_v6, %v6953_v63  ;;  %v6947_v27 = vrot.slane %v6946_v35, 2  ;;  %v6967_v30 = vadd.f32 %v6966_v37, %v6965_v12  ;;  %v13688_v38 = vpop.f32.mrb[143].mxu0 }
 0x748   : > { %v13690_v45 = vmul.f32 0.125, %v6929_v26  ;;  %v6922_v33 = vadd.f32 %v6921_v44, %v6920_v7  ;;  %v6935_v20 = vrot.slane %v6934_v16, 1  ;;  %v6958_v40 = vsel %vm2944_vm0, %v6224_v13, 0.0 }
 0x749   : > { %v6943_v43 = vadd.f32 %v6942_v15, %v6941_v0  ;;  %v6956_v34 = vrot.slane %v6955_v11, 1  ;;  %v6948_v9 = vadd.f32 %v6947_v27, %v6946_v35  ;;  %v6968_v50 = vrot.slane %v6967_v30, 2 }
 0x74a   : > { %v7561_v60 = vmul.f32 0.125, %v6922_v33  ;;  %v6936_v53 = vadd.f32 %v6935_v20, %v6934_v16  ;;  %v6959_v8 = vrot.slane %v6958_v40, 4  ;;  %v7558_v51 = vmul.f32 0.125, %v13633_v62  ;;  %v13694_v52 = vpop.f32.mrb[144].mxu0 }
 0x74b   : > { %v13696_v29 = vmul.f32 0.125, %v6943_v43  ;;  %v13698_v57 = vadd.f32 %v6956_v34, %v6955_v11  ;;  %v6949_v10 = vrot.slane %v6948_v9, 1  ;;  %v6969_v41 = vadd.f32 %v6968_v50, %v6967_v30  ;;  %v13700_v39 = vpop.f32.mrb[145].mxu0 }
 0x74c   : > { %v13703_v23 = vsel %vm7790_vm2, %v7561_v60, %v7830_v2  ;;  %v13705_v22 = vmul.f32 0.125, %v6936_v53  ;;  %v6960_v32 = vadd.f32 %v6959_v8, %v6958_v40  ;;  %v7825_v62 = vsel %vm7792_vm3, %v13620_v4, %v13627_v61 }
 0x74d   : > { %v6950_v47 = vadd.f32 %v6949_v10, %v6948_v9  ;;  %v6970_v55 = vrot.slane %v6969_v41, 1  ;;  %v7826_v59 = vsel %vm7794_vm4, %v13638_v36, %v7825_v62  ;;  %v6239_v63 = vadd.f32 %v13612_v54, %v13603_v17 }
 0x74e   : > { %v6961_v3 = vrot.slane %v6960_v32, 2  ;;  %v7827_v12 = vsel %vm7796_vm5, %v13629_v18, %v7826_v59  ;;  %v6234_v2 = vadd.f32 %v13612_v54, %v13605_v14  ;;  %v6249_v56 = vadd.f32 %v13612_v54, %v13616_v1  ;;  %v13720_v7 = vpop.f32.mrb[146].mxu0 }
 0x74f   : > { %v13722_v4 = vmul.f32 0.125, %v6950_v47  ;;  %v6971_v61 = vadd.f32 %v6970_v55, %v6969_v41  ;;  %v7828_v36 = vsel %vm7798_vm6, %v13650_v42, %v7827_v12  ;;  %v6979_v17 = vsel %vm2944_vm0, %v6239_v63, 0.0  ;;  %v13727_v5 = vpop.f32.mrb[147].mxu0 }
 0x750   : > { %v6962_v0 = vadd.f32 %v6961_v3, %v6960_v32  ;;  %v7829_v18 = vsel %vm7800_vm7, %v7558_v51, %v7828_v36  ;;  %v6980_v6 = vrot.slane %v6979_v17, 4  ;;  %v6972_v14 = vsel %vm2944_vm0, %v6234_v2, 0.0 }
 0x751   : > { %v7568_v35 = vmul.f32 0.125, %v6971_v61  ;;  %9900 = vmatprep.mubr.msk.f32.mxu1 %vm2944_vm0, %v7829_v18  ;;  %v6973_v1 = vrot.slane %v6972_v14, 4  ;;  %v6993_v37 = vsel %vm2944_vm0, %v6249_v56, 0.0  ;;  %v6244_v26 = vadd.f32 %v13612_v54, %v13618_v46 }
 0x752   : > { %v6963_v42 = vrot.slane %v6962_v0, 1  ;;  %v6981_v44 = vadd.f32 %v6980_v6, %v6979_v17  ;;  %v6994_v16 = vrot.slane %v6993_v37, 4  ;;  %v6259_v13 = vadd.f32 %v13612_v54, %v13624_v49  ;;  %v13737_v15 = vpop.f32.mrb[148].mxu0 }
 0x753   : > { %v6974_v11 = vadd.f32 %v6973_v1, %v6972_v14  ;;  %v6986_v27 = vsel %vm2944_vm0, %v6244_v26, 0.0  ;;  %v6254_v30 = vadd.f32 %v13612_v54, %v13631_v25  ;;  %v6269_v33 = vadd.f32 %v13612_v54, %v13648_v19  ;;  %v13744_v20 = vpop.f32.mrb[149].mxu0 }
 0x754   : > { %v6964_v46 = vadd.f32 %v6963_v42, %v6962_v0  ;;  %v6982_v40 = vrot.slane %v6981_v44, 2  ;;  %v6995_v43 = vadd.f32 %v6994_v16, %v6993_v37  ;;  %v6987_v34 = vrot.slane %v6986_v27, 4 }
 0x755   : > { %v6975_v9 = vrot.slane %v6974_v11, 2  ;;  %v7007_v49 = vsel %vm2944_vm0, %v6259_v13, 0.0  ;;  %v7000_v50 = vsel %vm2944_vm0, %v6254_v30, 0.0  ;;  %v7021_v60 = vsel %vm2944_vm0, %v6269_v33, 0.0 }
 0x756   : > { %v7567_v53 = vmul.f32 0.125, %v6964_v46  ;;  %v6983_v8 = vadd.f32 %v6982_v40, %v6981_v44  ;;  %v6996_v51 = vrot.slane %v6995_v43, 2  ;;  %v6988_v25 = vadd.f32 %v6987_v34, %v6986_v27  ;;  %v13749_v10 = vpop.f32.mrb[150].mxu0 }
 0x757   : > { %v6976_v19 = vadd.f32 %v6975_v9, %v6974_v11  ;;  %v7008_v41 = vrot.slane %v7007_v49, 4  ;;  %v7001_v32 = vrot.slane %v7000_v50, 4  ;;  %v7022_v62 = vrot.slane %v7021_v60, 4  ;;  %v13751_v47 = vpop.f32.mrb[151].mxu0 }
 0x758   : > { %v7837_v55 = vsel %vm7788_vm1, %v7568_v35, %v7567_v53  ;;  %v6984_v59 = vrot.slane %v6983_v8, 1  ;;  %v6997_v63 = vadd.f32 %v6996_v51, %v6995_v43  ;;  %v6989_v3 = vrot.slane %v6988_v25, 2 }
 0x759   : > { %v6977_v12 = vrot.slane %v6976_v19, 1  ;;  %v7009_v2 = vadd.f32 %v7008_v41, %v7007_v49  ;;  %v7002_v56 = vadd.f32 %v7001_v32, %v7000_v50  ;;  %v7023_v61 = vadd.f32 %v7022_v62, %v7021_v60 }
 0x75a   : > { %v6985_v36 = vadd.f32 %v6984_v59, %v6983_v8  ;;  %v6998_v17 = vrot.slane %v6997_v63, 1  ;;  %v6990_v0 = vadd.f32 %v6989_v3, %v6988_v25  ;;  %v6264_v18 = vadd.f32 %v13612_v54, %v13657_v48  ;;  %v13756_v6 = vpop.f32.mrb[152].mxu0 }
 0x75b   : > { %v6978_v14 = vadd.f32 %v6977_v12, %v6976_v19  ;;  %v7010_v1 = vrot.slane %v7009_v2, 2  ;;  %v7003_v37 = vrot.slane %v7002_v56, 2  ;;  %v7024_v26 = vrot.slane %v7023_v61, 2  ;;  %v13758_v35 = vpop.f32.mrb[153].mxu0 }
 0x75c   : > { %v13760_v42 = vmul.f32 0.125, %v6985_v36  ;;  %v6999_v44 = vadd.f32 %v6998_v17, %v6997_v63  ;;  %v6991_v16 = vrot.slane %v6990_v0, 1  ;;  %v7014_v13 = vsel %vm2944_vm0, %v6264_v18, 0.0 }
 0x75d   : > { %v7569_v11 = vmul.f32 0.125, %v6978_v14  ;;  %v7011_v27 = vadd.f32 %v7010_v1, %v7009_v2  ;;  %v7004_v30 = vadd.f32 %v7003_v37, %v7002_v56  ;;  %v7025_v33 = vadd.f32 %v7024_v26, %v7023_v61 }
 0x75e   : > { %v13763_v46 = vmul.f32 0.125, %v6999_v44  ;;  %v6992_v48 = vadd.f32 %v6991_v16, %v6990_v0  ;;  %v7015_v40 = vrot.slane %v7014_v13, 4  ;;  %v7566_v43 = vmul.f32 0.125, %v13698_v57  ;;  %v13766_v34 = vpop.f32.mrb[154].mxu0 }
 0x75f   : > { %v13769_v9 = vsel %vm7790_vm2, %v7569_v11, %v7837_v55  ;;  %v7012_v49 = vrot.slane %v7011_v27, 1  ;;  %v7005_v50 = vrot.slane %v7004_v30, 1  ;;  %v7026_v60 = vrot.slane %v7025_v33, 1  ;;  %v13771_v53 = vpop.f32.mrb[155].mxu0 }
 0x760   : > { %v13773_v8 = vmul.f32 0.125, %v6992_v48  ;;  %v7016_v51 = vadd.f32 %v7015_v40, %v7014_v13  ;;  %v7832_v25 = vsel %vm7792_vm3, %v13690_v45, %v13703_v23  ;;  %v6279_v57 = vadd.f32 %v13612_v54, %v13667_v24 }
 0x761   : > { %v13780_v19 = vadd.f32 %v7012_v49, %v7011_v27  ;;  %v7006_v41 = vadd.f32 %v7005_v50, %v7004_v30  ;;  %v7027_v32 = vadd.f32 %v7026_v60, %v7025_v33  ;;  %v7833_v62 = vsel %vm7794_vm4, %v13705_v22, %v7832_v25 }
 0x762   : > { %v7017_v55 = vrot.slane %v7016_v51, 2  ;;  %v7834_v59 = vsel %vm7796_vm5, %v13696_v29, %v7833_v62  ;;  %v7035_v63 = vsel %vm2944_vm0, %v6279_v57, 0.0  ;;  %v6274_v3 = vadd.f32 %v13612_v54, %v13673_v58  ;;  %v13789_v45 = vpop.f32.mrb[156].mxu0 }
 0x763   : > { %v13791_v23 = vmul.f32 0.125, %v7006_v41  ;;  %v7576_v24 = vmul.f32 0.125, %v7027_v32  ;;  %v7835_v12 = vsel %vm7798_vm6, %v13722_v4, %v7834_v59  ;;  %v7036_v2 = vrot.slane %v7035_v63, 4  ;;  %v13795_v56 = vpop.f32.mrb[157].mxu0 }
 0x764   : > { %v7018_v22 = vadd.f32 %v7017_v55, %v7016_v51  ;;  %v7836_v61 = vsel %vm7800_vm7, %v7566_v43, %v7835_v12  ;;  %v7028_v29 = vsel %vm2944_vm0, %v6274_v3, 0.0  ;;  %v6289_v36 = vadd.f32 %v13612_v54, %v13678_v31 }
 0x765   : > { %9901 = vmatmul.mubr.msk.f32.gmra.mrb[180].mxu1 %vm2944_vm0, %v7836_v61  ;;  %v7037_v58 = vadd.f32 %v7036_v2, %v7035_v63  ;;  %v7029_v17 = vrot.slane %v7028_v29, 4  ;;  %v6284_v0 = vadd.f32 %v13612_v54, %v13681_v21  ;;  %v6299_v4 = vadd.f32 %v13612_v54, %v13686_v28 }
 0x766   : > { %v7019_v18 = vrot.slane %v7018_v22, 1  ;;  %v7049_v14 = vsel %vm2944_vm0, %v6289_v36, 0.0  ;;  %v6294_v1 = vadd.f32 %v13612_v54, %v13688_v38  ;;  %v6309_v37 = vadd.f32 %v13612_v54, %v13694_v52  ;;  %v13811_v31 = vpop.f32.mrb[158].mxu0 }
 0x767   : > { %v7038_v26 = vrot.slane %v7037_v58, 2  ;;  %v7030_v44 = vadd.f32 %v7029_v17, %v7028_v29  ;;  %v7050_v16 = vrot.slane %v7049_v14, 4  ;;  %v7042_v13 = vsel %vm2944_vm0, %v6284_v0, 0.0  ;;  %v13814_v21 = vpop.f32.mrb[159].mxu0 }
 0x768   : > { %v7020_v11 = vadd.f32 %v7019_v18, %v7018_v22  ;;  %v7043_v28 = vrot.slane %v7042_v13, 4  ;;  %v7063_v27 = vsel %vm2944_vm0, %v6299_v4, 0.0  ;;  %v7056_v30 = vsel %vm2944_vm0, %v6294_v1, 0.0 }
 0x769   : > { %v7039_v33 = vadd.f32 %v7038_v26, %v7037_v58  ;;  %v7031_v38 = vrot.slane %v7030_v44, 2  ;;  %v7051_v48 = vadd.f32 %v7050_v16, %v7049_v14  ;;  %v7064_v40 = vrot.slane %v7063_v27, 4 }
 0x76a   : > { %v7575_v52 = vmul.f32 0.125, %v7020_v11  ;;  %v7044_v43 = vadd.f32 %v7043_v28, %v7042_v13  ;;  %v7057_v49 = vrot.slane %v7056_v30, 4  ;;  %v7077_v50 = vsel %vm2944_vm0, %v6309_v37, 0.0  ;;  %v13819_v60 = vpop.f32.mrb[160].mxu0 }
 0x76b   : > { %v7040_v51 = vrot.slane %v7039_v33, 1  ;;  %v7032_v25 = vadd.f32 %v7031_v38, %v7030_v44  ;;  %v7052_v57 = vrot.slane %v7051_v48, 2  ;;  %v7065_v41 = vadd.f32 %v7064_v40, %v7063_v27  ;;  %v13821_v32 = vpop.f32.mrb[161].mxu0 }
 0x76c   : > { %v7844_v62 = vsel %vm7788_vm1, %v7576_v24, %v7575_v52  ;;  %v7045_v55 = vrot.slane %v7044_v43, 2  ;;  %v7058_v59 = vadd.f32 %v7057_v49, %v7056_v30  ;;  %v7078_v63 = vrot.slane %v7077_v50, 4 }
 0x76d   : > { %v7041_v3 = vadd.f32 %v7040_v51, %v7039_v33  ;;  %v7033_v12 = vrot.slane %v7032_v25, 1  ;;  %v7053_v2 = vadd.f32 %v7052_v57, %v7051_v48  ;;  %v7066_v22 = vrot.slane %v7065_v41, 2 }
 0x76e   : > { %v7046_v61 = vadd.f32 %v7045_v55, %v7044_v43  ;;  %v7059_v29 = vrot.slane %v7058_v59, 2  ;;  %v7079_v36 = vadd.f32 %v7078_v63, %v7077_v50  ;;  %v6304_v58 = vadd.f32 %v13612_v54, %v13700_v39  ;;  %v13826_v17 = vpop.f32.mrb[162].mxu0 }
 0x76f   : > { %v13828_v0 = vmul.f32 0.125, %v7041_v3  ;;  %v7034_v4 = vadd.f32 %v7033_v12, %v7032_v25  ;;  %v7054_v18 = vrot.slane %v7053_v2, 1  ;;  %v7067_v24 = vadd.f32 %v7066_v22, %v7065_v41  ;;  %v13830_v14 = vpop.f32.mrb[163].mxu0 }
 0x770   : > { %v7047_v1 = vrot.slane %v7046_v61, 1  ;;  %v7060_v37 = vadd.f32 %v7059_v29, %v7058_v59  ;;  %v7080_v26 = vrot.slane %v7079_v36, 2  ;;  %v7070_v44 = vsel %vm2944_vm0, %v6304_v58, 0.0 }
 0x771   : > { %v7577_v16 = vmul.f32 0.125, %v7034_v4  ;;  %v7055_v13 = vadd.f32 %v7054_v18, %v7053_v2  ;;  %v7068_v11 = vrot.slane %v7067_v24, 1  ;;  %v7071_v28 = vrot.slane %v7070_v44, 4 }
 0x772   : > { %v7048_v27 = vadd.f32 %v7047_v1, %v7046_v61  ;;  %v7061_v39 = vrot.slane %v7060_v37, 1  ;;  %v7081_v30 = vadd.f32 %v7080_v26, %v7079_v36  ;;  %v7574_v33 = vmul.f32 0.125, %v13780_v19  ;;  %v13834_v38 = vpop.f32.mrb[164].mxu0 }
 0x773   : > { %v13837_v48 = vsel %vm7790_vm2, %v7577_v16, %v7844_v62  ;;  %v13839_v40 = vmul.f32 0.125, %v7055_v13  ;;  %v13841_v52 = vadd.f32 %v7068_v11, %v7067_v24  ;;  %v7072_v43 = vadd.f32 %v7071_v28, %v7070_v44  ;;  %v13843_v49 = vpop.f32.mrb[165].mxu0 }
 0x774   : > { %v13845_v50 = vmul.f32 0.125, %v7048_v27  ;;  %v7062_v51 = vadd.f32 %v7061_v39, %v7060_v37  ;;  %v7082_v25 = vrot.slane %v7081_v30, 1  ;;  %v7839_v19 = vsel %vm7792_vm3, %v13760_v42, %v13769_v9 }
 0x775   : > { %v7073_v57 = vrot.slane %v7072_v43, 2  ;;  %v7840_v41 = vsel %vm7794_vm4, %v13773_v8, %v7839_v19  ;;  %v6319_v62 = vadd.f32 %v13612_v54, %v13720_v7  ;;  %v6314_v55 = vadd.f32 %v13612_v54, %v13727_v5 }
 0x776   : > { %v13856_v59 = vmul.f32 0.125, %v7062_v51  ;;  %v7083_v63 = vadd.f32 %v7082_v25, %v7081_v30  ;;  %v7841_v3 = vsel %vm7796_vm5, %v13763_v46, %v7840_v41  ;;  %v6329_v12 = vadd.f32 %v13612_v54, %v13737_v15  ;;  %v13862_v42 = vpop.f32.mrb[166].mxu0 }
 0x777   : > { %v7074_v9 = vadd.f32 %v7073_v57, %v7072_v43  ;;  %v7842_v8 = vsel %vm7798_vm6, %v13791_v23, %v7841_v3  ;;  %v7091_v7 = vsel %vm2944_vm0, %v6319_v62, 0.0  ;;  %v7084_v2 = vsel %vm2944_vm0, %v6314_v55, 0.0  ;;  %v13868_v5 = vpop.f32.mrb[167].mxu0 }
 0x778   : > { %v7584_v22 = vmul.f32 0.125, %v7083_v63  ;;  %v7843_v61 = vsel %vm7800_vm7, %v7574_v33, %v7842_v8  ;;  %v7092_v29 = vrot.slane %v7091_v7, 4  ;;  %v7085_v46 = vrot.slane %v7084_v2, 4 }
 0x779   : > { %v7075_v36 = vrot.slane %v7074_v9, 1  ;;  %9903 = vmatprep.mubr.msk.f32.mxu1 %vm2944_vm0, %v7843_v61  ;;  %v7105_v15 = vsel %vm2944_vm0, %v6329_v12, 0.0  ;;  %v6324_v58 = vadd.f32 %v13612_v54, %v13744_v20  ;;  %v6339_v23 = vadd.f32 %v13612_v54, %v13749_v10 }
 0x77a   : > { %v7093_v4 = vadd.f32 %v7092_v29, %v7091_v7  ;;  %v7086_v18 = vadd.f32 %v7085_v46, %v7084_v2  ;;  %v7106_v24 = vrot.slane %v7105_v15, 4  ;;  %v6334_v1 = vadd.f32 %v13612_v54, %v13751_v47  ;;  %v13879_v37 = vpop.f32.mrb[168].mxu0 }
 0x77b   : > { %v7076_v26 = vadd.f32 %v7075_v36, %v7074_v9  ;;  %v7098_v44 = vsel %vm2944_vm0, %v6324_v58, 0.0  ;;  %v7119_v16 = vsel %vm2944_vm0, %v6339_v23, 0.0  ;;  %v6349_v13 = vadd.f32 %v13612_v54, %v13756_v6  ;;  %v13885_v20 = vpop.f32.mrb[169].mxu0 }
 0x77c   : > { %v7094_v11 = vrot.slane %v7093_v4, 2  ;;  %v7087_v10 = vrot.slane %v7086_v18, 2  ;;  %v7107_v28 = vadd.f32 %v7106_v24, %v7105_v15  ;;  %v7099_v27 = vrot.slane %v7098_v44, 4 }
 0x77d   : > { %v7583_v39 = vmul.f32 0.125, %v7076_v26  ;;  %v7120_v30 = vrot.slane %v7119_v16, 4  ;;  %v7112_v47 = vsel %vm2944_vm0, %v6334_v1, 0.0  ;;  %v7133_v33 = vsel %vm2944_vm0, %v6349_v13, 0.0 }
 0x77e   : > { %v7095_v43 = vadd.f32 %v7094_v11, %v7093_v4  ;;  %v7088_v51 = vadd.f32 %v7087_v10, %v7086_v18  ;;  %v7108_v25 = vrot.slane %v7107_v28, 2  ;;  %v7100_v19 = vadd.f32 %v7099_v27, %v7098_v44  ;;  %v13889_v57 = vpop.f32.mrb[170].mxu0 }
 0x77f   : > { %v7851_v6 = vsel %vm7788_vm1, %v7584_v22, %v7583_v39  ;;  %v7121_v41 = vadd.f32 %v7120_v30, %v7119_v16  ;;  %v7113_v62 = vrot.slane %v7112_v47, 4  ;;  %v7134_v55 = vrot.slane %v7133_v33, 4  ;;  %v13892_v63 = vpop.f32.mrb[171].mxu0 }
 0x780   : > { %v7096_v3 = vrot.slane %v7095_v43, 1  ;;  %v7089_v12 = vrot.slane %v7088_v51, 1  ;;  %v7109_v9 = vadd.f32 %v7108_v25, %v7107_v28  ;;  %v7101_v8 = vrot.slane %v7100_v19, 2 }
 0x781   : > { %v7122_v7 = vrot.slane %v7121_v41, 2  ;;  %v7114_v2 = vadd.f32 %v7113_v62, %v7112_v47  ;;  %v7135_v61 = vadd.f32 %v7134_v55, %v7133_v33  ;;  %v6344_v29 = vadd.f32 %v13612_v54, %v13758_v35 }
 0x782   : > { %v7097_v46 = vadd.f32 %v7096_v3, %v7095_v43  ;;  %v7090_v36 = vadd.f32 %v7089_v12, %v7088_v51  ;;  %v7110_v15 = vrot.slane %v7109_v9, 1  ;;  %v7102_v58 = vadd.f32 %v7101_v8, %v7100_v19  ;;  %v13896_v22 = vpop.f32.mrb[172].mxu0 }
 0x783   : > { %v7123_v23 = vadd.f32 %v7122_v7, %v7121_v41  ;;  %v7115_v4 = vrot.slane %v7114_v2, 2  ;;  %v7136_v18 = vrot.slane %v7135_v61, 2  ;;  %v7126_v24 = vsel %vm2944_vm0, %v6344_v29, 0.0  ;;  %v13899_v1 = vpop.f32.mrb[173].mxu0 }
 0x784   : > { %v13901_v26 = vmul.f32 0.125, %v7097_v46  ;;  %v7585_v44 = vmul.f32 0.125, %v7090_v36  ;;  %v7111_v16 = vadd.f32 %v7110_v15, %v7109_v9  ;;  %v7103_v13 = vrot.slane %v7102_v58, 1 }
 0x785   : > { %v7124_v11 = vrot.slane %v7123_v23, 1  ;;  %v7116_v35 = vadd.f32 %v7115_v4, %v7114_v2  ;;  %v7137_v10 = vadd.f32 %v7136_v18, %v7135_v61  ;;  %v7127_v28 = vrot.slane %v7126_v24, 4 }
 0x786   : > { %v13904_v27 = vsel %vm7790_vm2, %v7585_v44, %v7851_v6  ;;  %v13906_v39 = vmul.f32 0.125, %v7111_v16  ;;  %v7104_v30 = vadd.f32 %v7103_v13, %v7102_v58  ;;  %v7582_v47 = vmul.f32 0.125, %v13841_v52  ;;  %v13909_v33 = vpop.f32.mrb[174].mxu0 }
 0x787   : > { %v13911_v43 = vadd.f32 %v7124_v11, %v7123_v23  ;;  %v7117_v51 = vrot.slane %v7116_v35, 1  ;;  %v7138_v25 = vrot.slane %v7137_v10, 1  ;;  %v7128_v19 = vadd.f32 %v7127_v28, %v7126_v24  ;;  %v13913_v41 = vpop.f32.mrb[175].mxu0 }
 0x788   : > { %v13915_v62 = vmul.f32 0.125, %v7104_v30  ;;  %v7846_v6 = vsel %vm7792_vm3, %v13828_v0, %v13837_v48  ;;  %v6359_v55 = vadd.f32 %v13612_v54, %v13766_v34  ;;  %v6354_v52 = vadd.f32 %v13612_v54, %v13771_v53 }
 0x789   : > { %v7118_v3 = vadd.f32 %v7117_v51, %v7116_v35  ;;  %v7139_v12 = vadd.f32 %v7138_v25, %v7137_v10  ;;  %v7129_v9 = vrot.slane %v7128_v19, 2  ;;  %v7847_v8 = vsel %vm7794_vm4, %v13845_v50, %v7846_v6 }
 0x78a   : > { %v7848_v7 = vsel %vm7796_vm5, %v13839_v40, %v7847_v8  ;;  %v7147_v2 = vsel %vm2944_vm0, %v6359_v55, 0.0  ;;  %v7140_v61 = vsel %vm2944_vm0, %v6354_v52, 0.0  ;;  %v6369_v0 = vadd.f32 %v13612_v54, %v13789_v45  ;;  %v13932_v34 = vpop.f32.mrb[176].mxu0 }
 0x78b   : > { %v13934_v48 = vmul.f32 0.125, %v7118_v3  ;;  %v7592_v53 = vmul.f32 0.125, %v7139_v12  ;;  %v7130_v29 = vadd.f32 %v7129_v9, %v7128_v19  ;;  %v7849_v46 = vsel %vm7798_vm6, %v13856_v59, %v7848_v7  ;;  %v13938_v50 = vpop.f32.mrb[177].mxu0 }
 0x78c   : > { %v7850_v40 = vsel %vm7800_vm7, %v7582_v47, %v7849_v46  ;;  %v7148_v36 = vrot.slane %v7147_v2, 4  ;;  %v7141_v15 = vrot.slane %v7140_v61, 4  ;;  %v7161_v58 = vsel %vm2944_vm0, %v6369_v0, 0.0 }
 0x78d   : > { %v7131_v23 = vrot.slane %v7130_v29, 1  ;;  %9904 = vmatmul.mubr.msk.f32.gmra.mrb[182].mxu1 %vm2944_vm0, %v7850_v40  ;;  %v7162_v45 = vrot.slane %v7161_v58, 4  ;;  %v6364_v4 = vadd.f32 %v13612_v54, %v13795_v56  ;;  %v6379_v18 = vadd.f32 %v13612_v54, %v13811_v31 }
 0x78e   : > { %v7149_v24 = vadd.f32 %v7148_v36, %v7147_v2  ;;  %v7142_v59 = vadd.f32 %v7141_v15, %v7140_v61  ;;  %v6374_v44 = vadd.f32 %v13612_v54, %v13814_v21  ;;  %v6389_v16 = vadd.f32 %v13612_v54, %v13819_v60  ;;  %v13951_v13 = vpop.f32.mrb[178].mxu0 }
 0x78f   : > { %v7132_v11 = vadd.f32 %v7131_v23, %v7130_v29  ;;  %v7163_v35 = vadd.f32 %v7162_v45, %v7161_v58  ;;  %v7154_v10 = vsel %vm2944_vm0, %v6364_v4, 0.0  ;;  %v7175_v28 = vsel %vm2944_vm0, %v6379_v18, 0.0  ;;  %v13955_v56 = vpop.f32.mrb[179].mxu0 }
 0x790   : > { %v7150_v30 = vrot.slane %v7149_v24, 2  ;;  %v7143_v31 = vrot.slane %v7142_v59, 2  ;;  %v7155_v47 = vrot.slane %v7154_v10, 4  ;;  %v7176_v51 = vrot.slane %v7175_v28, 4 }
 0x791   : > { %v7591_v25 = vmul.f32 0.125, %v7132_v11  ;;  %v7164_v19 = vrot.slane %v7163_v35, 2  ;;  %v7168_v21 = vsel %vm2944_vm0, %v6374_v44, 0.0  ;;  %v7189_v60 = vsel %vm2944_vm0, %v6389_v16, 0.0 }
 0x792   : > { %v7151_v6 = vadd.f32 %v7150_v30, %v7149_v24  ;;  %v7144_v55 = vadd.f32 %v7143_v31, %v7142_v59  ;;  %v7156_v52 = vadd.f32 %v7155_v47, %v7154_v10  ;;  %v7177_v3 = vadd.f32 %v7176_v51, %v7175_v28  ;;  %v13959_v12 = vpop.f32.mrb[180].mxu0 }
 0x793   : > { %v7858_v9 = vsel %vm7788_vm1, %v7592_v53, %v7591_v25  ;;  %v7165_v8 = vadd.f32 %v7164_v19, %v7163_v35  ;;  %v7169_v7 = vrot.slane %v7168_v21, 4  ;;  %v7190_v2 = vrot.slane %v7189_v60, 4  ;;  %v13962_v61 = vpop.f32.mrb[181].mxu0 }
 0x794   : > { %v7152_v0 = vrot.slane %v7151_v6, 1  ;;  %v7145_v29 = vrot.slane %v7144_v55, 1  ;;  %v7157_v46 = vrot.slane %v7156_v52, 2  ;;  %v7178_v40 = vrot.slane %v7177_v3, 2 }
 0x795   : > { %v7166_v36 = vrot.slane %v7165_v8, 1  ;;  %v7170_v15 = vadd.f32 %v7169_v7, %v7168_v21  ;;  %v7191_v58 = vadd.f32 %v7190_v2, %v7189_v60  ;;  %v6384_v23 = vadd.f32 %v13612_v54, %v13821_v32 }
 0x796   : > { %v7153_v45 = vadd.f32 %v7152_v0, %v7151_v6  ;;  %v7146_v4 = vadd.f32 %v7145_v29, %v7144_v55  ;;  %v7158_v18 = vadd.f32 %v7157_v46, %v7156_v52  ;;  %v7179_v24 = vadd.f32 %v7178_v40, %v7177_v3  ;;  %v13966_v53 = vpop.f32.mrb[182].mxu0 }
 0x797   : > { %v7167_v59 = vadd.f32 %v7166_v36, %v7165_v8  ;;  %v7171_v44 = vrot.slane %v7170_v15, 2  ;;  %v7192_v16 = vrot.slane %v7191_v58, 2  ;;  %v7182_v11 = vsel %vm2944_vm0, %v6384_v23, 0.0  ;;  %v13969_v35 = vpop.f32.mrb[183].mxu0 }
 0x798   : > { %v13971_v10 = vmul.f32 0.125, %v7153_v45  ;;  %v7593_v28 = vmul.f32 0.125, %v7146_v4  ;;  %v7159_v30 = vrot.slane %v7158_v18, 1  ;;  %v7180_v31 = vrot.slane %v7179_v24, 1 }
 0x799   : > { %v13973_v47 = vmul.f32 0.125, %v7167_v59  ;;  %v7172_v32 = vadd.f32 %v7171_v44, %v7170_v15  ;;  %v7193_v51 = vadd.f32 %v7192_v16, %v7191_v58  ;;  %v7183_v25 = vrot.slane %v7182_v11, 4 }
 0x79a   : > { %v13976_v19 = vsel %vm7790_vm2, %v7593_v28, %v7858_v9  ;;  %v7160_v21 = vadd.f32 %v7159_v30, %v7158_v18  ;;  %v13978_v60 = vadd.f32 %v7180_v31, %v7179_v24  ;;  %v7590_v6 = vmul.f32 0.125, %v13911_v43  ;;  %v13981_v55 = vpop.f32.mrb[184].mxu0 }
 0x79b   : > { %v7173_v52 = vrot.slane %v7172_v32, 1  ;;  %v7194_v3 = vrot.slane %v7193_v51, 1  ;;  %v7184_v8 = vadd.f32 %v7183_v25, %v7182_v11  ;;  %v7853_v7 = vsel %vm7792_vm3, %v13901_v26, %v13904_v27  ;;  %v13986_v2 = vpop.f32.mrb[185].mxu0 }
 0x79c   : > { %v13988_v0 = vmul.f32 0.125, %v7160_v21  ;;  %v7854_v9 = vsel %vm7794_vm4, %v13915_v62, %v7853_v7  ;;  %v6399_v29 = vadd.f32 %v13612_v54, %v13826_v17  ;;  %v6394_v43 = vadd.f32 %v13612_v54, %v13830_v14 }
 0x79d   : > { %v7174_v46 = vadd.f32 %v7173_v52, %v7172_v32  ;;  %v7195_v40 = vadd.f32 %v7194_v3, %v7193_v51  ;;  %v7185_v36 = vrot.slane %v7184_v8, 2  ;;  %v7855_v15 = vsel %vm7796_vm5, %v13906_v39, %v7854_v9 }
 0x79e   : > { %v7856_v26 = vsel %vm7798_vm6, %v13934_v48, %v7855_v15  ;;  %v7203_v27 = vsel %vm2944_vm0, %v6399_v29, 0.0  ;;  %v7196_v58 = vsel %vm2944_vm0, %v6394_v43, 0.0  ;;  %v6409_v62 = vadd.f32 %v13612_v54, %v13834_v38  ;;  %v14004_v17 = vpop.f32.mrb[186].mxu0 }
 0x79f   : > { %v14006_v23 = vmul.f32 0.125, %v7174_v46  ;;  %v7600_v14 = vmul.f32 0.125, %v7195_v40  ;;  %v7186_v45 = vadd.f32 %v7185_v36, %v7184_v8  ;;  %v7857_v4 = vsel %vm7800_vm7, %v7590_v6, %v7856_v26  ;;  %v14009_v18 = vpop.f32.mrb[187].mxu0 }
 0x7a0   : > { %9906 = vmatprep.mubr.msk.f32.mxu1 %vm2944_vm0, %v7857_v4  ;;  %v7204_v39 = vrot.slane %v7203_v27, 4  ;;  %v7197_v48 = vrot.slane %v7196_v58, 4  ;;  %v7217_v24 = vsel %vm2944_vm0, %v6409_v62, 0.0  ;;  %v6404_v59 = vadd.f32 %v13612_v54, %v13843_v49 }
 0x7a1   : > { %v7187_v38 = vrot.slane %v7186_v45, 1  ;;  %v7218_v44 = vrot.slane %v7217_v24, 4  ;;  %v6419_v16 = vadd.f32 %v13612_v54, %v13862_v42  ;;  %v6414_v11 = vadd.f32 %v13612_v54, %v13868_v5 }
 0x7a2   : > { %v7205_v28 = vadd.f32 %v7204_v39, %v7203_v27  ;;  %v7198_v30 = vadd.f32 %v7197_v48, %v7196_v58  ;;  %v7210_v31 = vsel %vm2944_vm0, %v6404_v59, 0.0  ;;  %v6429_v32 = vadd.f32 %v13612_v54, %v13879_v37  ;;  %v14022_v51 = vpop.f32.mrb[188].mxu0 }
 0x7a3   : > { %v7188_v25 = vadd.f32 %v7187_v38, %v7186_v45  ;;  %v7219_v21 = vadd.f32 %v7218_v44, %v7217_v24  ;;  %v7211_v49 = vrot.slane %v7210_v31, 4  ;;  %v7231_v6 = vsel %vm2944_vm0, %v6419_v16, 0.0  ;;  %v14025_v52 = vpop.f32.mrb[189].mxu0  ;;  %v14037_v44 = vld [vmem:[%s14425_s3 + $0x3] ss:$0 sm:$0xff] }
 0x7a4   : > { %v7206_v42 = vrot.slane %v7205_v28, 2  ;;  %v7199_v3 = vrot.slane %v7198_v30, 2  ;;  %v7232_v8 = vrot.slane %v7231_v6, 4  ;;  %v7224_v5 = vsel %vm2944_vm0, %v6414_v11, 0.0 }
 0x7a5   : > { %v7599_v7 = vmul.f32 0.125, %v7188_v25  ;;  %v7220_v9 = vrot.slane %v7219_v21, 2  ;;  %v7212_v29 = vadd.f32 %v7211_v49, %v7210_v31  ;;  %v7225_v43 = vrot.slane %v7224_v5, 4 }
 0x7a6   : > { %v7207_v46 = vadd.f32 %v7206_v42, %v7205_v28  ;;  %v7200_v54 = vadd.f32 %v7199_v3, %v7198_v30  ;;  %v7233_v37 = vadd.f32 %v7232_v8, %v7231_v6  ;;  %v7245_v40 = vsel %vm2944_vm0, %v6429_v32, 0.0  ;;  %v14029_v36 = vpop.f32.mrb[190].mxu0 }
 0x7a7   : > { %v7865_v15 = vsel %vm7788_vm1, %v7600_v14, %v7599_v7  ;;  %v7221_v26 = vadd.f32 %v7220_v9, %v7219_v21  ;;  %v7213_v27 = vrot.slane %v7212_v29, 2  ;;  %v7226_v58 = vadd.f32 %v7225_v43, %v7224_v5  ;;  %v14032_v62 = vpop.f32.mrb[191].mxu0 }
 0x7a8   : > { %v7208_v45 = vrot.slane %v7207_v46, 1  ;;  %v7201_v4 = vrot.slane %v7200_v54, 1  ;;  %v7234_v39 = vrot.slane %v7233_v37, 2  ;;  %v7246_v48 = vrot.slane %v7245_v40, 4 }
 0x7a9   : > { %v7222_v24 = vrot.slane %v7221_v26, 1  ;;  %v7214_v59 = vadd.f32 %v7213_v27, %v7212_v29  ;;  %v7227_v38 = vrot.slane %v7226_v58, 2  ;;  %v6424_v14 = vadd.f32 %v14037_v44, %v13885_v20 }
 0x7aa   : > { %v7209_v16 = vadd.f32 %v7208_v45, %v7207_v46  ;;  %v7202_v11 = vadd.f32 %v7201_v4, %v7200_v54  ;;  %v7235_v28 = vadd.f32 %v7234_v39, %v7233_v37  ;;  %v7247_v30 = vadd.f32 %v7246_v48, %v7245_v40  ;;  %v14041_v31 = vpop.f32.mrb[192].mxu0 }
 0x7ab   : > { %v7223_v32 = vadd.f32 %v7222_v24, %v7221_v26  ;;  %v7215_v25 = vrot.slane %v7214_v59, 1  ;;  %v7228_v21 = vadd.f32 %v7227_v38, %v7226_v58  ;;  %v7238_v49 = vsel %vm2944_vm0, %v6424_v14, 0.0  ;;  %v14044_v6 = vpop.f32.mrb[193].mxu0 }
 0x7ac   : > { %v14046_v42 = vmul.f32 0.125, %v7209_v16  ;;  %v7601_v3 = vmul.f32 0.125, %v7202_v11  ;;  %v7236_v8 = vrot.slane %v7235_v28, 1  ;;  %v7248_v5 = vrot.slane %v7247_v30, 2 }
 0x7ad   : > { %v14048_v7 = vmul.f32 0.125, %v7223_v32  ;;  %v7216_v20 = vadd.f32 %v7215_v25, %v7214_v59  ;;  %v7229_v9 = vrot.slane %v7228_v21, 1  ;;  %v7239_v29 = vrot.slane %v7238_v49, 4 }
 0x7ae   : > { %v14051_v43 = vsel %vm7790_vm2, %v7601_v3, %v7865_v15  ;;  %v14053_v46 = vadd.f32 %v7236_v8, %v7235_v28  ;;  %v7249_v54 = vadd.f32 %v7248_v5, %v7247_v30  ;;  %v7598_v37 = vmul.f32 0.125, %v13978_v60 }
 0x7af   : > { %v14056_v40 = vmul.f32 0.125, %v7216_v20  ;;  %v7230_v26 = vadd.f32 %v7229_v9, %v7228_v21  ;;  %v7240_v27 = vadd.f32 %v7239_v29, %v7238_v49  ;;  %v7860_v58 = vsel %vm7792_vm3, %v13971_v10, %v13976_v19 }
 0x7b0   : > { %v7250_v45 = vrot.slane %v7249_v54, 1  ;;  %v7861_v4 = vsel %vm7794_vm4, %v13988_v0, %v7860_v58  ;;  %v6439_v15 = vadd.f32 %v14037_v44, %v13889_v57  ;;  %v6434_v39 = vadd.f32 %v14037_v44, %v13892_v63  ;;  %v14067_v48 = vpop.f32.mrb[194].mxu0 }
 0x7b1   : > { %v14069_v60 = vmul.f32 0.125, %v7230_v26  ;;  %v7241_v24 = vrot.slane %v7240_v27, 2  ;;  %v7862_v59 = vsel %vm7796_vm5, %v13973_v47, %v7861_v4  ;;  %v6449_v10 = vadd.f32 %v14037_v44, %v13896_v22  ;;  %v14075_v19 = vpop.f32.mrb[195].mxu0 }
 0x7b2   : > { %v7251_v0 = vadd.f32 %v7250_v45, %v7249_v54  ;;  %v7863_v57 = vsel %vm7798_vm6, %v14006_v23, %v7862_v59  ;;  %v7259_v38 = vsel %vm2944_vm0, %v6439_v15, 0.0  ;;  %v7252_v63 = vsel %vm2944_vm0, %v6434_v39, 0.0 }
 0x7b3   : > { %v7242_v14 = vadd.f32 %v7241_v24, %v7240_v27  ;;  %v7864_v16 = vsel %vm7800_vm7, %v7598_v37, %v7863_v57  ;;  %v7260_v11 = vrot.slane %v7259_v38, 4  ;;  %v7253_v28 = vrot.slane %v7252_v63, 4 }
 0x7b4   : > { %v7608_v30 = vmul.f32 0.125, %v7251_v0  ;;  %9907 = vmatmul.mubr.msk.f32.gmra.mrb[184].mxu1 %vm2944_vm0, %v7864_v16  ;;  %v7273_v22 = vsel %vm2944_vm0, %v6449_v10, 0.0  ;;  %v6444_v47 = vadd.f32 %v14037_v44, %v13899_v1  ;;  %v6459_v23 = vadd.f32 %v14037_v44, %v13909_v33 }
 0x7b5   : > { %v7243_v32 = vrot.slane %v7242_v14, 1  ;;  %v7261_v25 = vadd.f32 %v7260_v11, %v7259_v38  ;;  %v7254_v21 = vadd.f32 %v7253_v28, %v7252_v63  ;;  %v7274_v49 = vrot.slane %v7273_v22, 4 }
 0x7b6   : > { %v7266_v3 = vsel %vm2944_vm0, %v6444_v47, 0.0  ;;  %v7287_v8 = vsel %vm2944_vm0, %v6459_v23, 0.0  ;;  %v6454_v5 = vadd.f32 %v14037_v44, %v13913_v41  ;;  %v6469_v20 = vadd.f32 %v14037_v44, %v13932_v34 }
 0x7b7   : > { %v7244_v9 = vadd.f32 %v7243_v32, %v7242_v14  ;;  %v7262_v29 = vrot.slane %v7261_v25, 2  ;;  %v7255_v1 = vrot.slane %v7254_v21, 2  ;;  %v7275_v54 = vadd.f32 %v7274_v49, %v7273_v22 }
 0x7b8   : > { %v7267_v37 = vrot.slane %v7266_v3, 4  ;;  %v7288_v33 = vrot.slane %v7287_v8, 4  ;;  %v7280_v26 = vsel %vm2944_vm0, %v6454_v5, 0.0  ;;  %v7301_v27 = vsel %vm2944_vm0, %v6469_v20, 0.0  ;;  %v14096_v58 = vpop.f32.mrb[196].mxu0 }
 0x7b9   : > { %v7607_v45 = vmul.f32 0.125, %v7244_v9  ;;  %v7263_v4 = vadd.f32 %v7262_v29, %v7261_v25  ;;  %v7256_v15 = vadd.f32 %v7255_v1, %v7254_v21  ;;  %v7276_v39 = vrot.slane %v7275_v54, 2  ;;  %v14098_v41 = vpop.f32.mrb[197].mxu0 }
 0x7ba   : > { %v7268_v24 = vadd.f32 %v7267_v37, %v7266_v3  ;;  %v7289_v34 = vadd.f32 %v7288_v33, %v7287_v8  ;;  %v7281_v59 = vrot.slane %v7280_v26, 4  ;;  %v7302_v10 = vrot.slane %v7301_v27, 4 }
 0x7bb   : > { %v7872_v0 = vsel %vm7788_vm1, %v7608_v30, %v7607_v45  ;;  %v7264_v57 = vrot.slane %v7263_v4, 1  ;;  %v7257_v38 = vrot.slane %v7256_v15, 1  ;;  %v7277_v63 = vadd.f32 %v7276_v39, %v7275_v54 }
 0x7bc   : > { %v7269_v14 = vrot.slane %v7268_v24, 2  ;;  %v7290_v16 = vrot.slane %v7289_v34, 2  ;;  %v7282_v11 = vadd.f32 %v7281_v59, %v7280_v26  ;;  %v7303_v28 = vadd.f32 %v7302_v10, %v7301_v27  ;;  %v14101_v22 = vpop.f32.mrb[198].mxu0 }
 0x7bd   : > { %v7265_v47 = vadd.f32 %v7264_v57, %v7263_v4  ;;  %v7258_v23 = vadd.f32 %v7257_v38, %v7256_v15  ;;  %v7278_v32 = vrot.slane %v7277_v63, 1  ;;  %v6464_v25 = vadd.f32 %v14037_v44, %v13938_v50  ;;  %v14105_v21 = vpop.f32.mrb[199].mxu0 }
 0x7be   : > { %v7270_v49 = vadd.f32 %v7269_v14, %v7268_v24  ;;  %v7291_v3 = vadd.f32 %v7290_v16, %v7289_v34  ;;  %v7283_v30 = vrot.slane %v7282_v11, 2  ;;  %v7304_v8 = vrot.slane %v7303_v28, 2 }
 0x7bf   : > { %v14107_v5 = vmul.f32 0.125, %v7265_v47  ;;  %v7609_v20 = vmul.f32 0.125, %v7258_v23  ;;  %v7279_v9 = vadd.f32 %v7278_v32, %v7277_v63  ;;  %v7294_v29 = vsel %vm2944_vm0, %v6464_v25, 0.0 }
 0x7c0   : > { %v7271_v1 = vrot.slane %v7270_v49, 1  ;;  %v7292_v54 = vrot.slane %v7291_v3, 1  ;;  %v7284_v37 = vadd.f32 %v7283_v30, %v7282_v11  ;;  %v7305_v33 = vadd.f32 %v7304_v8, %v7303_v28 }
 0x7c1   : > { %v14111_v26 = vsel %vm7790_vm2, %v7609_v20, %v7872_v0  ;;  %v14113_v50 = vmul.f32 0.125, %v7279_v9  ;;  %v7295_v27 = vrot.slane %v7294_v29, 4  ;;  %v7606_v45 = vmul.f32 0.125, %v14053_v46  ;;  %v14116_v4 = vpop.f32.mrb[200].mxu0 }
 0x7c2   : > { %v7272_v15 = vadd.f32 %v7271_v1, %v7270_v49  ;;  %v14118_v39 = vadd.f32 %v7292_v54, %v7291_v3  ;;  %v7285_v24 = vrot.slane %v7284_v37, 1  ;;  %v7306_v34 = vrot.slane %v7305_v33, 1  ;;  %v14120_v59 = vpop.f32.mrb[201].mxu0 }
 0x7c3   : > { %v7296_v10 = vadd.f32 %v7295_v27, %v7294_v29  ;;  %v7867_v0 = vsel %vm7792_vm3, %v14046_v42, %v14051_v43  ;;  %v6479_v57 = vadd.f32 %v14037_v44, %v13951_v13  ;;  %v6474_v46 = vadd.f32 %v14037_v44, %v13955_v56 }
 0x7c4   : > { %v14129_v38 = vmul.f32 0.125, %v7272_v15  ;;  %v7286_v63 = vadd.f32 %v7285_v24, %v7284_v37  ;;  %v7307_v14 = vadd.f32 %v7306_v34, %v7305_v33  ;;  %v7868_v16 = vsel %vm7794_vm4, %v14056_v40, %v7867_v0 }
 0x7c5   : > { %v7297_v11 = vrot.slane %v7296_v10, 2  ;;  %v7869_v28 = vsel %vm7796_vm5, %v14048_v7, %v7868_v16  ;;  %v7315_v47 = vsel %vm2944_vm0, %v6479_v57, 0.0  ;;  %v7308_v42 = vsel %vm2944_vm0, %v6474_v46, 0.0  ;;  %v14137_v43 = vpop.f32.mrb[202].mxu0 }
 0x7c6   : > { %v14139_v13 = vmul.f32 0.125, %v7286_v63  ;;  %v7616_v56 = vmul.f32 0.125, %v7307_v14  ;;  %v7870_v23 = vsel %vm7798_vm6, %v14069_v60, %v7869_v28  ;;  %v7316_v32 = vrot.slane %v7315_v47, 4  ;;  %v14143_v25 = vpop.f32.mrb[203].mxu0 }
 0x7c7   : > { %v7298_v40 = vadd.f32 %v7297_v11, %v7296_v10  ;;  %v7871_v49 = vsel %vm7800_vm7, %v7606_v45, %v7870_v23  ;;  %v7309_v3 = vrot.slane %v7308_v42, 4  ;;  %v6489_v7 = vadd.f32 %v14037_v44, %v13959_v12 }
 0x7c8   : > { %9909 = vmatprep.mubr.msk.f32.mxu1 %vm2944_vm0, %v7871_v49  ;;  %v7317_v30 = vadd.f32 %v7316_v32, %v7315_v47  ;;  %v6484_v8 = vadd.f32 %v14037_v44, %v13962_v61  ;;  %v6499_v20 = vadd.f32 %v14037_v44, %v13966_v53  ;;  %v6494_v60 = vadd.f32 %v14037_v44, %v13969_v35 }
 0x7c9   : > { %v7299_v9 = vrot.slane %v7298_v40, 1  ;;  %v7310_v29 = vadd.f32 %v7309_v3, %v7308_v42  ;;  %v7329_v1 = vsel %vm2944_vm0, %v6489_v7, 0.0  ;;  %v6509_v54 = vadd.f32 %v14037_v44, %v13981_v55 }
 0x7ca   : > { %v7318_v12 = vrot.slane %v7317_v30, 2  ;;  %v7330_v37 = vrot.slane %v7329_v1, 4  ;;  %v7322_v33 = vsel %vm2944_vm0, %v6484_v8, 0.0  ;;  %v7343_v27 = vsel %vm2944_vm0, %v6499_v20, 0.0 }
 0x7cb   : > { %v7300_v61 = vadd.f32 %v7299_v9, %v7298_v40  ;;  %v7311_v45 = vrot.slane %v7310_v29, 2  ;;  %v7323_v15 = vrot.slane %v7322_v33, 4  ;;  %v7344_v53 = vrot.slane %v7343_v27, 4 }
 0x7cc   : > { %v7319_v24 = vadd.f32 %v7318_v12, %v7317_v30  ;;  %v7331_v34 = vadd.f32 %v7330_v37, %v7329_v1  ;;  %v7336_v35 = vsel %vm2944_vm0, %v6494_v60, 0.0  ;;  %v7357_v10 = vsel %vm2944_vm0, %v6509_v54, 0.0 }
 0x7cd   : > { %v7615_v0 = vmul.f32 0.125, %v7300_v61  ;;  %v7312_v57 = vadd.f32 %v7311_v45, %v7310_v29  ;;  %v7324_v46 = vadd.f32 %v7323_v15, %v7322_v33  ;;  %v7345_v55 = vadd.f32 %v7344_v53, %v7343_v27  ;;  %v14162_v63 = vpop.f32.mrb[204].mxu0 }
 0x7ce   : > { %v7320_v14 = vrot.slane %v7319_v24, 1  ;;  %v7332_v16 = vrot.slane %v7331_v34, 2  ;;  %v7337_v11 = vrot.slane %v7336_v35, 4  ;;  %v7358_v28 = vrot.slane %v7357_v10, 4  ;;  %v14164_v47 = vpop.f32.mrb[205].mxu0 }
 0x7cf   : > { %v7879_v42 = vsel %vm7788_vm1, %v7616_v56, %v7615_v0  ;;  %v7313_v23 = vrot.slane %v7312_v57, 1  ;;  %v7325_v32 = vrot.slane %v7324_v46, 2  ;;  %v7346_v40 = vrot.slane %v7345_v55, 2 }
 0x7d0   : > { %v7321_v49 = vadd.f32 %v7320_v14, %v7319_v24  ;;  %v7333_v3 = vadd.f32 %v7332_v16, %v7331_v34  ;;  %v7338_v7 = vadd.f32 %v7337_v11, %v7336_v35  ;;  %v7359_v30 = vadd.f32 %v7358_v28, %v7357_v10 }
 0x7d1   : > { %v7314_v8 = vadd.f32 %v7313_v23, %v7312_v57  ;;  %v7326_v20 = vadd.f32 %v7325_v32, %v7324_v46  ;;  %v7347_v60 = vadd.f32 %v7346_v40, %v7345_v55  ;;  %v6504_v9 = vadd.f32 %v14037_v44, %v13986_v2 }
 0x7d2   : > { %v14169_v29 = vmul.f32 0.125, %v7321_v49  ;;  %v7334_v1 = vrot.slane %v7333_v3, 1  ;;  %v7339_v54 = vrot.slane %v7338_v7, 2  ;;  %v7360_v12 = vrot.slane %v7359_v30, 2 }
 0x7d3   : > { %v7617_v37 = vmul.f32 0.125, %v7314_v8  ;;  %v7327_v56 = vrot.slane %v7326_v20, 1  ;;  %v7348_v33 = vrot.slane %v7347_v60, 1  ;;  %v7350_v27 = vsel %vm2944_vm0, %v6504_v9, 0.0 }
 0x7d4   : > { %v7335_v61 = vadd.f32 %v7334_v1, %v7333_v3  ;;  %v7340_v45 = vadd.f32 %v7339_v54, %v7338_v7  ;;  %v7361_v15 = vadd.f32 %v7360_v12, %v7359_v30  ;;  %v7351_v53 = vrot.slane %v7350_v27, 4  ;;  %v14172_v24 = vpop.f32.mrb[206].mxu0 }
 0x7d5   : > { %v14175_v34 = vsel %vm7790_vm2, %v7617_v37, %v7879_v42  ;;  %v7328_v2 = vadd.f32 %v7327_v56, %v7326_v20  ;;  %v14177_v35 = vadd.f32 %v7348_v33, %v7347_v60  ;;  %v7614_v10 = vmul.f32 0.125, %v14118_v39  ;;  %v14180_v0 = vpop.f32.mrb[207].mxu0 }
 0x7d6   : > { %v14182_v57 = vmul.f32 0.125, %v7335_v61  ;;  %v7341_v46 = vrot.slane %v7340_v45, 1  ;;  %v7362_v55 = vrot.slane %v7361_v15, 1  ;;  %v7352_v14 = vadd.f32 %v7351_v53, %v7350_v27 }
 0x7d7   : > { %v14184_v16 = vmul.f32 0.125, %v7328_v2  ;;  %v7874_v11 = vsel %vm7792_vm3, %v14107_v5, %v14111_v26  ;;  %v6519_v28 = vadd.f32 %v14037_v44, %v14004_v17  ;;  %v6514_v42 = vadd.f32 %v14037_v44, %v14009_v18 }
 0x7d8   : > { %v7342_v39 = vadd.f32 %v7341_v46, %v7340_v45  ;;  %v7363_v23 = vadd.f32 %v7362_v55, %v7361_v15  ;;  %v7353_v32 = vrot.slane %v7352_v14, 2  ;;  %v7875_v40 = vsel %vm7794_vm4, %v14129_v38, %v7874_v11 }
 0x7d9   : > { %v7876_v49 = vsel %vm7796_vm5, %v14113_v50, %v7875_v40  ;;  %v7371_v3 = vsel %vm2944_vm0, %v6519_v28, 0.0  ;;  %v7364_v7 = vsel %vm2944_vm0, %v6514_v42, 0.0  ;;  %v6529_v5 = vadd.f32 %v14037_v44, %v14022_v51 }
 0x7da   : > { %v14201_v17 = vmul.f32 0.125, %v7342_v39  ;;  %v7624_v26 = vmul.f32 0.125, %v7363_v23  ;;  %v7354_v18 = vadd.f32 %v7353_v32, %v7352_v14  ;;  %v7877_v30 = vsel %vm7798_vm6, %v14139_v13, %v7876_v49 }
 0x7db   : > { %v7878_v8 = vsel %vm7800_vm7, %v7614_v10, %v7877_v30  ;;  %v7372_v38 = vrot.slane %v7371_v3, 4  ;;  %v7365_v20 = vrot.slane %v7364_v7, 4  ;;  %v7385_v50 = vsel %vm2944_vm0, %v6529_v5, 0.0 }
 0x7dc   : > { %v7355_v60 = vrot.slane %v7354_v18, 1  ;;  %9910 = vmatmul.mubr.msk.f32.gmra.mrb[186].mxu1 %vm2944_vm0, %v7878_v8  ;;  %v7386_v9 = vrot.slane %v7385_v50, 4  ;;  %v6524_v51 = vadd.f32 %v14037_v44, %v14025_v52  ;;  %v6539_v1 = vadd.f32 %v14037_v44, %v14029_v36 }
 0x7dd   : > { %v7373_v54 = vadd.f32 %v7372_v38, %v7371_v3  ;;  %v7366_v12 = vadd.f32 %v7365_v20, %v7364_v7  ;;  %v6534_v13 = vadd.f32 %v14037_v44, %v14032_v62  ;;  %v6549_v37 = vadd.f32 %v14037_v44, %v14041_v31 }
 0x7de   : > { %v7356_v56 = vadd.f32 %v7355_v60, %v7354_v18  ;;  %v7387_v33 = vadd.f32 %v7386_v9, %v7385_v50  ;;  %v7378_v27 = vsel %vm2944_vm0, %v6524_v51, 0.0  ;;  %v7399_v61 = vsel %vm2944_vm0, %v6539_v1, 0.0 }
 0x7df   : > { %v7374_v45 = vrot.slane %v7373_v54, 2  ;;  %v7367_v15 = vrot.slane %v7366_v12, 2  ;;  %v7379_v52 = vrot.slane %v7378_v27, 4  ;;  %v7400_v53 = vrot.slane %v7399_v61, 4 }
 0x7e0   : > { %v7623_v2 = vmul.f32 0.125, %v7356_v56  ;;  %v7388_v36 = vrot.slane %v7387_v33, 2  ;;  %v7392_v10 = vsel %vm2944_vm0, %v6534_v13, 0.0  ;;  %v7413_v46 = vsel %vm2944_vm0, %v6549_v37, 0.0 }
 0x7e1   : > { %v7375_v62 = vadd.f32 %v7374_v45, %v7373_v54  ;;  %v7368_v55 = vadd.f32 %v7367_v15, %v7366_v12  ;;  %v7380_v14 = vadd.f32 %v7379_v52, %v7378_v27  ;;  %v7401_v31 = vadd.f32 %v7400_v53, %v7399_v61 }
 0x7e2   : > { %v7886_v11 = vsel %vm7788_vm1, %v7624_v26, %v7623_v2  ;;  %v7389_v28 = vadd.f32 %v7388_v36, %v7387_v33  ;;  %v7393_v42 = vrot.slane %v7392_v10, 4  ;;  %v7414_v39 = vrot.slane %v7413_v46, 4 }
 0x7e3   : > { %v7376_v23 = vrot.slane %v7375_v62, 1  ;;  %v7369_v32 = vrot.slane %v7368_v55, 1  ;;  %v7381_v40 = vrot.slane %v7380_v14, 2  ;;  %v7402_v49 = vrot.slane %v7401_v31, 2 }
 0x7e4   : > { %v7390_v3 = vrot.slane %v7389_v28, 1  ;;  %v7394_v7 = vadd.f32 %v7393_v42, %v7392_v10  ;;  %v7415_v5 = vadd.f32 %v7414_v39, %v7413_v46  ;;  %v6544_v18 = vadd.f32 %v14037_v44, %v14044_v6 }
 0x7e5   : > { %v7377_v30 = vadd.f32 %v7376_v23, %v7375_v62  ;;  %v7370_v8 = vadd.f32 %v7369_v32, %v7368_v55  ;;  %v7382_v38 = vadd.f32 %v7381_v40, %v7380_v14  ;;  %v7403_v20 = vadd.f32 %v7402_v49, %v7401_v31 }
 0x7e6   : > { %v7391_v50 = vadd.f32 %v7390_v3, %v7389_v28  ;;  %v7395_v60 = vrot.slane %v7394_v7, 2  ;;  %v7416_v26 = vrot.slane %v7415_v5, 2  ;;  %v7406_v9 = vsel %vm2944_vm0, %v6544_v18, 0.0 }
 0x7e7   : > { %v14224_v51 = vmul.f32 0.125, %v7377_v30  ;;  %v7625_v1 = vmul.f32 0.125, %v7370_v8  ;;  %v7383_v54 = vrot.slane %v7382_v38, 1  ;;  %v7404_v12 = vrot.slane %v7403_v20, 1  ;;  %v14226_v13 = vpop.f32.mrb[176].mxu1 }
 0x7e8   : > { %v14228_v37 = vmul.f32 0.125, %v7391_v50  ;;  %v7396_v56 = vadd.f32 %v7395_v60, %v7394_v7  ;;  %v7417_v6 = vadd.f32 %v7416_v26, %v7415_v5  ;;  %v7407_v33 = vrot.slane %v7406_v9, 4  ;;  %v14230_v27 = vpop.f32.mrb[177].mxu1 }
 0x7e9   : > { %v14233_v61 = vsel %vm7790_vm2, %v7625_v1, %v7886_v11  ;;  %v7384_v45 = vadd.f32 %v7383_v54, %v7382_v38  ;;  %v14235_v15 = vadd.f32 %v7404_v12, %v7403_v20  ;;  %v7622_v52 = vmul.f32 0.125, %v14177_v35 }
 0x7ea   : > { %v7397_v53 = vrot.slane %v7396_v56, 1  ;;  %v7418_v2 = vrot.slane %v7417_v6, 1  ;;  %v7408_v36 = vadd.f32 %v7407_v33, %v7406_v9  ;;  %v7881_v10 = vsel %vm7792_vm3, %v14169_v29, %v14175_v34 }
 0x7eb   : > { %v14241_v46 = vmul.f32 0.125, %v7384_v45  ;;  %v7882_v62 = vsel %vm7794_vm4, %v14184_v16, %v7881_v10  ;;  %v6559_v55 = vadd.f32 %v14037_v44, %v14067_v48  ;;  %v6554_v14 = vadd.f32 %v14037_v44, %v14075_v19 }
 0x7ec   : > { %v7398_v31 = vadd.f32 %v7397_v53, %v7396_v56  ;;  %v7419_v35 = vadd.f32 %v7418_v2, %v7417_v6  ;;  %v7409_v11 = vrot.slane %v7408_v36, 2  ;;  %v7883_v28 = vsel %vm7796_vm5, %v14182_v57, %v7882_v62 }
 0x7ed   : > { %v7884_v29 = vsel %vm7798_vm6, %v14201_v17, %v7883_v28  ;;  %v7427_v34 = vsel %vm2944_vm0, %v6559_v55, 0.0  ;;  %v7420_v42 = vsel %vm2944_vm0, %v6554_v14, 0.0  ;;  %v6569_v16 = vadd.f32 %v14037_v44, %v14096_v58 }
 0x7ee   : > { %v14257_v48 = vmul.f32 0.125, %v7398_v31  ;;  %v7632_v39 = vmul.f32 0.125, %v7419_v35  ;;  %v7410_v19 = vadd.f32 %v7409_v11, %v7408_v36  ;;  %v7885_v23 = vsel %vm7800_vm7, %v7622_v52, %v7884_v29 }
 0x7ef   : > { %9912 = vmatprep.mubr.msk.f32.mxu1 %vm2944_vm0, %v7885_v23  ;;  %v7428_v32 = vrot.slane %v7427_v34, 4  ;;  %v7421_v57 = vrot.slane %v7420_v42, 4  ;;  %v7441_v40 = vsel %vm2944_vm0, %v6569_v16, 0.0  ;;  %v6564_v17 = vadd.f32 %v14037_v44, %v14098_v41 }
 0x7f0   : > { %v7411_v49 = vrot.slane %v7410_v19, 1  ;;  %v7442_v3 = vrot.slane %v7441_v40, 4  ;;  %v6579_v58 = vadd.f32 %v14037_v44, %v14101_v22  ;;  %v6574_v7 = vadd.f32 %v14037_v44, %v14105_v21 }
 0x7f1   : > { %v7429_v5 = vadd.f32 %v7428_v32, %v7427_v34  ;;  %v7422_v18 = vadd.f32 %v7421_v57, %v7420_v42  ;;  %v7434_v30 = vsel %vm2944_vm0, %v6564_v17, 0.0  ;;  %v6589_v8 = vadd.f32 %v14037_v44, %v14116_v4 }
 0x7f2   : > { %v7412_v38 = vadd.f32 %v7411_v49, %v7410_v19  ;;  %v7443_v20 = vadd.f32 %v7442_v3, %v7441_v40  ;;  %v7435_v50 = vrot.slane %v7434_v30, 4  ;;  %v7455_v41 = vsel %vm2944_vm0, %v6579_v58, 0.0 }
 0x7f3   : > { %v7430_v60 = vrot.slane %v7429_v5, 2  ;;  %v7423_v26 = vrot.slane %v7422_v18, 2  ;;  %v7456_v9 = vrot.slane %v7455_v41, 4  ;;  %v7448_v22 = vsel %vm2944_vm0, %v6574_v7, 0.0 }
 0x7f4   : > { %v7631_v1 = vmul.f32 0.125, %v7412_v38  ;;  %v7444_v54 = vrot.slane %v7443_v20, 2  ;;  %v7436_v21 = vadd.f32 %v7435_v50, %v7434_v30  ;;  %v7449_v12 = vrot.slane %v7448_v22, 4 }
 0x7f5   : > { %v7431_v56 = vadd.f32 %v7430_v60, %v7429_v5  ;;  %v7424_v6 = vadd.f32 %v7423_v26, %v7422_v18  ;;  %v7457_v33 = vadd.f32 %v7456_v9, %v7455_v41  ;;  %v7469_v45 = vsel %vm2944_vm0, %v6589_v8, 0.0 }
 0x7f6   : > { %v7893_v4 = vsel %vm7788_vm1, %v7632_v39, %v7631_v1  ;;  %v7445_v52 = vadd.f32 %v7444_v54, %v7443_v20  ;;  %v7437_v53 = vrot.slane %v7436_v21, 2  ;;  %v7450_v2 = vadd.f32 %v7449_v12, %v7448_v22 }
 0x7f7   : > { %v7432_v36 = vrot.slane %v7431_v56, 1  ;;  %v7425_v10 = vrot.slane %v7424_v6, 1  ;;  %v7458_v62 = vrot.slane %v7457_v33, 2  ;;  %v7470_v55 = vrot.slane %v7469_v45, 4 }
 0x7f8   : > { %v7446_v14 = vrot.slane %v7445_v52, 1  ;;  %v7438_v31 = vadd.f32 %v7437_v53, %v7436_v21  ;;  %v7451_v35 = vrot.slane %v7450_v2, 2  ;;  %v6584_v11 = vadd.f32 %v14037_v44, %v14120_v59 }
 0x7f9   : > { %v7433_v28 = vadd.f32 %v7432_v36, %v7431_v56  ;;  %v7426_v29 = vadd.f32 %v7425_v10, %v7424_v6  ;;  %v7459_v34 = vadd.f32 %v7458_v62, %v7457_v33  ;;  %v7471_v42 = vadd.f32 %v7470_v55, %v7469_v45 }
 0x7fa   : > { %v7447_v16 = vadd.f32 %v7446_v14, %v7445_v52  ;;  %v7439_v19 = vrot.slane %v7438_v31, 1  ;;  %v7452_v39 = vadd.f32 %v7451_v35, %v7450_v2  ;;  %v7462_v23 = vsel %vm2944_vm0, %v6584_v11, 0.0 }
 0x7fb   : > { %v7634_v32 = vmul.f32 0.125, %v7433_v28  ;;  %v7633_v57 = vmul.f32 0.125, %v7426_v29  ;;  %v7460_v40 = vrot.slane %v7459_v34, 1  ;;  %v7472_v17 = vrot.slane %v7471_v42, 2 }
 0x7fc   : > { %v14278_v49 = vmul.f32 0.125, %v7447_v16  ;;  %v7440_v3 = vadd.f32 %v7439_v19, %v7438_v31  ;;  %v7453_v58 = vrot.slane %v7452_v39, 1  ;;  %v7463_v7 = vrot.slane %v7462_v23, 4 }
 0x7fd   : > { %v7894_v59 = vsel %vm7790_vm2, %v7633_v57, %v7893_v4  ;;  %v7461_v5 = vadd.f32 %v7460_v40, %v7459_v34  ;;  %v7473_v18 = vadd.f32 %v7472_v17, %v7471_v42  ;;  %v7630_v30 = vmul.f32 0.125, %v14235_v15 }
 0x7fe   : > { %v7635_v8 = vmul.f32 0.125, %v7440_v3  ;;  %v7454_v38 = vadd.f32 %v7453_v58, %v7452_v39  ;;  %v7464_v20 = vadd.f32 %v7463_v7, %v7462_v23  ;;  %v7888_v50 = vsel %vm7792_vm3, %v14224_v51, %v14233_v61 }
 0x7ff   : > { %v7474_v41 = vrot.slane %v7473_v18, 1  ;;  %v7889_v60 = vsel %vm7794_vm4, %v14241_v46, %v7888_v50  ;;  %v6599_v26 = vadd.f32 %v14037_v44, %v14137_v43  ;;  %v6594_v9 = vadd.f32 %v14037_v44, %v14143_v25  ;;  %v8826_v50 = vld [vmem:[%s14424_s2 + $0xa0] sm:$0xff] }
 0x800   : > { %v7637_v22 = vmul.f32 0.125, %v7454_v38  ;;  %v7465_v1 = vrot.slane %v7464_v20, 2  ;;  %v7890_v15 = vsel %vm7796_vm5, %v14228_v37, %v7889_v60  ;;  %v6609_v54 = vadd.f32 %v14037_v44, %v14162_v63 }
 0x801   : > { %v7475_v21 = vadd.f32 %v7474_v41, %v7473_v18  ;;  %v7891_v51 = vsel %vm7798_vm6, %v14257_v48, %v7890_v15  ;;  %v7483_v61 = vsel %vm2944_vm0, %v6599_v26, 0.0  ;;  %v7476_v46 = vsel %vm2944_vm0, %v6594_v9, 0.0  ;;  %v8827_v41 = vld [vmem:[%s14424_s2 + $0xa8] sm:$0xff] }
 0x802   : > { %v7466_v43 = vadd.f32 %v7465_v1, %v7464_v20  ;;  %v7892_v12 = vsel %vm7800_vm7, %v7630_v30, %v7891_v51  ;;  %v7484_v25 = vrot.slane %v7483_v61, 4  ;;  %v7477_v56 = vrot.slane %v7476_v46, 4  ;;  %v8829_v1 = vld [vmem:[%s14424_s2 + $0xb8] sm:$0xff] }
 0x803   : > { %v7640_v6 = vmul.f32 0.125, %v7475_v21  ;;  %9913 = vmatmul.mubr.msk.f32.gmra.mrb[188].mxu1 %vm2944_vm0, %v7892_v12  ;;  %v7497_v37 = vsel %vm2944_vm0, %v6609_v54, 0.0  ;;  %v6604_v63 = vadd.f32 %v14037_v44, %v14164_v47  ;;  %v6619_v48 = vadd.f32 %v14037_v44, %v14172_v24  ;;  %v14335_v12 = vld [vmem:[%s14425_s3 + $0x4] ss:$0 sm:$0xff] }
 0x804   : > { %v7467_v33 = vrot.slane %v7466_v43, 1  ;;  %v7485_v45 = vadd.f32 %v7484_v25, %v7483_v61  ;;  %v7478_v4 = vadd.f32 %v7477_v56, %v7476_v46  ;;  %v7498_v52 = vrot.slane %v7497_v37, 4 }
 0x805   : > { %v7490_v53 = vsel %vm2944_vm0, %v6604_v63, 0.0  ;;  %v7511_v2 = vsel %vm2944_vm0, %v6619_v48, 0.0  ;;  %v6614_v36 = vadd.f32 %v14037_v44, %v14180_v0  ;;  %v7638_v10 = vmul.f32 0.125, %v7461_v5 }
 0x806   : > { %v7468_v62 = vadd.f32 %v7467_v33, %v7466_v43  ;;  %v7486_v55 = vrot.slane %v7485_v45, 2  ;;  %v7479_v14 = vrot.slane %v7478_v4, 2  ;;  %v7499_v31 = vadd.f32 %v7498_v52, %v7497_v37 }
 0x807   : > { %v7491_v47 = vrot.slane %v7490_v53, 4  ;;  %v7512_v35 = vrot.slane %v7511_v2, 4  ;;  %v7504_v24 = vsel %vm2944_vm0, %v6614_v36, 0.0  ;;  %v7895_v11 = vsel %vm7792_vm3, %v7634_v32, %v7894_v59 }
 0x808   : > { %v7639_v28 = vmul.f32 0.125, %v7468_v62  ;;  %v7487_v29 = vadd.f32 %v7486_v55, %v7485_v45  ;;  %v7480_v34 = vadd.f32 %v7479_v14, %v7478_v4  ;;  %v7500_v42 = vrot.slane %v7499_v31, 2 }
 0x809   : > { %v7492_v16 = vadd.f32 %v7491_v47, %v7490_v53  ;;  %v7513_v19 = vadd.f32 %v7512_v35, %v7511_v2  ;;  %v7505_v39 = vrot.slane %v7504_v24, 4  ;;  %v7896_v44 = vsel %vm7794_vm4, %v7635_v8, %v7895_v11 }
 0x80a   : > { %v7900_v0 = vsel %vm7788_vm1, %v7640_v6, %v7639_v28  ;;  %v7488_v23 = vrot.slane %v7487_v29, 1  ;;  %v7481_v57 = vrot.slane %v7480_v34, 1  ;;  %v7501_v40 = vadd.f32 %v7500_v42, %v7499_v31 }
 0x80b   : > { %v7493_v17 = vrot.slane %v7492_v16, 2  ;;  %v7514_v3 = vrot.slane %v7513_v19, 2  ;;  %v7506_v58 = vadd.f32 %v7505_v39, %v7504_v24  ;;  %v7897_v32 = vsel %vm7796_vm5, %v14278_v49, %v7896_v44 }
 0x80c   : > { %v7489_v7 = vadd.f32 %v7488_v23, %v7487_v29  ;;  %v7482_v59 = vadd.f32 %v7481_v57, %v7480_v34  ;;  %v7502_v5 = vrot.slane %v7501_v40, 1  ;;  %v7898_v18 = vsel %vm7798_vm6, %v7637_v22, %v7897_v32  ;;  %v8828_v22 = vld [vmem:[%s14424_s2 + $0xb0] sm:$0xff] }
 0x80d   : > { %v7494_v30 = vadd.f32 %v7493_v17, %v7492_v16  ;;  %v7515_v38 = vadd.f32 %v7514_v3, %v7513_v19  ;;  %v7507_v20 = vrot.slane %v7506_v58, 2  ;;  %v7899_v8 = vsel %vm7800_vm7, %v7638_v10, %v7898_v18 }
 0x80e   : > { %v7641_v60 = vmul.f32 0.125, %v7482_v59  ;;  %9915 = vmatprep.mubr.msk.f32.mxu1 %vm2944_vm0, %v7899_v8  ;;  %v7642_v15 = vmul.f32 0.125, %v7489_v7  ;;  %v7503_v21 = vadd.f32 %v7502_v5, %v7501_v40  ;;  %v9982_v51 = vpack.c.bf16 %v8827_v41, %v8826_v50 }
 0x80f   : > { %v7495_v49 = vrot.slane %v7494_v30, 1  ;;  %v7516_v26 = vrot.slane %v7515_v38, 1  ;;  %v7508_v9 = vadd.f32 %v7507_v20, %v7506_v58  ;;  %v9986_v37 = vpack.c.bf16 %v8829_v1, %v8828_v22  ;;  %v8831_v1 = vld [vmem:[%s14425_s3 + $0x5] ss:$0 sm:$0xff] }
 0x810   : > { %v7901_v54 = vsel %vm7790_vm2, %v7641_v60, %v7900_v0  ;;  %v9899_v61 = vpop.f32.mrb[178].mxu1  ;;  %9983 = vmatprep.subr.bf16.mxu1 %v9982_v51  ;;  %v7644_v33 = vmul.f32 0.125, %v7503_v21  ;;  %v8006_v45 = vadd.f32 %v14335_v12, %v14230_v27  ;;  %v8011_v10 = vadd.f32 %v14226_v13, %v14335_v12 }
 0x811   : > { %v7496_v46 = vadd.f32 %v7495_v49, %v7494_v30  ;;  %v7509_v43 = vrot.slane %v7508_v9, 1  ;;  %v8015_v25 = vpop.f32.mrb[179].mxu1  ;;  %v7517_v56 = vadd.f32 %v7516_v26, %v7515_v38  ;;  %v7902_v6 = vsel %vm7792_vm3, %v7642_v15, %v7901_v54  ;;  %9985 = vmatpush3.bf16.msra.mxu1 %v9982_v51 }
 0x812   : > { %9987 = vmatprep.subr.bf16.mxu1 %v9986_v37  ;;  %v8016_v36 = vadd.f32 %v14335_v12, %v8015_v25  ;;  %v8084_v55 = vmax.f32 %v8006_v45, 0.0  ;;  %v8085_v31 = vmax.f32 %v8011_v10, 0.0  ;;  %v8021_v47 = vadd.f32 %v9899_v61, %v14335_v12 }
 0x813   : > { %v7643_v63 = vmul.f32 0.125, %v7496_v46  ;;  %v7510_v48 = vadd.f32 %v7509_v43, %v7508_v9  ;;  %v7646_v53 = vmul.f32 0.125, %v7517_v56 }
 0x814   : > { %v8086_v27 = vmax.f32 %v8016_v36, 0.0  ;;  %v8087_v35 = vmax.f32 %v8021_v47, 0.0 }
 0x815   : > { %v7645_v4 = vmul.f32 0.125, %v7510_v48  ;;  %v7903_v52 = vsel %vm7794_vm4, %v7643_v63, %v7902_v6  ;;  %9989 = vmatpush3.bf16.msra.mxu1 %v9986_v37 }
 0x816   : > { %v7904_v2 = vsel %vm7796_vm5, %v7644_v33, %v7903_v52 }
 0x817   : > { %v7905_v62 = vsel %vm7798_vm6, %v7645_v4, %v7904_v2 }
 0x818   : > { %v7906_v14 = vsel %vm7800_vm7, %v7646_v53, %v7905_v62 }
 0x819   : > { %9916 = vmatmul.mubr.msk.f32.gmra.mrb[190].mxu1 %vm2944_vm0, %v7906_v14 }
 0x81a   : > { %9926 = vmatprep.mubr.msk.f32.mxu1 %vm2944_vm0, %v8084_v55 }
 0x81d   : > { %9927 = vmatmul.mubr.msk.f32.vlgmr.msra.gmra.mrb[192].mxu1 %vm2944_vm0, %v8085_v31 }
 0x81e   : > { %9929 = vmatprep.mubr.msk.f32.mxu1 %vm2944_vm0, %v8086_v27 }
 0x821   : > { %9930 = vmatmul.mubr.msk.f32.gmra.mrb[194].mxu1 %vm2944_vm0, %v8087_v35 }
 0x838   : > { %v9902_v13 = vpop.f32.mrb[180].mxu1 }
 0x839   : > { %v8031_v24 = vadd.f32 %v9902_v13, %v14335_v12  ;;  %v8025_v11 = vpop.f32.mrb[181].mxu1 }
 0x83a   : > { %v8026_v28 = vadd.f32 %v14335_v12, %v8025_v11 }
 0x83b   : > { %v8089_v34 = vmax.f32 %v8031_v24, 0.0 }
 0x83c   : > { %v8088_v29 = vmax.f32 %v8026_v28, 0.0 }
 0x83e   : > { %9932 = vmatprep.mubr.msk.f32.mxu1 %vm2944_vm0, %v8088_v29 }
 0x83f   : > { %9933 = vmatmul.mubr.msk.f32.gmra.mrb[196].mxu1 %vm2944_vm0, %v8089_v34 }
 0x860   : > { %v9905_v42 = vpop.f32.mrb[182].mxu1 }
 0x861   : > { %v8041_v16 = vadd.f32 %v9905_v42, %v14335_v12  ;;  %v8035_v19 = vpop.f32.mrb[183].mxu1 }
 0x862   : > { %v8036_v39 = vadd.f32 %v14335_v12, %v8035_v19 }
 0x863   : > { %v8091_v0 = vmax.f32 %v8041_v16, 0.0 }
 0x864   : > { %v8090_v44 = vmax.f32 %v8036_v39, 0.0 }
 0x866   : > { %9935 = vmatprep.mubr.msk.f32.mxu1 %vm2944_vm0, %v8090_v44 }
 0x867   : > { %9936 = vmatmul.mubr.msk.f32.gmra.mrb[198].mxu1 %vm2944_vm0, %v8091_v0 }
 0x887   : > { %v9908_v23 = vpop.f32.mrb[184].mxu1 }
 0x888   : > { %v8051_v57 = vadd.f32 %v9908_v23, %v14335_v12  ;;  %v8045_v40 = vpop.f32.mrb[185].mxu1 }
 0x889   : > { %v8046_v17 = vadd.f32 %v14335_v12, %v8045_v40 }
 0x88a   : > { %v8093_v58 = vmax.f32 %v8051_v57, 0.0 }
 0x88b   : > { %v8092_v3 = vmax.f32 %v8046_v17, 0.0 }
 0x88d   : > { %9938 = vmatprep.mubr.msk.f32.mxu1 %vm2944_vm0, %v8092_v3 }
 0x88e   : > { %9939 = vmatmul.mubr.msk.f32.gmra.mrb[200].mxu1 %vm2944_vm0, %v8093_v58 }
 0x8af   : > { %v9911_v32 = vpop.f32.mrb[186].mxu1 }
 0x8b0   : > { %v8061_v7 = vadd.f32 %v9911_v32, %v14335_v12  ;;  %v8055_v59 = vpop.f32.mrb[187].mxu1 }
 0x8b1   : > { %v8056_v5 = vadd.f32 %v14335_v12, %v8055_v59 }
 0x8b2   : > { %v8095_v30 = vmax.f32 %v8061_v7, 0.0 }
 0x8b3   : > { %v8094_v18 = vmax.f32 %v8056_v5, 0.0 }
 0x8b5   : > { %9941 = vmatprep.mubr.msk.f32.mxu1 %vm2944_vm0, %v8094_v18 }
 0x8b6   : > { %9942 = vmatmul.mubr.msk.f32.gmra.mrb[202].mxu1 %vm2944_vm0, %v8095_v30 }
 0x8d6   : > { %v9914_v38 = vpop.f32.mrb[188].mxu1 }
 0x8d7   : > { %v8071_v20 = vadd.f32 %v9914_v38, %v14335_v12  ;;  %v8065_v8 = vpop.f32.mrb[189].mxu1 }
 0x8d8   : > { %v8066_v50 = vadd.f32 %v14335_v12, %v8065_v8 }
 0x8d9   : > { %v8097_v60 = vmax.f32 %v8071_v20, 0.0 }
 0x8da   : > { %v8096_v41 = vmax.f32 %v8066_v50, 0.0 }
 0x8dc   : > { %9944 = vmatprep.mubr.msk.f32.mxu1 %vm2944_vm0, %v8096_v41 }
 0x8dd   : > { %9945 = vmatmul.mubr.msk.f32.gmra.mrb[204].mxu1 %vm2944_vm0, %v8097_v60 }
 0x8ec   : > { %v9917_v49 = vpop.f32.mrb[190].mxu1 }
 0x8ed   : > { %v8081_v26 = vadd.f32 %v9917_v49, %v14335_v12  ;;  %v8075_v9 = vpop.f32.mrb[191].mxu1 }
 0x8ee   : > { %v8076_v22 = vadd.f32 %v14335_v12, %v8075_v9 }
 0x8ef   : > { %v8099_v21 = vmax.f32 %v8081_v26, 0.0 }
 0x8f0   : > { %v8098_v15 = vmax.f32 %v8076_v22, 0.0  ;;  %v9928_v54 = vpop.f32.mrb[192].mxu1 }
 0x8f1   : > { %v8233_v51 = vadd.f32 %v9928_v54, %v8831_v1  ;;  %v8227_v61 = vpop.f32.mrb[193].mxu1 }
 0x8f2   : > { %v8228_v46 = vadd.f32 %v8831_v1, %v8227_v61  ;;  %9947 = vmatprep.mubr.msk.f32.mxu1 %vm2944_vm0, %v8098_v15 }
 0x8f3   : > { %8307 = vst.msk [vmem:[%s14383_s27 + $0x8] sm:$0xff] %vm2944_vm0, %v8233_v51  ;;  %9948 = vmatmul.mubr.msk.f32.gmra.mrb[206].mxu1 %vm2944_vm0, %v8099_v21 }
 0x8f4   : > { %8306 = vst.msk [vmem:[%s14383_s27] sm:$0xff] %vm2944_vm0, %v8228_v46  ;;  %v9931_v43 = vpop.f32.mrb[194].mxu1 }
 0x8f5   : > { %v8243_v12 = vadd.f32 %v9931_v43, %v8831_v1  ;;  %v8237_v25 = vpop.f32.mrb[195].mxu1 }
 0x8f6   : > { %v8238_v56 = vadd.f32 %v8831_v1, %v8237_v25 }
 0x8f7   : > { %8309 = vst.msk [vmem:[%s14383_s27 + $0x18] sm:$0xff] %vm2944_vm0, %v8243_v12 }
 0x8f8   : > { %8308 = vst.msk [vmem:[%s14383_s27 + $0x10] sm:$0xff] %vm2944_vm0, %v8238_v56 }
 0x912   : > { %v9934_v6 = vpop.f32.mrb[196].mxu1 }
 0x913   : > { %v8253_v37 = vadd.f32 %v9934_v6, %v8831_v1  ;;  %v8247_v63 = vpop.f32.mrb[197].mxu1 }
 0x914   : > { %v8248_v48 = vadd.f32 %v8831_v1, %v8247_v63 }
 0x915   : > { %8311 = vst.msk [vmem:[%s14383_s27 + $0x28] sm:$0xff] %vm2944_vm0, %v8253_v37 }
 0x916   : > { %8310 = vst.msk [vmem:[%s14383_s27 + $0x20] sm:$0xff] %vm2944_vm0, %v8248_v48 }
 0x93a   : > { %v9937_v33 = vpop.f32.mrb[198].mxu1 }
 0x93b   : > { %v8263_v45 = vadd.f32 %v9937_v33, %v8831_v1  ;;  %v8257_v4 = vpop.f32.mrb[199].mxu1 }
 0x93c   : > { %v8258_v52 = vadd.f32 %v8831_v1, %v8257_v4 }
 0x93d   : > { %8313 = vst.msk [vmem:[%s14383_s27 + $0x38] sm:$0xff] %vm2944_vm0, %v8263_v45 }
 0x93e   : > { %8312 = vst.msk [vmem:[%s14383_s27 + $0x30] sm:$0xff] %vm2944_vm0, %v8258_v52 }
 0x961   : > { %v9940_v53 = vpop.f32.mrb[200].mxu1 }
 0x962   : > { %v8273_v2 = vadd.f32 %v9940_v53, %v8831_v1  ;;  %v8267_v36 = vpop.f32.mrb[201].mxu1 }
 0x963   : > { %v8268_v10 = vadd.f32 %v8831_v1, %v8267_v36 }
 0x964   : > { %8315 = vst.msk [vmem:[%s14383_s27 + $0x48] sm:$0xff] %vm2944_vm0, %v8273_v2 }
 0x965   : > { %8314 = vst.msk [vmem:[%s14383_s27 + $0x40] sm:$0xff] %vm2944_vm0, %v8268_v10 }
 0x989   : > { %v9943_v62 = vpop.f32.mrb[202].mxu1 }
 0x98a   : > { %v8283_v55 = vadd.f32 %v9943_v62, %v8831_v1  ;;  %v8277_v14 = vpop.f32.mrb[203].mxu1 }
 0x98b   : > { %v8278_v27 = vadd.f32 %v8831_v1, %v8277_v14 }
 0x98c   : > { %8317 = vst.msk [vmem:[%s14383_s27 + $0x58] sm:$0xff] %vm2944_vm0, %v8283_v55 }
 0x98d   : > { %8316 = vst.msk [vmem:[%s14383_s27 + $0x50] sm:$0xff] %vm2944_vm0, %v8278_v27 }
 0x9b0   : > { %v9946_v31 = vpop.f32.mrb[204].mxu1 }
 0x9b1   : > { %v8293_v47 = vadd.f32 %v9946_v31, %v8831_v1  ;;  %v8287_v35 = vpop.f32.mrb[205].mxu1 }
 0x9b2   : > { %v8288_v13 = vadd.f32 %v8831_v1, %v8287_v35 }
 0x9b3   : > { %8319 = vst.msk [vmem:[%s14383_s27 + $0x68] sm:$0xff] %vm2944_vm0, %v8293_v47 }
 0x9b4   : > { %8318 = vst.msk [vmem:[%s14383_s27 + $0x60] sm:$0xff] %vm2944_vm0, %v8288_v13 }
 0x9c6   : > { %v9949_v24 = vpop.f32.mrb[206].mxu1 }
 0x9c7   : > { %v8303_v11 = vadd.f32 %v9949_v24, %v8831_v1  ;;  %v8297_v28 = vpop.f32.mrb[207].mxu1 }
 0x9c8   : > { %v8298_v29 = vadd.f32 %v8831_v1, %v8297_v28 }
 0x9c9   : > { %8321 = vst.msk [vmem:[%s14383_s27 + $0x78] sm:$0xff] %vm2944_vm0, %v8303_v11 }
 0x9ca   : > { %8320 = vst.msk [vmem:[%s14383_s27 + $0x70] sm:$0xff] %vm2944_vm0, %v8298_v29 }
 0x9cb PF: > { %s14_s15 = sadd.s32 1, %s10285_s15  }
 0x9cc   : > { %p11_p5 = scmp.ge.s32.totalorder %s14_s15, 10  }
 0x9ce   :  { %13 = sbr.rel (!%p11_p5) target bundleno = 1 (0x1), region = 79 }

</bundles_post_ra>
